<compile_context>
chip_gen: v6e
topology: v6e:2x2x1
jax: 0.10.0
libtpu: 0.0.40
codegen_flags: <defaults>
</compile_context>

<pallas_src>
import functools

import jax
import jax.numpy as jnp
from jax.experimental import pallas as pl
from jax.experimental.pallas import tpu as pltpu

_K = 5  # conv kernel size (fixed by the module)


# ----------------------------- fused kernel --------------------------------


def _pool2x2_relu(y_ref, pitch, hp, wp):
    """Max-pool 2x2 (+ relu) on a flat-plane VMEM ref (rows = i*pitch + j)."""
    lp = (hp - 1) * pitch + wp
    m = None
    for a in (0, 1):
        for b in (0, 1):
            start = a * pitch + b
            if lp > 1:
                v = y_ref[pl.ds(start, lp, stride=2), :]   # rows start, start+2, ...
            else:
                v = y_ref[pl.ds(start, 1), :]
            m = v if m is None else jnp.maximum(m, v)
    # relu(max_pool(x)) == max_pool(relu(x)); relu applied after the max.
    return jnp.maximum(m, 0.0)


def _fused_forward_kernel(x_ref, w1_ref, b1_ref, w2_ref, b2_ref,
                          wf1_ref, bf1_ref, wf2_ref, bf2_ref,
                          out_ref, y1_ref, y2_ref, *,
                          pitch, ho1, wo1, h1p, w1p, ho2, wo2, h2p, w2p):
    c1out = w1_ref.shape[-1]
    c2out = w2_ref.shape[-1]
    nfc1 = wf1_ref.shape[-1]

    # ---- conv1: 25 shifted-slice matmuls accumulated in f32 (in-VMEM im2col) ----
    l1 = (ho1 - 1) * pitch + wo1
    acc1 = jnp.zeros((l1, c1out), jnp.float32)
    for di in range(_K):
        for dj in range(_K):
            xs = x_ref[pl.ds(di * pitch + dj, l1), :]            # (l1, Cin)
            acc1 = acc1 + jnp.dot(xs, w1_ref[di * _K + dj],
                                  preferred_element_type=jnp.float32)
    y1_ref[...] = acc1 + b1_ref[...]

    # ---- maxpool 2x2 + relu (fused epilogue, stride-2 VMEM loads) ----
    p1 = _pool2x2_relu(y1_ref, pitch, h1p, w1p)                  # (lp1, C1out)

    # ---- conv2 (same shifted-slice accumulation; dropout2d is identity) ----
    l2 = (ho2 - 1) * pitch + wo2
    acc2 = jnp.zeros((l2, c2out), jnp.float32)
    for di in range(_K):
        for dj in range(_K):
            off = di * pitch + dj
            acc2 = acc2 + jnp.dot(p1[off:off + l2, :], w2_ref[di * _K + dj],
                                  preferred_element_type=jnp.float32)
    y2_ref[...] = acc2 + b2_ref[...]

    # ---- maxpool 2x2 + relu ----
    p2 = _pool2x2_relu(y2_ref, pitch, h2p, w2p)                  # (lp2, C2out)

    # ---- fc1 + relu: accumulate one (1,C2out)x(C2out,60) matmul per spatial
    #      position (avoids any in-kernel reshape/flatten); dropout is identity.
    accf = jnp.zeros((1, nfc1), jnp.float32)
    for p in range(h2p):
        for q in range(w2p):
            row = p2[p * pitch + q: p * pitch + q + 1, :]        # (1, C2out)
            accf = accf + jnp.dot(row, wf1_ref[p * w2p + q],
                                  preferred_element_type=jnp.float32)
    h1 = jnp.maximum(accf + bf1_ref[...], 0.0)                   # (1, 60)

    # ---- fc2 + softmax ----
    logits = jnp.dot(h1, wf2_ref[...],
                     preferred_element_type=jnp.float32) + bf2_ref[...]
    mx = jnp.max(logits, axis=-1, keepdims=True)
    e = jnp.exp(logits - mx)
    denom = jnp.sum(e, axis=-1, keepdims=True)
    out_ref[...] = (e * pl.reciprocal(denom, approx=True)).astype(out_ref.dtype)


# ------------------------------ wrappers ------------------------------------


def prepare_params(params, h, w):
    """One-time weight re-layout into kernel-friendly shapes (feedback: no per-call .T)."""
    h1p, w1p = (h - 4) // 2, (w - 4) // 2
    h2p, w2p = (h1p - 4) // 2, (w1p - 4) // 2
    cout1, cin1 = params["w1"].shape[0], params["w1"].shape[1]
    cout2, cin2 = params["w2"].shape[0], params["w2"].shape[1]
    nfc1 = params["wf1"].shape[0]
    ncls = params["wf2"].shape[0]
    f32 = jnp.float32

    # conv taps: (Cout, Cin, kh, kw) -> (kh*kw, Cin, Cout)
    w1k = params["w1"].transpose(2, 3, 1, 0).reshape(_K * _K, cin1, cout1)
    w2k = params["w2"].transpose(2, 3, 1, 0).reshape(_K * _K, cin2, cout2)
    # fc1: reorder rows from torch's (C, H, W) flatten to per-spatial (H*W, C, 60)
    wf1k = (params["wf1"].reshape(nfc1, cout2, h2p, w2p)
            .transpose(2, 3, 1, 0).reshape(h2p * w2p, cout2, nfc1))
    wf2k = params["wf2"].T                                       # (60, 5)

    return dict(
        w1=w1k.astype(f32), b1=params["b1"].reshape(1, cout1).astype(f32),
        w2=w2k.astype(f32), b2=params["b2"].reshape(1, cout2).astype(f32),
        wf1=wf1k.astype(f32), bf1=params["bf1"].reshape(1, nfc1).astype(f32),
        wf2=wf2k.astype(f32), bf2=params["bf2"].reshape(1, ncls).astype(f32),
    )


def forward(kp, x):
    """x: (N, 3, H, W) NCHW -> softmax probabilities (N, 5). Single fused kernel."""
    n, c, h, w = x.shape
    ho1, wo1 = h - 4, w - 4
    h1p, w1p = ho1 // 2, wo1 // 2
    ho2, wo2 = h1p - 4, w1p - 4
    h2p, w2p = ho2 // 2, wo2 // 2
    l1 = (ho1 - 1) * w + wo1
    l2 = (ho2 - 1) * w + wo2
    c1out = kp["w1"].shape[-1]
    c2out = kp["w2"].shape[-1]
    ncls = kp["wf2"].shape[-1]

    # NCHW -> channels-last flat plane (N, H*W, C); only layout op outside the kernel.
    xf = x.transpose(0, 2, 3, 1).reshape(n, h * w, c).astype(jnp.float32)

    kernel = functools.partial(
        _fused_forward_kernel,
        pitch=w, ho1=ho1, wo1=wo1, h1p=h1p, w1p=w1p,
        ho2=ho2, wo2=wo2, h2p=h2p, w2p=w2p)

    def full(a):
        return pl.BlockSpec(a.shape, lambda i, nd=a.ndim: (0,) * nd)

    out = pl.pallas_call(
        kernel,
        out_shape=jax.ShapeDtypeStruct((n, 1, ncls), jnp.float32),
        grid=(n,),
        in_specs=[
            pl.BlockSpec((None, h * w, c), lambda i: (i, 0, 0)),  # one sample/step
            full(kp["w1"]), full(kp["b1"]),
            full(kp["w2"]), full(kp["b2"]),
            full(kp["wf1"]), full(kp["bf1"]),
            full(kp["wf2"]), full(kp["bf2"]),
        ],
        out_specs=pl.BlockSpec((None, 1, ncls), lambda i: (i, 0, 0)),
        scratch_shapes=[
            pltpu.VMEM((l1, c1out), jnp.float32),   # conv1 output plane
            pltpu.VMEM((l2, c2out), jnp.float32),   # conv2 output plane
        ],
        compiler_params=pltpu.CompilerParams(
            dimension_semantics=("parallel",)),
    )(xf, kp["w1"], kp["b1"], kp["w2"], kp["b2"],
      kp["wf1"], kp["bf1"], kp["wf2"], kp["bf2"])
    return out.reshape(n, ncls)


# ------------------------- reference & init ----------------------------------


def reference_forward(params, x):
    """Pure-JAX/XLA reference of the PyTorch module (eval mode)."""
    hi = jax.lax.Precision.HIGHEST
    dn = ("NCHW", "OIHW", "NCHW")
    y = jax.lax.conv_general_dilated(x, params["w1"], (1, 1), "VALID",
                                     dimension_numbers=dn, precision=hi)
    y = y + params["b1"][None, :, None, None]
    y = jax.lax.reduce_window(y, -jnp.inf, jax.lax.max, (1, 1, 2, 2), (1, 1, 2, 2), "VALID")
    y = jnp.maximum(y, 0.0)
    y = jax.lax.conv_general_dilated(y, params["w2"], (1, 1), "VALID",
                                     dimension_numbers=dn, precision=hi)
    y = y + params["b2"][None, :, None, None]
    y = jax.lax.reduce_window(y, -jnp.inf, jax.lax.max, (1, 1, 2, 2), (1, 1, 2, 2), "VALID")
    y = jnp.maximum(y, 0.0)
    y = y.reshape(y.shape[0], -1)
    y = jnp.maximum(jnp.dot(y, params["wf1"].T, precision=hi) + params["bf1"], 0.0)
    logits = jnp.dot(y, params["wf2"].T, precision=hi) + params["bf2"]
    return jax.nn.softmax(logits, axis=-1)


def init_params(key, h, w):
    """Deterministic PyTorch-like uniform init; shapes from the module __init__."""
    h1 = (h - 5 + 1) // 2
    w1 = (w - 5 + 1) // 2
    h2 = (h1 - 4) // 2
    w2 = (w1 - 4) // 2
    k = 20 * h2 * w2
    keys = jax.random.split(key, 8)

    def u(kk, shape, fan_in):
        bound = 1.0 / (fan_in ** 0.5)
        return jax.random.uniform(kk, shape, jnp.float32, -bound, bound)

    params = dict(
        w1=u(keys[0], (10, 3, 5, 5), 3 * 25), b1=u(keys[1], (10,), 3 * 25),
        w2=u(keys[2], (20, 10, 5, 5), 10 * 25), b2=u(keys[3], (20,), 10 * 25),
        wf1=u(keys[4], (60, k), k), bf1=u(keys[5], (60,), k),
        wf2=u(keys[6], (5, 60), 60), bf2=u(keys[7], (5,), 60),
    )
    return params, k


if __name__ == "__main__":
    key = jax.random.PRNGKey(0)
    pkey, xkey = jax.random.split(key)
    H = W = 16  # -> h1=w1=6, h2=w2=1, k = 20
    params, kdim = init_params(pkey, H, W)
    x = jax.random.normal(xkey, (2, 3, H, W), dtype=jnp.float32)

    kparams = prepare_params(params, H, W)
    fwd = jax.jit(forward)
    out = jax.block_until_ready(fwd(kparams, x))
    ref = jax.block_until_ready(reference_forward(params, x))

    assert out.shape == (2, 5)
    assert bool(jnp.all(jnp.isfinite(out)))
    # softmax rows sum to ~1 (approx reciprocal in the kernel)
    assert bool(jnp.allclose(jnp.sum(out, axis=-1), 1.0, atol=2e-2))
    # matches the pure-JAX reference of the PyTorch module
    assert bool(jnp.allclose(out, ref, atol=2e-2))
    print("KERNEL_OK")
</pallas_src>

<mosaic_0001>
module attributes {stable_mosaic.version = 11 : i64} {
  func.func @_fused_forward_kernel(%arg0: i32, %arg1: memref<1x256x3xf32, #tpu.memory_space<vmem>>, %arg2: memref<25x3x10xf32, #tpu.memory_space<vmem>>, %arg3: memref<1x10xf32, #tpu.memory_space<vmem>>, %arg4: memref<25x10x20xf32, #tpu.memory_space<vmem>>, %arg5: memref<1x20xf32, #tpu.memory_space<vmem>>, %arg6: memref<1x20x60xf32, #tpu.memory_space<vmem>>, %arg7: memref<1x60xf32, #tpu.memory_space<vmem>>, %arg8: memref<60x5xf32, #tpu.memory_space<vmem>>, %arg9: memref<1x5xf32, #tpu.memory_space<vmem>>, %arg10: memref<1x1x5xf32, #tpu.memory_space<vmem>>, %arg11: memref<188x10xf32, #tpu.memory_space<vmem>>, %arg12: memref<18x20xf32, #tpu.memory_space<vmem>>) attributes {dimension_semantics = [#tpu.dimension_semantics<parallel>], iteration_bounds = array<i64: 2>, scalar_prefetch = 0 : i64, scratch_operands = 2 : i64, tpu.core_type = #tpu.core_type<tc>, window_params = [{transform_indices = @transform_0, window_bounds = array<i64: 1, 256, 3>}, {pipeline_mode = #tpu.pipeline_mode<synchronous>, transform_indices = @transform_1, window_bounds = array<i64: 25, 3, 10>}, {pipeline_mode = #tpu.pipeline_mode<synchronous>, transform_indices = @transform_2, window_bounds = array<i64: 1, 10>}, {pipeline_mode = #tpu.pipeline_mode<synchronous>, transform_indices = @transform_3, window_bounds = array<i64: 25, 10, 20>}, {pipeline_mode = #tpu.pipeline_mode<synchronous>, transform_indices = @transform_4, window_bounds = array<i64: 1, 20>}, {pipeline_mode = #tpu.pipeline_mode<synchronous>, transform_indices = @transform_5, window_bounds = array<i64: 1, 20, 60>}, {pipeline_mode = #tpu.pipeline_mode<synchronous>, transform_indices = @transform_6, window_bounds = array<i64: 1, 60>}, {pipeline_mode = #tpu.pipeline_mode<synchronous>, transform_indices = @transform_7, window_bounds = array<i64: 60, 5>}, {pipeline_mode = #tpu.pipeline_mode<synchronous>, transform_indices = @transform_8, window_bounds = array<i64: 1, 5>}, {transform_indices = @transform_9, window_bounds = array<i64: 1, 1, 5>}]} {
    %cst = arith.constant 0.000000e+00 : f32
    %0 = vector.broadcast %cst : f32 to vector<188x10xf32>
    %c0 = arith.constant 0 : index
    %c0_0 = arith.constant 0 : index
    %c0_1 = arith.constant 0 : index
    %1 = vector.load %arg1[%c0, %c0_0, %c0_1] : memref<1x256x3xf32, #tpu.memory_space<vmem>>, vector<1x188x3xf32>
    %2 = vector.shape_cast %1 : vector<1x188x3xf32> to vector<188x3xf32>
    %c0_2 = arith.constant 0 : index
    %c0_3 = arith.constant 0 : index
    %c0_4 = arith.constant 0 : index
    %3 = vector.load %arg2[%c0_2, %c0_3, %c0_4] : memref<25x3x10xf32, #tpu.memory_space<vmem>>, vector<1x3x10xf32>
    %4 = vector.shape_cast %3 : vector<1x3x10xf32> to vector<3x10xf32>
    %cst_5 = arith.constant dense<0.000000e+00> : vector<188x10xf32>
    %5 = tpu.matmul %2, %4, %cst_5 {dimension_numbers = #tpu.dot_dimension_numbers<[1], [0], [0], [1], [0, 0, 1, 1], [], []>} : vector<188x3xf32>, vector<3x10xf32>, vector<188x10xf32> -> vector<188x10xf32>
    %6 = arith.addf %0, %5 : vector<188x10xf32>
    %c0_6 = arith.constant 0 : index
    %c1 = arith.constant 1 : index
    %c0_7 = arith.constant 0 : index
    %7 = vector.load %arg1[%c0_6, %c1, %c0_7] : memref<1x256x3xf32, #tpu.memory_space<vmem>>, vector<1x188x3xf32>
    %8 = vector.shape_cast %7 : vector<1x188x3xf32> to vector<188x3xf32>
    %c1_8 = arith.constant 1 : index
    %c0_9 = arith.constant 0 : index
    %c0_10 = arith.constant 0 : index
    %9 = vector.load %arg2[%c1_8, %c0_9, %c0_10] : memref<25x3x10xf32, #tpu.memory_space<vmem>>, vector<1x3x10xf32>
    %10 = vector.shape_cast %9 : vector<1x3x10xf32> to vector<3x10xf32>
    %cst_11 = arith.constant dense<0.000000e+00> : vector<188x10xf32>
    %11 = tpu.matmul %8, %10, %cst_11 {dimension_numbers = #tpu.dot_dimension_numbers<[1], [0], [0], [1], [0, 0, 1, 1], [], []>} : vector<188x3xf32>, vector<3x10xf32>, vector<188x10xf32> -> vector<188x10xf32>
    %12 = arith.addf %6, %11 : vector<188x10xf32>
    %c0_12 = arith.constant 0 : index
    %c2 = arith.constant 2 : index
    %c0_13 = arith.constant 0 : index
    %13 = vector.load %arg1[%c0_12, %c2, %c0_13] : memref<1x256x3xf32, #tpu.memory_space<vmem>>, vector<1x188x3xf32>
    %14 = vector.shape_cast %13 : vector<1x188x3xf32> to vector<188x3xf32>
    %c2_14 = arith.constant 2 : index
    %c0_15 = arith.constant 0 : index
    %c0_16 = arith.constant 0 : index
    %15 = vector.load %arg2[%c2_14, %c0_15, %c0_16] : memref<25x3x10xf32, #tpu.memory_space<vmem>>, vector<1x3x10xf32>
    %16 = vector.shape_cast %15 : vector<1x3x10xf32> to vector<3x10xf32>
    %cst_17 = arith.constant dense<0.000000e+00> : vector<188x10xf32>
    %17 = tpu.matmul %14, %16, %cst_17 {dimension_numbers = #tpu.dot_dimension_numbers<[1], [0], [0], [1], [0, 0, 1, 1], [], []>} : vector<188x3xf32>, vector<3x10xf32>, vector<188x10xf32> -> vector<188x10xf32>
    %18 = arith.addf %12, %17 : vector<188x10xf32>
    %c0_18 = arith.constant 0 : index
    %c3 = arith.constant 3 : index
    %c0_19 = arith.constant 0 : index
    %19 = vector.load %arg1[%c0_18, %c3, %c0_19] : memref<1x256x3xf32, #tpu.memory_space<vmem>>, vector<1x188x3xf32>
    %20 = vector.shape_cast %19 : vector<1x188x3xf32> to vector<188x3xf32>
    %c3_20 = arith.constant 3 : index
    %c0_21 = arith.constant 0 : index
    %c0_22 = arith.constant 0 : index
    %21 = vector.load %arg2[%c3_20, %c0_21, %c0_22] : memref<25x3x10xf32, #tpu.memory_space<vmem>>, vector<1x3x10xf32>
    %22 = vector.shape_cast %21 : vector<1x3x10xf32> to vector<3x10xf32>
    %cst_23 = arith.constant dense<0.000000e+00> : vector<188x10xf32>
    %23 = tpu.matmul %20, %22, %cst_23 {dimension_numbers = #tpu.dot_dimension_numbers<[1], [0], [0], [1], [0, 0, 1, 1], [], []>} : vector<188x3xf32>, vector<3x10xf32>, vector<188x10xf32> -> vector<188x10xf32>
    %24 = arith.addf %18, %23 : vector<188x10xf32>
    %c0_24 = arith.constant 0 : index
    %c4 = arith.constant 4 : index
    %c0_25 = arith.constant 0 : index
    %25 = vector.load %arg1[%c0_24, %c4, %c0_25] : memref<1x256x3xf32, #tpu.memory_space<vmem>>, vector<1x188x3xf32>
    %26 = vector.shape_cast %25 : vector<1x188x3xf32> to vector<188x3xf32>
    %c4_26 = arith.constant 4 : index
    %c0_27 = arith.constant 0 : index
    %c0_28 = arith.constant 0 : index
    %27 = vector.load %arg2[%c4_26, %c0_27, %c0_28] : memref<25x3x10xf32, #tpu.memory_space<vmem>>, vector<1x3x10xf32>
    %28 = vector.shape_cast %27 : vector<1x3x10xf32> to vector<3x10xf32>
    %cst_29 = arith.constant dense<0.000000e+00> : vector<188x10xf32>
    %29 = tpu.matmul %26, %28, %cst_29 {dimension_numbers = #tpu.dot_dimension_numbers<[1], [0], [0], [1], [0, 0, 1, 1], [], []>} : vector<188x3xf32>, vector<3x10xf32>, vector<188x10xf32> -> vector<188x10xf32>
    %30 = arith.addf %24, %29 : vector<188x10xf32>
    %c0_30 = arith.constant 0 : index
    %c16 = arith.constant 16 : index
    %c0_31 = arith.constant 0 : index
    %31 = vector.load %arg1[%c0_30, %c16, %c0_31] : memref<1x256x3xf32, #tpu.memory_space<vmem>>, vector<1x188x3xf32>
    %32 = vector.shape_cast %31 : vector<1x188x3xf32> to vector<188x3xf32>
    %c5 = arith.constant 5 : index
    %c0_32 = arith.constant 0 : index
    %c0_33 = arith.constant 0 : index
    %33 = vector.load %arg2[%c5, %c0_32, %c0_33] : memref<25x3x10xf32, #tpu.memory_space<vmem>>, vector<1x3x10xf32>
    %34 = vector.shape_cast %33 : vector<1x3x10xf32> to vector<3x10xf32>
    %cst_34 = arith.constant dense<0.000000e+00> : vector<188x10xf32>
    %35 = tpu.matmul %32, %34, %cst_34 {dimension_numbers = #tpu.dot_dimension_numbers<[1], [0], [0], [1], [0, 0, 1, 1], [], []>} : vector<188x3xf32>, vector<3x10xf32>, vector<188x10xf32> -> vector<188x10xf32>
    %36 = arith.addf %30, %35 : vector<188x10xf32>
    %c0_35 = arith.constant 0 : index
    %c17 = arith.constant 17 : index
    %c0_36 = arith.constant 0 : index
    %37 = vector.load %arg1[%c0_35, %c17, %c0_36] : memref<1x256x3xf32, #tpu.memory_space<vmem>>, vector<1x188x3xf32>
    %38 = vector.shape_cast %37 : vector<1x188x3xf32> to vector<188x3xf32>
    %c6 = arith.constant 6 : index
    %c0_37 = arith.constant 0 : index
    %c0_38 = arith.constant 0 : index
    %39 = vector.load %arg2[%c6, %c0_37, %c0_38] : memref<25x3x10xf32, #tpu.memory_space<vmem>>, vector<1x3x10xf32>
    %40 = vector.shape_cast %39 : vector<1x3x10xf32> to vector<3x10xf32>
    %cst_39 = arith.constant dense<0.000000e+00> : vector<188x10xf32>
    %41 = tpu.matmul %38, %40, %cst_39 {dimension_numbers = #tpu.dot_dimension_numbers<[1], [0], [0], [1], [0, 0, 1, 1], [], []>} : vector<188x3xf32>, vector<3x10xf32>, vector<188x10xf32> -> vector<188x10xf32>
    %42 = arith.addf %36, %41 : vector<188x10xf32>
    %c0_40 = arith.constant 0 : index
    %c18 = arith.constant 18 : index
    %c0_41 = arith.constant 0 : index
    %43 = vector.load %arg1[%c0_40, %c18, %c0_41] : memref<1x256x3xf32, #tpu.memory_space<vmem>>, vector<1x188x3xf32>
    %44 = vector.shape_cast %43 : vector<1x188x3xf32> to vector<188x3xf32>
    %c7 = arith.constant 7 : index
    %c0_42 = arith.constant 0 : index
    %c0_43 = arith.constant 0 : index
    %45 = vector.load %arg2[%c7, %c0_42, %c0_43] : memref<25x3x10xf32, #tpu.memory_space<vmem>>, vector<1x3x10xf32>
    %46 = vector.shape_cast %45 : vector<1x3x10xf32> to vector<3x10xf32>
    %cst_44 = arith.constant dense<0.000000e+00> : vector<188x10xf32>
    %47 = tpu.matmul %44, %46, %cst_44 {dimension_numbers = #tpu.dot_dimension_numbers<[1], [0], [0], [1], [0, 0, 1, 1], [], []>} : vector<188x3xf32>, vector<3x10xf32>, vector<188x10xf32> -> vector<188x10xf32>
    %48 = arith.addf %42, %47 : vector<188x10xf32>
    %c0_45 = arith.constant 0 : index
    %c19 = arith.constant 19 : index
    %c0_46 = arith.constant 0 : index
    %49 = vector.load %arg1[%c0_45, %c19, %c0_46] : memref<1x256x3xf32, #tpu.memory_space<vmem>>, vector<1x188x3xf32>
    %50 = vector.shape_cast %49 : vector<1x188x3xf32> to vector<188x3xf32>
    %c8 = arith.constant 8 : index
    %c0_47 = arith.constant 0 : index
    %c0_48 = arith.constant 0 : index
    %51 = vector.load %arg2[%c8, %c0_47, %c0_48] : memref<25x3x10xf32, #tpu.memory_space<vmem>>, vector<1x3x10xf32>
    %52 = vector.shape_cast %51 : vector<1x3x10xf32> to vector<3x10xf32>
    %cst_49 = arith.constant dense<0.000000e+00> : vector<188x10xf32>
    %53 = tpu.matmul %50, %52, %cst_49 {dimension_numbers = #tpu.dot_dimension_numbers<[1], [0], [0], [1], [0, 0, 1, 1], [], []>} : vector<188x3xf32>, vector<3x10xf32>, vector<188x10xf32> -> vector<188x10xf32>
    %54 = arith.addf %48, %53 : vector<188x10xf32>
    %c0_50 = arith.constant 0 : index
    %c20 = arith.constant 20 : index
    %c0_51 = arith.constant 0 : index
    %55 = vector.load %arg1[%c0_50, %c20, %c0_51] : memref<1x256x3xf32, #tpu.memory_space<vmem>>, vector<1x188x3xf32>
    %56 = vector.shape_cast %55 : vector<1x188x3xf32> to vector<188x3xf32>
    %c9 = arith.constant 9 : index
    %c0_52 = arith.constant 0 : index
    %c0_53 = arith.constant 0 : index
    %57 = vector.load %arg2[%c9, %c0_52, %c0_53] : memref<25x3x10xf32, #tpu.memory_space<vmem>>, vector<1x3x10xf32>
    %58 = vector.shape_cast %57 : vector<1x3x10xf32> to vector<3x10xf32>
    %cst_54 = arith.constant dense<0.000000e+00> : vector<188x10xf32>
    %59 = tpu.matmul %56, %58, %cst_54 {dimension_numbers = #tpu.dot_dimension_numbers<[1], [0], [0], [1], [0, 0, 1, 1], [], []>} : vector<188x3xf32>, vector<3x10xf32>, vector<188x10xf32> -> vector<188x10xf32>
    %60 = arith.addf %54, %59 : vector<188x10xf32>
    %c0_55 = arith.constant 0 : index
    %c32 = arith.constant 32 : index
    %c0_56 = arith.constant 0 : index
    %61 = vector.load %arg1[%c0_55, %c32, %c0_56] : memref<1x256x3xf32, #tpu.memory_space<vmem>>, vector<1x188x3xf32>
    %62 = vector.shape_cast %61 : vector<1x188x3xf32> to vector<188x3xf32>
    %c10 = arith.constant 10 : index
    %c0_57 = arith.constant 0 : index
    %c0_58 = arith.constant 0 : index
    %63 = vector.load %arg2[%c10, %c0_57, %c0_58] : memref<25x3x10xf32, #tpu.memory_space<vmem>>, vector<1x3x10xf32>
    %64 = vector.shape_cast %63 : vector<1x3x10xf32> to vector<3x10xf32>
    %cst_59 = arith.constant dense<0.000000e+00> : vector<188x10xf32>
    %65 = tpu.matmul %62, %64, %cst_59 {dimension_numbers = #tpu.dot_dimension_numbers<[1], [0], [0], [1], [0, 0, 1, 1], [], []>} : vector<188x3xf32>, vector<3x10xf32>, vector<188x10xf32> -> vector<188x10xf32>
    %66 = arith.addf %60, %65 : vector<188x10xf32>
    %c0_60 = arith.constant 0 : index
    %c33 = arith.constant 33 : index
    %c0_61 = arith.constant 0 : index
    %67 = vector.load %arg1[%c0_60, %c33, %c0_61] : memref<1x256x3xf32, #tpu.memory_space<vmem>>, vector<1x188x3xf32>
    %68 = vector.shape_cast %67 : vector<1x188x3xf32> to vector<188x3xf32>
    %c11 = arith.constant 11 : index
    %c0_62 = arith.constant 0 : index
    %c0_63 = arith.constant 0 : index
    %69 = vector.load %arg2[%c11, %c0_62, %c0_63] : memref<25x3x10xf32, #tpu.memory_space<vmem>>, vector<1x3x10xf32>
    %70 = vector.shape_cast %69 : vector<1x3x10xf32> to vector<3x10xf32>
    %cst_64 = arith.constant dense<0.000000e+00> : vector<188x10xf32>
    %71 = tpu.matmul %68, %70, %cst_64 {dimension_numbers = #tpu.dot_dimension_numbers<[1], [0], [0], [1], [0, 0, 1, 1], [], []>} : vector<188x3xf32>, vector<3x10xf32>, vector<188x10xf32> -> vector<188x10xf32>
    %72 = arith.addf %66, %71 : vector<188x10xf32>
    %c0_65 = arith.constant 0 : index
    %c34 = arith.constant 34 : index
    %c0_66 = arith.constant 0 : index
    %73 = vector.load %arg1[%c0_65, %c34, %c0_66] : memref<1x256x3xf32, #tpu.memory_space<vmem>>, vector<1x188x3xf32>
    %74 = vector.shape_cast %73 : vector<1x188x3xf32> to vector<188x3xf32>
    %c12 = arith.constant 12 : index
    %c0_67 = arith.constant 0 : index
    %c0_68 = arith.constant 0 : index
    %75 = vector.load %arg2[%c12, %c0_67, %c0_68] : memref<25x3x10xf32, #tpu.memory_space<vmem>>, vector<1x3x10xf32>
    %76 = vector.shape_cast %75 : vector<1x3x10xf32> to vector<3x10xf32>
    %cst_69 = arith.constant dense<0.000000e+00> : vector<188x10xf32>
    %77 = tpu.matmul %74, %76, %cst_69 {dimension_numbers = #tpu.dot_dimension_numbers<[1], [0], [0], [1], [0, 0, 1, 1], [], []>} : vector<188x3xf32>, vector<3x10xf32>, vector<188x10xf32> -> vector<188x10xf32>
    %78 = arith.addf %72, %77 : vector<188x10xf32>
    %c0_70 = arith.constant 0 : index
    %c35 = arith.constant 35 : index
    %c0_71 = arith.constant 0 : index
    %79 = vector.load %arg1[%c0_70, %c35, %c0_71] : memref<1x256x3xf32, #tpu.memory_space<vmem>>, vector<1x188x3xf32>
    %80 = vector.shape_cast %79 : vector<1x188x3xf32> to vector<188x3xf32>
    %c13 = arith.constant 13 : index
    %c0_72 = arith.constant 0 : index
    %c0_73 = arith.constant 0 : index
    %81 = vector.load %arg2[%c13, %c0_72, %c0_73] : memref<25x3x10xf32, #tpu.memory_space<vmem>>, vector<1x3x10xf32>
    %82 = vector.shape_cast %81 : vector<1x3x10xf32> to vector<3x10xf32>
    %cst_74 = arith.constant dense<0.000000e+00> : vector<188x10xf32>
    %83 = tpu.matmul %80, %82, %cst_74 {dimension_numbers = #tpu.dot_dimension_numbers<[1], [0], [0], [1], [0, 0, 1, 1], [], []>} : vector<188x3xf32>, vector<3x10xf32>, vector<188x10xf32> -> vector<188x10xf32>
    %84 = arith.addf %78, %83 : vector<188x10xf32>
    %c0_75 = arith.constant 0 : index
    %c36 = arith.constant 36 : index
    %c0_76 = arith.constant 0 : index
    %85 = vector.load %arg1[%c0_75, %c36, %c0_76] : memref<1x256x3xf32, #tpu.memory_space<vmem>>, vector<1x188x3xf32>
    %86 = vector.shape_cast %85 : vector<1x188x3xf32> to vector<188x3xf32>
    %c14 = arith.constant 14 : index
    %c0_77 = arith.constant 0 : index
    %c0_78 = arith.constant 0 : index
    %87 = vector.load %arg2[%c14, %c0_77, %c0_78] : memref<25x3x10xf32, #tpu.memory_space<vmem>>, vector<1x3x10xf32>
    %88 = vector.shape_cast %87 : vector<1x3x10xf32> to vector<3x10xf32>
    %cst_79 = arith.constant dense<0.000000e+00> : vector<188x10xf32>
    %89 = tpu.matmul %86, %88, %cst_79 {dimension_numbers = #tpu.dot_dimension_numbers<[1], [0], [0], [1], [0, 0, 1, 1], [], []>} : vector<188x3xf32>, vector<3x10xf32>, vector<188x10xf32> -> vector<188x10xf32>
    %90 = arith.addf %84, %89 : vector<188x10xf32>
    %c0_80 = arith.constant 0 : index
    %c48 = arith.constant 48 : index
    %c0_81 = arith.constant 0 : index
    %91 = vector.load %arg1[%c0_80, %c48, %c0_81] : memref<1x256x3xf32, #tpu.memory_space<vmem>>, vector<1x188x3xf32>
    %92 = vector.shape_cast %91 : vector<1x188x3xf32> to vector<188x3xf32>
    %c15 = arith.constant 15 : index
    %c0_82 = arith.constant 0 : index
    %c0_83 = arith.constant 0 : index
    %93 = vector.load %arg2[%c15, %c0_82, %c0_83] : memref<25x3x10xf32, #tpu.memory_space<vmem>>, vector<1x3x10xf32>
    %94 = vector.shape_cast %93 : vector<1x3x10xf32> to vector<3x10xf32>
    %cst_84 = arith.constant dense<0.000000e+00> : vector<188x10xf32>
    %95 = tpu.matmul %92, %94, %cst_84 {dimension_numbers = #tpu.dot_dimension_numbers<[1], [0], [0], [1], [0, 0, 1, 1], [], []>} : vector<188x3xf32>, vector<3x10xf32>, vector<188x10xf32> -> vector<188x10xf32>
    %96 = arith.addf %90, %95 : vector<188x10xf32>
    %c0_85 = arith.constant 0 : index
    %c49 = arith.constant 49 : index
    %c0_86 = arith.constant 0 : index
    %97 = vector.load %arg1[%c0_85, %c49, %c0_86] : memref<1x256x3xf32, #tpu.memory_space<vmem>>, vector<1x188x3xf32>
    %98 = vector.shape_cast %97 : vector<1x188x3xf32> to vector<188x3xf32>
    %c16_87 = arith.constant 16 : index
    %c0_88 = arith.constant 0 : index
    %c0_89 = arith.constant 0 : index
    %99 = vector.load %arg2[%c16_87, %c0_88, %c0_89] : memref<25x3x10xf32, #tpu.memory_space<vmem>>, vector<1x3x10xf32>
    %100 = vector.shape_cast %99 : vector<1x3x10xf32> to vector<3x10xf32>
    %cst_90 = arith.constant dense<0.000000e+00> : vector<188x10xf32>
    %101 = tpu.matmul %98, %100, %cst_90 {dimension_numbers = #tpu.dot_dimension_numbers<[1], [0], [0], [1], [0, 0, 1, 1], [], []>} : vector<188x3xf32>, vector<3x10xf32>, vector<188x10xf32> -> vector<188x10xf32>
    %102 = arith.addf %96, %101 : vector<188x10xf32>
    %c0_91 = arith.constant 0 : index
    %c50 = arith.constant 50 : index
    %c0_92 = arith.constant 0 : index
    %103 = vector.load %arg1[%c0_91, %c50, %c0_92] : memref<1x256x3xf32, #tpu.memory_space<vmem>>, vector<1x188x3xf32>
    %104 = vector.shape_cast %103 : vector<1x188x3xf32> to vector<188x3xf32>
    %c17_93 = arith.constant 17 : index
    %c0_94 = arith.constant 0 : index
    %c0_95 = arith.constant 0 : index
    %105 = vector.load %arg2[%c17_93, %c0_94, %c0_95] : memref<25x3x10xf32, #tpu.memory_space<vmem>>, vector<1x3x10xf32>
    %106 = vector.shape_cast %105 : vector<1x3x10xf32> to vector<3x10xf32>
    %cst_96 = arith.constant dense<0.000000e+00> : vector<188x10xf32>
    %107 = tpu.matmul %104, %106, %cst_96 {dimension_numbers = #tpu.dot_dimension_numbers<[1], [0], [0], [1], [0, 0, 1, 1], [], []>} : vector<188x3xf32>, vector<3x10xf32>, vector<188x10xf32> -> vector<188x10xf32>
    %108 = arith.addf %102, %107 : vector<188x10xf32>
    %c0_97 = arith.constant 0 : index
    %c51 = arith.constant 51 : index
    %c0_98 = arith.constant 0 : index
    %109 = vector.load %arg1[%c0_97, %c51, %c0_98] : memref<1x256x3xf32, #tpu.memory_space<vmem>>, vector<1x188x3xf32>
    %110 = vector.shape_cast %109 : vector<1x188x3xf32> to vector<188x3xf32>
    %c18_99 = arith.constant 18 : index
    %c0_100 = arith.constant 0 : index
    %c0_101 = arith.constant 0 : index
    %111 = vector.load %arg2[%c18_99, %c0_100, %c0_101] : memref<25x3x10xf32, #tpu.memory_space<vmem>>, vector<1x3x10xf32>
    %112 = vector.shape_cast %111 : vector<1x3x10xf32> to vector<3x10xf32>
    %cst_102 = arith.constant dense<0.000000e+00> : vector<188x10xf32>
    %113 = tpu.matmul %110, %112, %cst_102 {dimension_numbers = #tpu.dot_dimension_numbers<[1], [0], [0], [1], [0, 0, 1, 1], [], []>} : vector<188x3xf32>, vector<3x10xf32>, vector<188x10xf32> -> vector<188x10xf32>
    %114 = arith.addf %108, %113 : vector<188x10xf32>
    %c0_103 = arith.constant 0 : index
    %c52 = arith.constant 52 : index
    %c0_104 = arith.constant 0 : index
    %115 = vector.load %arg1[%c0_103, %c52, %c0_104] : memref<1x256x3xf32, #tpu.memory_space<vmem>>, vector<1x188x3xf32>
    %116 = vector.shape_cast %115 : vector<1x188x3xf32> to vector<188x3xf32>
    %c19_105 = arith.constant 19 : index
    %c0_106 = arith.constant 0 : index
    %c0_107 = arith.constant 0 : index
    %117 = vector.load %arg2[%c19_105, %c0_106, %c0_107] : memref<25x3x10xf32, #tpu.memory_space<vmem>>, vector<1x3x10xf32>
    %118 = vector.shape_cast %117 : vector<1x3x10xf32> to vector<3x10xf32>
    %cst_108 = arith.constant dense<0.000000e+00> : vector<188x10xf32>
    %119 = tpu.matmul %116, %118, %cst_108 {dimension_numbers = #tpu.dot_dimension_numbers<[1], [0], [0], [1], [0, 0, 1, 1], [], []>} : vector<188x3xf32>, vector<3x10xf32>, vector<188x10xf32> -> vector<188x10xf32>
    %120 = arith.addf %114, %119 : vector<188x10xf32>
    %c0_109 = arith.constant 0 : index
    %c64 = arith.constant 64 : index
    %c0_110 = arith.constant 0 : index
    %121 = vector.load %arg1[%c0_109, %c64, %c0_110] : memref<1x256x3xf32, #tpu.memory_space<vmem>>, vector<1x188x3xf32>
    %122 = vector.shape_cast %121 : vector<1x188x3xf32> to vector<188x3xf32>
    %c20_111 = arith.constant 20 : index
    %c0_112 = arith.constant 0 : index
    %c0_113 = arith.constant 0 : index
    %123 = vector.load %arg2[%c20_111, %c0_112, %c0_113] : memref<25x3x10xf32, #tpu.memory_space<vmem>>, vector<1x3x10xf32>
    %124 = vector.shape_cast %123 : vector<1x3x10xf32> to vector<3x10xf32>
    %cst_114 = arith.constant dense<0.000000e+00> : vector<188x10xf32>
    %125 = tpu.matmul %122, %124, %cst_114 {dimension_numbers = #tpu.dot_dimension_numbers<[1], [0], [0], [1], [0, 0, 1, 1], [], []>} : vector<188x3xf32>, vector<3x10xf32>, vector<188x10xf32> -> vector<188x10xf32>
    %126 = arith.addf %120, %125 : vector<188x10xf32>
    %c0_115 = arith.constant 0 : index
    %c65 = arith.constant 65 : index
    %c0_116 = arith.constant 0 : index
    %127 = vector.load %arg1[%c0_115, %c65, %c0_116] : memref<1x256x3xf32, #tpu.memory_space<vmem>>, vector<1x188x3xf32>
    %128 = vector.shape_cast %127 : vector<1x188x3xf32> to vector<188x3xf32>
    %c21 = arith.constant 21 : index
    %c0_117 = arith.constant 0 : index
    %c0_118 = arith.constant 0 : index
    %129 = vector.load %arg2[%c21, %c0_117, %c0_118] : memref<25x3x10xf32, #tpu.memory_space<vmem>>, vector<1x3x10xf32>
    %130 = vector.shape_cast %129 : vector<1x3x10xf32> to vector<3x10xf32>
    %cst_119 = arith.constant dense<0.000000e+00> : vector<188x10xf32>
    %131 = tpu.matmul %128, %130, %cst_119 {dimension_numbers = #tpu.dot_dimension_numbers<[1], [0], [0], [1], [0, 0, 1, 1], [], []>} : vector<188x3xf32>, vector<3x10xf32>, vector<188x10xf32> -> vector<188x10xf32>
    %132 = arith.addf %126, %131 : vector<188x10xf32>
    %c0_120 = arith.constant 0 : index
    %c66 = arith.constant 66 : index
    %c0_121 = arith.constant 0 : index
    %133 = vector.load %arg1[%c0_120, %c66, %c0_121] : memref<1x256x3xf32, #tpu.memory_space<vmem>>, vector<1x188x3xf32>
    %134 = vector.shape_cast %133 : vector<1x188x3xf32> to vector<188x3xf32>
    %c22 = arith.constant 22 : index
    %c0_122 = arith.constant 0 : index
    %c0_123 = arith.constant 0 : index
    %135 = vector.load %arg2[%c22, %c0_122, %c0_123] : memref<25x3x10xf32, #tpu.memory_space<vmem>>, vector<1x3x10xf32>
    %136 = vector.shape_cast %135 : vector<1x3x10xf32> to vector<3x10xf32>
    %cst_124 = arith.constant dense<0.000000e+00> : vector<188x10xf32>
    %137 = tpu.matmul %134, %136, %cst_124 {dimension_numbers = #tpu.dot_dimension_numbers<[1], [0], [0], [1], [0, 0, 1, 1], [], []>} : vector<188x3xf32>, vector<3x10xf32>, vector<188x10xf32> -> vector<188x10xf32>
    %138 = arith.addf %132, %137 : vector<188x10xf32>
    %c0_125 = arith.constant 0 : index
    %c67 = arith.constant 67 : index
    %c0_126 = arith.constant 0 : index
    %139 = vector.load %arg1[%c0_125, %c67, %c0_126] : memref<1x256x3xf32, #tpu.memory_space<vmem>>, vector<1x188x3xf32>
    %140 = vector.shape_cast %139 : vector<1x188x3xf32> to vector<188x3xf32>
    %c23 = arith.constant 23 : index
    %c0_127 = arith.constant 0 : index
    %c0_128 = arith.constant 0 : index
    %141 = vector.load %arg2[%c23, %c0_127, %c0_128] : memref<25x3x10xf32, #tpu.memory_space<vmem>>, vector<1x3x10xf32>
    %142 = vector.shape_cast %141 : vector<1x3x10xf32> to vector<3x10xf32>
    %cst_129 = arith.constant dense<0.000000e+00> : vector<188x10xf32>
    %143 = tpu.matmul %140, %142, %cst_129 {dimension_numbers = #tpu.dot_dimension_numbers<[1], [0], [0], [1], [0, 0, 1, 1], [], []>} : vector<188x3xf32>, vector<3x10xf32>, vector<188x10xf32> -> vector<188x10xf32>
    %144 = arith.addf %138, %143 : vector<188x10xf32>
    %c0_130 = arith.constant 0 : index
    %c68 = arith.constant 68 : index
    %c0_131 = arith.constant 0 : index
    %145 = vector.load %arg1[%c0_130, %c68, %c0_131] : memref<1x256x3xf32, #tpu.memory_space<vmem>>, vector<1x188x3xf32>
    %146 = vector.shape_cast %145 : vector<1x188x3xf32> to vector<188x3xf32>
    %c24 = arith.constant 24 : index
    %c0_132 = arith.constant 0 : index
    %c0_133 = arith.constant 0 : index
    %147 = vector.load %arg2[%c24, %c0_132, %c0_133] : memref<25x3x10xf32, #tpu.memory_space<vmem>>, vector<1x3x10xf32>
    %148 = vector.shape_cast %147 : vector<1x3x10xf32> to vector<3x10xf32>
    %cst_134 = arith.constant dense<0.000000e+00> : vector<188x10xf32>
    %149 = tpu.matmul %146, %148, %cst_134 {dimension_numbers = #tpu.dot_dimension_numbers<[1], [0], [0], [1], [0, 0, 1, 1], [], []>} : vector<188x3xf32>, vector<3x10xf32>, vector<188x10xf32> -> vector<188x10xf32>
    %150 = arith.addf %144, %149 : vector<188x10xf32>
    %c0_135 = arith.constant 0 : index
    %c0_136 = arith.constant 0 : index
    %151 = vector.load %arg3[%c0_135, %c0_136] : memref<1x10xf32, #tpu.memory_space<vmem>>, vector<1x10xf32>
    %152 = vector.broadcast %151 : vector<1x10xf32> to vector<188x10xf32>
    %153 = arith.addf %150, %152 : vector<188x10xf32>
    %c0_137 = arith.constant 0 : index
    %c0_138 = arith.constant 0 : index
    %154 = vector.load %arg11[%c0_137, %c0_138] : memref<188x10xf32, #tpu.memory_space<vmem>>, vector<188x10xf32>
    tpu.vector_store %arg11[%c0_137, %c0_138], %153 {strides = array<i32>} : memref<188x10xf32, #tpu.memory_space<vmem>>, vector<188x10xf32>,
    %c0_139 = arith.constant 0 : index
    %c0_140 = arith.constant 0 : index
    %155 = tpu.strided_load %arg11[%c0_139, %c0_140] {strides = array<i32: 2, 1>} : memref<188x10xf32, #tpu.memory_space<vmem>>, vector<86x10xf32>
    %c1_141 = arith.constant 1 : index
    %c0_142 = arith.constant 0 : index
    %156 = tpu.strided_load %arg11[%c1_141, %c0_142] {strides = array<i32: 2, 1>} : memref<188x10xf32, #tpu.memory_space<vmem>>, vector<86x10xf32>
    %157 = arith.maximumf %155, %156 : vector<86x10xf32>
    %c16_143 = arith.constant 16 : index
    %c0_144 = arith.constant 0 : index
    %158 = tpu.strided_load %arg11[%c16_143, %c0_144] {strides = array<i32: 2, 1>} : memref<188x10xf32, #tpu.memory_space<vmem>>, vector<86x10xf32>
    %159 = arith.maximumf %157, %158 : vector<86x10xf32>
    %c17_145 = arith.constant 17 : index
    %c0_146 = arith.constant 0 : index
    %160 = tpu.strided_load %arg11[%c17_145, %c0_146] {strides = array<i32: 2, 1>} : memref<188x10xf32, #tpu.memory_space<vmem>>, vector<86x10xf32>
    %161 = arith.maximumf %159, %160 : vector<86x10xf32>
    %cst_147 = arith.constant 0.000000e+00 : f32
    %162 = vector.broadcast %cst_147 : f32 to vector<86x10xf32>
    %163 = arith.maximumf %161, %162 : vector<86x10xf32>
    %cst_148 = arith.constant 0.000000e+00 : f32
    %164 = vector.broadcast %cst_148 : f32 to vector<18x20xf32>
    %165 = vector.extract_strided_slice %163 {offsets = [0, 0], sizes = [18, 10], strides = [1, 1]} : vector<86x10xf32> to vector<18x10xf32>
    %c0_149 = arith.constant 0 : index
    %c0_150 = arith.constant 0 : index
    %c0_151 = arith.constant 0 : index
    %166 = vector.load %arg4[%c0_149, %c0_150, %c0_151] : memref<25x10x20xf32, #tpu.memory_space<vmem>>, vector<1x10x20xf32>
    %167 = vector.shape_cast %166 : vector<1x10x20xf32> to vector<10x20xf32>
    %cst_152 = arith.constant dense<0.000000e+00> : vector<18x20xf32>
    %168 = tpu.matmul %165, %167, %cst_152 {dimension_numbers = #tpu.dot_dimension_numbers<[1], [0], [0], [1], [0, 0, 1, 1], [], []>} : vector<18x10xf32>, vector<10x20xf32>, vector<18x20xf32> -> vector<18x20xf32>
    %169 = arith.addf %164, %168 : vector<18x20xf32>
    %170 = vector.extract_strided_slice %163 {offsets = [1, 0], sizes = [18, 10], strides = [1, 1]} : vector<86x10xf32> to vector<18x10xf32>
    %c1_153 = arith.constant 1 : index
    %c0_154 = arith.constant 0 : index
    %c0_155 = arith.constant 0 : index
    %171 = vector.load %arg4[%c1_153, %c0_154, %c0_155] : memref<25x10x20xf32, #tpu.memory_space<vmem>>, vector<1x10x20xf32>
    %172 = vector.shape_cast %171 : vector<1x10x20xf32> to vector<10x20xf32>
    %cst_156 = arith.constant dense<0.000000e+00> : vector<18x20xf32>
    %173 = tpu.matmul %170, %172, %cst_156 {dimension_numbers = #tpu.dot_dimension_numbers<[1], [0], [0], [1], [0, 0, 1, 1], [], []>} : vector<18x10xf32>, vector<10x20xf32>, vector<18x20xf32> -> vector<18x20xf32>
    %174 = arith.addf %169, %173 : vector<18x20xf32>
    %175 = vector.extract_strided_slice %163 {offsets = [2, 0], sizes = [18, 10], strides = [1, 1]} : vector<86x10xf32> to vector<18x10xf32>
    %c2_157 = arith.constant 2 : index
    %c0_158 = arith.constant 0 : index
    %c0_159 = arith.constant 0 : index
    %176 = vector.load %arg4[%c2_157, %c0_158, %c0_159] : memref<25x10x20xf32, #tpu.memory_space<vmem>>, vector<1x10x20xf32>
    %177 = vector.shape_cast %176 : vector<1x10x20xf32> to vector<10x20xf32>
    %cst_160 = arith.constant dense<0.000000e+00> : vector<18x20xf32>
    %178 = tpu.matmul %175, %177, %cst_160 {dimension_numbers = #tpu.dot_dimension_numbers<[1], [0], [0], [1], [0, 0, 1, 1], [], []>} : vector<18x10xf32>, vector<10x20xf32>, vector<18x20xf32> -> vector<18x20xf32>
    %179 = arith.addf %174, %178 : vector<18x20xf32>
    %180 = vector.extract_strided_slice %163 {offsets = [3, 0], sizes = [18, 10], strides = [1, 1]} : vector<86x10xf32> to vector<18x10xf32>
    %c3_161 = arith.constant 3 : index
    %c0_162 = arith.constant 0 : index
    %c0_163 = arith.constant 0 : index
    %181 = vector.load %arg4[%c3_161, %c0_162, %c0_163] : memref<25x10x20xf32, #tpu.memory_space<vmem>>, vector<1x10x20xf32>
    %182 = vector.shape_cast %181 : vector<1x10x20xf32> to vector<10x20xf32>
    %cst_164 = arith.constant dense<0.000000e+00> : vector<18x20xf32>
    %183 = tpu.matmul %180, %182, %cst_164 {dimension_numbers = #tpu.dot_dimension_numbers<[1], [0], [0], [1], [0, 0, 1, 1], [], []>} : vector<18x10xf32>, vector<10x20xf32>, vector<18x20xf32> -> vector<18x20xf32>
    %184 = arith.addf %179, %183 : vector<18x20xf32>
    %185 = vector.extract_strided_slice %163 {offsets = [4, 0], sizes = [18, 10], strides = [1, 1]} : vector<86x10xf32> to vector<18x10xf32>
    %c4_165 = arith.constant 4 : index
    %c0_166 = arith.constant 0 : index
    %c0_167 = arith.constant 0 : index
    %186 = vector.load %arg4[%c4_165, %c0_166, %c0_167] : memref<25x10x20xf32, #tpu.memory_space<vmem>>, vector<1x10x20xf32>
    %187 = vector.shape_cast %186 : vector<1x10x20xf32> to vector<10x20xf32>
    %cst_168 = arith.constant dense<0.000000e+00> : vector<18x20xf32>
    %188 = tpu.matmul %185, %187, %cst_168 {dimension_numbers = #tpu.dot_dimension_numbers<[1], [0], [0], [1], [0, 0, 1, 1], [], []>} : vector<18x10xf32>, vector<10x20xf32>, vector<18x20xf32> -> vector<18x20xf32>
    %189 = arith.addf %184, %188 : vector<18x20xf32>
    %190 = vector.extract_strided_slice %163 {offsets = [16, 0], sizes = [18, 10], strides = [1, 1]} : vector<86x10xf32> to vector<18x10xf32>
    %c5_169 = arith.constant 5 : index
    %c0_170 = arith.constant 0 : index
    %c0_171 = arith.constant 0 : index
    %191 = vector.load %arg4[%c5_169, %c0_170, %c0_171] : memref<25x10x20xf32, #tpu.memory_space<vmem>>, vector<1x10x20xf32>
    %192 = vector.shape_cast %191 : vector<1x10x20xf32> to vector<10x20xf32>
    %cst_172 = arith.constant dense<0.000000e+00> : vector<18x20xf32>
    %193 = tpu.matmul %190, %192, %cst_172 {dimension_numbers = #tpu.dot_dimension_numbers<[1], [0], [0], [1], [0, 0, 1, 1], [], []>} : vector<18x10xf32>, vector<10x20xf32>, vector<18x20xf32> -> vector<18x20xf32>
    %194 = arith.addf %189, %193 : vector<18x20xf32>
    %195 = vector.extract_strided_slice %163 {offsets = [17, 0], sizes = [18, 10], strides = [1, 1]} : vector<86x10xf32> to vector<18x10xf32>
    %c6_173 = arith.constant 6 : index
    %c0_174 = arith.constant 0 : index
    %c0_175 = arith.constant 0 : index
    %196 = vector.load %arg4[%c6_173, %c0_174, %c0_175] : memref<25x10x20xf32, #tpu.memory_space<vmem>>, vector<1x10x20xf32>
    %197 = vector.shape_cast %196 : vector<1x10x20xf32> to vector<10x20xf32>
    %cst_176 = arith.constant dense<0.000000e+00> : vector<18x20xf32>
    %198 = tpu.matmul %195, %197, %cst_176 {dimension_numbers = #tpu.dot_dimension_numbers<[1], [0], [0], [1], [0, 0, 1, 1], [], []>} : vector<18x10xf32>, vector<10x20xf32>, vector<18x20xf32> -> vector<18x20xf32>
    %199 = arith.addf %194, %198 : vector<18x20xf32>
    %200 = vector.extract_strided_slice %163 {offsets = [18, 0], sizes = [18, 10], strides = [1, 1]} : vector<86x10xf32> to vector<18x10xf32>
    %c7_177 = arith.constant 7 : index
    %c0_178 = arith.constant 0 : index
    %c0_179 = arith.constant 0 : index
    %201 = vector.load %arg4[%c7_177, %c0_178, %c0_179] : memref<25x10x20xf32, #tpu.memory_space<vmem>>, vector<1x10x20xf32>
    %202 = vector.shape_cast %201 : vector<1x10x20xf32> to vector<10x20xf32>
    %cst_180 = arith.constant dense<0.000000e+00> : vector<18x20xf32>
    %203 = tpu.matmul %200, %202, %cst_180 {dimension_numbers = #tpu.dot_dimension_numbers<[1], [0], [0], [1], [0, 0, 1, 1], [], []>} : vector<18x10xf32>, vector<10x20xf32>, vector<18x20xf32> -> vector<18x20xf32>
    %204 = arith.addf %199, %203 : vector<18x20xf32>
    %205 = vector.extract_strided_slice %163 {offsets = [19, 0], sizes = [18, 10], strides = [1, 1]} : vector<86x10xf32> to vector<18x10xf32>
    %c8_181 = arith.constant 8 : index
    %c0_182 = arith.constant 0 : index
    %c0_183 = arith.constant 0 : index
    %206 = vector.load %arg4[%c8_181, %c0_182, %c0_183] : memref<25x10x20xf32, #tpu.memory_space<vmem>>, vector<1x10x20xf32>
    %207 = vector.shape_cast %206 : vector<1x10x20xf32> to vector<10x20xf32>
    %cst_184 = arith.constant dense<0.000000e+00> : vector<18x20xf32>
    %208 = tpu.matmul %205, %207, %cst_184 {dimension_numbers = #tpu.dot_dimension_numbers<[1], [0], [0], [1], [0, 0, 1, 1], [], []>} : vector<18x10xf32>, vector<10x20xf32>, vector<18x20xf32> -> vector<18x20xf32>
    %209 = arith.addf %204, %208 : vector<18x20xf32>
    %210 = vector.extract_strided_slice %163 {offsets = [20, 0], sizes = [18, 10], strides = [1, 1]} : vector<86x10xf32> to vector<18x10xf32>
    %c9_185 = arith.constant 9 : index
    %c0_186 = arith.constant 0 : index
    %c0_187 = arith.constant 0 : index
    %211 = vector.load %arg4[%c9_185, %c0_186, %c0_187] : memref<25x10x20xf32, #tpu.memory_space<vmem>>, vector<1x10x20xf32>
    %212 = vector.shape_cast %211 : vector<1x10x20xf32> to vector<10x20xf32>
    %cst_188 = arith.constant dense<0.000000e+00> : vector<18x20xf32>
    %213 = tpu.matmul %210, %212, %cst_188 {dimension_numbers = #tpu.dot_dimension_numbers<[1], [0], [0], [1], [0, 0, 1, 1], [], []>} : vector<18x10xf32>, vector<10x20xf32>, vector<18x20xf32> -> vector<18x20xf32>
    %214 = arith.addf %209, %213 : vector<18x20xf32>
    %215 = vector.extract_strided_slice %163 {offsets = [32, 0], sizes = [18, 10], strides = [1, 1]} : vector<86x10xf32> to vector<18x10xf32>
    %c10_189 = arith.constant 10 : index
    %c0_190 = arith.constant 0 : index
    %c0_191 = arith.constant 0 : index
    %216 = vector.load %arg4[%c10_189, %c0_190, %c0_191] : memref<25x10x20xf32, #tpu.memory_space<vmem>>, vector<1x10x20xf32>
    %217 = vector.shape_cast %216 : vector<1x10x20xf32> to vector<10x20xf32>
    %cst_192 = arith.constant dense<0.000000e+00> : vector<18x20xf32>
    %218 = tpu.matmul %215, %217, %cst_192 {dimension_numbers = #tpu.dot_dimension_numbers<[1], [0], [0], [1], [0, 0, 1, 1], [], []>} : vector<18x10xf32>, vector<10x20xf32>, vector<18x20xf32> -> vector<18x20xf32>
    %219 = arith.addf %214, %218 : vector<18x20xf32>
    %220 = vector.extract_strided_slice %163 {offsets = [33, 0], sizes = [18, 10], strides = [1, 1]} : vector<86x10xf32> to vector<18x10xf32>
    %c11_193 = arith.constant 11 : index
    %c0_194 = arith.constant 0 : index
    %c0_195 = arith.constant 0 : index
    %221 = vector.load %arg4[%c11_193, %c0_194, %c0_195] : memref<25x10x20xf32, #tpu.memory_space<vmem>>, vector<1x10x20xf32>
    %222 = vector.shape_cast %221 : vector<1x10x20xf32> to vector<10x20xf32>
    %cst_196 = arith.constant dense<0.000000e+00> : vector<18x20xf32>
    %223 = tpu.matmul %220, %222, %cst_196 {dimension_numbers = #tpu.dot_dimension_numbers<[1], [0], [0], [1], [0, 0, 1, 1], [], []>} : vector<18x10xf32>, vector<10x20xf32>, vector<18x20xf32> -> vector<18x20xf32>
    %224 = arith.addf %219, %223 : vector<18x20xf32>
    %225 = vector.extract_strided_slice %163 {offsets = [34, 0], sizes = [18, 10], strides = [1, 1]} : vector<86x10xf32> to vector<18x10xf32>
    %c12_197 = arith.constant 12 : index
    %c0_198 = arith.constant 0 : index
    %c0_199 = arith.constant 0 : index
    %226 = vector.load %arg4[%c12_197, %c0_198, %c0_199] : memref<25x10x20xf32, #tpu.memory_space<vmem>>, vector<1x10x20xf32>
    %227 = vector.shape_cast %226 : vector<1x10x20xf32> to vector<10x20xf32>
    %cst_200 = arith.constant dense<0.000000e+00> : vector<18x20xf32>
    %228 = tpu.matmul %225, %227, %cst_200 {dimension_numbers = #tpu.dot_dimension_numbers<[1], [0], [0], [1], [0, 0, 1, 1], [], []>} : vector<18x10xf32>, vector<10x20xf32>, vector<18x20xf32> -> vector<18x20xf32>
    %229 = arith.addf %224, %228 : vector<18x20xf32>
    %230 = vector.extract_strided_slice %163 {offsets = [35, 0], sizes = [18, 10], strides = [1, 1]} : vector<86x10xf32> to vector<18x10xf32>
    %c13_201 = arith.constant 13 : index
    %c0_202 = arith.constant 0 : index
    %c0_203 = arith.constant 0 : index
    %231 = vector.load %arg4[%c13_201, %c0_202, %c0_203] : memref<25x10x20xf32, #tpu.memory_space<vmem>>, vector<1x10x20xf32>
    %232 = vector.shape_cast %231 : vector<1x10x20xf32> to vector<10x20xf32>
    %cst_204 = arith.constant dense<0.000000e+00> : vector<18x20xf32>
    %233 = tpu.matmul %230, %232, %cst_204 {dimension_numbers = #tpu.dot_dimension_numbers<[1], [0], [0], [1], [0, 0, 1, 1], [], []>} : vector<18x10xf32>, vector<10x20xf32>, vector<18x20xf32> -> vector<18x20xf32>
    %234 = arith.addf %229, %233 : vector<18x20xf32>
    %235 = vector.extract_strided_slice %163 {offsets = [36, 0], sizes = [18, 10], strides = [1, 1]} : vector<86x10xf32> to vector<18x10xf32>
    %c14_205 = arith.constant 14 : index
    %c0_206 = arith.constant 0 : index
    %c0_207 = arith.constant 0 : index
    %236 = vector.load %arg4[%c14_205, %c0_206, %c0_207] : memref<25x10x20xf32, #tpu.memory_space<vmem>>, vector<1x10x20xf32>
    %237 = vector.shape_cast %236 : vector<1x10x20xf32> to vector<10x20xf32>
    %cst_208 = arith.constant dense<0.000000e+00> : vector<18x20xf32>
    %238 = tpu.matmul %235, %237, %cst_208 {dimension_numbers = #tpu.dot_dimension_numbers<[1], [0], [0], [1], [0, 0, 1, 1], [], []>} : vector<18x10xf32>, vector<10x20xf32>, vector<18x20xf32> -> vector<18x20xf32>
    %239 = arith.addf %234, %238 : vector<18x20xf32>
    %240 = vector.extract_strided_slice %163 {offsets = [48, 0], sizes = [18, 10], strides = [1, 1]} : vector<86x10xf32> to vector<18x10xf32>
    %c15_209 = arith.constant 15 : index
    %c0_210 = arith.constant 0 : index
    %c0_211 = arith.constant 0 : index
    %241 = vector.load %arg4[%c15_209, %c0_210, %c0_211] : memref<25x10x20xf32, #tpu.memory_space<vmem>>, vector<1x10x20xf32>
    %242 = vector.shape_cast %241 : vector<1x10x20xf32> to vector<10x20xf32>
    %cst_212 = arith.constant dense<0.000000e+00> : vector<18x20xf32>
    %243 = tpu.matmul %240, %242, %cst_212 {dimension_numbers = #tpu.dot_dimension_numbers<[1], [0], [0], [1], [0, 0, 1, 1], [], []>} : vector<18x10xf32>, vector<10x20xf32>, vector<18x20xf32> -> vector<18x20xf32>
    %244 = arith.addf %239, %243 : vector<18x20xf32>
    %245 = vector.extract_strided_slice %163 {offsets = [49, 0], sizes = [18, 10], strides = [1, 1]} : vector<86x10xf32> to vector<18x10xf32>
    %c16_213 = arith.constant 16 : index
    %c0_214 = arith.constant 0 : index
    %c0_215 = arith.constant 0 : index
    %246 = vector.load %arg4[%c16_213, %c0_214, %c0_215] : memref<25x10x20xf32, #tpu.memory_space<vmem>>, vector<1x10x20xf32>
    %247 = vector.shape_cast %246 : vector<1x10x20xf32> to vector<10x20xf32>
    %cst_216 = arith.constant dense<0.000000e+00> : vector<18x20xf32>
    %248 = tpu.matmul %245, %247, %cst_216 {dimension_numbers = #tpu.dot_dimension_numbers<[1], [0], [0], [1], [0, 0, 1, 1], [], []>} : vector<18x10xf32>, vector<10x20xf32>, vector<18x20xf32> -> vector<18x20xf32>
    %249 = arith.addf %244, %248 : vector<18x20xf32>
    %250 = vector.extract_strided_slice %163 {offsets = [50, 0], sizes = [18, 10], strides = [1, 1]} : vector<86x10xf32> to vector<18x10xf32>
    %c17_217 = arith.constant 17 : index
    %c0_218 = arith.constant 0 : index
    %c0_219 = arith.constant 0 : index
    %251 = vector.load %arg4[%c17_217, %c0_218, %c0_219] : memref<25x10x20xf32, #tpu.memory_space<vmem>>, vector<1x10x20xf32>
    %252 = vector.shape_cast %251 : vector<1x10x20xf32> to vector<10x20xf32>
    %cst_220 = arith.constant dense<0.000000e+00> : vector<18x20xf32>
    %253 = tpu.matmul %250, %252, %cst_220 {dimension_numbers = #tpu.dot_dimension_numbers<[1], [0], [0], [1], [0, 0, 1, 1], [], []>} : vector<18x10xf32>, vector<10x20xf32>, vector<18x20xf32> -> vector<18x20xf32>
    %254 = arith.addf %249, %253 : vector<18x20xf32>
    %255 = vector.extract_strided_slice %163 {offsets = [51, 0], sizes = [18, 10], strides = [1, 1]} : vector<86x10xf32> to vector<18x10xf32>
    %c18_221 = arith.constant 18 : index
    %c0_222 = arith.constant 0 : index
    %c0_223 = arith.constant 0 : index
    %256 = vector.load %arg4[%c18_221, %c0_222, %c0_223] : memref<25x10x20xf32, #tpu.memory_space<vmem>>, vector<1x10x20xf32>
    %257 = vector.shape_cast %256 : vector<1x10x20xf32> to vector<10x20xf32>
    %cst_224 = arith.constant dense<0.000000e+00> : vector<18x20xf32>
    %258 = tpu.matmul %255, %257, %cst_224 {dimension_numbers = #tpu.dot_dimension_numbers<[1], [0], [0], [1], [0, 0, 1, 1], [], []>} : vector<18x10xf32>, vector<10x20xf32>, vector<18x20xf32> -> vector<18x20xf32>
    %259 = arith.addf %254, %258 : vector<18x20xf32>
    %260 = vector.extract_strided_slice %163 {offsets = [52, 0], sizes = [18, 10], strides = [1, 1]} : vector<86x10xf32> to vector<18x10xf32>
    %c19_225 = arith.constant 19 : index
    %c0_226 = arith.constant 0 : index
    %c0_227 = arith.constant 0 : index
    %261 = vector.load %arg4[%c19_225, %c0_226, %c0_227] : memref<25x10x20xf32, #tpu.memory_space<vmem>>, vector<1x10x20xf32>
    %262 = vector.shape_cast %261 : vector<1x10x20xf32> to vector<10x20xf32>
    %cst_228 = arith.constant dense<0.000000e+00> : vector<18x20xf32>
    %263 = tpu.matmul %260, %262, %cst_228 {dimension_numbers = #tpu.dot_dimension_numbers<[1], [0], [0], [1], [0, 0, 1, 1], [], []>} : vector<18x10xf32>, vector<10x20xf32>, vector<18x20xf32> -> vector<18x20xf32>
    %264 = arith.addf %259, %263 : vector<18x20xf32>
    %265 = vector.extract_strided_slice %163 {offsets = [64, 0], sizes = [18, 10], strides = [1, 1]} : vector<86x10xf32> to vector<18x10xf32>
    %c20_229 = arith.constant 20 : index
    %c0_230 = arith.constant 0 : index
    %c0_231 = arith.constant 0 : index
    %266 = vector.load %arg4[%c20_229, %c0_230, %c0_231] : memref<25x10x20xf32, #tpu.memory_space<vmem>>, vector<1x10x20xf32>
    %267 = vector.shape_cast %266 : vector<1x10x20xf32> to vector<10x20xf32>
    %cst_232 = arith.constant dense<0.000000e+00> : vector<18x20xf32>
    %268 = tpu.matmul %265, %267, %cst_232 {dimension_numbers = #tpu.dot_dimension_numbers<[1], [0], [0], [1], [0, 0, 1, 1], [], []>} : vector<18x10xf32>, vector<10x20xf32>, vector<18x20xf32> -> vector<18x20xf32>
    %269 = arith.addf %264, %268 : vector<18x20xf32>
    %270 = vector.extract_strided_slice %163 {offsets = [65, 0], sizes = [18, 10], strides = [1, 1]} : vector<86x10xf32> to vector<18x10xf32>
    %c21_233 = arith.constant 21 : index
    %c0_234 = arith.constant 0 : index
    %c0_235 = arith.constant 0 : index
    %271 = vector.load %arg4[%c21_233, %c0_234, %c0_235] : memref<25x10x20xf32, #tpu.memory_space<vmem>>, vector<1x10x20xf32>
    %272 = vector.shape_cast %271 : vector<1x10x20xf32> to vector<10x20xf32>
    %cst_236 = arith.constant dense<0.000000e+00> : vector<18x20xf32>
    %273 = tpu.matmul %270, %272, %cst_236 {dimension_numbers = #tpu.dot_dimension_numbers<[1], [0], [0], [1], [0, 0, 1, 1], [], []>} : vector<18x10xf32>, vector<10x20xf32>, vector<18x20xf32> -> vector<18x20xf32>
    %274 = arith.addf %269, %273 : vector<18x20xf32>
    %275 = vector.extract_strided_slice %163 {offsets = [66, 0], sizes = [18, 10], strides = [1, 1]} : vector<86x10xf32> to vector<18x10xf32>
    %c22_237 = arith.constant 22 : index
    %c0_238 = arith.constant 0 : index
    %c0_239 = arith.constant 0 : index
    %276 = vector.load %arg4[%c22_237, %c0_238, %c0_239] : memref<25x10x20xf32, #tpu.memory_space<vmem>>, vector<1x10x20xf32>
    %277 = vector.shape_cast %276 : vector<1x10x20xf32> to vector<10x20xf32>
    %cst_240 = arith.constant dense<0.000000e+00> : vector<18x20xf32>
    %278 = tpu.matmul %275, %277, %cst_240 {dimension_numbers = #tpu.dot_dimension_numbers<[1], [0], [0], [1], [0, 0, 1, 1], [], []>} : vector<18x10xf32>, vector<10x20xf32>, vector<18x20xf32> -> vector<18x20xf32>
    %279 = arith.addf %274, %278 : vector<18x20xf32>
    %280 = vector.extract_strided_slice %163 {offsets = [67, 0], sizes = [18, 10], strides = [1, 1]} : vector<86x10xf32> to vector<18x10xf32>
    %c23_241 = arith.constant 23 : index
    %c0_242 = arith.constant 0 : index
    %c0_243 = arith.constant 0 : index
    %281 = vector.load %arg4[%c23_241, %c0_242, %c0_243] : memref<25x10x20xf32, #tpu.memory_space<vmem>>, vector<1x10x20xf32>
    %282 = vector.shape_cast %281 : vector<1x10x20xf32> to vector<10x20xf32>
    %cst_244 = arith.constant dense<0.000000e+00> : vector<18x20xf32>
    %283 = tpu.matmul %280, %282, %cst_244 {dimension_numbers = #tpu.dot_dimension_numbers<[1], [0], [0], [1], [0, 0, 1, 1], [], []>} : vector<18x10xf32>, vector<10x20xf32>, vector<18x20xf32> -> vector<18x20xf32>
    %284 = arith.addf %279, %283 : vector<18x20xf32>
    %285 = vector.extract_strided_slice %163 {offsets = [68, 0], sizes = [18, 10], strides = [1, 1]} : vector<86x10xf32> to vector<18x10xf32>
    %c24_245 = arith.constant 24 : index
    %c0_246 = arith.constant 0 : index
    %c0_247 = arith.constant 0 : index
    %286 = vector.load %arg4[%c24_245, %c0_246, %c0_247] : memref<25x10x20xf32, #tpu.memory_space<vmem>>, vector<1x10x20xf32>
    %287 = vector.shape_cast %286 : vector<1x10x20xf32> to vector<10x20xf32>
    %cst_248 = arith.constant dense<0.000000e+00> : vector<18x20xf32>
    %288 = tpu.matmul %285, %287, %cst_248 {dimension_numbers = #tpu.dot_dimension_numbers<[1], [0], [0], [1], [0, 0, 1, 1], [], []>} : vector<18x10xf32>, vector<10x20xf32>, vector<18x20xf32> -> vector<18x20xf32>
    %289 = arith.addf %284, %288 : vector<18x20xf32>
    %c0_249 = arith.constant 0 : index
    %c0_250 = arith.constant 0 : index
    %290 = vector.load %arg5[%c0_249, %c0_250] : memref<1x20xf32, #tpu.memory_space<vmem>>, vector<1x20xf32>
    %291 = vector.broadcast %290 : vector<1x20xf32> to vector<18x20xf32>
    %292 = arith.addf %289, %291 : vector<18x20xf32>
    %c0_251 = arith.constant 0 : index
    %c0_252 = arith.constant 0 : index
    %293 = vector.load %arg12[%c0_251, %c0_252] : memref<18x20xf32, #tpu.memory_space<vmem>>, vector<18x20xf32>
    tpu.vector_store %arg12[%c0_251, %c0_252], %292 {strides = array<i32>} : memref<18x20xf32, #tpu.memory_space<vmem>>, vector<18x20xf32>,
    %c0_253 = arith.constant 0 : index
    %c0_254 = arith.constant 0 : index
    %294 = vector.load %arg12[%c0_253, %c0_254] : memref<18x20xf32, #tpu.memory_space<vmem>>, vector<1x20xf32>
    %c1_255 = arith.constant 1 : index
    %c0_256 = arith.constant 0 : index
    %295 = vector.load %arg12[%c1_255, %c0_256] : memref<18x20xf32, #tpu.memory_space<vmem>>, vector<1x20xf32>
    %296 = arith.maximumf %294, %295 : vector<1x20xf32>
    %c16_257 = arith.constant 16 : index
    %c0_258 = arith.constant 0 : index
    %297 = vector.load %arg12[%c16_257, %c0_258] : memref<18x20xf32, #tpu.memory_space<vmem>>, vector<1x20xf32>
    %298 = arith.maximumf %296, %297 : vector<1x20xf32>
    %c17_259 = arith.constant 17 : index
    %c0_260 = arith.constant 0 : index
    %299 = vector.load %arg12[%c17_259, %c0_260] : memref<18x20xf32, #tpu.memory_space<vmem>>, vector<1x20xf32>
    %300 = arith.maximumf %298, %299 : vector<1x20xf32>
    %cst_261 = arith.constant 0.000000e+00 : f32
    %301 = vector.broadcast %cst_261 : f32 to vector<1x20xf32>
    %302 = arith.maximumf %300, %301 : vector<1x20xf32>
    %cst_262 = arith.constant 0.000000e+00 : f32
    %303 = vector.broadcast %cst_262 : f32 to vector<1x60xf32>
    %c0_263 = arith.constant 0 : index
    %c0_264 = arith.constant 0 : index
    %c0_265 = arith.constant 0 : index
    %304 = vector.load %arg6[%c0_263, %c0_264, %c0_265] : memref<1x20x60xf32, #tpu.memory_space<vmem>>, vector<1x20x60xf32>
    %305 = vector.shape_cast %304 : vector<1x20x60xf32> to vector<20x60xf32>
    %cst_266 = arith.constant dense<0.000000e+00> : vector<1x60xf32>
    %306 = tpu.matmul %302, %305, %cst_266 {dimension_numbers = #tpu.dot_dimension_numbers<[1], [0], [0], [1], [0, 0, 1, 1], [], []>} : vector<1x20xf32>, vector<20x60xf32>, vector<1x60xf32> -> vector<1x60xf32>
    %307 = arith.addf %303, %306 : vector<1x60xf32>
    %c0_267 = arith.constant 0 : index
    %c0_268 = arith.constant 0 : index
    %308 = vector.load %arg7[%c0_267, %c0_268] : memref<1x60xf32, #tpu.memory_space<vmem>>, vector<1x60xf32>
    %309 = arith.addf %307, %308 : vector<1x60xf32>
    %cst_269 = arith.constant 0.000000e+00 : f32
    %310 = vector.broadcast %cst_269 : f32 to vector<1x60xf32>
    %311 = arith.maximumf %309, %310 : vector<1x60xf32>
    %c0_270 = arith.constant 0 : index
    %c0_271 = arith.constant 0 : index
    %312 = vector.load %arg8[%c0_270, %c0_271] : memref<60x5xf32, #tpu.memory_space<vmem>>, vector<60x5xf32>
    %cst_272 = arith.constant dense<0.000000e+00> : vector<1x5xf32>
    %313 = tpu.matmul %311, %312, %cst_272 {dimension_numbers = #tpu.dot_dimension_numbers<[1], [0], [0], [1], [0, 0, 1, 1], [], []>} : vector<1x60xf32>, vector<60x5xf32>, vector<1x5xf32> -> vector<1x5xf32>
    %c0_273 = arith.constant 0 : index
    %c0_274 = arith.constant 0 : index
    %314 = vector.load %arg9[%c0_273, %c0_274] : memref<1x5xf32, #tpu.memory_space<vmem>>, vector<1x5xf32>
    %315 = arith.addf %313, %314 : vector<1x5xf32>
    %cst_275 = arith.constant dense<0xFF800000> : vector<1xf32>
    %316 = vector.multi_reduction <maximumf>, %315, %cst_275 [1] : vector<1x5xf32> to vector<1xf32>
    %317 = vector.shape_cast %316 : vector<1xf32> to vector<1x1xf32>
    %318 = vector.broadcast %317 : vector<1x1xf32> to vector<1x5xf32>
    %319 = arith.subf %315, %318 : vector<1x5xf32>
    %320 = math.exp %319 : vector<1x5xf32>
    %cst_276 = arith.constant dense<0.000000e+00> : vector<1xf32>
    %321 = vector.multi_reduction <add>, %320, %cst_276 [1] : vector<1x5xf32> to vector<1xf32>
    %322 = vector.shape_cast %321 : vector<1xf32> to vector<1x1xf32>
    %323 = tpu.reciprocal %322 {approx = true} : vector<1x1xf32> -> vector<1x1xf32>
    %324 = vector.broadcast %323 : vector<1x1xf32> to vector<1x5xf32>
    %325 = arith.mulf %320, %324 : vector<1x5xf32>
    %c0_277 = arith.constant 0 : index
    %c0_278 = arith.constant 0 : index
    %c0_279 = arith.constant 0 : index
    %326 = vector.load %arg10[%c0_277, %c0_278, %c0_279] : memref<1x1x5xf32, #tpu.memory_space<vmem>>, vector<1x1x5xf32>
    %327 = vector.shape_cast %326 : vector<1x1x5xf32> to vector<1x5xf32>
    %328 = vector.shape_cast %325 : vector<1x5xf32> to vector<1x1x5xf32>
    tpu.vector_store %arg10[%c0_277, %c0_278, %c0_279], %328 {strides = array<i32>} : memref<1x1x5xf32, #tpu.memory_space<vmem>>, vector<1x1x5xf32>,
    return
  }
  func.func @transform_0(%arg0: i32) -> (i32, i32, i32) {
    %c0_i32 = arith.constant 0 : i32
    %c0_i32_0 = arith.constant 0 : i32
    %c0_i32_1 = arith.constant 0 : i32
    return %arg0, %c0_i32, %c0_i32_0 : i32, i32, i32
  }
  func.func @transform_1(%arg0: i32) -> (i32, i32, i32) {
    %c0_i32 = arith.constant 0 : i32
    %c0_i32_0 = arith.constant 0 : i32
    %c0_i32_1 = arith.constant 0 : i32
    %c0_i32_2 = arith.constant 0 : i32
    return %c0_i32, %c0_i32_0, %c0_i32_1 : i32, i32, i32
  }
  func.func @transform_2(%arg0: i32) -> (i32, i32) {
    %c0_i32 = arith.constant 0 : i32
    %c0_i32_0 = arith.constant 0 : i32
    %c0_i32_1 = arith.constant 0 : i32
    return %c0_i32, %c0_i32_0 : i32, i32
  }
  func.func @transform_3(%arg0: i32) -> (i32, i32, i32) {
    %c0_i32 = arith.constant 0 : i32
    %c0_i32_0 = arith.constant 0 : i32
    %c0_i32_1 = arith.constant 0 : i32
    %c0_i32_2 = arith.constant 0 : i32
    return %c0_i32, %c0_i32_0, %c0_i32_1 : i32, i32, i32
  }
  func.func @transform_4(%arg0: i32) -> (i32, i32) {
    %c0_i32 = arith.constant 0 : i32
    %c0_i32_0 = arith.constant 0 : i32
    %c0_i32_1 = arith.constant 0 : i32
    return %c0_i32, %c0_i32_0 : i32, i32
  }
  func.func @transform_5(%arg0: i32) -> (i32, i32, i32) {
    %c0_i32 = arith.constant 0 : i32
    %c0_i32_0 = arith.constant 0 : i32
    %c0_i32_1 = arith.constant 0 : i32
    %c0_i32_2 = arith.constant 0 : i32
    return %c0_i32, %c0_i32_0, %c0_i32_1 : i32, i32, i32
  }
  func.func @transform_6(%arg0: i32) -> (i32, i32) {
    %c0_i32 = arith.constant 0 : i32
    %c0_i32_0 = arith.constant 0 : i32
    %c0_i32_1 = arith.constant 0 : i32
    return %c0_i32, %c0_i32_0 : i32, i32
  }
  func.func @transform_7(%arg0: i32) -> (i32, i32) {
    %c0_i32 = arith.constant 0 : i32
    %c0_i32_0 = arith.constant 0 : i32
    %c0_i32_1 = arith.constant 0 : i32
    return %c0_i32, %c0_i32_0 : i32, i32
  }
  func.func @transform_8(%arg0: i32) -> (i32, i32) {
    %c0_i32 = arith.constant 0 : i32
    %c0_i32_0 = arith.constant 0 : i32
    %c0_i32_1 = arith.constant 0 : i32
    return %c0_i32, %c0_i32_0 : i32, i32
  }
  func.func @transform_9(%arg0: i32) -> (i32, i32, i32) {
    %c0_i32 = arith.constant 0 : i32
    %c0_i32_0 = arith.constant 0 : i32
    %c0_i32_1 = arith.constant 0 : i32
    return %arg0, %c0_i32, %c0_i32_0 : i32, i32, i32
  }
}

</mosaic_0001>

<bundles_post_ra>
// kernel: forward.1
= control target key start
LH: loop header
LB: loop body
LE: loop exit
PB: predicated region body
PF: predicated region fallthrough
CT: control target
= control target key end

     0   :  { %14 = vsyncpa [#allocation5], 0  ;;  %s18140_s0 = inlined_call_operand.vmem [shape: f32[2,256,3], index: 0, kind: input, shape index: {}]   ;;  %s18141_s1 = inlined_call_operand.vmem [shape: f32[25,3,10], index: 1, kind: input, shape index: {}]   ;;  %s18142_s2 = inlined_call_operand.vmem [shape: f32[1,10], index: 2, kind: input, shape index: {}]   ;;  %s18143_s3 = inlined_call_operand.vmem [shape: f32[25,10,20], index: 3, kind: input, shape index: {}]   ;;  %s18144_s4 = inlined_call_operand.vmem [shape: f32[1,20], index: 4, kind: input, shape index: {}]   ;;  %s18145_s5 = inlined_call_operand.vmem [shape: f32[1,20,60], index: 5, kind: input, shape index: {}]   ;;  %s18146_s6 = inlined_call_operand.vmem [shape: f32[1,60], index: 6, kind: input, shape index: {}]   ;;  %s18147_s7 = inlined_call_operand.vmem [shape: f32[60,5], index: 7, kind: input, shape index: {}]   ;;  %s18148_s8 = inlined_call_operand.vmem [shape: f32[1,5], index: 8, kind: input, shape index: {}]   ;;  %s18149_s9 = inlined_call_operand.hbm [shape: f32[2,1,5], index: 9, kind: output, shape index: {}]  }
   0x1   :  { %16 = vsyncpa [#allocation5 + $0x1], 0  ;;  %s13955_s30 = smov 0   ;;  %s13957_s10 = smov 0  }
   0x2   :  { %s13959_s11 = smov 0   ;;  %s13961_s12 = smov 0  }
   0x3 LB: > { %s13976_s13 = sadd.s32 4294967295, %s13900_s12   ;;  %s10914_s14 = sadd.s32 4294967294, %s13900_s12   ;;  %s13900_s12 = sphi %s13961_s12, %s18596_s12   ;;  %s13896_s11 = sphi %s13959_s11, %s18595_s11   ;;  %s13892_s10 = sphi %s13957_s10, %s18594_s10   ;;  %s13888_s30 = sphi %s13955_s30, %s18593_s30  }
   0x4   : > { %s13980_s15 = sadd.s32 1, %s13900_s12   ;;  %s223_s16 = sadd.s32 1, %s13896_s11 }
   0x5   : > { %s220_s17 = ssub.s32 %s13900_s12, %s13980_s15  ;;  %p233_p0 = scmp.ne.s32.totalorder %s13896_s11, %s13892_s10 }
   0x6   : > { %p221_p1 = scmp.eq.s32.totalorder %s220_s17, 0  ;;  %p234_p2 = scmp.eq.s32.totalorder %s13976_s13, 1 }
   0x7   : > { %p239_p3 = scmp.ne.s32.totalorder %s13892_s10, %s13888_s30  ;;  %p240_p4 = scmp.eq.s32.totalorder %s10914_s14, 1 }
   0x8   : > { %s13991_s18 = scalar_select %p221_p1, %s13896_s11, %s223_s16  }
   0x9   : > { %p13993_p5 = por %p234_p2, %p233_p0  ;;  %p13997_p6 = por %p240_p4, %p239_p3 }
   0xa   : > { %p10917_p7 = scmp.ge.s32.totalorder %s13900_s12, 1  ;;  %p290_p8 = scmp.lt.s32.totalorder %s13900_s12, 3 }
   0xc   : > { %p291_p9 = pnand %p10917_p7, %p290_p8 }
   0xe   : > { %294 = sbr.rel (%p291_p9) target bundleno = 1914 (0x77a), region = 56 }
  0x13   : > { %v10920_v0 = vld [vmem:[%s18141_s1 + $0x4] sm:$0x7]  ;;  %vm454_vm0 = vcmask 1042432   ;;  %p325_p10 = scmp.lt.s32.totalorder %s13976_s13, 1  ;;  %v10971_v1 = vld [vmem:[%s18141_s1 + $0x8] sm:$0x7] }
  0x14   : > { %12490 = vmatprep.subr.msk.mxu0 %vm454_vm0, %v10920_v0  ;;  %13793 = vmatprep.subr.msk.mxu1 %vm454_vm0, %v10920_v0  ;;  %v354_v2 = vld [vmem:[%s18141_s1] sm:$0x7]  ;;  %vm381_vm1 = vcmask 23552   ;;  %v10997_v9 = vld [vmem:[%s18141_s1 + $0xc] sm:$0x7]  ;;  %vm8203_vm2 = vcmask 1041408  }
  0x15   : > { %12491 = vmatpush3.msk.msra.mxu0 %vm454_vm0, %v10920_v0  ;;  %13794 = vmatpush3.msk.msra.mxu1 %vm454_vm0, %v10920_v0  ;;  %s326_s27 = scalar_select %p325_p10, %s13976_s13, 1  ;;  %v14051_v10 = vld [vmem:[%s18141_s1 + $0x10] sm:$0x7]  ;;  %v14092_v19 = vld [vmem:[%s18141_s1 + $0x14] sm:$0x7]  ;;  %vm13903_vm3 = vmmov 0  }
  0x16   : > { %12566 = vmatprep.subr.msk.mxu0 %vm454_vm0, %v10971_v1  ;;  %12528 = vmatprep.subr.msk.mxu1 %vm454_vm0, %v354_v2  ;;  %v14251_v52 = vld [vmem:[%s18141_s1 + $0x18] sm:$0x7]  ;;  %vm8064_vm4 = vcmask 80896   ;;  %vm8191_vm5 = vcmask 1046528   ;;  %vm8581_vm6 = vcmask 1043456   ;;  %vm8088_vm7 = vcmask 76800  }
  0x17   : > { %s11726_s28 = sshll.u32 %s326_s27, 8  ;;  %vm8379_vm8 = vcmask 1045504   ;;  %vm8480_vm9 = vcmask 1044480   ;;  %vm10653_vm10 = vcmask 162816   ;;  %vm10656_vm11 = vcmask 156672   ;;  %s323_s29 = sand.u32 1, %s13892_s10  }
  0x18   : > { %s14023_s16 = scalar_lea.vmem %s18140_s0, %s11726_s28  ;;  %vm10756_vm12 = vcmask 490496   ;;  %vm10833_vm13 = vcmask 32768   ;;  %s11723_s14 = sshll.u32 %s13976_s13, 4 }
  0x19   : > { %v355_v3 = vld [vmem:[%s14023_s16 + $0x1] sm:$0xff]  ;;  %v356_v5 = vld [vmem:[%s14023_s16 + $0x9] sm:$0xff]  ;;  %v14037_v7 = vld [vmem:[%s14023_s16 + $0x11] sm:$0xff]  ;;  %s10857_s23 = scalar_lea.hbm %s18149_s9, %s11723_s14  ;;  %s10847_s24 = scalar_lea.sflag [#allocation5], %s323_s29 }
  0x1a   : > { %v14027_v4 = vld [vmem:[%s14023_s16 + $0xa1] sm:$0xff]  ;;  %12492 = vmatprep.mubr.msk.f32.mxu0 %vm381_vm1, %v355_v3  ;;  %v14034_v6 = vld [vmem:[%s14023_s16 + $0xa9] sm:$0xff]  ;;  %v14040_v8 = vld [vmem:[%s14023_s16 + $0xb1] sm:$0xff]  ;;  %s13904_s26 = smov [#allocation4]  }
  0x1b   : > { %12522 = vmatprep.mubr.msk.f32.mxu1 %vm381_vm1, %v14027_v4  ;;  %12493 = vmatmul.mubr.msk.f32.vlgmr.msra.gmra.mxu0 %vm381_vm1, %v356_v5  ;;  %v14057_v11 = vld [vmem:[%s14023_s16 + $0x19] sm:$0xff]  ;;  %v14063_v13 = vld [vmem:[%s14023_s16 + $0x21] sm:$0xff]  ;;  %v14077_v15 = vld [vmem:[%s14023_s16 + $0x29] sm:$0xff]  ;;  %s13844_s27 = sshll.u32 %s13904_s26, 4  ;;  %s13845_s27 = int_to_ptr.vmem [resolvable:$false] %s13844_s27 }
  0x1c   : > { %12523 = vmatmul.mubr.msk.f32.vlgmr.msra.gmra.mxu1 %vm381_vm1, %v14034_v6  ;;  %12567 = vmatpush3.msk.msra.mxu0 %vm454_vm0, %v10971_v1  ;;  %v378_v12 = vld [vmem:[%s14023_s16 + $0xb9] sm:$0xf]  ;;  %v330_v14 = vld [vmem:[%s14023_s16] sm:$0xff]  ;;  %v331_v16 = vld [vmem:[%s14023_s16 + $0x8] sm:$0xff]  ;;  %s13846_s13 = scalar_lea.vmem %s13845_s27, 32 }
  0x1d   : > { %12495 = vmatprep.mubr.msk.f32.mxu0 %vm381_vm1, %v14037_v7  ;;  %12525 = vmatprep.mubr.msk.f32.mxu1 %vm381_vm1, %v14040_v8  ;;  %v14081_v17 = vld [vmem:[%s14023_s16 + $0x31] sm:$0xff]  ;;  %v14099_v20 = vld [vmem:[%s14023_s16 + $0x39] sm:$0xff]  ;;  %v14105_v22 = vld [vmem:[%s14023_s16 + $0x41] sm:$0xff] }
  0x1e   : > { %12529 = vmatpush3.msk.msra.mxu1 %vm454_vm0, %v354_v2  ;;  %12642 = vmatprep.subr.msk.mxu0 %vm454_vm0, %v14051_v10  ;;  %v14084_v18 = vld [vmem:[%s14023_s16 + $0x10] sm:$0xff]  ;;  %v14102_v21 = vld [vmem:[%s14023_s16 + $0x18] sm:$0xff]  ;;  %v14108_v23 = vld [vmem:[%s14023_s16 + $0x20] sm:$0xff] }
  0x1f   : > { %12604 = vmatprep.subr.msk.mxu1 %vm454_vm0, %v10997_v9  ;;  %12496 = vmatmul.mubr.msk.f32.gmra.mxu0 %vm381_vm1, %v14057_v11  ;;  %v14122_v24 = vld [vmem:[%s14023_s16 + $0x49] sm:$0xff]  ;;  %v14128_v26 = vld [vmem:[%s14023_s16 + $0x51] sm:$0xff]  ;;  %v14142_v28 = vld [vmem:[%s14023_s16 + $0x59] sm:$0xff] }
  0x20   : > { %12526 = vmatmul.mubr.msk.f32.gmra.mxu1 %vm381_vm1, %v378_v12  ;;  %12498 = vmatprep.mubr.msk.f32.mxu0 %vm381_vm1, %v14063_v13  ;;  %v14125_v25 = vld [vmem:[%s14023_s16 + $0x28] sm:$0xff]  ;;  %v14131_v27 = vld [vmem:[%s14023_s16 + $0x30] sm:$0xff]  ;;  %v14145_v29 = vld [vmem:[%s14023_s16 + $0x38] sm:$0xff] }
  0x21   : > { %12530 = vmatprep.mubr.msk.f32.mxu1 %vm381_vm1, %v330_v14  ;;  %v14148_v30 = vld [vmem:[%s14023_s16 + $0x61] sm:$0xff]  ;;  %v14162_v32 = vld [vmem:[%s14023_s16 + $0x69] sm:$0xff]  ;;  %v14168_v34 = vld [vmem:[%s14023_s16 + $0x71] sm:$0xff] }
  0x22   : > { %v14151_v31 = vld [vmem:[%s14023_s16 + $0x40] sm:$0xff]  ;;  %v14165_v33 = vld [vmem:[%s14023_s16 + $0x48] sm:$0xff]  ;;  %v14171_v35 = vld [vmem:[%s14023_s16 + $0x50] sm:$0xff] }
  0x23   : > { %12499 = vmatmul.mubr.msk.f32.gmra.mxu0 %vm381_vm1, %v14077_v15  ;;  %v14182_v36 = vld [vmem:[%s14023_s16 + $0x79] sm:$0xff]  ;;  %v14188_v38 = vld [vmem:[%s14023_s16 + $0x81] sm:$0xff]  ;;  %v14202_v40 = vld [vmem:[%s14023_s16 + $0x89] sm:$0xff] }
  0x24   : > { %12531 = vmatmul.mubr.msk.f32.vlgmr.msra.gmra.mxu1 %vm381_vm1, %v331_v16  ;;  %12501 = vmatprep.mubr.msk.f32.mxu0 %vm381_vm1, %v14081_v17  ;;  %v14185_v37 = vld [vmem:[%s14023_s16 + $0x58] sm:$0xff]  ;;  %v14191_v39 = vld [vmem:[%s14023_s16 + $0x60] sm:$0xff]  ;;  %v14205_v41 = vld [vmem:[%s14023_s16 + $0x68] sm:$0xff] }
  0x25   : > { %12533 = vmatprep.mubr.msk.f32.mxu1 %vm381_vm1, %v14084_v18  ;;  %12605 = vmatpush3.msk.msra.mxu1 %vm454_vm0, %v10997_v9  ;;  %v14208_v42 = vld [vmem:[%s14023_s16 + $0x91] sm:$0xff]  ;;  %v14222_v44 = vld [vmem:[%s14023_s16 + $0x99] sm:$0xff]  ;;  %v903_v47 = vld [vmem:[%s14023_s16 + $0x2] sm:$0xff] }
  0x26   : > { %12680 = vmatprep.subr.msk.mxu1 %vm454_vm0, %v14092_v19  ;;  %v14211_v43 = vld [vmem:[%s14023_s16 + $0x70] sm:$0xff]  ;;  %v14225_v45 = vld [vmem:[%s14023_s16 + $0x78] sm:$0xff]  ;;  %v14228_v46 = vld [vmem:[%s14023_s16 + $0x80] sm:$0xff] }
  0x27   : > { %12502 = vmatmul.mubr.msk.f32.gmra.mxu0 %vm381_vm1, %v14099_v20  ;;  %v14239_v48 = vld [vmem:[%s14023_s16 + $0x88] sm:$0xff]  ;;  %v14243_v50 = vld [vmem:[%s14023_s16 + $0x90] sm:$0xff]  ;;  %v14261_v53 = vld [vmem:[%s14023_s16 + $0x98] sm:$0xff] }
  0x28   : > { %12534 = vmatmul.mubr.msk.f32.gmra.mxu1 %vm381_vm1, %v14102_v21  ;;  %12504 = vmatprep.mubr.msk.f32.mxu0 %vm381_vm1, %v14105_v22  ;;  %v904_v49 = vld [vmem:[%s14023_s16 + $0xa] sm:$0xff]  ;;  %v14246_v51 = vld [vmem:[%s14023_s16 + $0x12] sm:$0xff]  ;;  %v14264_v54 = vld [vmem:[%s14023_s16 + $0x1a] sm:$0xff] }
  0x29   : > { %12536 = vmatprep.mubr.msk.f32.mxu1 %vm381_vm1, %v14108_v23  ;;  %v14269_v55 = vld [vmem:[%s14023_s16 + $0xa0] sm:$0xff]  ;;  %v14285_v57 = vld [vmem:[%s14023_s16 + $0xa8] sm:$0xff]  ;;  %v14291_v59 = vld [vmem:[%s14023_s16 + $0xb0] sm:$0xff] }
  0x2a   : > { %v14272_v56 = vld [vmem:[%s14023_s16 + $0x22] sm:$0xff]  ;;  %v14288_v58 = vld [vmem:[%s14023_s16 + $0x2a] sm:$0xff]  ;;  %v14294_v60 = vld [vmem:[%s14023_s16 + $0x32] sm:$0xff] }
  0x2b   : > { %12505 = vmatmul.mubr.msk.f32.gmra.mxu0 %vm381_vm1, %v14122_v24  ;;  %v353_v61 = vld [vmem:[%s14023_s16 + $0xb8] sm:$0xf]  ;;  %v14309_v63 = vld [vmem:[%s14023_s16 + $0x42] sm:$0xff]  ;;  %v14319_v1 = vld [vmem:[%s14023_s16 + $0x4a] sm:$0xff] }
  0x2c   : > { %12537 = vmatmul.mubr.msk.f32.gmra.mxu1 %vm381_vm1, %v14125_v25  ;;  %12507 = vmatprep.mubr.msk.f32.mxu0 %vm381_vm1, %v14128_v26  ;;  %v14306_v62 = vld [vmem:[%s14023_s16 + $0x3a] sm:$0xff]  ;;  %v1213_v0 = vld [vmem:[%s14023_s16 + $0x3] sm:$0xff]  ;;  %v1214_v2 = vld [vmem:[%s14023_s16 + $0xb] sm:$0xff] }
  0x2d   : > { %12539 = vmatprep.mubr.msk.f32.mxu1 %vm381_vm1, %v14131_v27  ;;  %v14323_v3 = vld [vmem:[%s14023_s16 + $0x52] sm:$0xff]  ;;  %v14334_v9 = vld [vmem:[%s18141_s1 + $0x1c] sm:$0x7]  ;;  %v14347_v14 = vld [vmem:[%s14023_s16 + $0x62] sm:$0xff] }
  0x2e   : > { %v14326_v5 = vld [vmem:[%s14023_s16 + $0x13] sm:$0xff]  ;;  %v14344_v12 = vld [vmem:[%s14023_s16 + $0x1b] sm:$0xff]  ;;  %v14350_v16 = vld [vmem:[%s14023_s16 + $0x23] sm:$0xff] }
  0x2f   : > { %12508 = vmatmul.mubr.msk.f32.gmra.mxu0 %vm381_vm1, %v14142_v28  ;;  %18245 = vst [vmem:[#allocation7_spill] sm:$0xff] %v14326_v5  ;;  %18246 = vst [vmem:[#allocation8_spill] sm:$0xff] %v14344_v12 }
  0x30   : > { %12540 = vmatmul.mubr.msk.f32.gmra.mxu1 %vm381_vm1, %v14145_v29  ;;  %12510 = vmatprep.mubr.msk.f32.mxu0 %vm381_vm1, %v14148_v30  ;;  %18247 = vst [vmem:[#allocation9_spill] sm:$0xff] %v14350_v16 }
  0x31   : > { %12542 = vmatprep.mubr.msk.f32.mxu1 %vm381_vm1, %v14151_v31 }
  0x33   : > { %12511 = vmatmul.mubr.msk.f32.gmra.mxu0 %vm381_vm1, %v14162_v32 }
  0x34   : > { %12543 = vmatmul.mubr.msk.f32.gmra.mxu1 %vm381_vm1, %v14165_v33  ;;  %12513 = vmatprep.mubr.msk.f32.mxu0 %vm381_vm1, %v14168_v34 }
  0x35   : > { %12545 = vmatprep.mubr.msk.f32.mxu1 %vm381_vm1, %v14171_v35 }
  0x37   : > { %12514 = vmatmul.mubr.msk.f32.gmra.mxu0 %vm381_vm1, %v14182_v36 }
  0x38   : > { %12546 = vmatmul.mubr.msk.f32.gmra.mxu1 %vm381_vm1, %v14185_v37  ;;  %12516 = vmatprep.mubr.msk.f32.mxu0 %vm381_vm1, %v14188_v38 }
  0x39   : > { %12548 = vmatprep.mubr.msk.f32.mxu1 %vm381_vm1, %v14191_v39 }
  0x3b   : > { %12517 = vmatmul.mubr.msk.f32.gmra.mxu0 %vm381_vm1, %v14202_v40 }
  0x3c   : > { %12549 = vmatmul.mubr.msk.f32.gmra.mxu1 %vm381_vm1, %v14205_v41  ;;  %12519 = vmatprep.mubr.msk.f32.mxu0 %vm381_vm1, %v14208_v42 }
  0x3d   : > { %12551 = vmatprep.mubr.msk.f32.mxu1 %vm381_vm1, %v14211_v43 }
  0x3f   : > { %12520 = vmatmul.mubr.msk.f32.gmra.mxu0 %vm381_vm1, %v14222_v44 }
  0x40   : > { %12552 = vmatmul.mubr.msk.f32.gmra.mxu1 %vm381_vm1, %v14225_v45  ;;  %12568 = vmatprep.mubr.msk.f32.mxu0 %vm381_vm1, %v903_v47  ;;  %v14365_v47 = vld [vmem:[%s14023_s16 + $0x6a] sm:$0xff] }
  0x41   : > { %12554 = vmatprep.mubr.msk.f32.mxu1 %vm381_vm1, %v14228_v46 }
  0x43   : > { %12569 = vmatmul.mubr.msk.f32.vlgmr.msra.gmra.mxu0 %vm381_vm1, %v904_v49  ;;  %v14371_v49 = vld [vmem:[%s14023_s16 + $0x72] sm:$0xff] }
  0x44   : > { %12555 = vmatmul.mubr.msk.f32.gmra.mxu1 %vm381_vm1, %v14239_v48  ;;  %12643 = vmatpush3.msk.msra.mxu0 %vm454_vm0, %v14051_v10  ;;  %v14341_v10 = vld [vmem:[%s14023_s16 + $0x5a] sm:$0xff]  ;;  %18249 = vst [vmem:[#allocation11_spill] sm:$0xff] %v14371_v49 }
  0x45   : > { %12557 = vmatprep.mubr.msk.f32.mxu1 %vm381_vm1, %v14243_v50  ;;  %12571 = vmatprep.mubr.msk.f32.mxu0 %vm381_vm1, %v14246_v51 }
  0x46   : > { %12718 = vmatprep.subr.msk.mxu0 %vm454_vm0, %v14251_v52 }
  0x47   : > { %12572 = vmatmul.mubr.msk.f32.gmra.mxu0 %vm381_vm1, %v14264_v54 }
  0x48   : > { %12558 = vmatmul.mubr.msk.f32.gmra.mxu1 %vm381_vm1, %v14261_v53  ;;  %12574 = vmatprep.mubr.msk.f32.mxu0 %vm381_vm1, %v14272_v56 }
  0x49   : > { %12560 = vmatprep.mubr.msk.f32.mxu1 %vm381_vm1, %v14269_v55 }
  0x4b   : > { %12575 = vmatmul.mubr.msk.f32.gmra.mxu0 %vm381_vm1, %v14288_v58 }
  0x4c   : > { %12561 = vmatmul.mubr.msk.f32.gmra.mxu1 %vm381_vm1, %v14285_v57  ;;  %12577 = vmatprep.mubr.msk.f32.mxu0 %vm381_vm1, %v14294_v60 }
  0x4d   : > { %12563 = vmatprep.mubr.msk.f32.mxu1 %vm381_vm1, %v14291_v59 }
  0x4f   : > { %12578 = vmatmul.mubr.msk.f32.gmra.mxu0 %vm381_vm1, %v14306_v62 }
  0x50   : > { %12564 = vmatmul.mubr.msk.f32.gmra.mxu1 %vm381_vm1, %v353_v61  ;;  %12580 = vmatprep.mubr.msk.f32.mxu0 %vm381_vm1, %v14309_v63  ;;  %v14374_v61 = vld [vmem:[%s14023_s16 + $0x33] sm:$0xff] }
  0x51   : > { %12606 = vmatprep.mubr.msk.f32.mxu1 %vm381_vm1, %v1213_v0  ;;  %18250 = vst [vmem:[#allocation12_spill] sm:$0xff] %v14374_v61  ;;  %v14385_v0 = vld [vmem:[%s14023_s16 + $0x7a] sm:$0xff] }
  0x52   : > { %18251 = vst [vmem:[#allocation13_spill] sm:$0xff] %v14385_v0 }
  0x53   : > { %12581 = vmatmul.mubr.msk.f32.gmra.mxu0 %vm381_vm1, %v14319_v1 }
  0x54   : > { %12607 = vmatmul.mubr.msk.f32.vlgmr.msra.gmra.mxu1 %vm381_vm1, %v1214_v2  ;;  %12583 = vmatprep.mubr.msk.f32.mxu0 %vm381_vm1, %v14323_v3  ;;  %v14388_v2 = vld [vmem:[%s14023_s16 + $0x3b] sm:$0xff] }
  0x55   : > { %12609 = vmatprep.mubr.msk.f32.mxu1 %vm381_vm1, %v14326_v5  ;;  %12681 = vmatpush3.msk.msra.mxu1 %vm454_vm0, %v14092_v19  ;;  %v14368_v19 = vld [vmem:[%s14023_s16 + $0x2b] sm:$0xff]  ;;  %18252 = vst [vmem:[#allocation14_spill] sm:$0xff] %v14388_v2 }
  0x56   : > { %12756 = vmatprep.subr.msk.mxu1 %vm454_vm0, %v14334_v9  ;;  %18248 = vst [vmem:[#allocation10_spill] sm:$0xff] %v14368_v19  ;;  %v14411_v5 = vld [vmem:[%s14023_s16 + $0x92] sm:$0xff] }
  0x57   : > { %12584 = vmatmul.mubr.msk.f32.gmra.mxu0 %vm381_vm1, %v14341_v10  ;;  %18257 = vst [vmem:[#allocation19_spill] sm:$0xff] %v14411_v5 }
  0x58   : > { %12610 = vmatmul.mubr.msk.f32.gmra.mxu1 %vm381_vm1, %v14344_v12  ;;  %12586 = vmatprep.mubr.msk.f32.mxu0 %vm381_vm1, %v14347_v14  ;;  %v14394_v12 = vld [vmem:[%s14023_s16 + $0x43] sm:$0xff] }
  0x59   : > { %12612 = vmatprep.mubr.msk.f32.mxu1 %vm381_vm1, %v14350_v16  ;;  %v14391_v16 = vld [vmem:[%s14023_s16 + $0x82] sm:$0xff]  ;;  %18254 = vst [vmem:[#allocation16_spill] sm:$0xff] %v14394_v12 }
  0x5a   : > { %18253 = vst [vmem:[#allocation15_spill] sm:$0xff] %v14391_v16 }
  0x5b   : > { %12587 = vmatmul.mubr.msk.f32.gmra.mxu0 %vm381_vm1, %v14365_v47 }
  0x5c   : > { %12613 = vmatmul.mubr.msk.f32.gmra.mxu1 %vm381_vm1, %v14368_v19  ;;  %12589 = vmatprep.mubr.msk.f32.mxu0 %vm381_vm1, %v14371_v49  ;;  %v14408_v19 = vld [vmem:[%s14023_s16 + $0x4b] sm:$0xff]  ;;  %v14414_v49 = vld [vmem:[%s14023_s16 + $0x53] sm:$0xff] }
  0x5d   : > { %12615 = vmatprep.mubr.msk.f32.mxu1 %vm381_vm1, %v14374_v61  ;;  %v14405_v61 = vld [vmem:[%s14023_s16 + $0x8a] sm:$0xff]  ;;  %18256 = vst [vmem:[#allocation18_spill] sm:$0xff] %v14408_v19  ;;  %18258 = vst [vmem:[#allocation20_spill] sm:$0xff] %v14414_v49 }
  0x5e   : > { %18255 = vst [vmem:[#allocation17_spill] sm:$0xff] %v14405_v61 }
  0x5f   : > { %12590 = vmatmul.mubr.msk.f32.gmra.mxu0 %vm381_vm1, %v14385_v0  ;;  %v14434_v0 = vld [vmem:[%s14023_s16 + $0x63] sm:$0xff] }
  0x60   : > { %12616 = vmatmul.mubr.msk.f32.gmra.mxu1 %vm381_vm1, %v14388_v2  ;;  %12592 = vmatprep.mubr.msk.f32.mxu0 %vm381_vm1, %v14391_v16  ;;  %v14428_v2 = vld [vmem:[%s14023_s16 + $0x5b] sm:$0xff]  ;;  %18262 = vst [vmem:[#allocation24_spill] sm:$0xff] %v14434_v0 }
  0x61   : > { %12618 = vmatprep.mubr.msk.f32.mxu1 %vm381_vm1, %v14394_v12  ;;  %v14425_v12 = vld [vmem:[%s14023_s16 + $0x9a] sm:$0xff]  ;;  %18260 = vst [vmem:[#allocation22_spill] sm:$0xff] %v14428_v2  ;;  %v14431_v16 = vld [vmem:[%s14023_s16 + $0xa2] sm:$0xff] }
  0x62   : > { %18259 = vst [vmem:[#allocation21_spill] sm:$0xff] %v14425_v12  ;;  %18261 = vst [vmem:[#allocation23_spill] sm:$0xff] %v14431_v16 }
  0x63   : > { %12593 = vmatmul.mubr.msk.f32.gmra.mxu0 %vm381_vm1, %v14405_v61  ;;  %v14454_v61 = vld [vmem:[%s14023_s16 + $0x73] sm:$0xff] }
  0x64   : > { %12619 = vmatmul.mubr.msk.f32.gmra.mxu1 %vm381_vm1, %v14408_v19  ;;  %12595 = vmatprep.mubr.msk.f32.mxu0 %vm381_vm1, %v14411_v5  ;;  %v14448_v19 = vld [vmem:[%s14023_s16 + $0x6b] sm:$0xff]  ;;  %18266 = vst [vmem:[#allocation28_spill] sm:$0xff] %v14454_v61 }
  0x65   : > { %12621 = vmatprep.mubr.msk.f32.mxu1 %vm381_vm1, %v14414_v49  ;;  %v14445_v49 = vld [vmem:[%s14023_s16 + $0xaa] sm:$0xff]  ;;  %18264 = vst [vmem:[#allocation26_spill] sm:$0xff] %v14448_v19  ;;  %v14451_v5 = vld [vmem:[%s14023_s16 + $0xb2] sm:$0xff] }
  0x66   : > { %18263 = vst [vmem:[#allocation25_spill] sm:$0xff] %v14445_v49  ;;  %18265 = vst [vmem:[#allocation27_spill] sm:$0xff] %v14451_v5 }
  0x67   : > { %12596 = vmatmul.mubr.msk.f32.gmra.mxu0 %vm381_vm1, %v14425_v12  ;;  %v1523_v12 = vld [vmem:[%s14023_s16 + $0x4] sm:$0xff] }
  0x68   : > { %12622 = vmatmul.mubr.msk.f32.gmra.mxu1 %vm381_vm1, %v14428_v2  ;;  %12598 = vmatprep.mubr.msk.f32.mxu0 %vm381_vm1, %v14431_v16  ;;  %v14466_v2 = vld [vmem:[%s14023_s16 + $0x7b] sm:$0xff]  ;;  %v14469_v16 = vld [vmem:[%s14023_s16 + $0x83] sm:$0xff] }
  0x69   : > { %12624 = vmatprep.mubr.msk.f32.mxu1 %vm381_vm1, %v14434_v0  ;;  %v926_v0 = vld [vmem:[%s14023_s16 + $0xba] sm:$0xf]  ;;  %18267 = vst [vmem:[#allocation29_spill] sm:$0xff] %v14466_v2  ;;  %18268 = vst [vmem:[#allocation30_spill] sm:$0xff] %v14469_v16 }
  0x6b   : > { %12599 = vmatmul.mubr.msk.f32.gmra.mxu0 %vm381_vm1, %v14445_v49  ;;  %v14486_v49 = vld [vmem:[%s14023_s16 + $0x14] sm:$0xff] }
  0x6c   : > { %12625 = vmatmul.mubr.msk.f32.gmra.mxu1 %vm381_vm1, %v14448_v19  ;;  %12601 = vmatprep.mubr.msk.f32.mxu0 %vm381_vm1, %v14451_v5  ;;  %v1524_v19 = vld [vmem:[%s14023_s16 + $0xc] sm:$0xff]  ;;  %18271 = vst [vmem:[#allocation33_spill] sm:$0xff] %v14486_v49 }
  0x6d   : > { %12627 = vmatprep.mubr.msk.f32.mxu1 %vm381_vm1, %v14454_v61  ;;  %v14479_v61 = vld [vmem:[%s14023_s16 + $0x8b] sm:$0xff]  ;;  %v14483_v5 = vld [vmem:[%s14023_s16 + $0x93] sm:$0xff] }
  0x6e   : > { %18269 = vst [vmem:[#allocation31_spill] sm:$0xff] %v14479_v61  ;;  %18270 = vst [vmem:[#allocation32_spill] sm:$0xff] %v14483_v5 }
  0x6f   : > { %12602 = vmatmul.mubr.msk.f32.gmra.mxu0 %vm381_vm1, %v926_v0  ;;  %v14491_v0 = vld [vmem:[%s18141_s1 + $0x20] sm:$0x7] }
  0x70   : > { %12628 = vmatmul.mubr.msk.f32.gmra.mxu1 %vm381_vm1, %v14466_v2  ;;  %12644 = vmatprep.mubr.msk.f32.mxu0 %vm381_vm1, %v1523_v12  ;;  %v14501_v12 = vld [vmem:[%s14023_s16 + $0x9b] sm:$0xff]  ;;  %v14509_v2 = vld [vmem:[%s14023_s16 + $0xa3] sm:$0xff] }
  0x71   : > { %12630 = vmatprep.mubr.msk.f32.mxu1 %vm381_vm1, %v14469_v16  ;;  %18272 = vst [vmem:[#allocation34_spill] sm:$0xff] %v14501_v12  ;;  %v14504_v16 = vld [vmem:[%s14023_s16 + $0x1c] sm:$0xff]  ;;  %18273 = vst [vmem:[#allocation35_spill] sm:$0xff] %v14509_v2 }
  0x73   : > { %12645 = vmatmul.mubr.msk.f32.vlgmr.msra.gmra.mxu0 %vm381_vm1, %v1524_v19  ;;  %v14528_v19 = vld [vmem:[%s14023_s16 + $0x2c] sm:$0xff] }
  0x74   : > { %12631 = vmatmul.mubr.msk.f32.gmra.mxu1 %vm381_vm1, %v14479_v61  ;;  %12719 = vmatpush3.msk.msra.mxu0 %vm454_vm0, %v14251_v52  ;;  %v14512_v61 = vld [vmem:[%s14023_s16 + $0x24] sm:$0xff] }
  0x75   : > { %12633 = vmatprep.mubr.msk.f32.mxu1 %vm381_vm1, %v14483_v5  ;;  %12647 = vmatprep.mubr.msk.f32.mxu0 %vm381_vm1, %v14486_v49  ;;  %18274 = vst [vmem:[#allocation36_spill] sm:$0xff] %v14512_v61  ;;  %v14525_v52 = vld [vmem:[%s14023_s16 + $0xab] sm:$0xff]  ;;  %v14531_v5 = vld [vmem:[%s14023_s16 + $0xb3] sm:$0xff] }
  0x76   : > { %12794 = vmatprep.subr.msk.mxu0 %vm454_vm0, %v14491_v0  ;;  %18275 = vst [vmem:[#allocation37_spill] sm:$0xff] %v14525_v52  ;;  %18276 = vst [vmem:[#allocation38_spill] sm:$0xff] %v14531_v5  ;;  %v14534_v49 = vld [vmem:[%s14023_s16 + $0x34] sm:$0xff] }
  0x77   : > { %12648 = vmatmul.mubr.msk.f32.gmra.mxu0 %vm381_vm1, %v14504_v16 }
  0x78   : > { %12634 = vmatmul.mubr.msk.f32.gmra.mxu1 %vm381_vm1, %v14501_v12  ;;  %12650 = vmatprep.mubr.msk.f32.mxu0 %vm381_vm1, %v14512_v61  ;;  %v14546_v12 = vld [vmem:[%s14023_s16 + $0x3c] sm:$0xff]  ;;  %v14549_v61 = vld [vmem:[%s14023_s16 + $0x44] sm:$0xff] }
  0x79   : > { %12636 = vmatprep.mubr.msk.f32.mxu1 %vm381_vm1, %v14509_v2  ;;  %v1236_v2 = vld [vmem:[%s14023_s16 + $0xbb] sm:$0xf]  ;;  %18277 = vst [vmem:[#allocation39_spill] sm:$0xff] %v14549_v61 }
  0x7b   : > { %12651 = vmatmul.mubr.msk.f32.gmra.mxu0 %vm381_vm1, %v14528_v19 }
  0x7c   : > { %12637 = vmatmul.mubr.msk.f32.gmra.mxu1 %vm381_vm1, %v14525_v52  ;;  %12653 = vmatprep.mubr.msk.f32.mxu0 %vm381_vm1, %v14534_v49  ;;  %v14562_v52 = vld [vmem:[%s14023_s16 + $0x54] sm:$0xff] }
  0x7d   : > { %12639 = vmatprep.mubr.msk.f32.mxu1 %vm381_vm1, %v14531_v5  ;;  %v14559_v5 = vld [vmem:[%s14023_s16 + $0x4c] sm:$0xff] }
  0x7f   : > { %12654 = vmatmul.mubr.msk.f32.gmra.mxu0 %vm381_vm1, %v14546_v12 }
  0x80   : > { %12640 = vmatmul.mubr.msk.f32.gmra.mxu1 %vm381_vm1, %v1236_v2  ;;  %12656 = vmatprep.mubr.msk.f32.mxu0 %vm381_vm1, %v14549_v61  ;;  %v14571_v2 = vld [vmem:[%s18141_s1 + $0x24] sm:$0x7] }
  0x81   : > { %12682 = vmatprep.mubr.msk.f32.mxu1 %vm381_vm1, %v14084_v18  ;;  %v14578_v18 = vld [vmem:[%s14023_s16 + $0x5c] sm:$0xff]  ;;  %v14581_v61 = vld [vmem:[%s14023_s16 + $0x64] sm:$0xff] }
  0x83   : > { %12657 = vmatmul.mubr.msk.f32.gmra.mxu0 %vm381_vm1, %v14559_v5 }
  0x84   : > { %12683 = vmatmul.mubr.msk.f32.vlgmr.msra.gmra.mxu1 %vm381_vm1, %v14102_v21  ;;  %12659 = vmatprep.mubr.msk.f32.mxu0 %vm381_vm1, %v14562_v52  ;;  %v14596_v21 = vld [vmem:[%s14023_s16 + $0x6c] sm:$0xff] }
  0x85   : > { %12685 = vmatprep.mubr.msk.f32.mxu1 %vm381_vm1, %v14108_v23  ;;  %12757 = vmatpush3.msk.msra.mxu1 %vm454_vm0, %v14334_v9  ;;  %v14599_v23 = vld [vmem:[%s14023_s16 + $0x74] sm:$0xff] }
  0x86   : > { %12832 = vmatprep.subr.msk.mxu1 %vm454_vm0, %v14571_v2  ;;  %v14655_v9 = vld [vmem:[%s14023_s16 + $0xb4] sm:$0xff] }
  0x87   : > { %12660 = vmatmul.mubr.msk.f32.gmra.mxu0 %vm381_vm1, %v14578_v18 }
  0x88   : > { %12686 = vmatmul.mubr.msk.f32.gmra.mxu1 %vm381_vm1, %v14125_v25  ;;  %12662 = vmatprep.mubr.msk.f32.mxu0 %vm381_vm1, %v14581_v61  ;;  %v14610_v25 = vld [vmem:[%s14023_s16 + $0x7c] sm:$0xff] }
  0x89   : > { %12688 = vmatprep.mubr.msk.f32.mxu1 %vm381_vm1, %v14131_v27  ;;  %v14613_v27 = vld [vmem:[%s14023_s16 + $0x84] sm:$0xff] }
  0x8b   : > { %12663 = vmatmul.mubr.msk.f32.gmra.mxu0 %vm381_vm1, %v14596_v21 }
  0x8c   : > { %12689 = vmatmul.mubr.msk.f32.gmra.mxu1 %vm381_vm1, %v14145_v29  ;;  %12665 = vmatprep.mubr.msk.f32.mxu0 %vm381_vm1, %v14599_v23  ;;  %v14624_v29 = vld [vmem:[%s14023_s16 + $0x8c] sm:$0xff] }
  0x8d   : > { %12691 = vmatprep.mubr.msk.f32.mxu1 %vm381_vm1, %v14151_v31  ;;  %v14627_v31 = vld [vmem:[%s14023_s16 + $0x94] sm:$0xff] }
  0x8f   : > { %12666 = vmatmul.mubr.msk.f32.gmra.mxu0 %vm381_vm1, %v14610_v25 }
  0x90   : > { %12692 = vmatmul.mubr.msk.f32.gmra.mxu1 %vm381_vm1, %v14165_v33  ;;  %12668 = vmatprep.mubr.msk.f32.mxu0 %vm381_vm1, %v14613_v27  ;;  %v14638_v33 = vld [vmem:[%s14023_s16 + $0x9c] sm:$0xff] }
  0x91   : > { %12694 = vmatprep.mubr.msk.f32.mxu1 %vm381_vm1, %v14171_v35  ;;  %v14641_v35 = vld [vmem:[%s14023_s16 + $0xa4] sm:$0xff] }
  0x93   : > { %12669 = vmatmul.mubr.msk.f32.gmra.mxu0 %vm381_vm1, %v14624_v29 }
  0x94   : > { %12695 = vmatmul.mubr.msk.f32.gmra.mxu1 %vm381_vm1, %v14185_v37  ;;  %12671 = vmatprep.mubr.msk.f32.mxu0 %vm381_vm1, %v14627_v31  ;;  %v14652_v37 = vld [vmem:[%s14023_s16 + $0xac] sm:$0xff] }
  0x95   : > { %12697 = vmatprep.mubr.msk.f32.mxu1 %vm381_vm1, %v14191_v39  ;;  %v1546_v39 = vld [vmem:[%s14023_s16 + $0xbc] sm:$0xf] }
  0x97   : > { %12672 = vmatmul.mubr.msk.f32.gmra.mxu0 %vm381_vm1, %v14638_v33 }
  0x98   : > { %12698 = vmatmul.mubr.msk.f32.gmra.mxu1 %vm381_vm1, %v14205_v41  ;;  %12674 = vmatprep.mubr.msk.f32.mxu0 %vm381_vm1, %v14641_v35  ;;  %v14676_v41 = vld [vmem:[%s18141_s1 + $0x28] sm:$0x7] }
  0x99   : > { %12700 = vmatprep.mubr.msk.f32.mxu1 %vm381_vm1, %v14211_v43  ;;  %v18290_v43 = vld [vmem:[#allocation27_spill] sm:$0xff] }
  0x9b   : > { %12675 = vmatmul.mubr.msk.f32.gmra.mxu0 %vm381_vm1, %v14652_v37 }
  0x9c   : > { %12701 = vmatmul.mubr.msk.f32.gmra.mxu1 %vm381_vm1, %v14225_v45  ;;  %12677 = vmatprep.mubr.msk.f32.mxu0 %vm381_vm1, %v14655_v9  ;;  %v14825_v45 = vld [vmem:[%s14023_s16 + $0xba] sm:$0xff] }
  0x9d   : > { %12703 = vmatprep.mubr.msk.f32.mxu1 %vm381_vm1, %v14228_v46  ;;  %v14828_v46 = vld [vmem:[%s14023_s16 + $0xc2] sm:$0xff] }
  0x9f   : > { %12678 = vmatmul.mubr.msk.f32.gmra.mxu0 %vm381_vm1, %v1546_v39  ;;  %v18299_v39 = vld [vmem:[#allocation36_spill] sm:$0xff] }
  0xa0   : > { %12704 = vmatmul.mubr.msk.f32.gmra.mxu1 %vm381_vm1, %v14239_v48  ;;  %12720 = vmatprep.mubr.msk.f32.mxu0 %vm381_vm1, %v14037_v7  ;;  %v14699_v7 = vld [vmem:[%s14023_s16 + $0xb8] sm:$0xff] }
  0xa1   : > { %12706 = vmatprep.mubr.msk.f32.mxu1 %vm381_vm1, %v14243_v50 }
  0xa3   : > { %12721 = vmatmul.mubr.msk.f32.vlgmr.msra.gmra.mxu0 %vm381_vm1, %v14057_v11  ;;  %v14702_v11 = vld [vmem:[%s14023_s16 + $0xc0] sm:$0xff] }
  0xa4   : > { %12707 = vmatmul.mubr.msk.f32.gmra.mxu1 %vm381_vm1, %v14261_v53  ;;  %12795 = vmatpush3.msk.msra.mxu0 %vm454_vm0, %v14491_v0  ;;  %v18293_v53 = vld [vmem:[#allocation16_spill] sm:$0xff] }
  0xa5   : > { %12709 = vmatprep.mubr.msk.f32.mxu1 %vm381_vm1, %v14269_v55  ;;  %12723 = vmatprep.mubr.msk.f32.mxu0 %vm381_vm1, %v14063_v13  ;;  %v1856_v13 = vld [vmem:[%s14023_s16 + $0xc8] sm:$0xf] }
  0xa6   : > { %12870 = vmatprep.subr.msk.mxu0 %vm454_vm0, %v14676_v41 }
  0xa7   : > { %12724 = vmatmul.mubr.msk.f32.gmra.mxu0 %vm381_vm1, %v14077_v15  ;;  %v14727_v15 = vld [vmem:[%s18141_s1 + $0x2c] sm:$0x7] }
  0xa8   : > { %12710 = vmatmul.mubr.msk.f32.gmra.mxu1 %vm381_vm1, %v14285_v57  ;;  %12726 = vmatprep.mubr.msk.f32.mxu0 %vm381_vm1, %v14081_v17  ;;  %v18278_v17 = vld [vmem:[#allocation11_spill] sm:$0xff] }
  0xa9   : > { %12712 = vmatprep.mubr.msk.f32.mxu1 %vm381_vm1, %v14291_v59  ;;  %v18294_v59 = vld [vmem:[#allocation18_spill] sm:$0xff] }
  0xab   : > { %12727 = vmatmul.mubr.msk.f32.gmra.mxu0 %vm381_vm1, %v14099_v20  ;;  %v14778_v20 = vld [vmem:[%s14023_s16 + $0xb9] sm:$0xff] }
  0xac   : > { %12713 = vmatmul.mubr.msk.f32.gmra.mxu1 %vm381_vm1, %v14699_v7  ;;  %12729 = vmatprep.mubr.msk.f32.mxu0 %vm381_vm1, %v14105_v22  ;;  %v14781_v22 = vld [vmem:[%s14023_s16 + $0xc1] sm:$0xff] }
  0xad   : > { %12715 = vmatprep.mubr.msk.f32.mxu1 %vm381_vm1, %v14702_v11 }
  0xaf   : > { %12730 = vmatmul.mubr.msk.f32.gmra.mxu0 %vm381_vm1, %v14122_v24  ;;  %v18281_v24 = vld [vmem:[#allocation17_spill] sm:$0xff] }
  0xb0   : > { %12716 = vmatmul.mubr.msk.f32.gmra.mxu1 %vm381_vm1, %v1856_v13  ;;  %12732 = vmatprep.mubr.msk.f32.mxu0 %vm381_vm1, %v14128_v26  ;;  %v18282_v26 = vld [vmem:[#allocation19_spill] sm:$0xff] }
  0xb1   : > { %12758 = vmatprep.mubr.msk.f32.mxu1 %vm381_vm1, %v14246_v51  ;;  %v18292_v51 = vld [vmem:[#allocation14_spill] sm:$0xff] }
  0xb3   : > { %12733 = vmatmul.mubr.msk.f32.gmra.mxu0 %vm381_vm1, %v14142_v28  ;;  %v18283_v28 = vld [vmem:[#allocation7_spill] sm:$0xff] }
  0xb4   : > { %12759 = vmatmul.mubr.msk.f32.vlgmr.msra.gmra.mxu1 %vm381_vm1, %v14264_v54  ;;  %12735 = vmatprep.mubr.msk.f32.mxu0 %vm381_vm1, %v14148_v30  ;;  %v14802_v30 = vld [vmem:[%s18141_s1 + $0x30] sm:$0x7]  ;;  %v2476_v54 = vld [vmem:[%s14023_s16 + $0xca] sm:$0xf] }
  0xb5   : > { %12761 = vmatprep.mubr.msk.f32.mxu1 %vm381_vm1, %v14272_v56  ;;  %12833 = vmatpush3.msk.msra.mxu1 %vm454_vm0, %v14571_v2  ;;  %v18298_v2 = vld [vmem:[#allocation24_spill] sm:$0xff] }
  0xb6   : > { %12908 = vmatprep.subr.msk.mxu1 %vm454_vm0, %v14727_v15 }
  0xb7   : > { %12736 = vmatmul.mubr.msk.f32.gmra.mxu0 %vm381_vm1, %v14162_v32  ;;  %v18284_v32 = vld [vmem:[#allocation21_spill] sm:$0xff] }
  0xb8   : > { %12762 = vmatmul.mubr.msk.f32.gmra.mxu1 %vm381_vm1, %v14288_v58  ;;  %12738 = vmatprep.mubr.msk.f32.mxu0 %vm381_vm1, %v14168_v34  ;;  %v18285_v34 = vld [vmem:[#allocation8_spill] sm:$0xff] }
  0xb9   : > { %12764 = vmatprep.mubr.msk.f32.mxu1 %vm381_vm1, %v14294_v60  ;;  %v18295_v60 = vld [vmem:[#allocation20_spill] sm:$0xff] }
  0xbb   : > { %12739 = vmatmul.mubr.msk.f32.gmra.mxu0 %vm381_vm1, %v14182_v36  ;;  %v18286_v36 = vld [vmem:[#allocation23_spill] sm:$0xff] }
  0xbc   : > { %12765 = vmatmul.mubr.msk.f32.gmra.mxu1 %vm381_vm1, %v14306_v62  ;;  %12741 = vmatprep.mubr.msk.f32.mxu0 %vm381_vm1, %v14188_v38  ;;  %v18287_v38 = vld [vmem:[#allocation9_spill] sm:$0xff] }
  0xbd   : > { %12767 = vmatprep.mubr.msk.f32.mxu1 %vm381_vm1, %v14309_v63  ;;  %v18296_v62 = vld [vmem:[#allocation33_spill] sm:$0xff] }
  0xbf   : > { %12742 = vmatmul.mubr.msk.f32.gmra.mxu0 %vm381_vm1, %v14202_v40  ;;  %v18288_v40 = vld [vmem:[#allocation25_spill] sm:$0xff] }
  0xc0   : > { %12768 = vmatmul.mubr.msk.f32.gmra.mxu1 %vm381_vm1, %v14319_v1  ;;  %12744 = vmatprep.mubr.msk.f32.mxu0 %vm381_vm1, %v14208_v42  ;;  %v18289_v42 = vld [vmem:[#allocation10_spill] sm:$0xff] }
  0xc1   : > { %12770 = vmatprep.mubr.msk.f32.mxu1 %vm381_vm1, %v14323_v3 }
  0xc3   : > { %12745 = vmatmul.mubr.msk.f32.gmra.mxu0 %vm381_vm1, %v14222_v44  ;;  %v18291_v44 = vld [vmem:[#allocation12_spill] sm:$0xff] }
  0xc4   : > { %12771 = vmatmul.mubr.msk.f32.gmra.mxu1 %vm381_vm1, %v14341_v10  ;;  %12747 = vmatprep.mubr.msk.f32.mxu0 %vm381_vm1, %v14027_v4  ;;  %v18279_v4 = vld [vmem:[#allocation13_spill] sm:$0xff] }
  0xc5   : > { %12773 = vmatprep.mubr.msk.f32.mxu1 %vm381_vm1, %v14347_v14  ;;  %v18297_v14 = vld [vmem:[#allocation22_spill] sm:$0xff] }
  0xc7   : > { %12748 = vmatmul.mubr.msk.f32.gmra.mxu0 %vm381_vm1, %v14034_v6  ;;  %v18280_v6 = vld [vmem:[#allocation15_spill] sm:$0xff] }
  0xc8   : > { %12774 = vmatmul.mubr.msk.f32.gmra.mxu1 %vm381_vm1, %v14365_v47  ;;  %12750 = vmatprep.mubr.msk.f32.mxu0 %vm381_vm1, %v14040_v8  ;;  %v2166_v8 = vld [vmem:[%s14023_s16 + $0xc9] sm:$0xf]  ;;  %v14861_v47 = vld [vmem:[%s18141_s1 + $0x34] sm:$0x7] }
  0xc9   : > { %12776 = vmatprep.mubr.msk.f32.mxu1 %vm381_vm1, %v18278_v17 }
  0xcb   : > { %12751 = vmatmul.mubr.msk.f32.gmra.mxu0 %vm381_vm1, %v14778_v20 }
  0xcc   : > { %12777 = vmatmul.mubr.msk.f32.gmra.mxu1 %vm381_vm1, %v18279_v4  ;;  %12753 = vmatprep.mubr.msk.f32.mxu0 %vm381_vm1, %v14781_v22 }
  0xcd   : > { %12779 = vmatprep.mubr.msk.f32.mxu1 %vm381_vm1, %v18280_v6  ;;  %v18300_v6 = vld [vmem:[#allocation26_spill] sm:$0xff] }
  0xcf   : > { %12754 = vmatmul.mubr.msk.f32.gmra.mxu0 %vm381_vm1, %v2166_v8 }
  0xd0   : > { %12780 = vmatmul.mubr.msk.f32.gmra.mxu1 %vm381_vm1, %v18281_v24  ;;  %12796 = vmatprep.mubr.msk.f32.mxu0 %vm381_vm1, %v18283_v28  ;;  %v18301_v24 = vld [vmem:[#allocation28_spill] sm:$0xff] }
  0xd1   : > { %12782 = vmatprep.mubr.msk.f32.mxu1 %vm381_vm1, %v18282_v26 }
  0xd3   : > { %12797 = vmatmul.mubr.msk.f32.vlgmr.msra.gmra.mxu0 %vm381_vm1, %v18285_v34 }
  0xd4   : > { %12783 = vmatmul.mubr.msk.f32.gmra.mxu1 %vm381_vm1, %v18284_v32  ;;  %12871 = vmatpush3.msk.msra.mxu0 %vm454_vm0, %v14676_v41 }
  0xd5   : > { %12785 = vmatprep.mubr.msk.f32.mxu1 %vm381_vm1, %v18286_v36  ;;  %12799 = vmatprep.mubr.msk.f32.mxu0 %vm381_vm1, %v18287_v38  ;;  %v18302_v36 = vld [vmem:[#allocation29_spill] sm:$0xff]  ;;  %v18303_v38 = vld [vmem:[#allocation30_spill] sm:$0xff] }
  0xd6   : > { %12946 = vmatprep.subr.msk.mxu0 %vm454_vm0, %v14802_v30 }
  0xd7   : > { %12800 = vmatmul.mubr.msk.f32.gmra.mxu0 %vm381_vm1, %v18289_v42 }
  0xd8   : > { %12786 = vmatmul.mubr.msk.f32.gmra.mxu1 %vm381_vm1, %v18288_v40  ;;  %12802 = vmatprep.mubr.msk.f32.mxu0 %vm381_vm1, %v18291_v44  ;;  %v18304_v40 = vld [vmem:[#allocation39_spill] sm:$0xff] }
  0xd9   : > { %12788 = vmatprep.mubr.msk.f32.mxu1 %vm381_vm1, %v18290_v43 }
  0xdb   : > { %v12494_v48 = vpop.f32.mrf.mxu0  ;;  %12803 = vmatmul.mubr.msk.f32.gmra.mxu0 %vm381_vm1, %v18292_v51  ;;  %v18305_v51 = vld [vmem:[#allocation31_spill] sm:$0xff] }
  0xdc   : > { %v14830_v50 = vpop.f32.mrf.mxu1  ;;  %12789 = vmatmul.mubr.msk.f32.gmra.mxu1 %vm381_vm1, %v14825_v45  ;;  %12805 = vmatprep.mubr.msk.f32.mxu0 %vm381_vm1, %v18293_v53  ;;  %v18306_v53 = vld [vmem:[#allocation32_spill] sm:$0xff] }
  0xdd   : > { %12791 = vmatprep.mubr.msk.f32.mxu1 %vm381_vm1, %v14828_v46  ;;  %v524_v55 = vpop.f32.mrf.mxu0 }
  0xde   : > { %v14841_v56 = vpop.f32.mrf.mxu1 }
  0xdf   : > { %v12497_v57 = vpop.f32.mrf.mxu0  ;;  %12806 = vmatmul.mubr.msk.f32.gmra.mxu0 %vm381_vm1, %v18294_v59 }
  0xe0   : > { %v14843_v58 = vpop.f32.mrf.mxu1  ;;  %12792 = vmatmul.mubr.msk.f32.gmra.mxu1 %vm381_vm1, %v2476_v54  ;;  %12808 = vmatprep.mubr.msk.f32.mxu0 %vm381_vm1, %v18295_v60 }
  0xe1   : > { %12834 = vmatprep.mubr.msk.f32.mxu1 %vm381_vm1, %v18296_v62  ;;  %v534_v63 = vpop.f32.mrf.mxu0  ;;  %v18307_v62 = vld [vmem:[#allocation34_spill] sm:$0xff] }
  0xe2   : > { %v14852_v1 = vpop.f32.mrf.mxu1 }
  0xe3   : > { %v12500_v3 = vpop.f32.mrf.mxu0  ;;  %12809 = vmatmul.mubr.msk.f32.gmra.mxu0 %vm381_vm1, %v18297_v14 }
  0xe4   : > { %v12532_v10 = vpop.f32.mrf.mxu1  ;;  %12835 = vmatmul.mubr.msk.f32.vlgmr.msra.gmra.mxu1 %vm381_vm1, %v14504_v16  ;;  %12811 = vmatprep.mubr.msk.f32.mxu0 %vm381_vm1, %v18298_v2 }
  0xe5   : > { %v14863_v0 = vadd.f32 %v12532_v10, %v12494_v48  ;;  %12837 = vmatprep.mubr.msk.f32.mxu1 %vm381_vm1, %v18299_v39  ;;  %v544_v41 = vpop.f32.mrf.mxu0  ;;  %12909 = vmatpush3.msk.msra.mxu1 %vm454_vm0, %v14727_v15  ;;  %v18309_v39 = vld [vmem:[#allocation37_spill] sm:$0xff] }
  0xe6   : > { %v784_v13 = vpop.f32.mrf.mxu1  ;;  %12984 = vmatprep.subr.msk.mxu1 %vm454_vm0, %v14861_v47 }
  0xe7   : > { %v14871_v17 = vadd.f32 %v784_v13, %v524_v55  ;;  %v12503_v16 = vpop.f32.mrf.mxu0  ;;  %12812 = vmatmul.mubr.msk.f32.gmra.mxu0 %vm381_vm1, %v18300_v6 }
  0xe8   : > { %v12535_v4 = vpop.f32.mrf.mxu1  ;;  %12838 = vmatmul.mubr.msk.f32.gmra.mxu1 %vm381_vm1, %v14528_v19  ;;  %12814 = vmatprep.mubr.msk.f32.mxu0 %vm381_vm1, %v18301_v24 }
  0xe9   : > { %v14879_v8 = vadd.f32 %v12535_v4, %v12497_v57  ;;  %12840 = vmatprep.mubr.msk.f32.mxu1 %vm381_vm1, %v14534_v49  ;;  %v554_v15 = vpop.f32.mrf.mxu0  ;;  %v14937_v4 = vld [vmem:[%s14023_s16 + $0xc3] sm:$0xff] }
  0xea   : > { %v794_v26 = vpop.f32.mrf.mxu1 }
  0xeb   : > { %v14885_v28 = vadd.f32 %v794_v26, %v534_v63  ;;  %v12506_v32 = vpop.f32.mrf.mxu0  ;;  %12815 = vmatmul.mubr.msk.f32.gmra.mxu0 %vm381_vm1, %v18302_v36  ;;  %v18308_v63 = vld [vmem:[#allocation35_spill] sm:$0xff] }
  0xec   : > { %v12538_v34 = vpop.f32.mrf.mxu1  ;;  %12841 = vmatmul.mubr.msk.f32.gmra.mxu1 %vm381_vm1, %v14546_v12  ;;  %12817 = vmatprep.mubr.msk.f32.mxu0 %vm381_vm1, %v18303_v38 }
  0xed   : > { %v14891_v19 = vadd.f32 %v12538_v34, %v12500_v3  ;;  %12843 = vmatprep.mubr.msk.f32.mxu1 %vm381_vm1, %v18304_v40  ;;  %v564_v49 = vpop.f32.mrf.mxu0  ;;  %v3383_v34 = vld [vmem:[%s14023_s16 + $0x20] sm:$0xff] }
  0xee   : > { %v804_v42 = vpop.f32.mrf.mxu1 }
  0xef   : > { %v14897_v43 = vadd.f32 %v804_v42, %v544_v41  ;;  %v12509_v44 = vpop.f32.mrf.mxu0  ;;  %12818 = vmatmul.mubr.msk.f32.gmra.mxu0 %vm381_vm1, %v18305_v51  ;;  %v18310_v41 = vld [vmem:[#allocation38_spill] sm:$0xff] }
  0xf0   : > { %v12541_v48 = vpop.f32.mrf.mxu1  ;;  %12844 = vmatmul.mubr.msk.f32.gmra.mxu1 %vm381_vm1, %v14559_v5  ;;  %12820 = vmatprep.mubr.msk.f32.mxu0 %vm381_vm1, %v18306_v53 }
  0xf1   : > { %v14903_v12 = vadd.f32 %v12541_v48, %v12503_v16  ;;  %12846 = vmatprep.mubr.msk.f32.mxu1 %vm381_vm1, %v14562_v52  ;;  %v574_v54 = vpop.f32.mrf.mxu0  ;;  %v14967_v48 = vld [vmem:[%s14023_s16 + $0x30] sm:$0xff] }
  0xf2   : > { %v814_v55 = vpop.f32.mrf.mxu1 }
  0xf3   : > { %v14909_v57 = vadd.f32 %v814_v55, %v554_v15  ;;  %v12512_v59 = vpop.f32.mrf.mxu0  ;;  %12821 = vmatmul.mubr.msk.f32.gmra.mxu0 %vm381_vm1, %v18307_v62  ;;  %v14987_v55 = vld [vmem:[%s14023_s16 + $0x38] sm:$0xff] }
  0xf4   : > { %v12544_v60 = vpop.f32.mrf.mxu1  ;;  %12847 = vmatmul.mubr.msk.f32.gmra.mxu1 %vm381_vm1, %v14578_v18  ;;  %12823 = vmatprep.mubr.msk.f32.mxu0 %vm381_vm1, %v18308_v63 }
  0xf5   : > { %v14915_v5 = vadd.f32 %v12544_v60, %v12506_v32  ;;  %12849 = vmatprep.mubr.msk.f32.mxu1 %vm381_vm1, %v14581_v61  ;;  %v584_v52 = vpop.f32.mrf.mxu0  ;;  %v14934_v61 = vld [vmem:[%s14023_s16 + $0xbb] sm:$0xff] }
  0xf6   : > { %v824_v3 = vpop.f32.mrf.mxu1 }
  0xf7   : > { %v14921_v10 = vadd.f32 %v824_v3, %v564_v49  ;;  %v12515_v14 = vpop.f32.mrf.mxu0  ;;  %12824 = vmatmul.mubr.msk.f32.gmra.mxu0 %vm381_vm1, %v18309_v39  ;;  %v15018_v3 = vld [vmem:[%s14023_s16 + $0x48] sm:$0xff]  ;;  %v15024_v39 = vld [vmem:[%s14023_s16 + $0x50] sm:$0xff] }
  0xf8   : > { %v12547_v2 = vpop.f32.mrf.mxu1  ;;  %12850 = vmatmul.mubr.msk.f32.gmra.mxu1 %vm381_vm1, %v14596_v21  ;;  %12826 = vmatprep.mubr.msk.f32.mxu0 %vm381_vm1, %v18310_v41 }
  0xf9   : > { %v14927_v18 = vadd.f32 %v12547_v2, %v12509_v44  ;;  %12852 = vmatprep.mubr.msk.f32.mxu1 %vm381_vm1, %v14599_v23  ;;  %v594_v13 = vpop.f32.mrf.mxu0  ;;  %v2786_v23 = vld [vmem:[%s14023_s16 + $0xcb] sm:$0xf] }
  0xfa   : > { %v834_v16 = vpop.f32.mrf.mxu1  ;;  %v15021_v2 = vld [vmem:[%s14023_s16 + $0xc4] sm:$0xff] }
  0xfb   : > { %v14939_v6 = vadd.f32 %v834_v16, %v574_v54  ;;  %v12518_v24 = vpop.f32.mrf.mxu0  ;;  %12827 = vmatmul.mubr.msk.f32.gmra.mxu0 %vm381_vm1, %v14934_v61 }
  0xfc   : > { %v12550_v21 = vpop.f32.mrf.mxu1  ;;  %12853 = vmatmul.mubr.msk.f32.gmra.mxu1 %vm381_vm1, %v14610_v25  ;;  %12829 = vmatprep.mubr.msk.f32.mxu0 %vm381_vm1, %v14937_v4 }
  0xfd   : > { %v14945_v15 = vadd.f32 %v12550_v21, %v12512_v59  ;;  %12855 = vmatprep.mubr.msk.f32.mxu1 %vm381_vm1, %v14613_v27  ;;  %v604_v26 = vpop.f32.mrf.mxu0  ;;  %v3384_v27 = vld [vmem:[%s14023_s16 + $0x28] sm:$0xff]  ;;  %v15047_v21 = vld [vmem:[%s14023_s16 + $0x58] sm:$0xff] }
  0xfe   : > { %v844_v32 = vpop.f32.mrf.mxu1 }
  0xff   : > { %v14953_v36 = vadd.f32 %v844_v32, %v584_v52  ;;  %v12521_v38 = vpop.f32.mrf.mxu0  ;;  %12830 = vmatmul.mubr.msk.f32.gmra.mxu0 %vm381_vm1, %v2786_v23  ;;  %v15050_v32 = vld [vmem:[%s14023_s16 + $0x60] sm:$0xff] }
 0x100   : > { %v12553_v40 = vpop.f32.mrf.mxu1  ;;  %12856 = vmatmul.mubr.msk.f32.gmra.mxu1 %vm381_vm1, %v14624_v29  ;;  %12872 = vmatprep.mubr.msk.f32.mxu0 %vm381_vm1, %v3383_v34  ;;  %v14972_v29 = vld [vmem:[%s18141_s1 + $0x38] sm:$0x7] }
 0x101   : > { %v14958_v25 = vadd.f32 %v12553_v40, %v12515_v14  ;;  %12858 = vmatprep.mubr.msk.f32.mxu1 %vm381_vm1, %v14627_v31  ;;  %v614_v49 = vpop.f32.mrf.mxu0 }
 0x102   : > { %v854_v42 = vpop.f32.mrf.mxu1 }
 0x103   : > { %v14964_v44 = vadd.f32 %v854_v42, %v594_v13  ;;  %v12570_v53 = vpop.f32.mrf.mxu0  ;;  %12873 = vmatmul.mubr.msk.f32.vlgmr.msra.gmra.mxu0 %vm381_vm1, %v3384_v27 }
 0x104   : > { %v12556_v51 = vpop.f32.mrf.mxu1  ;;  %12859 = vmatmul.mubr.msk.f32.gmra.mxu1 %vm381_vm1, %v14638_v33  ;;  %v14980_v54 = vadd.f32 %v12570_v53, %v14863_v0  ;;  %12947 = vmatpush3.msk.msra.mxu0 %vm454_vm0, %v14802_v30  ;;  %v14992_v33 = vld [vmem:[%s14023_s16 + $0x40] sm:$0xff]  ;;  %v15076_v53 = vld [vmem:[%s14023_s16 + $0x70] sm:$0xff] }
 0x105   : > { %v14977_v31 = vadd.f32 %v12556_v51, %v12518_v24  ;;  %12861 = vmatprep.mubr.msk.f32.mxu1 %vm381_vm1, %v14641_v35  ;;  %v1070_v60 = vpop.f32.mrf.mxu0  ;;  %12875 = vmatprep.mubr.msk.f32.mxu0 %vm381_vm1, %v14967_v48 }
 0x106   : > { %v864_v59 = vpop.f32.mrf.mxu1  ;;  %13022 = vmatprep.subr.msk.mxu0 %vm454_vm0, %v14972_v29  ;;  %v14999_v35 = vadd.f32 %v1070_v60, %v14871_v17  ;;  %v15015_v17 = vld [vmem:[%s14023_s16 + $0xbc] sm:$0xff] }
 0x107   : > { %v14996_v30 = vadd.f32 %v864_v59, %v604_v26  ;;  %v12573_v62 = vpop.f32.mrf.mxu0  ;;  %12876 = vmatmul.mubr.msk.f32.gmra.mxu0 %vm381_vm1, %v14987_v55  ;;  %v15079_v59 = vld [vmem:[%s14023_s16 + $0x31] sm:$0xff] }
 0x108   : > { %v12559_v0 = vpop.f32.mrf.mxu1  ;;  %12862 = vmatmul.mubr.msk.f32.gmra.mxu1 %vm381_vm1, %v14652_v37  ;;  %v15008_v52 = vadd.f32 %v12573_v62, %v14879_v8  ;;  %12878 = vmatprep.mubr.msk.f32.mxu0 %vm381_vm1, %v14992_v33  ;;  %v15093_v62 = vld [vmem:[%s18141_s1 + $0x3c] sm:$0x7] }
 0x109   : > { %v15005_v63 = vadd.f32 %v12559_v0, %v12521_v38  ;;  %12864 = vmatprep.mubr.msk.f32.mxu1 %vm381_vm1, %v14655_v9  ;;  %v1080_v14 = vpop.f32.mrf.mxu0 }
 0x10a   : > { %v874_v37 = vpop.f32.mrf.mxu1  ;;  %v15029_v9 = vadd.f32 %v1080_v14, %v14885_v28  ;;  %v3096_v28 = vld [vmem:[%s14023_s16 + $0xcc] sm:$0xf]  ;;  %v3696_v14 = vld [vmem:[%s14023_s16 + $0x39] sm:$0xff] }
 0x10b   : > { %v15026_v8 = vadd.f32 %v874_v37, %v614_v49  ;;  %v12576_v13 = vpop.f32.mrf.mxu0  ;;  %12879 = vmatmul.mubr.msk.f32.gmra.mxu0 %vm381_vm1, %v15018_v3 }
 0x10c   : > { %v12562_v41 = vpop.f32.mrf.mxu1  ;;  %12865 = vmatmul.mubr.msk.f32.gmra.mxu1 %vm381_vm1, %v15015_v17  ;;  %v15039_v24 = vadd.f32 %v12576_v13, %v14891_v19  ;;  %12881 = vmatprep.mubr.msk.f32.mxu0 %vm381_vm1, %v15024_v39 }
 0x10d   : > { %v15036_v16 = vadd.f32 %v12562_v41, %v14830_v50  ;;  %12867 = vmatprep.mubr.msk.f32.mxu1 %vm381_vm1, %v15021_v2  ;;  %v1090_v26 = vpop.f32.mrf.mxu0  ;;  %v3693_v50 = vld [vmem:[%s14023_s16 + $0x21] sm:$0xff] }
 0x10e   : > { %v884_v23 = vpop.f32.mrf.mxu1  ;;  %v15057_v34 = vadd.f32 %v1090_v26, %v14897_v43  ;;  %v3694_v43 = vld [vmem:[%s14023_s16 + $0x29] sm:$0xff] }
 0x10f   : > { %v15054_v19 = vadd.f32 %v884_v23, %v14841_v56  ;;  %v12579_v40 = vpop.f32.mrf.mxu0  ;;  %12882 = vmatmul.mubr.msk.f32.gmra.mxu0 %vm381_vm1, %v15047_v21  ;;  %v15072_v56 = vld [vmem:[%s14023_s16 + $0x68] sm:$0xff] }
 0x110   : > { %v12565_v38 = vpop.f32.mrf.mxu1  ;;  %12868 = vmatmul.mubr.msk.f32.gmra.mxu1 %vm381_vm1, %v3096_v28  ;;  %v15066_v49 = vadd.f32 %v12579_v40, %v14903_v12  ;;  %12884 = vmatprep.mubr.msk.f32.mxu0 %vm381_vm1, %v15050_v32  ;;  %v15110_v28 = vld [vmem:[%s14023_s16 + $0x80] sm:$0xff] }
 0x111   : > { %v15063_v27 = vadd.f32 %v12565_v38, %v14843_v58  ;;  %12910 = vmatprep.mubr.msk.f32.mxu1 %vm381_vm1, %v3693_v50  ;;  %v1100_v51 = vpop.f32.mrf.mxu0  ;;  %v3698_v38 = vld [vmem:[%s14023_s16 + $0x49] sm:$0xff] }
 0x112   : > { %v894_v42 = vpop.f32.mrf.mxu1  ;;  %v15085_v12 = vadd.f32 %v1100_v51, %v14909_v57  ;;  %v15106_v57 = vld [vmem:[%s14023_s16 + $0x78] sm:$0xff] }
 0x113   : > { %v15082_v58 = vadd.f32 %v894_v42, %v14852_v1  ;;  %v12582_v60 = vpop.f32.mrf.mxu0  ;;  %12885 = vmatmul.mubr.msk.f32.gmra.mxu0 %vm381_vm1, %v15072_v56  ;;  %v15140_v42 = vld [vmem:[%s14023_s16 + $0x90] sm:$0xff] }
 0x114   : > { %v12608_v0 = vpop.f32.mrf.mxu1  ;;  %12911 = vmatmul.mubr.msk.f32.vlgmr.msra.gmra.mxu1 %vm381_vm1, %v3694_v43  ;;  %v15096_v37 = vadd.f32 %v12582_v60, %v14915_v5  ;;  %12887 = vmatprep.mubr.msk.f32.mxu0 %vm381_vm1, %v15076_v53  ;;  %v3697_v5 = vld [vmem:[%s14023_s16 + $0x41] sm:$0xff] }
 0x115   : > { %v15099_v1 = vadd.f32 %v12608_v0, %v14980_v54  ;;  %12913 = vmatprep.mubr.msk.f32.mxu1 %vm381_vm1, %v15079_v59  ;;  %v1110_v41 = vpop.f32.mrf.mxu0  ;;  %12985 = vmatpush3.msk.msra.mxu1 %vm454_vm0, %v14861_v47 }
 0x116   : > { %v1380_v13 = vpop.f32.mrf.mxu1  ;;  %v15116_v54 = vadd.f32 %v1110_v41, %v14921_v10  ;;  %13060 = vmatprep.subr.msk.mxu1 %vm454_vm0, %v15093_v62 }
 0x117   : > { %v15119_v23 = vadd.f32 %v1380_v13, %v14999_v35  ;;  %v12585_v26 = vpop.f32.mrf.mxu0  ;;  %12888 = vmatmul.mubr.msk.f32.gmra.mxu0 %vm381_vm1, %v15106_v57  ;;  %v15136_v35 = vld [vmem:[%s14023_s16 + $0x88] sm:$0xff] }
 0x118   : > { %v12611_v50 = vpop.f32.mrf.mxu1  ;;  %12914 = vmatmul.mubr.msk.f32.gmra.mxu1 %vm381_vm1, %v3696_v14  ;;  %v15127_v47 = vadd.f32 %v12585_v26, %v14927_v18  ;;  %12890 = vmatprep.mubr.msk.f32.mxu0 %vm381_vm1, %v15110_v28  ;;  %v3699_v18 = vld [vmem:[%s14023_s16 + $0x51] sm:$0xff]  ;;  %v15166_v26 = vld [vmem:[%s14023_s16 + $0xa0] sm:$0xff] }
 0x119   : > { %v15130_v10 = vadd.f32 %v12611_v50, %v15008_v52  ;;  %12916 = vmatprep.mubr.msk.f32.mxu1 %vm381_vm1, %v3697_v5  ;;  %v1120_v40 = vpop.f32.mrf.mxu0 }
 0x11a   : > { %v1390_v43 = vpop.f32.mrf.mxu1  ;;  %v15144_v52 = vadd.f32 %v1120_v40, %v14939_v6  ;;  %v15162_v6 = vld [vmem:[%s14023_s16 + $0x98] sm:$0xff] }
 0x11b   : > { %v15147_v51 = vadd.f32 %v1390_v43, %v15029_v9  ;;  %v12588_v60 = vpop.f32.mrf.mxu0  ;;  %12891 = vmatmul.mubr.msk.f32.gmra.mxu0 %vm381_vm1, %v15136_v35  ;;  %v3700_v9 = vld [vmem:[%s14023_s16 + $0x59] sm:$0xff] }
 0x11c   : > { %v12614_v0 = vpop.f32.mrf.mxu1  ;;  %12917 = vmatmul.mubr.msk.f32.gmra.mxu1 %vm381_vm1, %v3698_v38  ;;  %v15153_v14 = vadd.f32 %v12588_v60, %v14945_v15  ;;  %12893 = vmatprep.mubr.msk.f32.mxu0 %vm381_vm1, %v15140_v42  ;;  %v3701_v15 = vld [vmem:[%s14023_s16 + $0x61] sm:$0xff] }
 0x11d   : > { %v15156_v41 = vadd.f32 %v12614_v0, %v15039_v24  ;;  %12919 = vmatprep.mubr.msk.f32.mxu1 %vm381_vm1, %v3699_v18  ;;  %v1130_v13 = vpop.f32.mrf.mxu0 }
 0x11e   : > { %v1400_v5 = vpop.f32.mrf.mxu1  ;;  %v15170_v24 = vadd.f32 %v1130_v13, %v14953_v36  ;;  %v15188_v36 = vld [vmem:[%s14023_s16 + $0xa8] sm:$0xff]  ;;  %v15192_v13 = vld [vmem:[%s14023_s16 + $0xb0] sm:$0xff] }
 0x11f   : > { %v15173_v50 = vadd.f32 %v1400_v5, %v15057_v34  ;;  %v12591_v38 = vpop.f32.mrf.mxu0  ;;  %12894 = vmatmul.mubr.msk.f32.gmra.mxu0 %vm381_vm1, %v15162_v6  ;;  %v3702_v34 = vld [vmem:[%s14023_s16 + $0x69] sm:$0xff] }
 0x120   : > { %v12617_v40 = vpop.f32.mrf.mxu1  ;;  %12920 = vmatmul.mubr.msk.f32.gmra.mxu1 %vm381_vm1, %v3700_v9  ;;  %v15179_v43 = vadd.f32 %v12591_v38, %v14958_v25  ;;  %12896 = vmatprep.mubr.msk.f32.mxu0 %vm381_vm1, %v15166_v26  ;;  %v15195_v9 = vld [vmem:[%s14023_s16 + $0x71] sm:$0xff] }
 0x121   : > { %v15182_v18 = vadd.f32 %v12617_v40, %v15066_v49  ;;  %12922 = vmatprep.mubr.msk.f32.mxu1 %vm381_vm1, %v3701_v15  ;;  %v1140_v60 = vpop.f32.mrf.mxu0  ;;  %18311 = vst [vmem:[#allocation11_spill] sm:$0xff] %v15195_v9 }
 0x122   : > { %v1410_v0 = vpop.f32.mrf.mxu1  ;;  %v1203_v25 = vadd.f32 %v1140_v60, %v14964_v44  ;;  %v15215_v44 = vld [vmem:[%s14023_s16 + $0x79] sm:$0xff] }
 0x123   : > { %v15199_v49 = vadd.f32 %v1410_v0, %v15085_v12  ;;  %v12594_v5 = vpop.f32.mrf.mxu0  ;;  %12897 = vmatmul.mubr.msk.f32.gmra.mxu0 %vm381_vm1, %v15188_v36  ;;  %18312 = vst [vmem:[#allocation13_spill] sm:$0xff] %v15215_v44 }
 0x124   : > { %v12620_v38 = vpop.f32.mrf.mxu1  ;;  %12923 = vmatmul.mubr.msk.f32.gmra.mxu1 %vm381_vm1, %v3702_v34  ;;  %v15205_v15 = vadd.f32 %v12594_v5, %v14977_v31  ;;  %12899 = vmatprep.mubr.msk.f32.mxu0 %vm381_vm1, %v15192_v13  ;;  %v15218_v34 = vld [vmem:[%s14023_s16 + $0x81] sm:$0xff] }
 0x125   : > { %v15208_v40 = vadd.f32 %v12620_v38, %v15096_v37  ;;  %12925 = vmatprep.mubr.msk.f32.mxu1 %vm381_vm1, %v15195_v9  ;;  %v1150_v12 = vpop.f32.mrf.mxu0  ;;  %18313 = vst [vmem:[#allocation15_spill] sm:$0xff] %v15218_v34 }
 0x126   : > { %v1420_v60 = vpop.f32.mrf.mxu1  ;;  %v15221_v31 = vadd.f32 %v1150_v12, %v14996_v30  ;;  %v15241_v30 = vld [vmem:[%s14023_s16 + $0xc8] sm:$0xff] }
 0x127   : > { %v15224_v37 = vadd.f32 %v1420_v60, %v15116_v54  ;;  %v12597_v0 = vpop.f32.mrf.mxu0  ;;  %12900 = vmatmul.mubr.msk.f32.gmra.mxu0 %vm381_vm1, %v14699_v7  ;;  %18314 = vst [vmem:[#allocation17_spill] sm:$0xff] %v15241_v30  ;;  %v15244_v54 = vld [vmem:[%s14023_s16 + $0x89] sm:$0xff] }
 0x128   : > { %v12623_v5 = vpop.f32.mrf.mxu1  ;;  %12926 = vmatmul.mubr.msk.f32.gmra.mxu1 %vm381_vm1, %v15215_v44  ;;  %v15231_v38 = vadd.f32 %v12597_v0, %v15005_v63  ;;  %12902 = vmatprep.mubr.msk.f32.mxu0 %vm381_vm1, %v14702_v11  ;;  %18315 = vst [vmem:[#allocation19_spill] sm:$0xff] %v15244_v54  ;;  %v15247_v60 = vld [vmem:[%s14023_s16 + $0xd0] sm:$0xff] }
 0x129   : > { %v15234_v9 = vadd.f32 %v12623_v5, %v15127_v47  ;;  %12928 = vmatprep.mubr.msk.f32.mxu1 %vm381_vm1, %v15218_v34  ;;  %v1160_v7 = vpop.f32.mrf.mxu0  ;;  %18316 = vst [vmem:[#allocation7_spill] sm:$0xff] %v15247_v60  ;;  %v15250_v63 = vld [vmem:[%s14023_s16 + $0x91] sm:$0xff] }
 0x12a   : > { %v1430_v12 = vpop.f32.mrf.mxu1  ;;  %18317 = vst [vmem:[#allocation21_spill] sm:$0xff] %v15250_v63  ;;  %v15253_v47 = vadd.f32 %v1160_v7, %v15026_v8  ;;  %v3406_v8 = vld [vmem:[%s14023_s16 + $0xd8] sm:$0xf] }
 0x12b   : > { %v15256_v11 = vadd.f32 %v1430_v12, %v15144_v52  ;;  %v12600_v0 = vpop.f32.mrf.mxu0  ;;  %12903 = vmatmul.mubr.msk.f32.gmra.mxu0 %vm381_vm1, %v15241_v30  ;;  %v15274_v52 = vld [vmem:[%s14023_s16 + $0x99] sm:$0xff] }
 0x12c   : > { %v12626_v5 = vpop.f32.mrf.mxu1  ;;  %12929 = vmatmul.mubr.msk.f32.gmra.mxu1 %vm381_vm1, %v15244_v54  ;;  %v15263_v34 = vadd.f32 %v12600_v0, %v15036_v16  ;;  %12905 = vmatprep.mubr.msk.f32.mxu0 %vm381_vm1, %v15247_v60  ;;  %18318 = vst [vmem:[#allocation8_spill] sm:$0xff] %v15274_v52  ;;  %v15277_v54 = vld [vmem:[%s14023_s16 + $0xa1] sm:$0xff] }
 0x12d   : > { %v15266_v44 = vadd.f32 %v12626_v5, %v15153_v14  ;;  %12931 = vmatprep.mubr.msk.f32.mxu1 %vm381_vm1, %v15250_v63  ;;  %v1170_v7 = vpop.f32.mrf.mxu0  ;;  %18319 = vst [vmem:[#allocation23_spill] sm:$0xff] %v15277_v54  ;;  %v4003_v16 = vld [vmem:[%s14023_s16 + $0x22] sm:$0xff] }
 0x12e   : > { %v1440_v12 = vpop.f32.mrf.mxu1  ;;  %v15281_v14 = vadd.f32 %v1170_v7, %v15054_v19  ;;  %v15299_v19 = vld [vmem:[%s14023_s16 + $0xa9] sm:$0xff] }
 0x12f   : > { %v15284_v0 = vadd.f32 %v1440_v12, %v15170_v24  ;;  %v12603_v5 = vpop.f32.mrf.mxu0  ;;  %12906 = vmatmul.mubr.msk.f32.gmra.mxu0 %vm381_vm1, %v3406_v8  ;;  %18320 = vst [vmem:[#allocation9_spill] sm:$0xff] %v15299_v19  ;;  %v4004_v24 = vld [vmem:[%s14023_s16 + $0x2a] sm:$0xff] }
 0x130   : > { %v12629_v63 = vpop.f32.mrf.mxu1  ;;  %12932 = vmatmul.mubr.msk.f32.gmra.mxu1 %vm381_vm1, %v15274_v52  ;;  %v15290_v60 = vadd.f32 %v12603_v5, %v15063_v27  ;;  %12948 = vmatprep.mubr.msk.f32.mxu0 %vm381_vm1, %v4003_v16  ;;  %v15303_v12 = vld [vmem:[%s14023_s16 + $0xb1] sm:$0xff] }
 0x131   : > { %v15293_v30 = vadd.f32 %v12629_v63, %v15179_v43  ;;  %12934 = vmatprep.mubr.msk.f32.mxu1 %vm381_vm1, %v15277_v54  ;;  %v1180_v7 = vpop.f32.mrf.mxu0  ;;  %18321 = vst [vmem:[#allocation25_spill] sm:$0xff] %v15303_v12  ;;  %v15311_v43 = vld [vmem:[%s14023_s16 + $0x32] sm:$0xff]  ;;  %v15316_v63 = vld [vmem:[%s18141_s1 + $0x40] sm:$0x7] }
 0x132   : > { %v1450_v8 = vpop.f32.mrf.mxu1  ;;  %v15306_v52 = vadd.f32 %v1180_v7, %v15082_v58  ;;  %v15332_v7 = vld [vmem:[%s14023_s16 + $0x3a] sm:$0xff] }
 0x133   : > { %v15308_v27 = vadd.f32 %v1450_v8, %v1203_v25  ;;  %v12646_v5 = vpop.f32.mrf.mxu0  ;;  %12949 = vmatmul.mubr.msk.f32.vlgmr.msra.gmra.mxu0 %vm381_vm1, %v4004_v24 }
 0x134   : > { %v12632_v16 = vpop.f32.mrf.mxu1  ;;  %12935 = vmatmul.mubr.msk.f32.gmra.mxu1 %vm381_vm1, %v15299_v19  ;;  %v15325_v25 = vadd.f32 %v12646_v5, %v15099_v1  ;;  %13023 = vmatpush3.msk.msra.mxu0 %vm454_vm0, %v14972_v29 }
 0x135   : > { %v15322_v58 = vadd.f32 %v12632_v16, %v15205_v15  ;;  %12937 = vmatprep.mubr.msk.f32.mxu1 %vm381_vm1, %v15303_v12  ;;  %v1690_v19 = vpop.f32.mrf.mxu0  ;;  %12951 = vmatprep.mubr.msk.f32.mxu0 %vm381_vm1, %v15311_v43  ;;  %v15337_v15 = vld [vmem:[%s14023_s16 + $0x42] sm:$0xff] }
 0x136   : > { %v1460_v8 = vpop.f32.mrf.mxu1  ;;  %18322 = vst [vmem:[#allocation10_spill] sm:$0xff] %v15337_v15  ;;  %13098 = vmatprep.subr.msk.mxu0 %vm454_vm0, %v15316_v63  ;;  %v15345_v1 = vadd.f32 %v1690_v19, %v15119_v23  ;;  %v15362_v23 = vld [vmem:[%s14023_s16 + $0xc9] sm:$0xff] }
 0x137   : > { %v15342_v29 = vadd.f32 %v1460_v8, %v15221_v31  ;;  %v12649_v16 = vpop.f32.mrf.mxu0  ;;  %12952 = vmatmul.mubr.msk.f32.gmra.mxu0 %vm381_vm1, %v15332_v7  ;;  %18323 = vst [vmem:[#allocation27_spill] sm:$0xff] %v15362_v23  ;;  %v15365_v31 = vld [vmem:[%s14023_s16 + $0x4a] sm:$0xff] }
 0x138   : > { %v12635_v24 = vpop.f32.mrf.mxu1  ;;  %12938 = vmatmul.mubr.msk.f32.gmra.mxu1 %vm381_vm1, %v14778_v20  ;;  %v15355_v12 = vadd.f32 %v12649_v16, %v15130_v10  ;;  %12954 = vmatprep.mubr.msk.f32.mxu0 %vm381_vm1, %v15337_v15  ;;  %18324 = vst [vmem:[#allocation12_spill] sm:$0xff] %v15365_v31  ;;  %v15368_v8 = vld [vmem:[%s14023_s16 + $0xd1] sm:$0xff] }
 0x139   : > { %v15352_v5 = vadd.f32 %v12635_v24, %v15231_v38  ;;  %12940 = vmatprep.mubr.msk.f32.mxu1 %vm381_vm1, %v14781_v22  ;;  %v1700_v19 = vpop.f32.mrf.mxu0  ;;  %18325 = vst [vmem:[#allocation14_spill] sm:$0xff] %v15368_v8  ;;  %v15371_v38 = vld [vmem:[%s14023_s16 + $0x52] sm:$0xff] }
 0x13a   : > { %v1470_v20 = vpop.f32.mrf.mxu1  ;;  %18326 = vst [vmem:[#allocation16_spill] sm:$0xff] %v15371_v38  ;;  %v15377_v22 = vadd.f32 %v1700_v19, %v15147_v51  ;;  %v3716_v51 = vld [vmem:[%s14023_s16 + $0xd9] sm:$0xf] }
 0x13b   : > { %v15374_v10 = vadd.f32 %v1470_v20, %v15253_v47  ;;  %v12652_v16 = vpop.f32.mrf.mxu0  ;;  %12955 = vmatmul.mubr.msk.f32.gmra.mxu0 %vm381_vm1, %v15365_v31  ;;  %v15395_v47 = vld [vmem:[%s14023_s16 + $0x5a] sm:$0xff] }
 0x13c   : > { %v12638_v24 = vpop.f32.mrf.mxu1  ;;  %12941 = vmatmul.mubr.msk.f32.gmra.mxu1 %vm381_vm1, %v15362_v23  ;;  %v15387_v15 = vadd.f32 %v12652_v16, %v15156_v41  ;;  %12957 = vmatprep.mubr.msk.f32.mxu0 %vm381_vm1, %v15371_v38  ;;  %18327 = vst [vmem:[#allocation18_spill] sm:$0xff] %v15395_v47  ;;  %v15398_v23 = vld [vmem:[%s14023_s16 + $0x62] sm:$0xff] }
 0x13d   : > { %v15384_v54 = vadd.f32 %v12638_v24, %v15263_v34  ;;  %12943 = vmatprep.mubr.msk.f32.mxu1 %vm381_vm1, %v15368_v8  ;;  %v1710_v19 = vpop.f32.mrf.mxu0  ;;  %18328 = vst [vmem:[#allocation20_spill] sm:$0xff] %v15398_v23  ;;  %v4313_v34 = vld [vmem:[%s14023_s16 + $0x23] sm:$0xff] }
 0x13e   : > { %v1480_v20 = vpop.f32.mrf.mxu1  ;;  %v15405_v24 = vadd.f32 %v1710_v19, %v15173_v50  ;;  %v15420_v50 = vld [vmem:[%s14023_s16 + $0x6a] sm:$0xff]  ;;  %v15424_v19 = vld [vmem:[%s14023_s16 + $0x72] sm:$0xff] }
 0x13f   : > { %v15402_v41 = vadd.f32 %v1480_v20, %v15281_v14  ;;  %v12655_v8 = vpop.f32.mrf.mxu0  ;;  %12958 = vmatmul.mubr.msk.f32.gmra.mxu0 %vm381_vm1, %v15395_v47  ;;  %18329 = vst [vmem:[#allocation33_spill] sm:$0xff] %v15420_v50  ;;  %v4314_v14 = vld [vmem:[%s14023_s16 + $0x2b] sm:$0xff]  ;;  %18330 = vst [vmem:[#allocation22_spill] sm:$0xff] %v15424_v19  ;;  %v15427_v47 = vld [vmem:[%s14023_s16 + $0x33] sm:$0xff] }
 0x140   : > { %v12641_v16 = vpop.f32.mrf.mxu1  ;;  %12944 = vmatmul.mubr.msk.f32.gmra.mxu1 %vm381_vm1, %v3716_v51  ;;  %v15414_v31 = vadd.f32 %v12655_v8, %v15182_v18  ;;  %12960 = vmatprep.mubr.msk.f32.mxu0 %vm381_vm1, %v15398_v23  ;;  %18331 = vst [vmem:[#allocation24_spill] sm:$0xff] %v15427_v47 }
 0x141   : > { %v15411_v38 = vadd.f32 %v12641_v16, %v15290_v60  ;;  %12986 = vmatprep.mubr.msk.f32.mxu1 %vm381_vm1, %v4313_v34  ;;  %v1720_v51 = vpop.f32.mrf.mxu0  ;;  %v15441_v16 = vld [vmem:[%s18141_s1 + $0x44] sm:$0x7] }
 0x142   : > { %v1490_v20 = vpop.f32.mrf.mxu1  ;;  %v15433_v60 = vadd.f32 %v1720_v51, %v15199_v49  ;;  %v15454_v49 = vld [vmem:[%s14023_s16 + $0x7a] sm:$0xff] }
 0x143   : > { %v15430_v18 = vadd.f32 %v1490_v20, %v15306_v52  ;;  %v12658_v8 = vpop.f32.mrf.mxu0  ;;  %12961 = vmatmul.mubr.msk.f32.gmra.mxu0 %vm381_vm1, %v15420_v50  ;;  %18332 = vst [vmem:[#allocation36_spill] sm:$0xff] %v15454_v49  ;;  %v15458_v50 = vld [vmem:[%s14023_s16 + $0x82] sm:$0xff] }
 0x144   : > { %v12684_v34 = vpop.f32.mrf.mxu1  ;;  %12987 = vmatmul.mubr.msk.f32.vlgmr.msra.gmra.mxu1 %vm381_vm1, %v4314_v14  ;;  %v15444_v23 = vadd.f32 %v12658_v8, %v15208_v40  ;;  %12963 = vmatprep.mubr.msk.f32.mxu0 %vm381_vm1, %v15424_v19  ;;  %v4316_v14 = vld [vmem:[%s14023_s16 + $0x3b] sm:$0xff]  ;;  %18333 = vst [vmem:[#allocation26_spill] sm:$0xff] %v15458_v50  ;;  %v4317_v40 = vld [vmem:[%s14023_s16 + $0x43] sm:$0xff]  ;;  %v15488_v19 = vld [vmem:[%s14023_s16 + $0x92] sm:$0xff] }
 0x145   : > { %v15447_v52 = vadd.f32 %v12684_v34, %v15325_v25  ;;  %12989 = vmatprep.mubr.msk.f32.mxu1 %vm381_vm1, %v15427_v47  ;;  %v1730_v20 = vpop.f32.mrf.mxu0  ;;  %13061 = vmatpush3.msk.msra.mxu1 %vm454_vm0, %v15093_v62  ;;  %18335 = vst [vmem:[#allocation29_spill] sm:$0xff] %v15488_v19 }
 0x146   : > { %v2000_v51 = vpop.f32.mrf.mxu1  ;;  %v15464_v25 = vadd.f32 %v1730_v20, %v15224_v37  ;;  %13136 = vmatprep.subr.msk.mxu1 %vm454_vm0, %v15441_v16  ;;  %v4318_v20 = vld [vmem:[%s14023_s16 + $0x4b] sm:$0xff] }
 0x147   : > { %v15467_v8 = vadd.f32 %v2000_v51, %v15345_v1  ;;  %v12661_v34 = vpop.f32.mrf.mxu0  ;;  %12964 = vmatmul.mubr.msk.f32.gmra.mxu0 %vm381_vm1, %v15454_v49  ;;  %v15484_v1 = vld [vmem:[%s14023_s16 + $0x8a] sm:$0xff] }
 0x148   : > { %v12687_v47 = vpop.f32.mrf.mxu1  ;;  %12990 = vmatmul.mubr.msk.f32.gmra.mxu1 %vm381_vm1, %v4316_v14  ;;  %v15475_v62 = vadd.f32 %v12661_v34, %v15234_v9  ;;  %12966 = vmatprep.mubr.msk.f32.mxu0 %vm381_vm1, %v15458_v50  ;;  %18334 = vst [vmem:[#allocation28_spill] sm:$0xff] %v15484_v1  ;;  %v4319_v9 = vld [vmem:[%s14023_s16 + $0x53] sm:$0xff] }
 0x149   : > { %v15478_v37 = vadd.f32 %v12687_v47, %v15355_v12  ;;  %12992 = vmatprep.mubr.msk.f32.mxu1 %vm381_vm1, %v4317_v40  ;;  %v1740_v51 = vpop.f32.mrf.mxu0 }
 0x14a   : > { %v2010_v49 = vpop.f32.mrf.mxu1  ;;  %v15492_v12 = vadd.f32 %v1740_v51, %v15256_v11  ;;  %v15510_v11 = vld [vmem:[%s14023_s16 + $0x9a] sm:$0xff] }
 0x14b   : > { %v15495_v47 = vadd.f32 %v2010_v49, %v15377_v22  ;;  %v12664_v14 = vpop.f32.mrf.mxu0  ;;  %12967 = vmatmul.mubr.msk.f32.gmra.mxu0 %vm381_vm1, %v15484_v1  ;;  %18336 = vst [vmem:[#allocation30_spill] sm:$0xff] %v15510_v11  ;;  %v4320_v22 = vld [vmem:[%s14023_s16 + $0x5b] sm:$0xff] }
 0x14c   : > { %v12690_v40 = vpop.f32.mrf.mxu1  ;;  %12993 = vmatmul.mubr.msk.f32.gmra.mxu1 %vm381_vm1, %v4318_v20  ;;  %v15501_v34 = vadd.f32 %v12664_v14, %v15266_v44  ;;  %12969 = vmatprep.mubr.msk.f32.mxu0 %vm381_vm1, %v15488_v19  ;;  %v15514_v1 = vld [vmem:[%s14023_s16 + $0xa2] sm:$0xff] }
 0x14d   : > { %v15504_v50 = vadd.f32 %v12690_v40, %v15387_v15  ;;  %12995 = vmatprep.mubr.msk.f32.mxu1 %vm381_vm1, %v4319_v9  ;;  %v1750_v49 = vpop.f32.mrf.mxu0  ;;  %18337 = vst [vmem:[#allocation39_spill] sm:$0xff] %v15514_v1  ;;  %v4321_v44 = vld [vmem:[%s14023_s16 + $0x63] sm:$0xff] }
 0x14e   : > { %v2020_v51 = vpop.f32.mrf.mxu1  ;;  %v15518_v15 = vadd.f32 %v1750_v49, %v15284_v0  ;;  %v15536_v0 = vld [vmem:[%s14023_s16 + $0xaa] sm:$0xff] }
 0x14f   : > { %v15521_v20 = vadd.f32 %v2020_v51, %v15405_v24  ;;  %v12667_v14 = vpop.f32.mrf.mxu0  ;;  %12970 = vmatmul.mubr.msk.f32.gmra.mxu0 %vm381_vm1, %v15510_v11  ;;  %v4322_v24 = vld [vmem:[%s14023_s16 + $0x6b] sm:$0xff] }
 0x150   : > { %v12693_v9 = vpop.f32.mrf.mxu1  ;;  %12996 = vmatmul.mubr.msk.f32.gmra.mxu1 %vm381_vm1, %v4320_v22  ;;  %v15527_v40 = vadd.f32 %v12667_v14, %v15293_v30  ;;  %12972 = vmatprep.mubr.msk.f32.mxu0 %vm381_vm1, %v15514_v1  ;;  %v15540_v11 = vld [vmem:[%s14023_s16 + $0xb2] sm:$0xff] }
 0x151   : > { %v15530_v19 = vadd.f32 %v12693_v9, %v15414_v31  ;;  %12998 = vmatprep.mubr.msk.f32.mxu1 %vm381_vm1, %v4321_v44  ;;  %v1760_v49 = vpop.f32.mrf.mxu0  ;;  %v15543_v22 = vld [vmem:[%s14023_s16 + $0x73] sm:$0xff] }
 0x152   : > { %v2030_v51 = vpop.f32.mrf.mxu1  ;;  %18338 = vst [vmem:[#allocation31_spill] sm:$0xff] %v15543_v22  ;;  %v1823_v30 = vadd.f32 %v1760_v49, %v15308_v27  ;;  %v15563_v27 = vld [vmem:[%s14023_s16 + $0x7b] sm:$0xff] }
 0x153   : > { %v15547_v31 = vadd.f32 %v2030_v51, %v15433_v60  ;;  %v12670_v14 = vpop.f32.mrf.mxu0  ;;  %12973 = vmatmul.mubr.msk.f32.gmra.mxu0 %vm381_vm1, %v15536_v0  ;;  %18339 = vst [vmem:[#allocation32_spill] sm:$0xff] %v15563_v27 }
 0x154   : > { %v12696_v9 = vpop.f32.mrf.mxu1  ;;  %12999 = vmatmul.mubr.msk.f32.gmra.mxu1 %vm381_vm1, %v4322_v24  ;;  %v15553_v44 = vadd.f32 %v12670_v14, %v15322_v58  ;;  %12975 = vmatprep.mubr.msk.f32.mxu0 %vm381_vm1, %v15540_v11  ;;  %v15566_v24 = vld [vmem:[%s14023_s16 + $0x83] sm:$0xff] }
 0x155   : > { %v15556_v1 = vadd.f32 %v12696_v9, %v15444_v23  ;;  %13001 = vmatprep.mubr.msk.f32.mxu1 %vm381_vm1, %v15543_v22  ;;  %v1770_v60 = vpop.f32.mrf.mxu0  ;;  %18340 = vst [vmem:[#allocation34_spill] sm:$0xff] %v15566_v24 }
 0x156   : > { %v2040_v49 = vpop.f32.mrf.mxu1  ;;  %v15569_v58 = vadd.f32 %v1770_v60, %v15342_v29  ;;  %v15589_v29 = vld [vmem:[%s14023_s16 + $0xca] sm:$0xff] }
 0x157   : > { %v15572_v23 = vadd.f32 %v2040_v49, %v15464_v25  ;;  %v12673_v51 = vpop.f32.mrf.mxu0  ;;  %12976 = vmatmul.mubr.msk.f32.gmra.mxu0 %vm381_vm1, %v14825_v45  ;;  %18341 = vst [vmem:[#allocation35_spill] sm:$0xff] %v15589_v29  ;;  %v15592_v25 = vld [vmem:[%s14023_s16 + $0x8b] sm:$0xff] }
 0x158   : > { %v12699_v14 = vpop.f32.mrf.mxu1  ;;  %13002 = vmatmul.mubr.msk.f32.gmra.mxu1 %vm381_vm1, %v15563_v27  ;;  %v15579_v9 = vadd.f32 %v12673_v51, %v15352_v5  ;;  %12978 = vmatprep.mubr.msk.f32.mxu0 %vm381_vm1, %v14828_v46  ;;  %18342 = vst [vmem:[#allocation37_spill] sm:$0xff] %v15592_v25  ;;  %v15595_v49 = vld [vmem:[%s14023_s16 + $0xd2] sm:$0xff] }
 0x159   : > { %v15582_v22 = vadd.f32 %v12699_v14, %v15475_v62  ;;  %13004 = vmatprep.mubr.msk.f32.mxu1 %vm381_vm1, %v15566_v24  ;;  %v1780_v45 = vpop.f32.mrf.mxu0  ;;  %18343 = vst [vmem:[#allocation38_spill] sm:$0xff] %v15595_v49  ;;  %v15598_v5 = vld [vmem:[%s14023_s16 + $0x93] sm:$0xff] }
 0x15a   : > { %v2050_v60 = vpop.f32.mrf.mxu1  ;;  %18344 = vst [vmem:[#allocation40_spill] sm:$0xff] %v15598_v5  ;;  %v15601_v62 = vadd.f32 %v1780_v45, %v15374_v10  ;;  %v4026_v10 = vld [vmem:[%s14023_s16 + $0xda] sm:$0xf] }
 0x15b   : > { %v15604_v46 = vadd.f32 %v2050_v60, %v15492_v12  ;;  %v12676_v51 = vpop.f32.mrf.mxu0  ;;  %12979 = vmatmul.mubr.msk.f32.gmra.mxu0 %vm381_vm1, %v15589_v29  ;;  %v15622_v12 = vld [vmem:[%s14023_s16 + $0x9b] sm:$0xff] }
 0x15c   : > { %v12702_v14 = vpop.f32.mrf.mxu1  ;;  %13005 = vmatmul.mubr.msk.f32.gmra.mxu1 %vm381_vm1, %v15592_v25  ;;  %v15611_v24 = vadd.f32 %v12676_v51, %v15384_v54  ;;  %12981 = vmatprep.mubr.msk.f32.mxu0 %vm381_vm1, %v15595_v49  ;;  %18345 = vst [vmem:[#allocation41_spill] sm:$0xff] %v15622_v12  ;;  %v15625_v25 = vld [vmem:[%s14023_s16 + $0xa3] sm:$0xff] }
 0x15d   : > { %v15614_v27 = vadd.f32 %v12702_v14, %v15501_v34  ;;  %13007 = vmatprep.mubr.msk.f32.mxu1 %vm381_vm1, %v15598_v5  ;;  %v1790_v45 = vpop.f32.mrf.mxu0  ;;  %18346 = vst [vmem:[#allocation42_spill] sm:$0xff] %v15625_v25  ;;  %v4623_v54 = vld [vmem:[%s14023_s16 + $0x24] sm:$0xff] }
 0x15e   : > { %v2060_v60 = vpop.f32.mrf.mxu1  ;;  %v15629_v34 = vadd.f32 %v1790_v45, %v15402_v41  ;;  %v15647_v41 = vld [vmem:[%s14023_s16 + $0xab] sm:$0xff] }
 0x15f   : > { %v15632_v51 = vadd.f32 %v2060_v60, %v15518_v15  ;;  %v12679_v14 = vpop.f32.mrf.mxu0  ;;  %12982 = vmatmul.mubr.msk.f32.gmra.mxu0 %vm381_vm1, %v4026_v10  ;;  %18347 = vst [vmem:[#allocation43_spill] sm:$0xff] %v15647_v41  ;;  %v4624_v15 = vld [vmem:[%s14023_s16 + $0x2c] sm:$0xff] }
 0x160   : > { %v12705_v5 = vpop.f32.mrf.mxu1  ;;  %13008 = vmatmul.mubr.msk.f32.gmra.mxu1 %vm381_vm1, %v15622_v12  ;;  %v15638_v49 = vadd.f32 %v12679_v14, %v15411_v38  ;;  %13024 = vmatprep.mubr.msk.f32.mxu0 %vm381_vm1, %v4623_v54  ;;  %v15651_v60 = vld [vmem:[%s14023_s16 + $0xb3] sm:$0xff] }
 0x161   : > { %v15641_v29 = vadd.f32 %v12705_v5, %v15527_v40  ;;  %13010 = vmatprep.mubr.msk.f32.mxu1 %vm381_vm1, %v15625_v25  ;;  %v1800_v45 = vpop.f32.mrf.mxu0  ;;  %18348 = vst [vmem:[#allocation44_spill] sm:$0xff] %v15651_v60  ;;  %v15659_v40 = vld [vmem:[%s14023_s16 + $0x34] sm:$0xff]  ;;  %v15664_v5 = vld [vmem:[%s18141_s1 + $0x48] sm:$0x7] }
 0x162   : > { %v2070_v10 = vpop.f32.mrf.mxu1  ;;  %v15654_v12 = vadd.f32 %v1800_v45, %v15430_v18  ;;  %v15678_v45 = vld [vmem:[%s14023_s16 + $0x3c] sm:$0xff] }
 0x163   : > { %v15656_v38 = vadd.f32 %v2070_v10, %v1823_v30  ;;  %v12722_v14 = vpop.f32.mrf.mxu0  ;;  %13025 = vmatmul.mubr.msk.f32.vlgmr.msra.gmra.mxu0 %vm381_vm1, %v4624_v15  ;;  %v15683_v15 = vld [vmem:[%s14023_s16 + $0x44] sm:$0xff] }
 0x164   : > { %v12708_v54 = vpop.f32.mrf.mxu1  ;;  %13011 = vmatmul.mubr.msk.f32.gmra.mxu1 %vm381_vm1, %v15647_v41  ;;  %v2430_v30 = vadd.f32 %v12722_v14, %v15447_v52  ;;  %13099 = vmatpush3.msk.msra.mxu0 %vm454_vm0, %v15316_v63  ;;  %18349 = vst [vmem:[#allocation45_spill] sm:$0xff] %v15683_v15 }
 0x165   : > { %v15670_v18 = vadd.f32 %v12708_v54, %v15553_v44  ;;  %13013 = vmatprep.mubr.msk.f32.mxu1 %vm381_vm1, %v15651_v60  ;;  %v2310_v25 = vpop.f32.mrf.mxu0  ;;  %13027 = vmatprep.mubr.msk.f32.mxu0 %vm381_vm1, %v15659_v40 }
 0x166   : > { %v2080_v10 = vpop.f32.mrf.mxu1  ;;  %13174 = vmatprep.subr.msk.mxu0 %vm454_vm0, %v15664_v5  ;;  %v2429_v52 = vadd.f32 %v2310_v25, %v15467_v8  ;;  %v15704_v8 = vld [vmem:[%s14023_s16 + $0xcb] sm:$0xff] }
 0x167   : > { %v15688_v63 = vadd.f32 %v2080_v10, %v15569_v58  ;;  %v12725_v54 = vpop.f32.mrf.mxu0  ;;  %13028 = vmatmul.mubr.msk.f32.gmra.mxu0 %vm381_vm1, %v15678_v45  ;;  %18350 = vst [vmem:[#allocation46_spill] sm:$0xff] %v15704_v8  ;;  %v15707_v58 = vld [vmem:[%s14023_s16 + $0x4c] sm:$0xff] }
 0x168   : > { %v12711_v44 = vpop.f32.mrf.mxu1  ;;  %13014 = vmatmul.mubr.msk.f32.gmra.mxu1 %vm381_vm1, %v14934_v61  ;;  %v2432_v60 = vadd.f32 %v12725_v54, %v15478_v37  ;;  %13030 = vmatprep.mubr.msk.f32.mxu0 %vm381_vm1, %v15683_v15  ;;  %v15710_v10 = vld [vmem:[%s14023_s16 + $0xd3] sm:$0xff] }
 0x169   : > { %v15696_v14 = vadd.f32 %v12711_v44, %v15579_v9  ;;  %13016 = vmatprep.mubr.msk.f32.mxu1 %vm381_vm1, %v14937_v4  ;;  %v2320_v25 = vpop.f32.mrf.mxu0  ;;  %18351 = vst [vmem:[#allocation47_spill] sm:$0xff] %v15710_v10  ;;  %v15713_v9 = vld [vmem:[%s14023_s16 + $0x54] sm:$0xff] }
 0x16a   : > { %v2090_v61 = vpop.f32.mrf.mxu1  ;;  %18352 = vst [vmem:[#allocation48_spill] sm:$0xff] %v15713_v9  ;;  %v2431_v4 = vadd.f32 %v2320_v25, %v15495_v47  ;;  %v4336_v47 = vld [vmem:[%s14023_s16 + $0xdb] sm:$0xf] }
 0x16b   : > { %v15716_v37 = vadd.f32 %v2090_v61, %v15601_v62  ;;  %v12728_v54 = vpop.f32.mrf.mxu0  ;;  %13031 = vmatmul.mubr.msk.f32.gmra.mxu0 %vm381_vm1, %v15707_v58  ;;  %v15733_v62 = vld [vmem:[%s14023_s16 + $0x5c] sm:$0xff] }
 0x16c   : > { %v12714_v44 = vpop.f32.mrf.mxu1  ;;  %13017 = vmatmul.mubr.msk.f32.gmra.mxu1 %vm381_vm1, %v15704_v8  ;;  %v2434_v15 = vadd.f32 %v12728_v54, %v15504_v50  ;;  %13033 = vmatprep.mubr.msk.f32.mxu0 %vm381_vm1, %v15713_v9  ;;  %v15736_v8 = vld [vmem:[%s14023_s16 + $0x64] sm:$0xff] }
 0x16d   : > { %v15724_v41 = vadd.f32 %v12714_v44, %v15611_v24  ;;  %13019 = vmatprep.mubr.msk.f32.mxu1 %vm381_vm1, %v15710_v10  ;;  %v2330_v25 = vpop.f32.mrf.mxu0  ;;  %18353 = vst [vmem:[#allocation49_spill] sm:$0xff] %v15736_v8 }
 0x16e   : > { %v2100_v61 = vpop.f32.mrf.mxu1  ;;  %v2433_v50 = vadd.f32 %v2330_v25, %v15521_v20  ;;  %v15754_v20 = vld [vmem:[%s14023_s16 + $0x6c] sm:$0xff] }
 0x16f   : > { %v15739_v24 = vadd.f32 %v2100_v61, %v15629_v34  ;;  %v12731_v54 = vpop.f32.mrf.mxu0  ;;  %13034 = vmatmul.mubr.msk.f32.gmra.mxu0 %vm381_vm1, %v15733_v62 }
 0x170   : > { %v12717_v44 = vpop.f32.mrf.mxu1  ;;  %13020 = vmatmul.mubr.msk.f32.gmra.mxu1 %vm381_vm1, %v4336_v47  ;;  %v2436_v9 = vadd.f32 %v12731_v54, %v15530_v19  ;;  %13036 = vmatprep.mubr.msk.f32.mxu0 %vm381_vm1, %v15736_v8  ;;  %v15757_v47 = vld [vmem:[%s14023_s16 + $0x74] sm:$0xff] }
 0x171   : > { %v15746_v10 = vadd.f32 %v12717_v44, %v15638_v49  ;;  %13062 = vmatprep.mubr.msk.f32.mxu1 %vm381_vm1, %v14967_v48  ;;  %v2340_v61 = vpop.f32.mrf.mxu0  ;;  %v15770_v48 = vld [vmem:[%s18141_s1 + $0x4c] sm:$0x7] }
 0x172   : > { %v2110_v34 = vpop.f32.mrf.mxu1  ;;  %v2435_v49 = vadd.f32 %v2340_v61, %v15547_v31  ;;  %v15780_v31 = vld [vmem:[%s14023_s16 + $0x7c] sm:$0xff] }
 0x173   : > { %v15760_v25 = vadd.f32 %v2110_v34, %v15654_v12  ;;  %v12734_v19 = vpop.f32.mrf.mxu0  ;;  %13037 = vmatmul.mubr.msk.f32.gmra.mxu0 %vm381_vm1, %v15754_v20  ;;  %v15783_v34 = vld [vmem:[%s14023_s16 + $0x84] sm:$0xff] }
 0x174   : > { %v12760_v44 = vpop.f32.mrf.mxu1  ;;  %13063 = vmatmul.mubr.msk.f32.vlgmr.msra.gmra.mxu1 %vm381_vm1, %v14987_v55  ;;  %v2438_v54 = vadd.f32 %v12734_v19, %v15556_v1  ;;  %13039 = vmatprep.mubr.msk.f32.mxu0 %vm381_vm1, %v15757_v47 }
 0x175   : > { %v15773_v8 = vadd.f32 %v12760_v44, %v2430_v30  ;;  %13065 = vmatprep.mubr.msk.f32.mxu1 %vm381_vm1, %v14992_v33  ;;  %v2350_v12 = vpop.f32.mrf.mxu0  ;;  %13137 = vmatpush3.msk.msra.mxu1 %vm454_vm0, %v15441_v16  ;;  %v15804_v16 = vld [vmem:[%s14023_s16 + $0x8c] sm:$0xff] }
 0x176   : > { %v2620_v55 = vpop.f32.mrf.mxu1  ;;  %v2437_v1 = vadd.f32 %v2350_v12, %v15572_v23  ;;  %13212 = vmatprep.subr.msk.mxu1 %vm454_vm0, %v15770_v48  ;;  %v15807_v12 = vld [vmem:[%s14023_s16 + $0x94] sm:$0xff] }
 0x177   : > { %v15788_v30 = vadd.f32 %v2620_v55, %v2429_v52  ;;  %v12737_v61 = vpop.f32.mrf.mxu0  ;;  %13040 = vmatmul.mubr.msk.f32.gmra.mxu0 %vm381_vm1, %v15780_v31 }
 0x178   : > { %v12763_v33 = vpop.f32.mrf.mxu1  ;;  %13066 = vmatmul.mubr.msk.f32.gmra.mxu1 %vm381_vm1, %v15018_v3  ;;  %v2440_v19 = vadd.f32 %v12737_v61, %v15582_v22  ;;  %13042 = vmatprep.mubr.msk.f32.mxu0 %vm381_vm1, %v15783_v34 }
 0x179   : > { %v15797_v44 = vadd.f32 %v12763_v33, %v2432_v60  ;;  %13068 = vmatprep.mubr.msk.f32.mxu1 %vm381_vm1, %v15024_v39  ;;  %v2360_v23 = vpop.f32.mrf.mxu0 }
 0x17a   : > { %v2630_v52 = vpop.f32.mrf.mxu1  ;;  %v2439_v3 = vadd.f32 %v2360_v23, %v15604_v46  ;;  %v15824_v46 = vld [vmem:[%s14023_s16 + $0x9c] sm:$0xff]  ;;  %v15827_v23 = vld [vmem:[%s14023_s16 + $0xa4] sm:$0xff] }
 0x17b   : > { %v15810_v55 = vadd.f32 %v2630_v52, %v2431_v4  ;;  %v12740_v22 = vpop.f32.mrf.mxu0  ;;  %13043 = vmatmul.mubr.msk.f32.gmra.mxu0 %vm381_vm1, %v15804_v16  ;;  %18354 = vst [vmem:[#allocation50_spill] sm:$0xff] %v15824_v46 }
 0x17c   : > { %v12766_v60 = vpop.f32.mrf.mxu1  ;;  %13069 = vmatmul.mubr.msk.f32.gmra.mxu1 %vm381_vm1, %v15047_v21  ;;  %v2442_v39 = vadd.f32 %v12740_v22, %v15614_v27  ;;  %13045 = vmatprep.mubr.msk.f32.mxu0 %vm381_vm1, %v15807_v12 }
 0x17d   : > { %v15817_v61 = vadd.f32 %v12766_v60, %v2434_v15  ;;  %13071 = vmatprep.mubr.msk.f32.mxu1 %vm381_vm1, %v15050_v32  ;;  %v2370_v4 = vpop.f32.mrf.mxu0 }
 0x17e   : > { %v2640_v33 = vpop.f32.mrf.mxu1  ;;  %v2441_v21 = vadd.f32 %v2370_v4, %v15632_v51  ;;  %v15844_v51 = vld [vmem:[%s14023_s16 + $0xac] sm:$0xff]  ;;  %v15847_v4 = vld [vmem:[%s14023_s16 + $0xb4] sm:$0xff] }
 0x17f   : > { %v15830_v52 = vadd.f32 %v2640_v33, %v2433_v50  ;;  %v12743_v27 = vpop.f32.mrf.mxu0  ;;  %13046 = vmatmul.mubr.msk.f32.gmra.mxu0 %vm381_vm1, %v15824_v46 }
 0x180   : > { %v12769_v15 = vpop.f32.mrf.mxu1  ;;  %13072 = vmatmul.mubr.msk.f32.gmra.mxu1 %vm381_vm1, %v15072_v56  ;;  %v2444_v32 = vadd.f32 %v12743_v27, %v15641_v29  ;;  %13048 = vmatprep.mubr.msk.f32.mxu0 %vm381_vm1, %v15827_v23 }
 0x181   : > { %v15837_v22 = vadd.f32 %v12769_v15, %v2436_v9  ;;  %13074 = vmatprep.mubr.msk.f32.mxu1 %vm381_vm1, %v15076_v53  ;;  %v2380_v50 = vpop.f32.mrf.mxu0 }
 0x182   : > { %v2650_v60 = vpop.f32.mrf.mxu1  ;;  %v2443_v33 = vadd.f32 %v2380_v50, %v15656_v38 }
 0x183   : > { %v15850_v46 = vadd.f32 %v2650_v60, %v2435_v49  ;;  %v12746_v56 = vpop.f32.mrf.mxu0  ;;  %13049 = vmatmul.mubr.msk.f32.gmra.mxu0 %vm381_vm1, %v15844_v51  ;;  %v15881_v60 = vld [vmem:[%s14023_s16 + $0xd4] sm:$0xff] }
 0x184   : > { %v12772_v29 = vpop.f32.mrf.mxu1  ;;  %13075 = vmatmul.mubr.msk.f32.gmra.mxu1 %vm381_vm1, %v15106_v57  ;;  %v2446_v53 = vadd.f32 %v12746_v56, %v15670_v18  ;;  %13051 = vmatprep.mubr.msk.f32.mxu0 %vm381_vm1, %v15847_v4 }
 0x185   : > { %v15857_v9 = vadd.f32 %v12772_v29, %v2438_v54  ;;  %13077 = vmatprep.mubr.msk.f32.mxu1 %vm381_vm1, %v15110_v28  ;;  %v2390_v38 = vpop.f32.mrf.mxu0  ;;  %v15878_v28 = vld [vmem:[%s14023_s16 + $0xcc] sm:$0xff] }
 0x186   : > { %v2660_v49 = vpop.f32.mrf.mxu1  ;;  %v2445_v27 = vadd.f32 %v2390_v38, %v15688_v63 }
 0x187   : > { %v15864_v15 = vadd.f32 %v2660_v49, %v2437_v1  ;;  %v12749_v50 = vpop.f32.mrf.mxu0  ;;  %13052 = vmatmul.mubr.msk.f32.gmra.mxu0 %vm381_vm1, %v15015_v17 }
 0x188   : > { %v12775_v57 = vpop.f32.mrf.mxu1  ;;  %13078 = vmatmul.mubr.msk.f32.gmra.mxu1 %vm381_vm1, %v15136_v35  ;;  %v2448_v18 = vadd.f32 %v12749_v50, %v15696_v14  ;;  %13054 = vmatprep.mubr.msk.f32.mxu0 %vm381_vm1, %v15021_v2 }
 0x189   : > { %v15871_v54 = vadd.f32 %v12775_v57, %v2440_v19  ;;  %13080 = vmatprep.mubr.msk.f32.mxu1 %vm381_vm1, %v15140_v42  ;;  %v2400_v63 = vpop.f32.mrf.mxu0  ;;  %v15920_v57 = vld [vmem:[%s14023_s16 + $0xc0] sm:$0xff] }
 0x18a   : > { %v2670_v1 = vpop.f32.mrf.mxu1  ;;  %v2447_v17 = vadd.f32 %v2400_v63, %v15716_v37  ;;  %v4646_v37 = vld [vmem:[%s14023_s16 + $0xdc] sm:$0xf]  ;;  %18355 = vst [vmem:[#allocation51_spill] sm:$0xff] %v15920_v57 }
 0x18b   : > { %v15884_v35 = vadd.f32 %v2670_v1, %v2439_v3  ;;  %v12752_v14 = vpop.f32.mrf.mxu0  ;;  %13055 = vmatmul.mubr.msk.f32.gmra.mxu0 %vm381_vm1, %v15878_v28 }
 0x18c   : > { %v12778_v19 = vpop.f32.mrf.mxu1  ;;  %13081 = vmatmul.mubr.msk.f32.gmra.mxu1 %vm381_vm1, %v15162_v6  ;;  %v2450_v2 = vadd.f32 %v12752_v14, %v15724_v41  ;;  %13057 = vmatprep.mubr.msk.f32.mxu0 %vm381_vm1, %v15881_v60 }
 0x18d   : > { %v15891_v42 = vadd.f32 %v12778_v19, %v2442_v39  ;;  %13083 = vmatprep.mubr.msk.f32.mxu1 %vm381_vm1, %v15166_v26  ;;  %v2410_v3 = vpop.f32.mrf.mxu0 }
 0x18e   : > { %v2680_v56 = vpop.f32.mrf.mxu1  ;;  %v15899_v29 = vadd.f32 %v2410_v3, %v15739_v24  ;;  %v15916_v24 = vld [vmem:[%s14023_s16 + $0xb8] sm:$0xff] }
 0x18f   : > { %v15901_v6 = vadd.f32 %v2680_v56, %v2441_v21  ;;  %v12755_v41 = vpop.f32.mrf.mxu0  ;;  %13058 = vmatmul.mubr.msk.f32.gmra.mxu0 %vm381_vm1, %v4646_v37  ;;  %v5244_v21 = vld [vmem:[%s14023_s16 + $0x39] sm:$0xff]  ;;  %v15949_v37 = vld [vmem:[%s14023_s16 + $0x51] sm:$0xff] }
 0x190   : > { %v12781_v39 = vpop.f32.mrf.mxu1  ;;  %13084 = vmatmul.mubr.msk.f32.gmra.mxu1 %vm381_vm1, %v15188_v36  ;;  %v15907_v38 = vadd.f32 %v12755_v41, %v15746_v10  ;;  %13100 = vmatprep.mubr.msk.f32.mxu0 %vm381_vm1, %v15079_v59  ;;  %v18356_v56 = vld [vmem:[#allocation17_spill] sm:$0xff] }
 0x191   : > { %v15909_v26 = vadd.f32 %v12781_v39, %v2444_v32  ;;  %13086 = vmatprep.mubr.msk.f32.mxu1 %vm381_vm1, %v15192_v13  ;;  %v2420_v49 = vpop.f32.mrf.mxu0  ;;  %v15926_v32 = vld [vmem:[%s14023_s16 + $0x41] sm:$0xff]  ;;  %v15931_v13 = vld [vmem:[%s18141_s1 + $0x50] sm:$0x7] }
 0x192   : > { %v2690_v50 = vpop.f32.mrf.mxu1  ;;  %v2451_v36 = vadd.f32 %v2420_v49, %v15760_v25 }
 0x193   : > { %v15923_v10 = vadd.f32 %v2690_v50, %v2443_v33  ;;  %v12798_v63 = vpop.f32.mrf.mxu0  ;;  %13101 = vmatmul.mubr.msk.f32.vlgmr.msra.gmra.mxu0 %vm381_vm1, %v5244_v21  ;;  %v15944_v33 = vld [vmem:[%s14023_s16 + $0x49] sm:$0xff]  ;;  %v18357_v21 = vld [vmem:[#allocation7_spill] sm:$0xff] }
 0x194   : > { %v12784_v59 = vpop.f32.mrf.mxu1  ;;  %13087 = vmatmul.mubr.msk.f32.gmra.mxu1 %vm381_vm1, %v15916_v24  ;;  %v3050_v25 = vadd.f32 %v12798_v63, %v15773_v8  ;;  %13175 = vmatpush3.msk.msra.mxu0 %vm454_vm0, %v15664_v5 }
 0x195   : > { %v15936_v1 = vadd.f32 %v12784_v59, %v2446_v53  ;;  %13089 = vmatprep.mubr.msk.f32.mxu1 %vm381_vm1, %v15920_v57  ;;  %v2930_v19 = vpop.f32.mrf.mxu0  ;;  %13103 = vmatprep.mubr.msk.f32.mxu0 %vm381_vm1, %v15926_v32  ;;  %v15974_v59 = vld [vmem:[%s14023_s16 + $0xe0] sm:$0xff]  ;;  %v18361_v57 = vld [vmem:[#allocation13_spill] sm:$0xff] }
 0x196   : > { %v2700_v14 = vpop.f32.mrf.mxu1  ;;  %13250 = vmatprep.subr.msk.mxu0 %vm454_vm0, %v15931_v13  ;;  %v3049_v8 = vadd.f32 %v2930_v19, %v15788_v30  ;;  %v15971_v30 = vld [vmem:[%s14023_s16 + $0x59] sm:$0xff]  ;;  %18359 = vst [vmem:[#allocation7_spill] sm:$0xff] %v15974_v59 }
 0x197   : > { %v15953_v5 = vadd.f32 %v2700_v14, %v2445_v27  ;;  %v12801_v3 = vpop.f32.mrf.mxu0  ;;  %13104 = vmatmul.mubr.msk.f32.gmra.mxu0 %vm381_vm1, %v15944_v33  ;;  %v15968_v27 = vld [vmem:[%s14023_s16 + $0xd8] sm:$0xff] }
 0x198   : > { %v12787_v53 = vpop.f32.mrf.mxu1  ;;  %13090 = vmatmul.mubr.msk.f32.gmra.mxu1 %vm381_vm1, %v18356_v56  ;;  %v3052_v39 = vadd.f32 %v12801_v3, %v15797_v44  ;;  %13106 = vmatprep.mubr.msk.f32.mxu0 %vm381_vm1, %v15949_v37  ;;  %18358 = vst [vmem:[#allocation17_spill] sm:$0xff] %v15968_v27 }
 0x199   : > { %v15960_v41 = vadd.f32 %v12787_v53, %v2448_v18  ;;  %13092 = vmatprep.mubr.msk.f32.mxu1 %vm381_vm1, %v18357_v21  ;;  %v2940_v50 = vpop.f32.mrf.mxu0  ;;  %v15977_v18 = vld [vmem:[%s14023_s16 + $0x61] sm:$0xff] }
 0x19a   : > { %v2710_v49 = vpop.f32.mrf.mxu1  ;;  %v3051_v44 = vadd.f32 %v2940_v50, %v15810_v55  ;;  %v15995_v55 = vld [vmem:[%s14023_s16 + $0x69] sm:$0xff] }
 0x19b   : > { %v15979_v63 = vadd.f32 %v2710_v49, %v2447_v17  ;;  %v12804_v19 = vpop.f32.mrf.mxu0  ;;  %13107 = vmatmul.mubr.msk.f32.gmra.mxu0 %vm381_vm1, %v15971_v30  ;;  %v4956_v17 = vld [vmem:[%s14023_s16 + $0xe8] sm:$0xf] }
 0x19c   : > { %v12790_v14 = vpop.f32.mrf.mxu1  ;;  %13093 = vmatmul.mubr.msk.f32.gmra.mxu1 %vm381_vm1, %v15968_v27  ;;  %v3054_v3 = vadd.f32 %v12804_v19, %v15817_v61  ;;  %13109 = vmatprep.mubr.msk.f32.mxu0 %vm381_vm1, %v15977_v18 }
 0x19d   : > { %v15986_v53 = vadd.f32 %v12790_v14, %v2450_v2  ;;  %13095 = vmatprep.mubr.msk.f32.mxu1 %vm381_vm1, %v15974_v59  ;;  %v2950_v21 = vpop.f32.mrf.mxu0  ;;  %v18360_v59 = vld [vmem:[#allocation11_spill] sm:$0xff] }
 0x19e   : > { %v2720_v56 = vpop.f32.mrf.mxu1  ;;  %v3053_v50 = vadd.f32 %v2950_v21, %v15830_v52 }
 0x19f   : > { %v15998_v49 = vadd.f32 %v2720_v56, %v15899_v29  ;;  %v12807_v14 = vpop.f32.mrf.mxu0  ;;  %13110 = vmatmul.mubr.msk.f32.gmra.mxu0 %vm381_vm1, %v15995_v55 }
 0x1a0   : > { %v12793_v2 = vpop.f32.mrf.mxu1  ;;  %13096 = vmatmul.mubr.msk.f32.gmra.mxu1 %vm381_vm1, %v4956_v17  ;;  %v3056_v19 = vadd.f32 %v12807_v14, %v15837_v22  ;;  %13112 = vmatprep.mubr.msk.f32.mxu0 %vm381_vm1, %v18360_v59  ;;  %v16022_v22 = vld [vmem:[%s18141_s1 + $0x54] sm:$0x7]  ;;  %v18365_v14 = vld [vmem:[#allocation12_spill] sm:$0xff] }
 0x1a1   : > { %v16005_v61 = vadd.f32 %v12793_v2, %v15907_v38  ;;  %13138 = vmatprep.mubr.msk.f32.mxu1 %vm381_vm1, %v15311_v43  ;;  %v2960_v52 = vpop.f32.mrf.mxu0 }
 0x1a2   : > { %v2730_v29 = vpop.f32.mrf.mxu1  ;;  %v3055_v17 = vadd.f32 %v2960_v52, %v15850_v46  ;;  %v18363_v46 = vld [vmem:[#allocation10_spill] sm:$0xff] }
 0x1a3   : > { %v16012_v56 = vadd.f32 %v2730_v29, %v2451_v36  ;;  %v12810_v21 = vpop.f32.mrf.mxu0  ;;  %13113 = vmatmul.mubr.msk.f32.gmra.mxu0 %vm381_vm1, %v18361_v57  ;;  %v18362_v36 = vld [vmem:[#allocation15_spill] sm:$0xff] }
 0x1a4   : > { %v12836_v27 = vpop.f32.mrf.mxu1  ;;  %13139 = vmatmul.mubr.msk.f32.vlgmr.msra.gmra.mxu1 %vm381_vm1, %v15332_v7  ;;  %v3058_v43 = vadd.f32 %v12810_v21, %v15857_v9  ;;  %13115 = vmatprep.mubr.msk.f32.mxu0 %vm381_vm1, %v18362_v36 }
 0x1a5   : > { %v16025_v38 = vadd.f32 %v12836_v27, %v3050_v25  ;;  %13141 = vmatprep.mubr.msk.f32.mxu1 %vm381_vm1, %v18363_v46  ;;  %v2970_v59 = vpop.f32.mrf.mxu0  ;;  %13213 = vmatpush3.msk.msra.mxu1 %vm454_vm0, %v15770_v48  ;;  %v18364_v27 = vld [vmem:[#allocation19_spill] sm:$0xff]  ;;  %v18366_v48 = vld [vmem:[#allocation21_spill] sm:$0xff] }
 0x1a6   : > { %v3240_v57 = vpop.f32.mrf.mxu1  ;;  %v3057_v7 = vadd.f32 %v2970_v59, %v15864_v15  ;;  %13288 = vmatprep.subr.msk.mxu1 %vm454_vm0, %v16022_v22  ;;  %v18367_v15 = vld [vmem:[#allocation16_spill] sm:$0xff] }
 0x1a7   : > { %v16034_v2 = vadd.f32 %v3240_v57, %v3049_v8  ;;  %v12813_v9 = vpop.f32.mrf.mxu0  ;;  %13116 = vmatmul.mubr.msk.f32.gmra.mxu0 %vm381_vm1, %v18364_v27  ;;  %v18368_v27 = vld [vmem:[#allocation8_spill] sm:$0xff] }
 0x1a8   : > { %v12839_v25 = vpop.f32.mrf.mxu1  ;;  %13142 = vmatmul.mubr.msk.f32.gmra.mxu1 %vm381_vm1, %v18365_v14  ;;  %v3060_v29 = vadd.f32 %v12813_v9, %v15871_v54  ;;  %13118 = vmatprep.mubr.msk.f32.mxu0 %vm381_vm1, %v18366_v48  ;;  %v18369_v54 = vld [vmem:[#allocation18_spill] sm:$0xff]  ;;  %v18371_v14 = vld [vmem:[#allocation20_spill] sm:$0xff] }
 0x1a9   : > { %v16043_v52 = vadd.f32 %v12839_v25, %v3052_v39  ;;  %13144 = vmatprep.mubr.msk.f32.mxu1 %vm381_vm1, %v18367_v15  ;;  %v2980_v8 = vpop.f32.mrf.mxu0  ;;  %v18370_v25 = vld [vmem:[#allocation23_spill] sm:$0xff] }
 0x1aa   : > { %v3250_v21 = vpop.f32.mrf.mxu1  ;;  %v3059_v36 = vadd.f32 %v2980_v8, %v15884_v35 }
 0x1ab   : > { %v16050_v46 = vadd.f32 %v3250_v21, %v3051_v44  ;;  %v12816_v59 = vpop.f32.mrf.mxu0  ;;  %13119 = vmatmul.mubr.msk.f32.gmra.mxu0 %vm381_vm1, %v18368_v27  ;;  %v18372_v27 = vld [vmem:[#allocation9_spill] sm:$0xff] }
 0x1ac   : > { %v12842_v57 = vpop.f32.mrf.mxu1  ;;  %13145 = vmatmul.mubr.msk.f32.gmra.mxu1 %vm381_vm1, %v18369_v54  ;;  %v3062_v39 = vadd.f32 %v12816_v59, %v15891_v42  ;;  %13121 = vmatprep.mubr.msk.f32.mxu0 %vm381_vm1, %v18370_v25  ;;  %v18373_v42 = vld [vmem:[#allocation33_spill] sm:$0xff]  ;;  %v18375_v54 = vld [vmem:[#allocation22_spill] sm:$0xff] }
 0x1ad   : > { %v16057_v9 = vadd.f32 %v12842_v57, %v3054_v3  ;;  %13147 = vmatprep.mubr.msk.f32.mxu1 %vm381_vm1, %v18371_v14  ;;  %v2990_v35 = vpop.f32.mrf.mxu0  ;;  %v18374_v57 = vld [vmem:[#allocation25_spill] sm:$0xff]  ;;  %v16081_v14 = vld [vmem:[%s14023_s16 + $0xc1] sm:$0xff] }
 0x1ae   : > { %v3260_v44 = vpop.f32.mrf.mxu1  ;;  %v3061_v48 = vadd.f32 %v2990_v35, %v15901_v6  ;;  %v16078_v6 = vld [vmem:[%s14023_s16 + $0xb9] sm:$0xff] }
 0x1af   : > { %v16064_v15 = vadd.f32 %v3260_v44, %v3053_v50  ;;  %v12819_v8 = vpop.f32.mrf.mxu0  ;;  %13122 = vmatmul.mubr.msk.f32.gmra.mxu0 %vm381_vm1, %v18372_v27 }
 0x1b0   : > { %v12845_v21 = vpop.f32.mrf.mxu1  ;;  %13148 = vmatmul.mubr.msk.f32.gmra.mxu1 %vm381_vm1, %v18373_v42  ;;  %v3064_v3 = vadd.f32 %v12819_v8, %v15909_v26  ;;  %13124 = vmatprep.mubr.msk.f32.mxu0 %vm381_vm1, %v18374_v57  ;;  %v18377_v42 = vld [vmem:[#allocation26_spill] sm:$0xff] }
 0x1b1   : > { %v16071_v59 = vadd.f32 %v12845_v21, %v3056_v19  ;;  %13150 = vmatprep.mubr.msk.f32.mxu1 %vm381_vm1, %v18375_v54  ;;  %v3000_v50 = vpop.f32.mrf.mxu0  ;;  %v18376_v19 = vld [vmem:[#allocation36_spill] sm:$0xff] }
 0x1b2   : > { %v3270_v25 = vpop.f32.mrf.mxu1  ;;  %v3063_v35 = vadd.f32 %v3000_v50, %v15923_v10 }
 0x1b3   : > { %v16084_v44 = vadd.f32 %v3270_v25, %v3055_v17  ;;  %v12822_v27 = vpop.f32.mrf.mxu0  ;;  %13125 = vmatmul.mubr.msk.f32.gmra.mxu0 %vm381_vm1, %v16078_v6 }
 0x1b4   : > { %v12848_v26 = vpop.f32.mrf.mxu1  ;;  %13151 = vmatmul.mubr.msk.f32.gmra.mxu1 %vm381_vm1, %v18376_v19  ;;  %v3066_v8 = vadd.f32 %v12822_v27, %v15936_v1  ;;  %13127 = vmatprep.mubr.msk.f32.mxu0 %vm381_vm1, %v16081_v14  ;;  %v18378_v19 = vld [vmem:[#allocation27_spill] sm:$0xff]  ;;  %v18379_v1 = vld [vmem:[#allocation28_spill] sm:$0xff] }
 0x1b5   : > { %v16091_v21 = vadd.f32 %v12848_v26, %v3058_v43  ;;  %13153 = vmatprep.mubr.msk.f32.mxu1 %vm381_vm1, %v18377_v42  ;;  %v3010_v10 = vpop.f32.mrf.mxu0  ;;  %v18380_v26 = vld [vmem:[#allocation14_spill] sm:$0xff]  ;;  %v18381_v42 = vld [vmem:[#allocation29_spill] sm:$0xff] }
 0x1b6   : > { %v3280_v17 = vpop.f32.mrf.mxu1  ;;  %v3065_v57 = vadd.f32 %v3010_v10, %v15953_v5  ;;  %v16112_v5 = vld [vmem:[%s14023_s16 + $0xd9] sm:$0xff] }
 0x1b7   : > { %v16098_v54 = vadd.f32 %v3280_v17, %v3057_v7  ;;  %v12825_v50 = vpop.f32.mrf.mxu0  ;;  %13128 = vmatmul.mubr.msk.f32.gmra.mxu0 %vm381_vm1, %v18378_v19  ;;  %v16115_v17 = vld [vmem:[%s14023_s16 + $0xe1] sm:$0xff] }
 0x1b8   : > { %v12851_v25 = vpop.f32.mrf.mxu1  ;;  %13154 = vmatmul.mubr.msk.f32.gmra.mxu1 %vm381_vm1, %v18379_v1  ;;  %v3068_v43 = vadd.f32 %v12825_v50, %v15960_v41  ;;  %13130 = vmatprep.mubr.msk.f32.mxu0 %vm381_vm1, %v18380_v26  ;;  %v18382_v50 = vld [vmem:[#allocation30_spill] sm:$0xff] }
 0x1b9   : > { %v16105_v27 = vadd.f32 %v12851_v25, %v3060_v29  ;;  %13156 = vmatprep.mubr.msk.f32.mxu1 %vm381_vm1, %v18381_v42  ;;  %v3020_v7 = vpop.f32.mrf.mxu0  ;;  %v18383_v42 = vld [vmem:[#allocation39_spill] sm:$0xff] }
 0x1ba   : > { %v3290_v10 = vpop.f32.mrf.mxu1  ;;  %v3067_v19 = vadd.f32 %v3020_v7, %v15979_v63  ;;  %v5266_v63 = vld [vmem:[%s14023_s16 + $0xe9] sm:$0xf] }
 0x1bb   : > { %v16118_v1 = vadd.f32 %v3290_v10, %v3059_v36  ;;  %v12828_v41 = vpop.f32.mrf.mxu0  ;;  %13131 = vmatmul.mubr.msk.f32.gmra.mxu0 %vm381_vm1, %v16112_v5 }
 0x1bc   : > { %v12854_v29 = vpop.f32.mrf.mxu1  ;;  %13157 = vmatmul.mubr.msk.f32.gmra.mxu1 %vm381_vm1, %v18382_v50  ;;  %v3070_v25 = vadd.f32 %v12828_v41, %v15986_v53  ;;  %13133 = vmatprep.mubr.msk.f32.mxu0 %vm381_vm1, %v16115_v17 }
 0x1bd   : > { %v16125_v26 = vadd.f32 %v12854_v29, %v3062_v39  ;;  %13159 = vmatprep.mubr.msk.f32.mxu1 %vm381_vm1, %v18383_v42  ;;  %v3030_v36 = vpop.f32.mrf.mxu0  ;;  %v5864_v42 = vld [vmem:[%s14023_s16 + $0x3b] sm:$0xff] }
 0x1be   : > { %v3300_v7 = vpop.f32.mrf.mxu1  ;;  %v16133_v10 = vadd.f32 %v3030_v36, %v15998_v49  ;;  %v18384_v49 = vld [vmem:[#allocation24_spill] sm:$0xff] }
 0x1bf   : > { %v16135_v50 = vadd.f32 %v3300_v7, %v3061_v48  ;;  %v12831_v53 = vpop.f32.mrf.mxu0  ;;  %13134 = vmatmul.mubr.msk.f32.gmra.mxu0 %vm381_vm1, %v5266_v63  ;;  %v16150_v48 = vld [vmem:[%s14023_s16 + $0xba] sm:$0xff]  ;;  %v16154_v7 = vld [vmem:[%s14023_s16 + $0xc2] sm:$0xff] }
 0x1c0   : > { %v12857_v39 = vpop.f32.mrf.mxu1  ;;  %13160 = vmatmul.mubr.msk.f32.gmra.mxu1 %vm381_vm1, %v15536_v0  ;;  %v16141_v41 = vadd.f32 %v12831_v53, %v16005_v61  ;;  %13176 = vmatprep.mubr.msk.f32.mxu0 %vm381_vm1, %v18384_v49  ;;  %18385 = vst [vmem:[#allocation11_spill] sm:$0xff] %v16150_v48  ;;  %18386 = vst [vmem:[#allocation13_spill] sm:$0xff] %v16154_v7 }
 0x1c1   : > { %v16143_v29 = vadd.f32 %v12857_v39, %v3064_v3  ;;  %13162 = vmatprep.mubr.msk.f32.mxu1 %vm381_vm1, %v15540_v11  ;;  %v3040_v36 = vpop.f32.mrf.mxu0  ;;  %v16160_v3 = vld [vmem:[%s14023_s16 + $0x43] sm:$0xff]  ;;  %v16165_v11 = vld [vmem:[%s18141_s1 + $0x58] sm:$0x7] }
 0x1c2   : > { %v3310_v63 = vpop.f32.mrf.mxu1  ;;  %v3071_v0 = vadd.f32 %v3040_v36, %v16012_v56  ;;  %18387 = vst [vmem:[#allocation15_spill] sm:$0xff] %v16160_v3 }
 0x1c3   : > { %v16157_v61 = vadd.f32 %v3310_v63, %v3063_v35  ;;  %v12874_v39 = vpop.f32.mrf.mxu0  ;;  %13177 = vmatmul.mubr.msk.f32.vlgmr.msra.gmra.mxu0 %vm381_vm1, %v5864_v42  ;;  %v16178_v35 = vld [vmem:[%s14023_s16 + $0x4b] sm:$0xff]  ;;  %v16183_v42 = vld [vmem:[%s14023_s16 + $0x53] sm:$0xff] }
 0x1c4   : > { %v12860_v53 = vpop.f32.mrf.mxu1  ;;  %13163 = vmatmul.mubr.msk.f32.gmra.mxu1 %vm381_vm1, %v16150_v48  ;;  %v3670_v56 = vadd.f32 %v12874_v39, %v16025_v38  ;;  %13251 = vmatpush3.msk.msra.mxu0 %vm454_vm0, %v15931_v13  ;;  %18388 = vst [vmem:[#allocation10_spill] sm:$0xff] %v16178_v35  ;;  %18389 = vst [vmem:[#allocation19_spill] sm:$0xff] %v16183_v42  ;;  %v18390_v39 = vld [vmem:[#allocation35_spill] sm:$0xff] }
 0x1c5   : > { %v16170_v49 = vadd.f32 %v12860_v53, %v3066_v8  ;;  %13165 = vmatprep.mubr.msk.f32.mxu1 %vm381_vm1, %v16154_v7  ;;  %v3550_v63 = vpop.f32.mrf.mxu0  ;;  %13179 = vmatprep.mubr.msk.f32.mxu0 %vm381_vm1, %v16160_v3  ;;  %v18391_v3 = vld [vmem:[#allocation38_spill] sm:$0xff] }
 0x1c6   : > { %v3320_v36 = vpop.f32.mrf.mxu1  ;;  %13326 = vmatprep.subr.msk.mxu0 %vm454_vm0, %v16165_v11  ;;  %v3669_v38 = vadd.f32 %v3550_v63, %v16034_v2  ;;  %v16205_v2 = vld [vmem:[%s14023_s16 + $0x5b] sm:$0xff] }
 0x1c7   : > { %v16187_v13 = vadd.f32 %v3320_v36, %v3065_v57  ;;  %v12877_v53 = vpop.f32.mrf.mxu0  ;;  %13180 = vmatmul.mubr.msk.f32.gmra.mxu0 %vm381_vm1, %v16178_v35  ;;  %v16202_v57 = vld [vmem:[%s14023_s16 + $0xda] sm:$0xff]  ;;  %18393 = vst [vmem:[#allocation21_spill] sm:$0xff] %v16205_v2 }
 0x1c8   : > { %v12863_v8 = vpop.f32.mrf.mxu1  ;;  %13166 = vmatmul.mubr.msk.f32.gmra.mxu1 %vm381_vm1, %v18390_v39  ;;  %v3672_v48 = vadd.f32 %v12877_v53, %v16043_v52  ;;  %13182 = vmatprep.mubr.msk.f32.mxu0 %vm381_vm1, %v16183_v42  ;;  %18392 = vst [vmem:[#allocation12_spill] sm:$0xff] %v16202_v57  ;;  %v16208_v39 = vld [vmem:[%s14023_s16 + $0xe2] sm:$0xff] }
 0x1c9   : > { %v16194_v7 = vadd.f32 %v12863_v8, %v3068_v43  ;;  %13168 = vmatprep.mubr.msk.f32.mxu1 %vm381_vm1, %v18391_v3  ;;  %v3560_v63 = vpop.f32.mrf.mxu0  ;;  %18394 = vst [vmem:[#allocation16_spill] sm:$0xff] %v16208_v39  ;;  %v16211_v43 = vld [vmem:[%s14023_s16 + $0x63] sm:$0xff] }
 0x1ca   : > { %v3330_v36 = vpop.f32.mrf.mxu1  ;;  %18395 = vst [vmem:[#allocation8_spill] sm:$0xff] %v16211_v43  ;;  %v3671_v52 = vadd.f32 %v3560_v63, %v16050_v46  ;;  %v16229_v46 = vld [vmem:[%s14023_s16 + $0x6b] sm:$0xff] }
 0x1cb   : > { %v16213_v8 = vadd.f32 %v3330_v36, %v3067_v19  ;;  %v12880_v53 = vpop.f32.mrf.mxu0  ;;  %13183 = vmatmul.mubr.msk.f32.gmra.mxu0 %vm381_vm1, %v16205_v2  ;;  %v5576_v19 = vld [vmem:[%s14023_s16 + $0xea] sm:$0xf]  ;;  %18396 = vst [vmem:[#allocation18_spill] sm:$0xff] %v16229_v46 }
 0x1cc   : > { %v12866_v3 = vpop.f32.mrf.mxu1  ;;  %13169 = vmatmul.mubr.msk.f32.gmra.mxu1 %vm381_vm1, %v16202_v57  ;;  %v3674_v35 = vadd.f32 %v12880_v53, %v16057_v9  ;;  %13185 = vmatprep.mubr.msk.f32.mxu0 %vm381_vm1, %v16211_v43 }
 0x1cd   : > { %v16220_v42 = vadd.f32 %v12866_v3, %v3070_v25  ;;  %13171 = vmatprep.mubr.msk.f32.mxu1 %vm381_vm1, %v16208_v39  ;;  %v3570_v63 = vpop.f32.mrf.mxu0  ;;  %v18397_v39 = vld [vmem:[#allocation31_spill] sm:$0xff] }
 0x1ce   : > { %v3340_v36 = vpop.f32.mrf.mxu1  ;;  %v3673_v2 = vadd.f32 %v3570_v63, %v16064_v15 }
 0x1cf   : > { %v16232_v57 = vadd.f32 %v3340_v36, %v16133_v10  ;;  %v12883_v3 = vpop.f32.mrf.mxu0  ;;  %13186 = vmatmul.mubr.msk.f32.gmra.mxu0 %vm381_vm1, %v16229_v46  ;;  %v18398_v46 = vld [vmem:[#allocation32_spill] sm:$0xff] }
 0x1d0   : > { %v12869_v25 = vpop.f32.mrf.mxu1  ;;  %13172 = vmatmul.mubr.msk.f32.gmra.mxu1 %vm381_vm1, %v5576_v19  ;;  %v3676_v53 = vadd.f32 %v12883_v3, %v16071_v59  ;;  %13188 = vmatprep.mubr.msk.f32.mxu0 %vm381_vm1, %v18397_v39  ;;  %v16256_v59 = vld [vmem:[%s18141_s1 + $0x5c] sm:$0x7] }
 0x1d1   : > { %v16239_v9 = vadd.f32 %v12869_v25, %v16141_v41  ;;  %13214 = vmatprep.mubr.msk.f32.mxu1 %vm381_vm1, %v15659_v40  ;;  %v3580_v15 = vpop.f32.mrf.mxu0 }
 0x1d2   : > { %v3350_v10 = vpop.f32.mrf.mxu1  ;;  %v3675_v19 = vadd.f32 %v3580_v15, %v16084_v44  ;;  %v18400_v44 = vld [vmem:[#allocation45_spill] sm:$0xff] }
 0x1d3   : > { %v16246_v36 = vadd.f32 %v3350_v10, %v3071_v0  ;;  %v12886_v63 = vpop.f32.mrf.mxu0  ;;  %13189 = vmatmul.mubr.msk.f32.gmra.mxu0 %vm381_vm1, %v18398_v46  ;;  %v18399_v0 = vld [vmem:[#allocation34_spill] sm:$0xff] }
 0x1d4   : > { %v12912_v43 = vpop.f32.mrf.mxu1  ;;  %13215 = vmatmul.mubr.msk.f32.vlgmr.msra.gmra.mxu1 %vm381_vm1, %v15678_v45  ;;  %v3678_v40 = vadd.f32 %v12886_v63, %v16091_v21  ;;  %13191 = vmatprep.mubr.msk.f32.mxu0 %vm381_vm1, %v18399_v0 }
 0x1d5   : > { %v16259_v41 = vadd.f32 %v12912_v43, %v3670_v56  ;;  %13217 = vmatprep.mubr.msk.f32.mxu1 %vm381_vm1, %v18400_v44  ;;  %v3590_v39 = vpop.f32.mrf.mxu0  ;;  %13289 = vmatpush3.msk.msra.mxu1 %vm454_vm0, %v16022_v22  ;;  %v18401_v43 = vld [vmem:[#allocation37_spill] sm:$0xff]  ;;  %v18402_v22 = vld [vmem:[#allocation40_spill] sm:$0xff] }
 0x1d6   : > { %v3860_v46 = vpop.f32.mrf.mxu1  ;;  %v3677_v45 = vadd.f32 %v3590_v39, %v16098_v54  ;;  %13364 = vmatprep.subr.msk.mxu1 %vm454_vm0, %v16256_v59  ;;  %v18403_v54 = vld [vmem:[#allocation48_spill] sm:$0xff] }
 0x1d7   : > { %v16268_v25 = vadd.f32 %v3860_v46, %v3669_v38  ;;  %v12889_v21 = vpop.f32.mrf.mxu0  ;;  %13192 = vmatmul.mubr.msk.f32.gmra.mxu0 %vm381_vm1, %v18401_v43  ;;  %v18404_v46 = vld [vmem:[#allocation41_spill] sm:$0xff] }
 0x1d8   : > { %v12915_v56 = vpop.f32.mrf.mxu1  ;;  %13218 = vmatmul.mubr.msk.f32.gmra.mxu1 %vm381_vm1, %v15707_v58  ;;  %v3680_v3 = vadd.f32 %v12889_v21, %v16105_v27  ;;  %13194 = vmatprep.mubr.msk.f32.mxu0 %vm381_vm1, %v18402_v22  ;;  %v18406_v21 = vld [vmem:[#allocation49_spill] sm:$0xff] }
 0x1d9   : > { %v16277_v10 = vadd.f32 %v12915_v56, %v3672_v48  ;;  %13220 = vmatprep.mubr.msk.f32.mxu1 %vm381_vm1, %v18403_v54  ;;  %v3600_v38 = vpop.f32.mrf.mxu0  ;;  %v18405_v48 = vld [vmem:[#allocation42_spill] sm:$0xff]  ;;  %v18407_v54 = vld [vmem:[#allocation43_spill] sm:$0xff] }
 0x1da   : > { %v3870_v15 = vpop.f32.mrf.mxu1  ;;  %v3679_v63 = vadd.f32 %v3600_v38, %v16118_v1  ;;  %v18408_v38 = vld [vmem:[#allocation44_spill] sm:$0xff] }
 0x1db   : > { %v16284_v0 = vadd.f32 %v3870_v15, %v3671_v52  ;;  %v12892_v44 = vpop.f32.mrf.mxu0  ;;  %13195 = vmatmul.mubr.msk.f32.gmra.mxu0 %vm381_vm1, %v18404_v46 }
 0x1dc   : > { %v12918_v39 = vpop.f32.mrf.mxu1  ;;  %13221 = vmatmul.mubr.msk.f32.gmra.mxu1 %vm381_vm1, %v15733_v62  ;;  %v3682_v58 = vadd.f32 %v12892_v44, %v16125_v26  ;;  %13197 = vmatprep.mubr.msk.f32.mxu0 %vm381_vm1, %v18405_v48  ;;  %v16315_v44 = vld [vmem:[%s14023_s16 + $0xc3] sm:$0xff] }
 0x1dd   : > { %v16291_v27 = vadd.f32 %v12918_v39, %v3674_v35  ;;  %13223 = vmatprep.mubr.msk.f32.mxu1 %vm381_vm1, %v18406_v21  ;;  %v3610_v1 = vpop.f32.mrf.mxu0 }
 0x1de   : > { %v3880_v52 = vpop.f32.mrf.mxu1  ;;  %v3681_v56 = vadd.f32 %v3610_v1, %v16135_v50  ;;  %v16312_v50 = vld [vmem:[%s14023_s16 + $0xbb] sm:$0xff] }
 0x1df   : > { %v16298_v43 = vadd.f32 %v3880_v52, %v3673_v2  ;;  %v12895_v22 = vpop.f32.mrf.mxu0  ;;  %13198 = vmatmul.mubr.msk.f32.gmra.mxu0 %vm381_vm1, %v18407_v54  ;;  %v18409_v52 = vld [vmem:[#allocation46_spill] sm:$0xff] }
 0x1e0   : > { %v12921_v62 = vpop.f32.mrf.mxu1  ;;  %13224 = vmatmul.mubr.msk.f32.gmra.mxu1 %vm381_vm1, %v15754_v20  ;;  %v3684_v26 = vadd.f32 %v12895_v22, %v16143_v29  ;;  %13200 = vmatprep.mubr.msk.f32.mxu0 %vm381_vm1, %v18408_v38  ;;  %v18411_v38 = vld [vmem:[#allocation50_spill] sm:$0xff] }
 0x1e1   : > { %v16305_v35 = vadd.f32 %v12921_v62, %v3676_v53  ;;  %13226 = vmatprep.mubr.msk.f32.mxu1 %vm381_vm1, %v15757_v47  ;;  %v3620_v2 = vpop.f32.mrf.mxu0  ;;  %v16349_v62 = vld [vmem:[%s14023_s16 + $0xe3] sm:$0xff] }
 0x1e2   : > { %v3890_v15 = vpop.f32.mrf.mxu1  ;;  %v3683_v39 = vadd.f32 %v3620_v2, %v16157_v61 }
 0x1e3   : > { %v16318_v46 = vadd.f32 %v3890_v15, %v3675_v19  ;;  %v12898_v20 = vpop.f32.mrf.mxu0  ;;  %13201 = vmatmul.mubr.msk.f32.gmra.mxu0 %vm381_vm1, %v16312_v50 }
 0x1e4   : > { %v12924_v29 = vpop.f32.mrf.mxu1  ;;  %13227 = vmatmul.mubr.msk.f32.gmra.mxu1 %vm381_vm1, %v15780_v31  ;;  %v3686_v47 = vadd.f32 %v12898_v20, %v16170_v49  ;;  %13203 = vmatprep.mubr.msk.f32.mxu0 %vm381_vm1, %v16315_v44  ;;  %v6483_v20 = vld [vmem:[%s14023_s16 + $0x40] sm:$0xff] }
 0x1e5   : > { %v16325_v53 = vadd.f32 %v12924_v29, %v3678_v40  ;;  %13229 = vmatprep.mubr.msk.f32.mxu1 %vm381_vm1, %v15783_v34  ;;  %v3630_v61 = vpop.f32.mrf.mxu0  ;;  %v18410_v34 = vld [vmem:[#allocation47_spill] sm:$0xff] }
 0x1e6   : > { %v3900_v19 = vpop.f32.mrf.mxu1  ;;  %v3685_v48 = vadd.f32 %v3630_v61, %v16187_v13  ;;  %v16346_v13 = vld [vmem:[%s14023_s16 + $0xdb] sm:$0xff] }
 0x1e7   : > { %v16332_v21 = vadd.f32 %v3900_v19, %v3677_v45  ;;  %v12901_v1 = vpop.f32.mrf.mxu0  ;;  %13204 = vmatmul.mubr.msk.f32.gmra.mxu0 %vm381_vm1, %v18409_v52  ;;  %v16392_v52 = vld [vmem:[%s14023_s16 + $0xc4] sm:$0xff] }
 0x1e8   : > { %v12927_v31 = vpop.f32.mrf.mxu1  ;;  %13230 = vmatmul.mubr.msk.f32.gmra.mxu1 %vm381_vm1, %v15804_v16  ;;  %v3688_v49 = vadd.f32 %v12901_v1, %v16194_v7  ;;  %13206 = vmatprep.mubr.msk.f32.mxu0 %vm381_vm1, %v18410_v34 }
 0x1e9   : > { %v16339_v40 = vadd.f32 %v12927_v31, %v3680_v3  ;;  %13232 = vmatprep.mubr.msk.f32.mxu1 %vm381_vm1, %v15807_v12  ;;  %v3640_v45 = vpop.f32.mrf.mxu0 }
 0x1ea   : > { %v3910_v22 = vpop.f32.mrf.mxu1  ;;  %v16352_v16 = vadd.f32 %v3640_v45, %v16213_v8  ;;  %v5886_v8 = vld [vmem:[%s14023_s16 + $0xeb] sm:$0xf] }
 0x1eb   : > { %v16354_v7 = vadd.f32 %v3910_v22, %v3679_v63  ;;  %v12904_v3 = vpop.f32.mrf.mxu0  ;;  %13207 = vmatmul.mubr.msk.f32.gmra.mxu0 %vm381_vm1, %v16346_v13 }
 0x1ec   : > { %v12930_v54 = vpop.f32.mrf.mxu1  ;;  %13233 = vmatmul.mubr.msk.f32.gmra.mxu1 %vm381_vm1, %v18411_v38  ;;  %v16361_v12 = vadd.f32 %v12904_v3, %v16220_v42  ;;  %13209 = vmatprep.mubr.msk.f32.mxu0 %vm381_vm1, %v16349_v62  ;;  %v6487_v38 = vld [vmem:[%s14023_s16 + $0x60] sm:$0xff] }
 0x1ed   : > { %v16363_v2 = vadd.f32 %v12930_v54, %v3682_v58  ;;  %13235 = vmatprep.mubr.msk.f32.mxu1 %vm381_vm1, %v15827_v23  ;;  %v3650_v63 = vpop.f32.mrf.mxu0 }
 0x1ee   : > { %v3920_v15 = vpop.f32.mrf.mxu1  ;;  %v16372_v29 = vadd.f32 %v3650_v63, %v16232_v57  ;;  %v16388_v57 = vld [vmem:[%s14023_s16 + $0xbc] sm:$0xff] }
 0x1ef   : > { %v16374_v42 = vadd.f32 %v3920_v15, %v3681_v56  ;;  %v12907_v58 = vpop.f32.mrf.mxu0  ;;  %13210 = vmatmul.mubr.msk.f32.gmra.mxu0 %vm381_vm1, %v5886_v8  ;;  %v6484_v56 = vld [vmem:[%s14023_s16 + $0x48] sm:$0xff] }
 0x1f0   : > { %v12933_v61 = vpop.f32.mrf.mxu1  ;;  %13236 = vmatmul.mubr.msk.f32.gmra.mxu1 %vm381_vm1, %v15844_v51  ;;  %v16380_v23 = vadd.f32 %v12907_v58, %v16239_v9  ;;  %13252 = vmatprep.mubr.msk.f32.mxu0 %vm381_vm1, %v6483_v20 }
 0x1f1   : > { %v16382_v19 = vadd.f32 %v12933_v61, %v3684_v26  ;;  %13238 = vmatprep.mubr.msk.f32.mxu1 %vm381_vm1, %v15847_v4  ;;  %v3660_v1 = vpop.f32.mrf.mxu0  ;;  %v6485_v26 = vld [vmem:[%s14023_s16 + $0x50] sm:$0xff]  ;;  %v16403_v4 = vld [vmem:[%s18141_s1 + $0x60] sm:$0x7]  ;;  %v16437_v61 = vld [vmem:[%s14023_s16 + $0xe4] sm:$0xff] }
 0x1f2   : > { %v3930_v31 = vpop.f32.mrf.mxu1  ;;  %v16395_v51 = vadd.f32 %v3660_v1, %v16246_v36 }
 0x1f3   : > { %v16397_v9 = vadd.f32 %v3930_v31, %v3683_v39  ;;  %v12950_v45 = vpop.f32.mrf.mxu0  ;;  %13253 = vmatmul.mubr.msk.f32.vlgmr.msra.gmra.mxu0 %vm381_vm1, %v6484_v56  ;;  %v6486_v39 = vld [vmem:[%s14023_s16 + $0x58] sm:$0xff] }
 0x1f4   : > { %v12936_v34 = vpop.f32.mrf.mxu1  ;;  %13239 = vmatmul.mubr.msk.f32.gmra.mxu1 %vm381_vm1, %v16388_v57  ;;  %v4290_v36 = vadd.f32 %v12950_v45, %v16259_v41  ;;  %13327 = vmatpush3.msk.msra.mxu0 %vm454_vm0, %v16165_v11  ;;  %v6491_v45 = vld [vmem:[%s14023_s16 + $0x80] sm:$0xff] }
 0x1f5   : > { %v16408_v22 = vadd.f32 %v12936_v34, %v3686_v47  ;;  %13241 = vmatprep.mubr.msk.f32.mxu1 %vm381_vm1, %v16392_v52  ;;  %v4170_v54 = vpop.f32.mrf.mxu0  ;;  %13255 = vmatprep.mubr.msk.f32.mxu0 %vm381_vm1, %v6485_v26 }
 0x1f6   : > { %v3940_v3 = vpop.f32.mrf.mxu1  ;;  %13402 = vmatprep.subr.msk.mxu0 %vm454_vm0, %v16403_v4  ;;  %v4289_v11 = vadd.f32 %v4170_v54, %v16268_v25  ;;  %v6488_v25 = vld [vmem:[%s14023_s16 + $0x68] sm:$0xff] }
 0x1f7   : > { %v16420_v41 = vadd.f32 %v3940_v3, %v3685_v48  ;;  %v12953_v8 = vpop.f32.mrf.mxu0  ;;  %13256 = vmatmul.mubr.msk.f32.gmra.mxu0 %vm381_vm1, %v6486_v39  ;;  %v16433_v48 = vld [vmem:[%s14023_s16 + $0xdc] sm:$0xff] }
 0x1f8   : > { %v12939_v47 = vpop.f32.mrf.mxu1  ;;  %13242 = vmatmul.mubr.msk.f32.gmra.mxu1 %vm381_vm1, %v15878_v28  ;;  %v4292_v15 = vadd.f32 %v12953_v8, %v16277_v10  ;;  %13258 = vmatprep.mubr.msk.f32.mxu0 %vm381_vm1, %v6487_v38  ;;  %v6489_v28 = vld [vmem:[%s14023_s16 + $0x70] sm:$0xff] }
 0x1f9   : > { %v16426_v63 = vadd.f32 %v12939_v47, %v3688_v49  ;;  %13244 = vmatprep.mubr.msk.f32.mxu1 %vm381_vm1, %v15881_v60  ;;  %v4180_v58 = vpop.f32.mrf.mxu0  ;;  %v6493_v8 = vld [vmem:[%s14023_s16 + $0x90] sm:$0xff] }
 0x1fa   : > { %v3950_v20 = vpop.f32.mrf.mxu1  ;;  %v4291_v10 = vadd.f32 %v4180_v58, %v16284_v0  ;;  %v6490_v0 = vld [vmem:[%s14023_s16 + $0x78] sm:$0xff] }
 0x1fb   : > { %v16441_v49 = vadd.f32 %v3950_v20, %v16352_v16  ;;  %v12956_v60 = vpop.f32.mrf.mxu0  ;;  %13259 = vmatmul.mubr.msk.f32.gmra.mxu0 %vm381_vm1, %v6488_v25  ;;  %v6196_v16 = vld [vmem:[%s14023_s16 + $0xec] sm:$0xf] }
 0x1fc   : > { %v12942_v56 = vpop.f32.mrf.mxu1  ;;  %13245 = vmatmul.mubr.msk.f32.gmra.mxu1 %vm381_vm1, %v16433_v48  ;;  %v4294_v31 = vadd.f32 %v12956_v60, %v16291_v27  ;;  %13261 = vmatprep.mubr.msk.f32.mxu0 %vm381_vm1, %v6489_v28 }
 0x1fd   : > { %v16448_v1 = vadd.f32 %v12942_v56, %v16361_v12  ;;  %13247 = vmatprep.mubr.msk.f32.mxu1 %vm381_vm1, %v16437_v61  ;;  %v4190_v34 = vpop.f32.mrf.mxu0  ;;  %v6495_v56 = vld [vmem:[%s14023_s16 + $0xa0] sm:$0xff] }
 0x1fe   : > { %v3960_v26 = vpop.f32.mrf.mxu1  ;;  %v4293_v12 = vadd.f32 %v4190_v34, %v16298_v43 }
 0x1ff   : > { %v16458_v39 = vadd.f32 %v3960_v26, %v16372_v29  ;;  %v12959_v54 = vpop.f32.mrf.mxu0  ;;  %13262 = vmatmul.mubr.msk.f32.gmra.mxu0 %vm381_vm1, %v6490_v0  ;;  %v6492_v29 = vld [vmem:[%s14023_s16 + $0x88] sm:$0xff]  ;;  %v6497_v0 = vld [vmem:[%s14023_s16 + $0xb0] sm:$0xff] }
 0x200   : > { %v12945_v3 = vpop.f32.mrf.mxu1  ;;  %13248 = vmatmul.mubr.msk.f32.gmra.mxu1 %vm381_vm1, %v6196_v16  ;;  %v4296_v38 = vadd.f32 %v12959_v54, %v16305_v35  ;;  %13264 = vmatprep.mubr.msk.f32.mxu0 %vm381_vm1, %v6491_v45  ;;  %v6799_v26 = vld [vmem:[%s14023_s16 + $0x71] sm:$0xff]  ;;  %v6801_v54 = vld [vmem:[%s14023_s16 + $0x81] sm:$0xff] }
 0x201   : > { %v16464_v27 = vadd.f32 %v12945_v3, %v16380_v23  ;;  %13290 = vmatprep.mubr.msk.f32.mxu1 %vm381_vm1, %v15926_v32  ;;  %v4200_v43 = vpop.f32.mrf.mxu0 }
 0x202   : > { %v3970_v47 = vpop.f32.mrf.mxu1  ;;  %v4295_v20 = vadd.f32 %v4200_v43, %v16318_v46 }
 0x203   : > { %v16473_v25 = vadd.f32 %v3970_v47, %v16395_v51  ;;  %v12962_v23 = vpop.f32.mrf.mxu0  ;;  %13265 = vmatmul.mubr.msk.f32.gmra.mxu0 %vm381_vm1, %v6492_v29  ;;  %v6494_v51 = vld [vmem:[%s14023_s16 + $0x98] sm:$0xff] }
 0x204   : > { %v12988_v58 = vpop.f32.mrf.mxu1  ;;  %13291 = vmatmul.mubr.msk.f32.vlgmr.msra.gmra.mxu1 %vm381_vm1, %v15944_v33  ;;  %v4298_v35 = vadd.f32 %v12962_v23, %v16325_v53  ;;  %13267 = vmatprep.mubr.msk.f32.mxu0 %vm381_vm1, %v6493_v8  ;;  %v18412_v8 = vld [vmem:[#allocation51_spill] sm:$0xff]  ;;  %v6500_v23 = vld [vmem:[%s14023_s16 + $0xc8] sm:$0xff] }
 0x205   : > { %v16480_v32 = vadd.f32 %v12988_v58, %v4290_v36  ;;  %13293 = vmatprep.mubr.msk.f32.mxu1 %vm381_vm1, %v15949_v37  ;;  %v4210_v28 = vpop.f32.mrf.mxu0  ;;  %13365 = vmatpush3.msk.msra.mxu1 %vm454_vm0, %v16256_v59  ;;  %v6496_v59 = vld [vmem:[%s14023_s16 + $0xa8] sm:$0xff] }
 0x206   : > { %v4480_v46 = vpop.f32.mrf.mxu1  ;;  %v4297_v33 = vadd.f32 %v4210_v28, %v16332_v21  ;;  %v6803_v28 = vld [vmem:[%s14023_s16 + $0x91] sm:$0xff] }
 0x207   : > { %v16490_v53 = vadd.f32 %v4480_v46, %v4289_v11  ;;  %v12965_v36 = vpop.f32.mrf.mxu0  ;;  %13268 = vmatmul.mubr.msk.f32.gmra.mxu0 %vm381_vm1, %v6494_v51  ;;  %v6501_v51 = vld [vmem:[%s14023_s16 + $0xd0] sm:$0xff] }
 0x208   : > { %v12991_v60 = vpop.f32.mrf.mxu1  ;;  %13294 = vmatmul.mubr.msk.f32.gmra.mxu1 %vm381_vm1, %v15971_v30  ;;  %v4300_v37 = vadd.f32 %v12965_v36, %v16339_v40  ;;  %13270 = vmatprep.mubr.msk.f32.mxu0 %vm381_vm1, %v6495_v56 }
 0x209   : > { %v16496_v16 = vadd.f32 %v12991_v60, %v4292_v15  ;;  %13296 = vmatprep.mubr.msk.f32.mxu1 %vm381_vm1, %v15977_v18  ;;  %v4220_v21 = vpop.f32.mrf.mxu0  ;;  %v6804_v60 = vld [vmem:[%s14023_s16 + $0x99] sm:$0xff] }
 0x20a   : > { %v4490_v11 = vpop.f32.mrf.mxu1  ;;  %v4299_v34 = vadd.f32 %v4220_v21, %v16354_v7  ;;  %v6800_v7 = vld [vmem:[%s14023_s16 + $0x79] sm:$0xff] }
 0x20b   : > { %v16505_v45 = vadd.f32 %v4490_v11, %v4291_v10  ;;  %v12968_v30 = vpop.f32.mrf.mxu0  ;;  %13271 = vmatmul.mubr.msk.f32.gmra.mxu0 %vm381_vm1, %v6496_v59  ;;  %v6805_v59 = vld [vmem:[%s14023_s16 + $0xa1] sm:$0xff] }
 0x20c   : > { %v12994_v40 = vpop.f32.mrf.mxu1  ;;  %13297 = vmatmul.mubr.msk.f32.gmra.mxu1 %vm381_vm1, %v15995_v55  ;;  %v4302_v18 = vadd.f32 %v12968_v30, %v16363_v2  ;;  %13273 = vmatprep.mubr.msk.f32.mxu0 %vm381_vm1, %v6497_v0 }
 0x20d   : > { %v16511_v15 = vadd.f32 %v12994_v40, %v4294_v31  ;;  %13299 = vmatprep.mubr.msk.f32.mxu1 %vm381_vm1, %v6799_v26  ;;  %v4230_v10 = vpop.f32.mrf.mxu0  ;;  %v18414_v40 = vld [vmem:[#allocation7_spill] sm:$0xff] }
 0x20e   : > { %v4500_v3 = vpop.f32.mrf.mxu1  ;;  %v4301_v29 = vadd.f32 %v4230_v10, %v16374_v42  ;;  %v6802_v42 = vld [vmem:[%s14023_s16 + $0x89] sm:$0xff] }
 0x20f   : > { %v16518_v47 = vadd.f32 %v4500_v3, %v4293_v12  ;;  %v12971_v55 = vpop.f32.mrf.mxu0  ;;  %13274 = vmatmul.mubr.msk.f32.gmra.mxu0 %vm381_vm1, %v15916_v24  ;;  %v6505_v3 = vld [vmem:[%s14023_s16 + $0xf0] sm:$0xff] }
 0x210   : > { %v12997_v2 = vpop.f32.mrf.mxu1  ;;  %13300 = vmatmul.mubr.msk.f32.gmra.mxu1 %vm381_vm1, %v6800_v7  ;;  %v4304_v31 = vadd.f32 %v12971_v55, %v16382_v19  ;;  %13276 = vmatprep.mubr.msk.f32.mxu0 %vm381_vm1, %v18412_v8  ;;  %v6504_v7 = vld [vmem:[%s14023_s16 + $0xe8] sm:$0xff] }
 0x211   : > { %v16524_v43 = vadd.f32 %v12997_v2, %v4296_v38  ;;  %13302 = vmatprep.mubr.msk.f32.mxu1 %vm381_vm1, %v6801_v54  ;;  %v4240_v12 = vpop.f32.mrf.mxu0  ;;  %v6807_v54 = vld [vmem:[%s14023_s16 + $0xb1] sm:$0xff] }
 0x212   : > { %v4510_v58 = vpop.f32.mrf.mxu1  ;;  %v4303_v24 = vadd.f32 %v4240_v12, %v16397_v9  ;;  %v7103_v12 = vld [vmem:[%s14023_s16 + $0x42] sm:$0xff] }
 0x213   : > { %v16534_v46 = vadd.f32 %v4510_v58, %v4295_v20  ;;  %v12974_v19 = vpop.f32.mrf.mxu0  ;;  %13277 = vmatmul.mubr.msk.f32.gmra.mxu0 %vm381_vm1, %v6500_v23 }
 0x214   : > { %v13000_v38 = vpop.f32.mrf.mxu1  ;;  %13303 = vmatmul.mubr.msk.f32.gmra.mxu1 %vm381_vm1, %v6802_v42  ;;  %v4306_v56 = vadd.f32 %v12974_v19, %v16408_v22  ;;  %13279 = vmatprep.mubr.msk.f32.mxu0 %vm381_vm1, %v6501_v51  ;;  %v6506_v42 = vld [vmem:[%s14023_s16 + $0xf8] sm:$0xf] }
 0x215   : > { %v16539_v36 = vadd.f32 %v13000_v38, %v4298_v35  ;;  %13305 = vmatprep.mubr.msk.f32.mxu1 %vm381_vm1, %v6803_v28  ;;  %v4250_v9 = vpop.f32.mrf.mxu0  ;;  %v18413_v35 = vld [vmem:[#allocation17_spill] sm:$0xff] }
 0x216   : > { %v4520_v20 = vpop.f32.mrf.mxu1  ;;  %v4305_v21 = vadd.f32 %v4250_v9, %v16420_v41  ;;  %v6806_v41 = vld [vmem:[%s14023_s16 + $0xa9] sm:$0xff]  ;;  %v6811_v9 = vld [vmem:[%s14023_s16 + $0xd1] sm:$0xff] }
 0x217   : > { %v16546_v11 = vadd.f32 %v4520_v20, %v4297_v33  ;;  %v12977_v0 = vpop.f32.mrf.mxu0  ;;  %13280 = vmatmul.mubr.msk.f32.gmra.mxu0 %vm381_vm1, %v18413_v35  ;;  %v7107_v35 = vld [vmem:[%s14023_s16 + $0x62] sm:$0xff] }
 0x218   : > { %v13003_v22 = vpop.f32.mrf.mxu1  ;;  %13306 = vmatmul.mubr.msk.f32.gmra.mxu1 %vm381_vm1, %v6804_v60  ;;  %v4308_v26 = vadd.f32 %v12977_v0, %v16426_v63  ;;  %13282 = vmatprep.mubr.msk.f32.mxu0 %vm381_vm1, %v18414_v40 }
 0x219   : > { %v16552_v30 = vadd.f32 %v13003_v22, %v4300_v37  ;;  %13308 = vmatprep.mubr.msk.f32.mxu1 %vm381_vm1, %v6805_v59  ;;  %v4260_v33 = vpop.f32.mrf.mxu0 }
 0x21a   : > { %v4530_v10 = vpop.f32.mrf.mxu1  ;;  %v4307_v55 = vadd.f32 %v4260_v33, %v16441_v49  ;;  %v7108_v33 = vld [vmem:[%s14023_s16 + $0x6a] sm:$0xff] }
 0x21b   : > { %v16562_v2 = vadd.f32 %v4530_v10, %v4299_v34  ;;  %v12980_v63 = vpop.f32.mrf.mxu0  ;;  %13283 = vmatmul.mubr.msk.f32.gmra.mxu0 %vm381_vm1, %v6504_v7 }
 0x21c   : > { %v13006_v37 = vpop.f32.mrf.mxu1  ;;  %13309 = vmatmul.mubr.msk.f32.gmra.mxu1 %vm381_vm1, %v6806_v41  ;;  %v4310_v8 = vadd.f32 %v12980_v63, %v16448_v1  ;;  %13285 = vmatprep.mubr.msk.f32.mxu0 %vm381_vm1, %v6505_v3  ;;  %v6815_v3 = vld [vmem:[%s14023_s16 + $0xf1] sm:$0xff] }
 0x21d   : > { %v16567_v23 = vadd.f32 %v13006_v37, %v4302_v18  ;;  %13311 = vmatprep.mubr.msk.f32.mxu1 %vm381_vm1, %v6807_v54  ;;  %v4270_v49 = vpop.f32.mrf.mxu0 }
 0x21e   : > { %v4540_v34 = vpop.f32.mrf.mxu1  ;;  %v4309_v58 = vadd.f32 %v4270_v49, %v16458_v39  ;;  %v6810_v39 = vld [vmem:[%s14023_s16 + $0xc9] sm:$0xff] }
 0x21f   : > { %v16574_v51 = vadd.f32 %v4540_v34, %v4301_v29  ;;  %v12983_v28 = vpop.f32.mrf.mxu0  ;;  %13286 = vmatmul.mubr.msk.f32.gmra.mxu0 %vm381_vm1, %v6506_v42  ;;  %v7104_v29 = vld [vmem:[%s14023_s16 + $0x4a] sm:$0xff]  ;;  %v6816_v42 = vld [vmem:[%s14023_s16 + $0xf9] sm:$0xf]  ;;  %v7111_v34 = vld [vmem:[%s14023_s16 + $0x82] sm:$0xff] }
 0x220   : > { %v13009_v1 = vpop.f32.mrf.mxu1  ;;  %13312 = vmatmul.mubr.msk.f32.gmra.mxu1 %vm381_vm1, %v16078_v6  ;;  %v4312_v18 = vadd.f32 %v12983_v28, %v16464_v27  ;;  %13328 = vmatprep.mubr.msk.f32.mxu0 %vm381_vm1, %v7103_v12  ;;  %v7105_v6 = vld [vmem:[%s14023_s16 + $0x52] sm:$0xff] }
 0x221   : > { %v16580_v19 = vadd.f32 %v13009_v1, %v4304_v31  ;;  %13314 = vmatprep.mubr.msk.f32.mxu1 %vm381_vm1, %v16081_v14  ;;  %v4280_v38 = vpop.f32.mrf.mxu0 }
 0x222   : > { %v4550_v60 = vpop.f32.mrf.mxu1  ;;  %v4311_v20 = vadd.f32 %v4280_v38, %v16473_v25  ;;  %v7106_v25 = vld [vmem:[%s14023_s16 + $0x5a] sm:$0xff] }
 0x223   : > { %v16589_v59 = vadd.f32 %v4550_v60, %v4303_v24  ;;  %v13026_v31 = vpop.f32.mrf.mxu0  ;;  %13329 = vmatmul.mubr.msk.f32.vlgmr.msra.gmra.mxu0 %vm381_vm1, %v7104_v29  ;;  %v18415_v29 = vld [vmem:[#allocation15_spill] sm:$0xff]  ;;  %v7113_v60 = vld [vmem:[%s14023_s16 + $0x92] sm:$0xff] }
 0x224   : > { %v13012_v27 = vpop.f32.mrf.mxu1  ;;  %13315 = vmatmul.mubr.msk.f32.gmra.mxu1 %vm381_vm1, %v6810_v39  ;;  %v4910_v0 = vadd.f32 %v13026_v31, %v16480_v32  ;;  %13403 = vmatpush3.msk.msra.mxu0 %vm454_vm0, %v16403_v4 }
 0x225   : > { %v16594_v14 = vadd.f32 %v13012_v27, %v4306_v56  ;;  %13317 = vmatprep.mubr.msk.f32.mxu1 %vm381_vm1, %v6811_v9  ;;  %v4790_v22 = vpop.f32.mrf.mxu0  ;;  %13331 = vmatprep.mubr.msk.f32.mxu0 %vm381_vm1, %v7105_v6 }
 0x226   : > { %v4560_v24 = vpop.f32.mrf.mxu1  ;;  %v4909_v56 = vadd.f32 %v4790_v22, %v16490_v53 }
 0x227   : > { %v16603_v40 = vadd.f32 %v4560_v24, %v4305_v21  ;;  %v13029_v7 = vpop.f32.mrf.mxu0  ;;  %13332 = vmatmul.mubr.msk.f32.gmra.mxu0 %vm381_vm1, %v7106_v25  ;;  %v6814_v21 = vld [vmem:[%s14023_s16 + $0xe9] sm:$0xff]  ;;  %v18417_v24 = vld [vmem:[#allocation19_spill] sm:$0xff] }
 0x228   : > { %v13015_v32 = vpop.f32.mrf.mxu1  ;;  %13318 = vmatmul.mubr.msk.f32.gmra.mxu1 %vm381_vm1, %v16112_v5  ;;  %v4912_v41 = vadd.f32 %v13029_v7, %v16496_v16  ;;  %13334 = vmatprep.mubr.msk.f32.mxu0 %vm381_vm1, %v7107_v35  ;;  %v7109_v5 = vld [vmem:[%s14023_s16 + $0x72] sm:$0xff]  ;;  %v7115_v35 = vld [vmem:[%s14023_s16 + $0xa2] sm:$0xff] }
 0x229   : > { %v16609_v4 = vadd.f32 %v13015_v32, %v4308_v26  ;;  %13320 = vmatprep.mubr.msk.f32.mxu1 %vm381_vm1, %v16115_v17  ;;  %v4800_v10 = vpop.f32.mrf.mxu0 }
 0x22a   : > { %v4570_v53 = vpop.f32.mrf.mxu1  ;;  %v4911_v26 = vadd.f32 %v4800_v10, %v16505_v45  ;;  %v18419_v10 = vld [vmem:[#allocation8_spill] sm:$0xff] }
 0x22b   : > { %v16619_v54 = vadd.f32 %v4570_v53, %v4307_v55  ;;  %v13032_v16 = vpop.f32.mrf.mxu0  ;;  %13335 = vmatmul.mubr.msk.f32.gmra.mxu0 %vm381_vm1, %v7108_v33  ;;  %v7110_v55 = vld [vmem:[%s14023_s16 + $0x7a] sm:$0xff] }
 0x22c   : > { %v13018_v63 = vpop.f32.mrf.mxu1  ;;  %13321 = vmatmul.mubr.msk.f32.gmra.mxu1 %vm381_vm1, %v6814_v21  ;;  %v4914_v37 = vadd.f32 %v13032_v16, %v16511_v15  ;;  %13337 = vmatprep.mubr.msk.f32.mxu0 %vm381_vm1, %v7109_v5  ;;  %v18418_v21 = vld [vmem:[#allocation21_spill] sm:$0xff]  ;;  %v7117_v5 = vld [vmem:[%s14023_s16 + $0xb2] sm:$0xff] }
 0x22d   : > { %v16624_v17 = vadd.f32 %v13018_v63, %v4310_v8  ;;  %13323 = vmatprep.mubr.msk.f32.mxu1 %vm381_vm1, %v6815_v3  ;;  %v4810_v45 = vpop.f32.mrf.mxu0  ;;  %v7419_v63 = vld [vmem:[%s14023_s16 + $0x73] sm:$0xff] }
 0x22e   : > { %v4580_v49 = vpop.f32.mrf.mxu1  ;;  %v4913_v28 = vadd.f32 %v4810_v45, %v16518_v47 }
 0x22f   : > { %v16632_v12 = vadd.f32 %v4580_v49, %v4309_v58  ;;  %v13035_v8 = vpop.f32.mrf.mxu0  ;;  %13338 = vmatmul.mubr.msk.f32.gmra.mxu0 %vm381_vm1, %v7110_v55  ;;  %v7112_v58 = vld [vmem:[%s14023_s16 + $0x8a] sm:$0xff]  ;;  %v18420_v55 = vld [vmem:[#allocation18_spill] sm:$0xff] }
 0x230   : > { %v13021_v1 = vpop.f32.mrf.mxu1  ;;  %13324 = vmatmul.mubr.msk.f32.gmra.mxu1 %vm381_vm1, %v6816_v42  ;;  %v4916_v39 = vadd.f32 %v13035_v8, %v16524_v43  ;;  %13340 = vmatprep.mubr.msk.f32.mxu0 %vm381_vm1, %v7111_v34  ;;  %v18416_v43 = vld [vmem:[#allocation10_spill] sm:$0xff] }
 0x231   : > { %v16637_v15 = vadd.f32 %v13021_v1, %v4312_v18  ;;  %13366 = vmatprep.mubr.msk.f32.mxu1 %vm381_vm1, %v18415_v29  ;;  %v4820_v47 = vpop.f32.mrf.mxu0  ;;  %v7421_v1 = vld [vmem:[%s14023_s16 + $0x83] sm:$0xff] }
 0x232   : > { %v4590_v38 = vpop.f32.mrf.mxu1  ;;  %v4915_v6 = vadd.f32 %v4820_v47, %v16534_v46 }
 0x233   : > { %v16645_v9 = vadd.f32 %v4590_v38, %v4311_v20  ;;  %v13038_v27 = vpop.f32.mrf.mxu0  ;;  %13341 = vmatmul.mubr.msk.f32.gmra.mxu0 %vm381_vm1, %v7112_v58  ;;  %v7114_v20 = vld [vmem:[%s14023_s16 + $0x9a] sm:$0xff] }
 0x234   : > { %v13064_v18 = vpop.f32.mrf.mxu1  ;;  %13367 = vmatmul.mubr.msk.f32.vlgmr.msra.gmra.mxu1 %vm381_vm1, %v18416_v43  ;;  %v4918_v31 = vadd.f32 %v13038_v27, %v16539_v36  ;;  %13343 = vmatprep.mubr.msk.f32.mxu0 %vm381_vm1, %v7113_v60  ;;  %v18421_v58 = vld [vmem:[#allocation11_spill] sm:$0xff]  ;;  %v18422_v60 = vld [vmem:[#allocation13_spill] sm:$0xff]  ;;  %v7121_v43 = vld [vmem:[%s14023_s16 + $0xd2] sm:$0xff] }
 0x235   : > { %v16652_v25 = vadd.f32 %v13064_v18, %v4910_v0  ;;  %13369 = vmatprep.mubr.msk.f32.mxu1 %vm381_vm1, %v18417_v24  ;;  %v4830_v22 = vpop.f32.mrf.mxu0  ;;  %v7423_v24 = vld [vmem:[%s14023_s16 + $0x93] sm:$0xff] }
 0x236   : > { %v5100_v46 = vpop.f32.mrf.mxu1  ;;  %v16660_v32 = vadd.f32 %v4830_v22, %v16546_v11  ;;  %v7116_v11 = vld [vmem:[%s14023_s16 + $0xaa] sm:$0xff] }
 0x237   : > { %v16662_v7 = vadd.f32 %v5100_v46, %v4909_v56  ;;  %v13041_v36 = vpop.f32.mrf.mxu0  ;;  %13344 = vmatmul.mubr.msk.f32.gmra.mxu0 %vm381_vm1, %v7114_v20 }
 0x238   : > { %v13067_v0 = vpop.f32.mrf.mxu1  ;;  %13370 = vmatmul.mubr.msk.f32.gmra.mxu1 %vm381_vm1, %v18418_v21  ;;  %v4920_v33 = vadd.f32 %v13041_v36, %v16552_v30  ;;  %13346 = vmatprep.mubr.msk.f32.mxu0 %vm381_vm1, %v7115_v35 }
 0x239   : > { %v16668_v53 = vadd.f32 %v13067_v0, %v4912_v41  ;;  %13372 = vmatprep.mubr.msk.f32.mxu1 %vm381_vm1, %v18419_v10  ;;  %v4840_v56 = vpop.f32.mrf.mxu0  ;;  %v7425_v0 = vld [vmem:[%s14023_s16 + $0xa3] sm:$0xff] }
 0x23a   : > { %v5110_v3 = vpop.f32.mrf.mxu1  ;;  %v16677_v16 = vadd.f32 %v4840_v56, %v16562_v2  ;;  %v7420_v2 = vld [vmem:[%s14023_s16 + $0x7b] sm:$0xff] }
 0x23b   : > { %v16679_v42 = vadd.f32 %v5110_v3, %v4911_v26  ;;  %v13044_v30 = vpop.f32.mrf.mxu0  ;;  %13347 = vmatmul.mubr.msk.f32.gmra.mxu0 %vm381_vm1, %v7116_v11  ;;  %v18424_v3 = vld [vmem:[#allocation16_spill] sm:$0xff] }
 0x23c   : > { %v13070_v41 = vpop.f32.mrf.mxu1  ;;  %13373 = vmatmul.mubr.msk.f32.gmra.mxu1 %vm381_vm1, %v18420_v55  ;;  %v4922_v49 = vadd.f32 %v13044_v30, %v16567_v23  ;;  %13349 = vmatprep.mubr.msk.f32.mxu0 %vm381_vm1, %v7117_v5  ;;  %v7124_v5 = vld [vmem:[%s14023_s16 + $0xea] sm:$0xff]  ;;  %v7427_v55 = vld [vmem:[%s14023_s16 + $0xb3] sm:$0xff] }
 0x23d   : > { %v16685_v45 = vadd.f32 %v13070_v41, %v4914_v37  ;;  %13375 = vmatprep.mubr.msk.f32.mxu1 %vm381_vm1, %v7419_v63  ;;  %v4850_v26 = vpop.f32.mrf.mxu0  ;;  %v7125_v41 = vld [vmem:[%s14023_s16 + $0xf2] sm:$0xff] }
 0x23e   : > { %v5120_v34 = vpop.f32.mrf.mxu1  ;;  %v16692_v8 = vadd.f32 %v4850_v26, %v16574_v51  ;;  %v7120_v51 = vld [vmem:[%s14023_s16 + $0xca] sm:$0xff] }
 0x23f   : > { %v16694_v29 = vadd.f32 %v5120_v34, %v4913_v28  ;;  %v13047_v23 = vpop.f32.mrf.mxu0  ;;  %13350 = vmatmul.mubr.msk.f32.gmra.mxu0 %vm381_vm1, %v18421_v58  ;;  %v7422_v28 = vld [vmem:[%s14023_s16 + $0x8b] sm:$0xff] }
 0x240   : > { %v13073_v37 = vpop.f32.mrf.mxu1  ;;  %13376 = vmatmul.mubr.msk.f32.gmra.mxu1 %vm381_vm1, %v7420_v2  ;;  %v4924_v38 = vadd.f32 %v13047_v23, %v16580_v19  ;;  %13352 = vmatprep.mubr.msk.f32.mxu0 %vm381_vm1, %v18422_v60 }
 0x241   : > { %v16700_v47 = vadd.f32 %v13073_v37, %v4916_v39  ;;  %13378 = vmatprep.mubr.msk.f32.mxu1 %vm381_vm1, %v7421_v1  ;;  %v4860_v27 = vpop.f32.mrf.mxu0  ;;  %v7126_v1 = vld [vmem:[%s14023_s16 + $0xfa] sm:$0xf]  ;;  %v7723_v37 = vld [vmem:[%s14023_s16 + $0x44] sm:$0xff] }
 0x242   : > { %v5130_v18 = vpop.f32.mrf.mxu1  ;;  %v16710_v20 = vadd.f32 %v4860_v27, %v16589_v59  ;;  %v7424_v59 = vld [vmem:[%s14023_s16 + $0x9b] sm:$0xff] }
 0x243   : > { %v16712_v22 = vadd.f32 %v5130_v18, %v4915_v6  ;;  %v13050_v19 = vpop.f32.mrf.mxu0  ;;  %13353 = vmatmul.mubr.msk.f32.gmra.mxu0 %vm381_vm1, %v7120_v51 }
 0x244   : > { %v13076_v39 = vpop.f32.mrf.mxu1  ;;  %13379 = vmatmul.mubr.msk.f32.gmra.mxu1 %vm381_vm1, %v7422_v28  ;;  %v4926_v46 = vadd.f32 %v13050_v19, %v16594_v14  ;;  %13355 = vmatprep.mubr.msk.f32.mxu0 %vm381_vm1, %v7121_v43  ;;  %v7430_v28 = vld [vmem:[%s14023_s16 + $0xcb] sm:$0xff]  ;;  %v7431_v43 = vld [vmem:[%s14023_s16 + $0xd3] sm:$0xff] }
 0x245   : > { %v16717_v35 = vadd.f32 %v13076_v39, %v4918_v31  ;;  %13381 = vmatprep.mubr.msk.f32.mxu1 %vm381_vm1, %v7423_v24  ;;  %v4870_v36 = vpop.f32.mrf.mxu0  ;;  %v18423_v31 = vld [vmem:[#allocation12_spill] sm:$0xff]  ;;  %v7725_v24 = vld [vmem:[%s14023_s16 + $0x54] sm:$0xff] }
 0x246   : > { %v16722_v6 = vpop.f32.mrf.mxu1  ;;  %v16726_v21 = vadd.f32 %v4870_v36, %v16603_v40  ;;  %v7426_v40 = vld [vmem:[%s14023_s16 + $0xab] sm:$0xff]  ;;  %v7726_v39 = vld [vmem:[%s14023_s16 + $0x5c] sm:$0xff] }
 0x247   : > { %v13053_v10 = vpop.f32.mrf.mxu0  ;;  %13356 = vmatmul.mubr.msk.f32.gmra.mxu0 %vm381_vm1, %v18423_v31  ;;  %v7727_v36 = vld [vmem:[%s14023_s16 + $0x64] sm:$0xff] }
 0x248   : > { %v13079_v14 = vpop.f32.mrf.mxu1  ;;  %13382 = vmatmul.mubr.msk.f32.gmra.mxu1 %vm381_vm1, %v7424_v59  ;;  %v4928_v11 = vadd.f32 %v13053_v10, %v16609_v4  ;;  %13358 = vmatprep.mubr.msk.f32.mxu0 %vm381_vm1, %v18424_v3  ;;  %v7434_v31 = vld [vmem:[%s14023_s16 + $0xeb] sm:$0xff] }
 0x249   : > { %v16732_v56 = vadd.f32 %v13079_v14, %v4920_v33  ;;  %13384 = vmatprep.mubr.msk.f32.mxu1 %vm381_vm1, %v7425_v0  ;;  %v4880_v63 = vpop.f32.mrf.mxu0 }
 0x24a   : > { %v16739_v30 = vpop.f32.mrf.mxu1  ;;  %v16744_v2 = vadd.f32 %v4880_v63, %v16619_v54 }
 0x24b   : > { %v13056_v4 = vpop.f32.mrf.mxu0  ;;  %13359 = vmatmul.mubr.msk.f32.gmra.mxu0 %vm381_vm1, %v7124_v5 }
 0x24c   : > { %v13082_v33 = vpop.f32.mrf.mxu1  ;;  %13385 = vmatmul.mubr.msk.f32.gmra.mxu1 %vm381_vm1, %v7426_v40  ;;  %v4930_v26 = vadd.f32 %v13056_v4, %v16624_v17  ;;  %13361 = vmatprep.mubr.msk.f32.mxu0 %vm381_vm1, %v7125_v41  ;;  %v7729_v40 = vld [vmem:[%s14023_s16 + $0x74] sm:$0xff]  ;;  %v7730_v4 = vld [vmem:[%s14023_s16 + $0x7c] sm:$0xff] }
 0x24d   : > { %v16749_v34 = vadd.f32 %v13082_v33, %v4922_v49  ;;  %13387 = vmatprep.mubr.msk.f32.mxu1 %vm381_vm1, %v7427_v55  ;;  %v4890_v23 = vpop.f32.mrf.mxu0  ;;  %v7436_v55 = vld [vmem:[%s14023_s16 + $0xfb] sm:$0xf] }
 0x24e   : > { %v16754_v54 = vpop.f32.mrf.mxu1  ;;  %v16758_v58 = vadd.f32 %v4890_v23, %v16632_v12  ;;  %v7724_v12 = vld [vmem:[%s14023_s16 + $0x4c] sm:$0xff] }
 0x24f   : > { %v13059_v60 = vpop.f32.mrf.mxu0  ;;  %13362 = vmatmul.mubr.msk.f32.gmra.mxu0 %vm381_vm1, %v7126_v1  ;;  %v7731_v1 = vld [vmem:[%s14023_s16 + $0x84] sm:$0xff] }
 0x250   : > { %v13085_v17 = vpop.f32.mrf.mxu1  ;;  %13388 = vmatmul.mubr.msk.f32.gmra.mxu1 %vm381_vm1, %v16312_v50  ;;  %v4932_v49 = vadd.f32 %v13059_v60, %v16637_v15  ;;  %13404 = vmatprep.mubr.msk.f32.mxu0 %vm381_vm1, %v7723_v37 }
 0x251   : > { %v16764_v51 = vadd.f32 %v13085_v17, %v4924_v38  ;;  %13390 = vmatprep.mubr.msk.f32.mxu1 %vm381_vm1, %v16315_v44  ;;  %v4900_v27 = vpop.f32.mrf.mxu0  ;;  %v7732_v17 = vld [vmem:[%s14023_s16 + $0x8c] sm:$0xff] }
 0x252   : > { %v16771_v18 = vpop.f32.mrf.mxu1  ;;  %v16776_v50 = vadd.f32 %v4900_v27, %v16645_v9 }
 0x253   : > { %v13102_v38 = vpop.f32.mrf.mxu0  ;;  %13405 = vmatmul.mubr.msk.f32.vlgmr.msra.gmra.mxu0 %vm381_vm1, %v7724_v12 }
 0x254   : > { %v13088_v15 = vpop.f32.mrf.mxu1  ;;  %13391 = vmatmul.mubr.msk.f32.gmra.mxu1 %vm381_vm1, %v7430_v28  ;;  %v5530_v19 = vadd.f32 %v13102_v38, %v16652_v25  ;;  %13407 = vmatprep.mubr.msk.f32.mxu0 %vm381_vm1, %v7725_v24 }
 0x255   : > { %v16780_v44 = vadd.f32 %v13088_v15, %v4926_v46  ;;  %13393 = vmatprep.mubr.msk.f32.mxu1 %vm381_vm1, %v7431_v43  ;;  %v5410_v9 = vpop.f32.mrf.mxu0  ;;  %v7734_v15 = vld [vmem:[%s14023_s16 + $0x9c] sm:$0xff] }
 0x256   : > { %v16786_v59 = vpop.f32.mrf.mxu1  ;;  %v16790_v0 = vadd.f32 %v5410_v9, %v16662_v7  ;;  %v7728_v7 = vld [vmem:[%s14023_s16 + $0x6c] sm:$0xff]  ;;  %v7735_v9 = vld [vmem:[%s14023_s16 + $0xa4] sm:$0xff] }
 0x257   : > { %v13105_v10 = vpop.f32.mrf.mxu0  ;;  %13408 = vmatmul.mubr.msk.f32.gmra.mxu0 %vm381_vm1, %v7726_v39 }
 0x258   : > { %v13091_v46 = vpop.f32.mrf.mxu1  ;;  %13394 = vmatmul.mubr.msk.f32.gmra.mxu1 %vm381_vm1, %v16346_v13  ;;  %v5532_v14 = vadd.f32 %v13105_v10, %v16668_v53  ;;  %13410 = vmatprep.mubr.msk.f32.mxu0 %vm381_vm1, %v7727_v36  ;;  %v7435_v13 = vld [vmem:[%s14023_s16 + $0xf3] sm:$0xff] }
 0x259   : > { %v16795_v25 = vadd.f32 %v13091_v46, %v4928_v11  ;;  %13396 = vmatprep.mubr.msk.f32.mxu1 %vm381_vm1, %v16349_v62  ;;  %v5420_v5 = vpop.f32.mrf.mxu0 }
 0x25a   : > { %v16803_v3 = vpop.f32.mrf.mxu1  ;;  %v16808_v11 = vadd.f32 %v5420_v5, %v16679_v42 }
 0x25b   : > { %v13108_v53 = vpop.f32.mrf.mxu0  ;;  %13411 = vmatmul.mubr.msk.f32.gmra.mxu0 %vm381_vm1, %v7728_v7  ;;  %v7737_v7 = vld [vmem:[%s14023_s16 + $0xb4] sm:$0xff] }
 0x25c   : > { %v13094_v63 = vpop.f32.mrf.mxu1  ;;  %13397 = vmatmul.mubr.msk.f32.gmra.mxu1 %vm381_vm1, %v7434_v31  ;;  %v5534_v41 = vadd.f32 %v13108_v53, %v16685_v45  ;;  %13413 = vmatprep.mubr.msk.f32.mxu0 %vm381_vm1, %v7729_v40 }
 0x25d   : > { %v16812_v62 = vadd.f32 %v13094_v63, %v4930_v26  ;;  %13399 = vmatprep.mubr.msk.f32.mxu1 %vm381_vm1, %v7435_v13  ;;  %v5430_v33 = vpop.f32.mrf.mxu0 }
 0x25e   : > { %v16819_v42 = vpop.f32.mrf.mxu1  ;;  %v16823_v23 = vadd.f32 %v5430_v33, %v16694_v29  ;;  %v7733_v29 = vld [vmem:[%s14023_s16 + $0x94] sm:$0xff] }
 0x25f   : > { %v13111_v26 = vpop.f32.mrf.mxu0  ;;  %13414 = vmatmul.mubr.msk.f32.gmra.mxu0 %vm381_vm1, %v7730_v4 }
 0x260   : > { %v13097_v37 = vpop.f32.mrf.mxu1  ;;  %13400 = vmatmul.mubr.msk.f32.gmra.mxu1 %vm381_vm1, %v7436_v55  ;;  %v5536_v60 = vadd.f32 %v13111_v26, %v16700_v47  ;;  %13416 = vmatprep.mubr.msk.f32.mxu0 %vm381_vm1, %v7731_v1 }
 0x261   : > { %v16827_v45 = vadd.f32 %v13097_v37, %v4932_v49  ;;  %v5440_v12 = vpop.f32.mrf.mxu0  ;;  %v7741_v37 = vld [vmem:[%s14023_s16 + $0xd4] sm:$0xff] }
 0x262   : > { %v16832_v28 = vpop.f32.mrf.mxu1  ;;  %v16836_v27 = vadd.f32 %v5440_v12, %v16712_v22 }
 0x263   : > { %v13114_v43 = vpop.f32.mrf.mxu0  ;;  %13417 = vmatmul.mubr.msk.f32.gmra.mxu0 %vm381_vm1, %v7732_v17 }
 0x264   : > { %v13140_v24 = vpop.f32.mrf.mxu1  ;;  %v5538_v49 = vadd.f32 %v13114_v43, %v16717_v35  ;;  %13419 = vmatprep.mubr.msk.f32.mxu0 %vm381_vm1, %v7733_v29  ;;  %v7736_v35 = vld [vmem:[%s14023_s16 + $0xac] sm:$0xff] }
 0x265   : > { %v16840_v47 = vadd.f32 %v13140_v24, %v5530_v19  ;;  %v16844_v38 = vpop.f32.mrf.mxu0 }
 0x266   : > { %v16846_v39 = vpop.f32.mrf.mxu1 }
 0x267   : > { %v13117_v22 = vpop.f32.mrf.mxu0  ;;  %13420 = vmatmul.mubr.msk.f32.gmra.mxu0 %vm381_vm1, %v7734_v15 }
 0x268   : > { %v13143_v36 = vpop.f32.mrf.mxu1  ;;  %v5540_v46 = vadd.f32 %v13117_v22, %v16732_v56  ;;  %13422 = vmatprep.mubr.msk.f32.mxu0 %vm381_vm1, %v7735_v9  ;;  %v7745_v9 = vld [vmem:[%s14023_s16 + $0xf4] sm:$0xff] }
 0x269   : > { %v16851_v10 = vadd.f32 %v13143_v36, %v5532_v14  ;;  %v16855_v19 = vpop.f32.mrf.mxu0 }
 0x26a   : > { %v16857_v31 = vpop.f32.mrf.mxu1 }
 0x26b   : > { %v13120_v5 = vpop.f32.mrf.mxu0  ;;  %13423 = vmatmul.mubr.msk.f32.gmra.mxu0 %vm381_vm1, %v7736_v35 }
 0x26c   : > { %v13146_v13 = vpop.f32.mrf.mxu1  ;;  %v5542_v40 = vadd.f32 %v13120_v5, %v16749_v34  ;;  %13425 = vmatprep.mubr.msk.f32.mxu0 %vm381_vm1, %v7737_v7  ;;  %v7740_v34 = vld [vmem:[%s14023_s16 + $0xcc] sm:$0xff] }
 0x26d   : > { %v16862_v63 = vadd.f32 %v13146_v13, %v5534_v41  ;;  %v16865_v56 = vpop.f32.mrf.mxu0 }
 0x26e   : > { %v16867_v14 = vpop.f32.mrf.mxu1 }
 0x26f   : > { %v13123_v53 = vpop.f32.mrf.mxu0  ;;  %13426 = vmatmul.mubr.msk.f32.gmra.mxu0 %vm381_vm1, %v16388_v57 }
 0x270   : > { %v13149_v55 = vpop.f32.mrf.mxu1  ;;  %v5544_v4 = vadd.f32 %v13123_v53, %v16764_v51  ;;  %13428 = vmatprep.mubr.msk.f32.mxu0 %vm381_vm1, %v16392_v52 }
 0x271   : > { %v16872_v33 = vadd.f32 %v13149_v55, %v5536_v60  ;;  %v16877_v41 = vpop.f32.mrf.mxu0 }
 0x272   : > { %v16879_v1 = vpop.f32.mrf.mxu1 }
 0x273   : > { %v13126_v26 = vpop.f32.mrf.mxu0  ;;  %13429 = vmatmul.mubr.msk.f32.gmra.mxu0 %vm381_vm1, %v7740_v34 }
 0x274   : > { %v13152_v17 = vpop.f32.mrf.mxu1  ;;  %v5546_v57 = vadd.f32 %v13126_v26, %v16780_v44  ;;  %13431 = vmatprep.mubr.msk.f32.mxu0 %vm381_vm1, %v7741_v37  ;;  %v7744_v44 = vld [vmem:[%s14023_s16 + $0xec] sm:$0xff]  ;;  %v18240_v37 = vmov 0.0  }
 0x275   : > { %v16884_v51 = vadd.f32 %v13152_v17, %v5538_v49  ;;  %v16887_v60 = vpop.f32.mrf.mxu0  ;;  %13440 = vmatprep.subr.mxu1 %v18240_v37  ;;  %13492 = vmatprep.subr.mxu0 %v18240_v37 }
 0x276   : > { %v16889_v52 = vpop.f32.mrf.mxu1 }
 0x277   : > { %v13129_v12 = vpop.f32.mrf.mxu0  ;;  %13432 = vmatmul.mubr.msk.f32.gmra.mxu0 %vm381_vm1, %v16433_v48  ;;  %v7746_v48 = vld [vmem:[%s14023_s16 + $0xfc] sm:$0xf]  ;;  %s324_s16 = scalar_lea.vmem [#allocation4], %s323_s29 }
 0x278   : > { %v13155_v29 = vpop.f32.mrf.mxu1  ;;  %v5548_v43 = vadd.f32 %v13129_v12, %v16795_v25  ;;  %13434 = vmatprep.mubr.msk.f32.mxu0 %vm381_vm1, %v16437_v61  ;;  %v11571_v12 = vld [vmem:[%s18143_s3 + $0x18] sm:$0x3]  ;;  %s10859_s17 = sshll.u32 %s324_s16, 4  ;;  %s10860_s17 = int_to_ptr.vmem [resolvable:$true] %s10859_s17 }
 0x279   : > { %v5850_v24 = vadd.f32 %v13155_v29, %v5540_v46  ;;  %v16897_v49 = vpop.f32.mrf.mxu0  ;;  %13441 = vmatpush3.msk.msra.mxu1 %vm8203_vm2, %v11571_v12  ;;  %s13840_s25 = scalar_lea.vmem %s10860_s17, 16  ;;  %p13847_p0 = scmp.lt.s32.totalorder %s10860_s17, %s13845_s27 }
 0x27a   : > { %v16899_v15 = vpop.f32.mrf.mxu1  ;;  %13442 = vmatprep.subr.mxu1 %v18240_v37  ;;  %p13841_p11 = scmp.ne.s32.totalorder %s10860_s17, %s13840_s25  ;;  %p13848_p1 = scmp.lt.s32.totalorder %s13846_s13, %s13840_s25 }
 0x27b   : > { %v13132_v22 = vpop.f32.mrf.mxu0  ;;  %13435 = vmatmul.mubr.msk.f32.gmra.mxu0 %vm381_vm1, %v7744_v44 }
 0x27c   : > { %v13158_v36 = vpop.f32.mrf.mxu1  ;;  %v5550_v35 = vadd.f32 %v13132_v22, %v16812_v62  ;;  %13437 = vmatprep.mubr.msk.f32.mxu0 %vm381_vm1, %v7745_v9  ;;  %p13842_p12 = pnand %p13841_p11, %p13993_p5  ;;  %p13849_p2 = por %p13848_p1, %p13847_p0 }
 0x27d   : > { %v5852_v7 = vadd.f32 %v13158_v36, %v5542_v40  ;;  %v16906_v25 = vpop.f32.mrf.mxu0 }
 0x27e   : > { %18425 = vst [vmem:[#allocation23_spill] sm:$0xff] %v16906_v25  ;;  %v16908_v46 = vpop.f32.mrf.mxu1  ;;  %p13843_p13 = pneg %p13842_p12 }
 0x27f   : > { %18426 = vst [vmem:[#allocation20_spill] sm:$0xff] %v16908_v46  ;;  %v13135_v61 = vpop.f32.mrf.mxu0  ;;  %13438 = vmatmul.mubr.msk.f32.gmra.mxu0 %vm381_vm1, %v7746_v48 }
 0x280   : > { %v13161_v5 = vpop.f32.mrf.mxu1  ;;  %v5552_v13 = vadd.f32 %v13135_v61, %v16827_v45  ;;  %p13850_p3 = pnand %p13849_p2, %p13843_p13 }
 0x281   : > { %v5854_v53 = vadd.f32 %v13161_v5, %v5544_v4  ;;  %v16912_v55 = vpop.f32.mrf.mxu0 }
 0x282   : > { %18427 = vst [vmem:[#allocation9_spill] sm:$0xff] %v16912_v55  ;;  %v16914_v34 = vpop.f32.mrf.mxu1 }
 0x283   : > { %18428 = vst [vmem:[#allocation33_spill] sm:$0xff] %v16914_v34  ;;  %v13178_v40 = vpop.f32.mrf.mxu0 }
 0x284   : > { %v13164_v62 = vpop.f32.mrf.mxu1  ;;  %v6150_v17 = vadd.f32 %v13178_v40, %v16840_v47 }
 0x285   : > { %v5856_v26 = vadd.f32 %v13164_v62, %v5546_v57  ;;  %v16924_v4 = vpop.f32.mrf.mxu0 }
 0x286   : > { %v16922_v45 = vpop.f32.mrf.mxu1 }
 0x287   : > { %18429 = vst [vmem:[#allocation25_spill] sm:$0xff] %v16922_v45  ;;  %v13181_v44 = vpop.f32.mrf.mxu0 }
 0x288   : > { %v13167_v29 = vpop.f32.mrf.mxu1  ;;  %v6152_v57 = vadd.f32 %v13181_v44, %v16851_v10 }
 0x289   : > { %v5858_v9 = vadd.f32 %v13167_v29, %v5548_v43  ;;  %v16931_v47 = vpop.f32.mrf.mxu0 }
 0x28a   : > { %v16929_v22 = vpop.f32.mrf.mxu1  ;;  %18431 = vst [vmem:[#allocation36_spill] sm:$0xff] %v16931_v47 }
 0x28b   : > { %18430 = vst [vmem:[#allocation22_spill] sm:$0xff] %v16929_v22  ;;  %v13184_v48 = vpop.f32.mrf.mxu0 }
 0x28c   : > { %v13170_v36 = vpop.f32.mrf.mxu1  ;;  %v6154_v5 = vadd.f32 %v13184_v48, %v16862_v63 }
 0x28d   : > { %v5860_v61 = vadd.f32 %v13170_v36, %v5550_v35  ;;  %v16936_v40 = vpop.f32.mrf.mxu0 }
 0x28e   : > { %v16934_v62 = vpop.f32.mrf.mxu1  ;;  %18433 = vst [vmem:[#allocation27_spill] sm:$0xff] %v16936_v40 }
 0x28f   : > { %18432 = vst [vmem:[#allocation26_spill] sm:$0xff] %v16934_v62  ;;  %v13187_v37 = vpop.f32.mrf.mxu0 }
 0x290   : > { %v13173_v12 = vpop.f32.mrf.mxu1  ;;  %v6156_v43 = vadd.f32 %v13187_v37, %v16872_v33 }
 0x291   : > { %v5862_v45 = vadd.f32 %v13173_v12, %v5552_v13  ;;  %v16941_v10 = vpop.f32.mrf.mxu0 }
 0x292   : > { %v16939_v29 = vpop.f32.mrf.mxu1  ;;  %18435 = vst [vmem:[#allocation14_spill] sm:$0xff] %v16941_v10 }
 0x293   : > { %18434 = vst [vmem:[#allocation28_spill] sm:$0xff] %v16939_v29  ;;  %v13190_v44 = vpop.f32.mrf.mxu0 }
 0x294   : > { %v13216_v22 = vpop.f32.mrf.mxu1  ;;  %v6158_v47 = vadd.f32 %v13190_v44, %v16884_v51 }
 0x295   : > { %v6460_v35 = vadd.f32 %v13216_v22, %v6150_v17  ;;  %v16944_v36 = vpop.f32.mrf.mxu0 }
 0x296   : > { %18436 = vst [vmem:[#allocation29_spill] sm:$0xff] %v16944_v36  ;;  %v16946_v63 = vpop.f32.mrf.mxu1 }
 0x297   : > { %v13193_v48 = vpop.f32.mrf.mxu0 }
 0x298   : > { %v13219_v40 = vpop.f32.mrf.mxu1  ;;  %v6160_v62 = vadd.f32 %v13193_v48, %v5850_v24  ;;  %v11570_v24 = vld [vmem:[%s18143_s3 + $0x10] sm:$0xff]  ;;  %v18443_v48 = vmov 0.0  }
 0x299   : > { %v6462_v34 = vadd.f32 %v13219_v40, %v6152_v57  ;;  %v16948_v13 = vpop.f32.mrf.mxu0  ;;  %13443 = vmatpush3.msra.mxu1 %v11570_v24  ;;  %13444 = vmatprep.mubr.msk.f32.mxu1 %vm13903_vm3, %v18443_v48 }
 0x29a   : > { %18437 = vst [vmem:[#allocation30_spill] sm:$0xff] %v16948_v13  ;;  %v16950_v33 = vpop.f32.mrf.mxu1  ;;  %13453 = vmatprep.subr.mxu1 %v18443_v48  ;;  %13496 = vmatprep.mubr.msk.f32.mxu0 %vm13903_vm3, %v18443_v48 }
 0x29b   : > { %18438 = vst [vmem:[#allocation39_spill] sm:$0xff] %v16950_v33  ;;  %v13196_v37 = vpop.f32.mrf.mxu0 }
 0x29c   : > { %v13222_v12 = vpop.f32.mrf.mxu1  ;;  %v6162_v10 = vadd.f32 %v13196_v37, %v5852_v7 }
 0x29d   : > { %v6464_v29 = vadd.f32 %v13222_v12, %v6154_v5  ;;  %v16952_v55 = vpop.f32.mrf.mxu0 }
 0x29e   : > { %18439 = vst [vmem:[#allocation24_spill] sm:$0xff] %v16952_v55  ;;  %v16954_v51 = vpop.f32.mrf.mxu1 }
 0x29f   : > { %18440 = vst [vmem:[#allocation35_spill] sm:$0xff] %v16954_v51  ;;  %v13199_v17 = vpop.f32.mrf.mxu0 }
 0x2a0   : > { %v13225_v22 = vpop.f32.mrf.mxu1  ;;  %v6164_v44 = vadd.f32 %v13199_v17, %v5854_v53 }
 0x2a1   : > { %v6466_v36 = vadd.f32 %v13225_v22, %v6156_v43  ;;  %v16959_v57 = vpop.f32.mrf.mxu0 }
 0x2a2   : > { %18441 = vst [vmem:[#allocation38_spill] sm:$0xff] %v16959_v57  ;;  %v16961_v40 = vpop.f32.mrf.mxu1 }
 0x2a3   : > { %18442 = vst [vmem:[#allocation31_spill] sm:$0xff] %v16961_v40  ;;  %v13202_v7 = vpop.f32.mrf.mxu0 }
 0x2a4   : > { %v13228_v5 = vpop.f32.mrf.mxu1  ;;  %v6166_v37 = vadd.f32 %v13202_v7, %v5856_v26 }
 0x2a5   : > { %v6468_v12 = vadd.f32 %v13228_v5, %v6158_v47  ;;  %v16964_v51 = vpop.f32.mrf.mxu0  ;;  %v11593_v47 = vld [vmem:[%s18143_s3 + $0x48] sm:$0x3] }
 0x2a6   : > { %v16966_v55 = vpop.f32.mrf.mxu1  ;;  %13493 = vmatpush3.msk.msra.mxu0 %vm8203_vm2, %v11593_v47 }
 0x2a7   : > { %18444 = vst [vmem:[#allocation32_spill] sm:$0xff] %v16966_v55  ;;  %v13205_v53 = vpop.f32.mrf.mxu0  ;;  %13494 = vmatprep.subr.mxu0 %v18443_v48 }
 0x2a8   : > { %v13231_v43 = vpop.f32.mrf.mxu1  ;;  %v6168_v17 = vadd.f32 %v13205_v53, %v5858_v9 }
 0x2a9   : > { %v6470_v22 = vadd.f32 %v13231_v43, %v6160_v62  ;;  %v16968_v13 = vpop.f32.mrf.mxu0 }
 0x2aa   : > { %18445 = vst [vmem:[#allocation34_spill] sm:$0xff] %v16968_v13  ;;  %v16970_v57 = vpop.f32.mrf.mxu1 }
 0x2ab   : > { %18446 = vst [vmem:[#allocation45_spill] sm:$0xff] %v16970_v57  ;;  %v13208_v40 = vpop.f32.mrf.mxu0 }
 0x2ac   : > { %v13234_v24 = vpop.f32.mrf.mxu1  ;;  %v6170_v33 = vadd.f32 %v13208_v40, %v5860_v61 }
 0x2ad   : > { %v6472_v46 = vadd.f32 %v13234_v24, %v6162_v10  ;;  %v16972_v25 = vpop.f32.mrf.mxu0  ;;  %v11592_v10 = vld [vmem:[%s18143_s3 + $0x40] sm:$0xff] }
 0x2ae   : > { %18447 = vst [vmem:[#allocation37_spill] sm:$0xff] %v16972_v25  ;;  %v16974_v26 = vpop.f32.mrf.mxu1  ;;  %13495 = vmatpush3.msra.mxu0 %v11592_v10 }
 0x2af   : > { %18448 = vst [vmem:[#allocation40_spill] sm:$0xff] %v16974_v26  ;;  %v13211_v7 = vpop.f32.mrf.mxu0  ;;  %13518 = vmatprep.subr.mxu0 %v18443_v48 }
 0x2b0   : > { %v13237_v5 = vpop.f32.mrf.mxu1  ;;  %v6172_v9 = vadd.f32 %v13211_v7, %v5862_v45 }
 0x2b1   : > { %v6474_v62 = vadd.f32 %v13237_v5, %v6164_v44  ;;  %v16981_v53 = vpop.f32.mrf.mxu0 }
 0x2b2   : > { %18449 = vst [vmem:[#allocation48_spill] sm:$0xff] %v16981_v53  ;;  %v16983_v61 = vpop.f32.mrf.mxu1 }
 0x2b3   : > { %18450 = vst [vmem:[#allocation41_spill] sm:$0xff] %v16983_v61  ;;  %v13254_v43 = vpop.f32.mrf.mxu0 }
 0x2b4   : > { %v13240_v40 = vpop.f32.mrf.mxu1  ;;  %v16993_v44 = vadd.f32 %v13254_v43, %v6460_v35 }
 0x2b5   : > { %v6476_v45 = vadd.f32 %v13240_v40, %v6166_v37  ;;  %v16997_v47 = vpop.f32.mrf.mxu0 }
 0x2b6   : > { %v16995_v24 = vpop.f32.mrf.mxu1 }
 0x2b7   : > { %18451 = vst [vmem:[#allocation42_spill] sm:$0xff] %v16995_v24  ;;  %v13257_v5 = vpop.f32.mrf.mxu0 }
 0x2b8   : > { %v13243_v7 = vpop.f32.mrf.mxu1  ;;  %v16999_v53 = vadd.f32 %v13257_v5, %v6462_v34 }
 0x2b9   : > { %v6478_v61 = vadd.f32 %v13243_v7, %v6168_v17  ;;  %v17003_v26 = vpop.f32.mrf.mxu0 }
 0x2ba   : > { %v17001_v10 = vpop.f32.mrf.mxu1 }
 0x2bb   : > { %18452 = vst [vmem:[#allocation49_spill] sm:$0xff] %v17001_v10  ;;  %v13260_v57 = vpop.f32.mrf.mxu0 }
 0x2bc   : > { %v13246_v25 = vpop.f32.mrf.mxu1  ;;  %v17005_v48 = vadd.f32 %v13260_v57, %v6464_v29 }
 0x2bd   : > { %v6480_v13 = vadd.f32 %v13246_v25, %v6170_v33  ;;  %v17009_v37 = vpop.f32.mrf.mxu0 }
 0x2be   : > { %v17007_v35 = vpop.f32.mrf.mxu1 }
 0x2bf   : > { %18453 = vst [vmem:[#allocation43_spill] sm:$0xff] %v17007_v35  ;;  %v13263_v43 = vpop.f32.mrf.mxu0 }
 0x2c0   : > { %v13249_v40 = vpop.f32.mrf.mxu1  ;;  %v17011_v55 = vadd.f32 %v13263_v43, %v6466_v36 }
 0x2c1   : > { %v6482_v24 = vadd.f32 %v13249_v40, %v6172_v9  ;;  %v17015_v17 = vpop.f32.mrf.mxu0 }
 0x2c2   : > { %18454 = vst [vmem:[#allocation44_spill] sm:$0xff] %v17011_v55  ;;  %v17013_v34 = vpop.f32.mrf.mxu1  ;;  %18456 = vst [vmem:[#allocation47_spill] sm:$0xff] %v17015_v17 }
 0x2c3   : > { %18455 = vst [vmem:[#allocation46_spill] sm:$0xff] %v17013_v34  ;;  %v13266_v7 = vpop.f32.mrf.mxu0 }
 0x2c4   : > { %v17017_v5 = vpop.f32.mrf.mxu1  ;;  %v17019_v10 = vadd.f32 %v13266_v7, %v6468_v12 }
 0x2c5   : > { %v17021_v25 = vpop.f32.mrf.mxu0 }
 0x2c6   : > { %18457 = vst [vmem:[#allocation50_spill] sm:$0xff] %v17019_v10  ;;  %18458 = vst [vmem:[#allocation51_spill] sm:$0xff] %v17021_v25  ;;  %v17023_v29 = vpop.f32.mrf.mxu1 }
 0x2c7   : > { %v13269_v33 = vpop.f32.mrf.mxu0 }
 0x2c8   : > { %v17025_v57 = vpop.f32.mrf.mxu1  ;;  %v17027_v35 = vadd.f32 %v13269_v33, %v6470_v22 }
 0x2c9   : > { %v17029_v36 = vpop.f32.mrf.mxu0 }
 0x2ca   : > { %18459 = vst [vmem:[#allocation17_spill] sm:$0xff] %v17027_v35  ;;  %18460 = vst [vmem:[#allocation7_spill] sm:$0xff] %v17029_v36  ;;  %v17031_v9 = vpop.f32.mrf.mxu1 }
 0x2cb   : > { %v13272_v40 = vpop.f32.mrf.mxu0 }
 0x2cc   : > { %v17033_v43 = vpop.f32.mrf.mxu1  ;;  %v17035_v34 = vadd.f32 %v13272_v40, %v6472_v46 }
 0x2cd   : > { %v17037_v12 = vpop.f32.mrf.mxu0 }
 0x2ce   : > { %18461 = vst [vmem:[#allocation15_spill] sm:$0xff] %v17035_v34  ;;  %18462 = vst [vmem:[#allocation10_spill] sm:$0xff] %v17037_v12  ;;  %v17039_v7 = vpop.f32.mrf.mxu1 }
 0x2cf   : > { %18463 = vst [vmem:[#allocation19_spill] sm:$0xff] %v17039_v7  ;;  %v13275_v10 = vpop.f32.mrf.mxu0 }
 0x2d0   : > { %v17041_v25 = vpop.f32.mrf.mxu1  ;;  %v17043_v55 = vadd.f32 %v13275_v10, %v6474_v62 }
 0x2d1   : > { %18464 = vst [vmem:[#allocation21_spill] sm:$0xff] %v17041_v25  ;;  %v17045_v22 = vpop.f32.mrf.mxu0 }
 0x2d2   : > { %18465 = vst [vmem:[#allocation8_spill] sm:$0xff] %v17043_v55  ;;  %18466 = vst [vmem:[#allocation18_spill] sm:$0xff] %v17045_v22  ;;  %v17047_v33 = vpop.f32.mrf.mxu1 }
 0x2d3   : > { %18467 = vst [vmem:[#allocation11_spill] sm:$0xff] %v17047_v33  ;;  %v13278_v35 = vpop.f32.mrf.mxu0 }
 0x2d4   : > { %v17049_v36 = vpop.f32.mrf.mxu1  ;;  %v17051_v17 = vadd.f32 %v13278_v35, %v6476_v45 }
 0x2d5   : > { %18468 = vst [vmem:[#allocation13_spill] sm:$0xff] %v17049_v36  ;;  %v17053_v46 = vpop.f32.mrf.mxu0 }
 0x2d6   : > { %18469 = vst [vmem:[#allocation12_spill] sm:$0xff] %v17051_v17  ;;  %18470 = vst [vmem:[#allocation16_spill] sm:$0xff] %v17053_v46  ;;  %v17055_v40 = vpop.f32.mrf.mxu1 }
 0x2d7   : > { %18471 = vst [vmem:[#allocation52_spill] sm:$0xff] %v17055_v40  ;;  %v13281_v34 = vpop.f32.mrf.mxu0 }
 0x2d8   : > { %v17057_v12 = vpop.f32.mrf.mxu1  ;;  %v17059_v7 = vadd.f32 %v13281_v34, %v6478_v61 }
 0x2d9   : > { %18472 = vst [vmem:[#allocation53_spill] sm:$0xff] %v17057_v12  ;;  %v17061_v62 = vpop.f32.mrf.mxu0 }
 0x2da   : > { %18473 = vst [vmem:[#allocation54_spill] sm:$0xff] %v17059_v7  ;;  %18474 = vst [vmem:[#allocation55_spill] sm:$0xff] %v17061_v62  ;;  %v17063_v10 = vpop.f32.mrf.mxu1 }
 0x2db   : > { %18475 = vst [vmem:[#allocation56_spill] sm:$0xff] %v17063_v10  ;;  %v13284_v55 = vpop.f32.mrf.mxu0 }
 0x2dc   : > { %v17065_v22 = vpop.f32.mrf.mxu1  ;;  %v17067_v33 = vadd.f32 %v13284_v55, %v6480_v13 }
 0x2dd   : > { %18476 = vst [vmem:[#allocation57_spill] sm:$0xff] %v17065_v22  ;;  %v17069_v45 = vpop.f32.mrf.mxu0 }
 0x2de   : > { %18477 = vst [vmem:[#allocation58_spill] sm:$0xff] %v17067_v33  ;;  %18478 = vst [vmem:[#allocation59_spill] sm:$0xff] %v17069_v45  ;;  %v17071_v35 = vpop.f32.mrf.mxu1 }
 0x2df   : > { %18479 = vst [vmem:[#allocation60_spill] sm:$0xff] %v17071_v35  ;;  %v13287_v17 = vpop.f32.mrf.mxu0 }
 0x2e0   : > { %v17073_v46 = vpop.f32.mrf.mxu1  ;;  %v17075_v40 = vadd.f32 %v13287_v17, %v6482_v24 }
 0x2e1   : > { %18480 = vst [vmem:[#allocation61_spill] sm:$0xff] %v17073_v46  ;;  %v17077_v61 = vpop.f32.mrf.mxu0 }
 0x2e2   : > { %18481 = vst [vmem:[#allocation62_spill] sm:$0xff] %v17075_v40  ;;  %18482 = vst [vmem:[#allocation63_spill] sm:$0xff] %v17077_v61  ;;  %v17079_v34 = vpop.f32.mrf.mxu1 }
 0x2e3   : > { %18483 = vst [vmem:[#allocation64_spill] sm:$0xff] %v17079_v34  ;;  %v17083_v10 = vpop.f32.mrf.mxu0 }
 0x2e4   : > { %v17081_v7 = vpop.f32.mrf.mxu1 }
 0x2e5   : > { %18484 = vst [vmem:[#allocation65_spill] sm:$0xff] %v17081_v7  ;;  %v17087_v55 = vpop.f32.mrf.mxu0 }
 0x2e6   : > { %v17085_v22 = vpop.f32.mrf.mxu1 }
 0x2e7   : > { %18485 = vst [vmem:[#allocation66_spill] sm:$0xff] %v17085_v22  ;;  %v17091_v33 = vpop.f32.mrf.mxu0 }
 0x2e8   : > { %v17089_v13 = vpop.f32.mrf.mxu1 }
 0x2e9   : > { %18486 = vst [vmem:[#allocation67_spill] sm:$0xff] %v17089_v13  ;;  %v17095_v24 = vpop.f32.mrf.mxu0 }
 0x2ea   : > { %v17093_v35 = vpop.f32.mrf.mxu1 }
 0x2eb   : > { %18487 = vst [vmem:[#allocation68_spill] sm:$0xff] %v17093_v35  ;;  %v17099_v40 = vpop.f32.mrf.mxu0 }
 0x2ec   : > { %v17097_v17 = vpop.f32.mrf.mxu1  ;;  %18489 = vst [vmem:[#allocation70_spill] sm:$0xff] %v17099_v40 }
 0x2ed   : > { %18488 = vst [vmem:[#allocation69_spill] sm:$0xff] %v17097_v17  ;;  %v17103_v7 = vpop.f32.mrf.mxu0 }
 0x2ee   : > { %v17101_v34 = vpop.f32.mrf.mxu1  ;;  %18491 = vst [vmem:[#allocation72_spill] sm:$0xff] %v17103_v7 }
 0x2ef   : > { %18490 = vst [vmem:[#allocation71_spill] sm:$0xff] %v17101_v34  ;;  %v17107_v22 = vpop.f32.mrf.mxu0 }
 0x2f0   : > { %v17105_v61 = vpop.f32.mrf.mxu1  ;;  %18493 = vst [vmem:[#allocation74_spill] sm:$0xff] %v17107_v22 }
 0x2f1   : > { %18492 = vst [vmem:[#allocation73_spill] sm:$0xff] %v17105_v61  ;;  %v17111_v13 = vpop.f32.mrf.mxu0 }
 0x2f2   : > { %v17109_v46 = vpop.f32.mrf.mxu1  ;;  %18495 = vst [vmem:[#allocation76_spill] sm:$0xff] %v17111_v13 }
 0x2f3   : > { %18494 = vst [vmem:[#allocation75_spill] sm:$0xff] %v17109_v46  ;;  %v17113_v45 = vpop.f32.mrf.mxu0 }
 0x2f4   : > { %18496 = vst [vmem:[#allocation77_spill] sm:$0xff] %v17113_v45  ;;  %v17115_v35 = vpop.f32.mrf.mxu1 }
 0x2f5   : > { %v17117_v62 = vpop.f32.mrf.mxu0 }
 0x2f6   : > { %18497 = vst [vmem:[#allocation78_spill] sm:$0xff] %v17117_v62  ;;  %v17119_v17 = vpop.f32.mrf.mxu1 }
 0x2f7   : > { %v17121_v12 = vpop.f32.mrf.mxu0 }
 0x2f8   : > { %18498 = vst [vmem:[#allocation79_spill] sm:$0xff] %v17121_v12  ;;  %v17123_v34 = vpop.f32.mrf.mxu1 }
 0x2f9   : > { %v17125_v36 = vpop.f32.mrf.mxu0 }
 0x2fa   : > { %18499 = vst [vmem:[#allocation80_spill] sm:$0xff] %v17125_v36  ;;  %v17127_v61 = vpop.f32.mrf.mxu1 }
 0x2fb   : > { %18500 = vst [vmem:[#allocation81_spill] sm:$0xff] %v17127_v61  ;;  %v17129_v22 = vpop.f32.mrf.mxu0 }
 0x2fc   : > { %18501 = vst [vmem:[#allocation82_spill] sm:$0xff] %v17129_v22  ;;  %v17131_v46 = vpop.f32.mrf.mxu1 }
 0x2fd   : > { %v17133_v13 = vpop.f32.mrf.mxu0 }
 0x2fe   : > { %18502 = vst [vmem:[#allocation83_spill] sm:$0xff] %v17133_v13  ;;  %v17135_v45 = vpop.f32.mrf.mxu1  ;;  %v5227_v13 = vadd.f32 %v16722_v6, %v16660_v32  ;;  %v5237_v32 = vadd.f32 %v16803_v3, %v16744_v2  ;;  %v5239_v6 = vadd.f32 %v16819_v42, %v16758_v58  ;;  %v5843_v58 = vadd.f32 %v16867_v14, %v16823_v23  ;;  %v18510_v23 = vld [vmem:[#allocation20_spill] sm:$0xff] }
 0x2ff   : > { %18503 = vst [vmem:[#allocation84_spill] sm:$0xff] %v17135_v45  ;;  %v17137_v7 = vpop.f32.mrf.mxu0 }
 0x300   : > { %18504 = vst [vmem:[#allocation85_spill] sm:$0xff] %v17137_v7  ;;  %v17139_v62 = vpop.f32.mrf.mxu1  ;;  %v5229_v7 = vadd.f32 %v16739_v30, %v16677_v16  ;;  %v5241_v16 = vadd.f32 %v16832_v28, %v16776_v50 }
 0x301   : > { %v17141_v25 = vpop.f32.mrf.mxu0 }
 0x302   : > { %18505 = vst [vmem:[#allocation86_spill] sm:$0xff] %v17141_v25  ;;  %v17143_v12 = vpop.f32.mrf.mxu1  ;;  %v5231_v25 = vadd.f32 %v16754_v54, %v16692_v8  ;;  %v5539_v54 = vadd.f32 %v16855_v19, %v5229_v7 }
 0x303   : > { %v17145_v40 = vpop.f32.mrf.mxu0 }
 0x304   : > { %18506 = vst [vmem:[#allocation87_spill] sm:$0xff] %v17145_v40  ;;  %v17147_v36 = vpop.f32.mrf.mxu1  ;;  %v5233_v40 = vadd.f32 %v16771_v18, %v16710_v20  ;;  %v5537_v20 = vadd.f32 %v16844_v38, %v5227_v13  ;;  %v5541_v2 = vadd.f32 %v16865_v56, %v5231_v25  ;;  %v5849_v38 = vadd.f32 %v16899_v15, %v5539_v54  ;;  %v18511_v56 = vld [vmem:[#allocation9_spill] sm:$0xff]  ;;  %v18517_v13 = vld [vmem:[#allocation27_spill] sm:$0xff] }
 0x305   : > { %18507 = vst [vmem:[#allocation88_spill] sm:$0xff] %v17147_v36  ;;  %v17149_v61 = vpop.f32.mrf.mxu0  ;;  %v5839_v36 = vadd.f32 %v16846_v39, %v16790_v0  ;;  %v18509_v39 = vld [vmem:[#allocation23_spill] sm:$0xff]  ;;  %v5551_v14 = vadd.f32 %v18511_v56, %v5241_v16  ;;  %v18514_v15 = vld [vmem:[#allocation25_spill] sm:$0xff]  ;;  %v18518_v16 = vld [vmem:[#allocation28_spill] sm:$0xff] }
 0x306   : > { %18508 = vst [vmem:[#allocation89_spill] sm:$0xff] %v17149_v61  ;;  %v17151_v22 = vpop.f32.mrf.mxu1  ;;  %v5235_v61 = vadd.f32 %v16786_v59, %v16726_v21  ;;  %v5841_v21 = vadd.f32 %v16857_v31, %v16808_v11  ;;  %v5543_v50 = vadd.f32 %v16877_v41, %v5233_v40  ;;  %v5845_v59 = vadd.f32 %v16879_v1, %v16836_v27  ;;  %v18512_v1 = vld [vmem:[#allocation33_spill] sm:$0xff]  ;;  %v18516_v40 = vld [vmem:[#allocation26_spill] sm:$0xff]  ;;  %v18519_v54 = vld [vmem:[#allocation39_spill] sm:$0xff] }
 0x307   : > { %v17155_v45 = vpop.f32.mrf.mxu0  ;;  %v6149_v18 = vadd.f32 %v16924_v4, %v5839_v36  ;;  %v5847_v42 = vadd.f32 %v16889_v52, %v5537_v20  ;;  %v5547_v11 = vadd.f32 %v16897_v49, %v5237_v32  ;;  %v5549_v19 = vadd.f32 %v18509_v39, %v5239_v6  ;;  %v18513_v4 = vld [vmem:[#allocation36_spill] sm:$0xff]  ;;  %v18515_v36 = vld [vmem:[#allocation22_spill] sm:$0xff]  ;;  %v18524_v56 = vld [vmem:[#allocation35_spill] sm:$0xff] }
 0x308   : > { %v17173_v30 = vpop.f32.mrf.mxu1  ;;  %v5545_v3 = vadd.f32 %v16887_v60, %v5235_v61  ;;  %v5851_v31 = vadd.f32 %v18510_v23, %v5541_v2  ;;  %v5853_v60 = vadd.f32 %v18512_v1, %v5543_v50  ;;  %v6151_v52 = vadd.f32 %v18513_v4, %v5841_v21  ;;  %v18520_v2 = vld [vmem:[#allocation14_spill] sm:$0xff]  ;;  %v18523_v23 = vld [vmem:[#allocation24_spill] sm:$0xff]  ;;  %v18526_v1 = vld [vmem:[#allocation31_spill] sm:$0xff] }
 0x309   : > { %v17175_v8 = vpop.f32.mrf.mxu0  ;;  %v6459_v28 = vadd.f32 %v16946_v63, %v6149_v18  ;;  %v7080_v63 = vadd.f32 %v17017_v5, %v16993_v44  ;;  %v5857_v7 = vadd.f32 %v18515_v36, %v5547_v11  ;;  %v5859_v61 = vadd.f32 %v18516_v40, %v5549_v19  ;;  %v18521_v5 = vld [vmem:[#allocation29_spill] sm:$0xff] }
 0x30a   : > { %v17198_v41 = vpop.f32.mrf.mxu1  ;;  %v5855_v25 = vadd.f32 %v18514_v15, %v5545_v3  ;;  %v6153_v32 = vadd.f32 %v18517_v13, %v5843_v58  ;;  %v5861_v20 = vadd.f32 %v18518_v16, %v5551_v14  ;;  %v6461_v18 = vadd.f32 %v18519_v54, %v6151_v52  ;;  %v18522_v3 = vld [vmem:[#allocation30_spill] sm:$0xff]  ;;  %v18530_v54 = vld [vmem:[#allocation37_spill] sm:$0xff] }
 0x30b   : > { %v17188_v0 = vpop.f32.mrf.mxu0  ;;  %v6769_v49 = vadd.f32 %v16997_v47, %v6459_v28  ;;  %v7390_v47 = vadd.f32 %v17083_v10, %v7080_v63  ;;  %v6155_v44 = vadd.f32 %v18520_v2, %v5845_v59  ;;  %v6157_v50 = vadd.f32 %v18521_v5, %v5847_v42  ;;  %v18525_v14 = vld [vmem:[#allocation38_spill] sm:$0xff]  ;;  %v18533_v2 = vld [vmem:[#allocation81_spill] sm:$0xff]  ;;  %v18534_v5 = vld [vmem:[#allocation40_spill] sm:$0xff] }
 0x30c   : > { %v6159_v11 = vadd.f32 %v18522_v3, %v5849_v38  ;;  %v17220_v28 = vpop.f32.mrf.mxu1  ;;  %v6771_v58 = vadd.f32 %v17003_v26, %v6461_v18  ;;  %v7082_v19 = vadd.f32 %v17025_v57, %v16999_v53  ;;  %v6161_v59 = vadd.f32 %v18523_v23, %v5851_v31  ;;  %v17236_v26 = vld [vmem:[%s18142_s2] ss:$0 sm:$0xff]  ;;  %v18535_v3 = vld [vmem:[#allocation48_spill] sm:$0xff] }
 0x30d   : > { %v17200_v27 = vpop.f32.mrf.mxu0  ;;  %v7079_v21 = vadd.f32 %v17023_v29, %v6769_v49  ;;  %v7700_v10 = vadd.f32 %v17115_v35, %v7390_v47  ;;  %v6463_v42 = vadd.f32 %v18524_v56, %v6153_v32  ;;  %v6163_v38 = vadd.f32 %v18525_v14, %v5853_v60  ;;  %v18527_v49 = vld [vmem:[#allocation32_spill] sm:$0xff]  ;;  %v18528_v32 = vld [vmem:[#allocation34_spill] sm:$0xff] }
 0x30e   : > { %v6465_v4 = vadd.f32 %v18526_v1, %v6155_v44  ;;  %v7081_v53 = vadd.f32 %v17031_v9, %v6771_v58  ;;  %v7392_v57 = vadd.f32 %v17091_v33, %v7082_v19  ;;  %v6165_v31 = vadd.f32 %v16964_v51, %v5855_v25  ;;  %v17246_v36 = vpop.f32.mrf.mxu1  ;;  %v18529_v51 = vld [vmem:[#allocation45_spill] sm:$0xff]  ;;  %v18536_v58 = vld [vmem:[#allocation47_spill] sm:$0xff]  ;;  %v18537_v19 = vld [vmem:[#allocation44_spill] sm:$0xff] }
 0x30f   : > { %v17211_v6 = vpop.f32.mrf.mxu0  ;;  %v7389_v29 = vadd.f32 %v17087_v55, %v7079_v21  ;;  %v6467_v63 = vadd.f32 %v18527_v49, %v6157_v50  ;;  %v6773_v60 = vadd.f32 %v17009_v37, %v6463_v42  ;;  %v7084_v15 = vadd.f32 %v17033_v43, %v17005_v48  ;;  %v18531_v37 = vld [vmem:[#allocation19_spill] sm:$0xff]  ;;  %v18532_v48 = vld [vmem:[#allocation70_spill] sm:$0xff]  ;;  %v18539_v56 = vld [vmem:[#allocation72_spill] sm:$0xff] }
 0x310   : > { %v7391_v13 = vadd.f32 %v17095_v24, %v7081_v53  ;;  %v7702_v9 = vadd.f32 %v17123_v34, %v7392_v57  ;;  %v6167_v16 = vadd.f32 %v18528_v32, %v5857_v7  ;;  %v6469_v25 = vadd.f32 %v18529_v51, %v6159_v11  ;;  %v18547_v51 = vld [vmem:[#allocation46_spill] sm:$0xff] }
 0x311   : > { %v17222_v39 = vpop.f32.mrf.mxu0  ;;  %v7699_v35 = vadd.f32 %v17119_v17, %v7389_v29  ;;  %v6169_v18 = vadd.f32 %v18530_v54, %v5859_v61  ;;  %v7083_v21 = vadd.f32 %v18531_v37, %v6773_v60  ;;  %v7394_v43 = vadd.f32 %v18532_v48, %v7084_v15  ;;  %v18538_v61 = vld [vmem:[#allocation21_spill] sm:$0xff]  ;;  %v18544_v15 = vld [vmem:[#allocation74_spill] sm:$0xff]  ;;  %v18548_v54 = vld [vmem:[#allocation51_spill] sm:$0xff] }
 0x312   : > { %v7701_v44 = vadd.f32 %v18533_v2, %v7391_v13  ;;  %v6471_v50 = vadd.f32 %v18534_v5, %v6161_v59  ;;  %v6171_v7 = vadd.f32 %v18535_v3, %v5861_v20  ;;  %v6775_v11 = vadd.f32 %v18536_v58, %v6465_v4  ;;  %v18540_v59 = vld [vmem:[#allocation41_spill] sm:$0xff]  ;;  %v18541_v20 = vld [vmem:[#allocation42_spill] sm:$0xff]  ;;  %v18545_v13 = vld [vmem:[#allocation84_spill] sm:$0xff] }
 0x313   : > { %v13406_v52 = vpop.f32.mrf.mxu0  ;;  %v7086_v29 = vadd.f32 %v18538_v61, %v18537_v19  ;;  %v7393_v42 = vadd.f32 %v18539_v56, %v7083_v21  ;;  %v7704_v14 = vadd.f32 %v17131_v46, %v7394_v43  ;;  %v6473_v53 = vadd.f32 %v18540_v59, %v6163_v38  ;;  %v18542_v4 = vld [vmem:[#allocation49_spill] sm:$0xff]  ;;  %v18549_v37 = vld [vmem:[#allocation50_spill] sm:$0xff]  ;;  %v18551_v43 = vld [vmem:[#allocation76_spill] sm:$0xff] }
 0x314   : > { %v8010_v55 = vadd.f32 %v13406_v52, %v7700_v10  ;;  %v17264_v10 = vpop.f32.mrf.mxu1  ;;  %v6475_v57 = vadd.f32 %v18541_v20, %v6165_v31  ;;  %v6481_v38 = vadd.f32 %v18547_v51, %v6171_v7  ;;  %v6777_v31 = vadd.f32 %v18548_v54, %v6467_v63  ;;  %v18553_v3 = vld [vmem:[#allocation10_spill] sm:$0xff] }
 0x315   : > { %v7890_v40 = vpop.f32.mrf.mxu0  ;;  %v6781_v7 = vadd.f32 %v18553_v3, %v6471_v50  ;;  %v18554_v63 = vld [vmem:[#allocation18_spill] sm:$0xff]  ;;  %v18560_v50 = vld [vmem:[#allocation55_spill] sm:$0xff] }
 0x316   : > { %v8041_v33 = vadd.f32 %v17236_v26, %v8010_v55  ;;  %v8009_v17 = vadd.f32 %v7890_v40, %v7699_v35  ;;  %v6477_v35 = vadd.f32 %v18542_v4, %v6167_v16  ;;  %v18543_v55 = vld [vmem:[#allocation11_spill] sm:$0xff]  ;;  %v7396_v40 = vadd.f32 %v18544_v15, %v7086_v29  ;;  %v18550_v16 = vld [vmem:[#allocation13_spill] sm:$0xff] }
 0x317   : > { %v13409_v47 = vpop.f32.mrf.mxu0  ;;  %v7085_v49 = vadd.f32 %v18543_v55, %v6775_v11  ;;  %v7088_v21 = vadd.f32 %v18550_v16, %v18549_v37  ;;  %v6783_v58 = vadd.f32 %v18554_v63, %v6473_v53  ;;  %v18555_v11 = vld [vmem:[#allocation52_spill] sm:$0xff]  ;;  %v18556_v29 = vld [vmem:[#allocation77_spill] sm:$0xff]  ;;  %v18568_v16 = vld [vmem:[#allocation79_spill] sm:$0xff] }
 0x318   : > { %8066 = vst.msk [vmem:[#allocation2 + $0x8] sm:$0xff] %vm8064_vm4, %v8041_v33  ;;  %v8040_v34 = vadd.f32 %v17236_v26, %v8009_v17  ;;  %v8012_v24 = vadd.f32 %v13409_v47, %v7702_v9  ;;  %v7703_v9 = vadd.f32 %v18545_v13, %v7393_v42  ;;  %v18546_v17 = vld [vmem:[#allocation43_spill] sm:$0xff]  ;;  %v17283_v47 = vpop.f32.mrf.mxu1  ;;  %v7087_v19 = vadd.f32 %v18555_v11, %v6777_v31  ;;  %v18561_v53 = vld [vmem:[#allocation56_spill] sm:$0xff] }
 0x319   : > { %v7900_v23 = vpop.f32.mrf.mxu0  ;;  %v6479_v32 = vadd.f32 %v18546_v17, %v6169_v18  ;;  %v7395_v2 = vadd.f32 %v18551_v43, %v7085_v49  ;;  %v18552_v18 = vld [vmem:[#allocation7_spill] sm:$0xff]  ;;  %v6787_v20 = vadd.f32 %v18560_v50, %v6477_v35  ;;  %v18563_v13 = vld [vmem:[#allocation88_spill] sm:$0xff]  ;;  %v18565_v17 = vld [vmem:[#allocation57_spill] sm:$0xff] }
 0x31a   : > { %8065 = vst.msk [vmem:[#allocation2] sm:$0xff] %vm8064_vm4, %v8040_v34  ;;  %v8043_v1 = vadd.f32 %v17236_v26, %v8012_v24  ;;  %v8011_v52 = vadd.f32 %v7900_v23, %v7701_v44  ;;  %v7706_v44 = vadd.f32 %v17139_v62, %v7396_v40  ;;  %v6779_v5 = vadd.f32 %v18552_v18, %v6469_v25  ;;  %v18559_v25 = vld [vmem:[#allocation53_spill] sm:$0xff]  ;;  %v17302_v55 = vpop.f32.mrf.mxu1  ;;  %v18566_v35 = vld [vmem:[#allocation59_spill] sm:$0xff]  ;;  %v18567_v31 = vld [vmem:[#allocation60_spill] sm:$0xff] }
 0x31b   : > { %v13412_v60 = vpop.f32.mrf.mxu0  ;;  %v7398_v23 = vadd.f32 %v18556_v29, %v7088_v21  ;;  %v7705_v56 = vadd.f32 %v17143_v12, %v7395_v2  ;;  %v18562_v12 = vld [vmem:[#allocation78_spill] sm:$0xff]  ;;  %v6789_v54 = vadd.f32 %v18566_v35, %v6479_v32  ;;  %v7091_v37 = vadd.f32 %v18567_v31, %v6781_v7  ;;  %v18570_v18 = vld [vmem:[#allocation61_spill] sm:$0xff]  ;;  %v18571_v3 = vld [vmem:[#allocation63_spill] sm:$0xff] }
 0x31c   : > { %8068 = vst.msk [vmem:[#allocation2 + $0x18] sm:$0xff] %vm8064_vm4, %v8043_v1  ;;  %v8042_v46 = vadd.f32 %v17236_v26, %v8011_v52  ;;  %v8014_v33 = vadd.f32 %v13412_v60, %v7704_v14  ;;  %v18557_v14 = vld [vmem:[#allocation16_spill] sm:$0xff]  ;;  %v18558_v52 = vld [vmem:[#allocation17_spill] sm:$0xff]  ;;  %v7089_v4 = vadd.f32 %v18561_v53, %v6779_v5  ;;  %v7397_v40 = vadd.f32 %v18562_v12, %v7087_v19  ;;  %v18577_v50 = vld [vmem:[#allocation82_spill] sm:$0xff] }
 0x31d   : > { %v7910_v48 = vpop.f32.mrf.mxu0  ;;  %v6785_v1 = vadd.f32 %v18557_v14, %v6475_v57  ;;  %v7090_v59 = vadd.f32 %v18559_v25, %v18558_v52  ;;  %v17319_v63 = vadd.f32 %v18571_v3, %v6481_v38  ;;  %v18572_v32 = vld [vmem:[#allocation64_spill] sm:$0xff]  ;;  %v18575_v38 = vld [vmem:[#allocation65_spill] sm:$0xff]  ;;  %v18586_v3 = vld [vmem:[#allocation86_spill] sm:$0xff] }
 0x31e   : > { %8067 = vst.msk [vmem:[#allocation2 + $0x10] sm:$0xff] %vm8064_vm4, %v8042_v46  ;;  %v8045_v34 = vadd.f32 %v17236_v26, %v8014_v33  ;;  %v8013_v24 = vadd.f32 %v7910_v48, %v7703_v9  ;;  %v7708_v9 = vadd.f32 %v18563_v13, %v7398_v23  ;;  %v18564_v33 = vld [vmem:[#allocation15_spill] sm:$0xff]  ;;  %v7707_v43 = vadd.f32 %v17151_v22, %v7397_v40  ;;  %v18573_v7 = vld [vmem:[#allocation80_spill] sm:$0xff]  ;;  %v18578_v40 = vld [vmem:[#allocation54_spill] sm:$0xff] }
 0x31f   : > { %v13415_v61 = vpop.f32.mrf.mxu0  ;;  %v7092_v51 = vadd.f32 %v18565_v17, %v18564_v33  ;;  %v7400_v21 = vadd.f32 %v18568_v16, %v7090_v59  ;;  %v7093_v11 = vadd.f32 %v18572_v32, %v6783_v58  ;;  %v7399_v19 = vadd.f32 %v18573_v7, %v7089_v4  ;;  %v18574_v52 = vld [vmem:[#allocation12_spill] sm:$0xff]  ;;  %v18576_v59 = vld [vmem:[#allocation66_spill] sm:$0xff]  ;;  %v18579_v13 = vld [vmem:[#allocation67_spill] sm:$0xff] }
 0x320   : > { %8070 = vst.msk [vmem:[#allocation2 + $0x28] sm:$0xff] %vm8064_vm4, %v8045_v34  ;;  %v8044_v62 = vadd.f32 %v17236_v26, %v8013_v24  ;;  %v8016_v42 = vadd.f32 %v13415_v61, %v7706_v44  ;;  %v18569_v24 = vld [vmem:[#allocation8_spill] sm:$0xff]  ;;  %v17323_v61 = vpop.f32.mrf.mxu1  ;;  %v7096_v25 = vadd.f32 %v18575_v38, %v18574_v52  ;;  %v7095_v58 = vadd.f32 %v18576_v59, %v6785_v1  ;;  %v18581_v1 = vld [vmem:[#allocation58_spill] sm:$0xff]  ;;  %v18582_v33 = vld [vmem:[#allocation69_spill] sm:$0xff] }
 0x321   : > { %v7920_v49 = vpop.f32.mrf.mxu0  ;;  %v8090_v60 = vld [vmem:[#allocation2] ss:$2 sm:$0xff]  ;;  %v8112_v15 = vld [vmem:[#allocation2 + $0x1] ss:$2 sm:$0xff]  ;;  %v7094_v5 = vadd.f32 %v18570_v18, %v18569_v24  ;;  %v7402_v53 = vadd.f32 %v18577_v50, %v7092_v51  ;;  %v7709_v4 = vadd.f32 %v17198_v41, %v7399_v19  ;;  %v7100_v17 = vadd.f32 %v18582_v33, %v18581_v1 }
 0x322   : > { %8069 = vst.msk [vmem:[#allocation2 + $0x20] sm:$0xff] %vm8064_vm4, %v8044_v62  ;;  %v8047_v57 = vadd.f32 %v17236_v26, %v8016_v42  ;;  %v8015_v46 = vadd.f32 %v7920_v49, %v7705_v56  ;;  %v8133_v34 = vmax.f32 %v8090_v60, %v8112_v15  ;;  %v7710_v56 = vadd.f32 %v17173_v30, %v7400_v21  ;;  %v18583_v51 = vld [vmem:[#allocation83_spill] sm:$0xff]  ;;  %v17341_v35 = vpop.f32.mrf.mxu1  ;;  %v18585_v24 = vld [vmem:[#allocation85_spill] sm:$0xff] }
 0x323   : > { %v13418_v48 = vpop.f32.mrf.mxu0  ;;  %v7401_v41 = vadd.f32 %v18583_v51, %v7091_v37  ;;  %v7712_v21 = vadd.f32 %v17220_v28, %v7402_v53  ;;  %v7404_v18 = vadd.f32 %v18585_v24, %v7094_v5  ;;  %v7403_v37 = vadd.f32 %v18586_v3, %v7093_v11 }
 0x324   : > { %8072 = vst.msk [vmem:[#allocation2 + $0x38] sm:$0xff] %vm8064_vm4, %v8047_v57  ;;  %v8046_v2 = vadd.f32 %v17236_v26, %v8015_v46  ;;  %v8018_v44 = vadd.f32 %v13418_v48, %v7708_v9  ;;  %v7098_v9 = vadd.f32 %v18579_v13, %v18578_v40  ;;  %v18580_v57 = vld [vmem:[#allocation68_spill] sm:$0xff]  ;;  %v17359_v5 = vpop.f32.mrf.mxu1 }
 0x325   : > { %v7930_v29 = vpop.f32.mrf.mxu0  ;;  %v8092_v22 = vld [vmem:[#allocation2 + $0x10] ss:$2 sm:$0xff]  ;;  %v8114_v23 = vld [vmem:[#allocation2 + $0x11] ss:$2 sm:$0xff]  ;;  %v7097_v46 = vadd.f32 %v18580_v57, %v6787_v20  ;;  %v7711_v19 = vadd.f32 %v17246_v36, %v7401_v41  ;;  %v7714_v38 = vadd.f32 %v17264_v10, %v7404_v18 }
 0x326   : > { %8071 = vst.msk [vmem:[#allocation2 + $0x30] sm:$0xff] %vm8064_vm4, %v8046_v2  ;;  %v8049_v62 = vadd.f32 %v17236_v26, %v8018_v44  ;;  %v8017_v42 = vadd.f32 %v7930_v29, %v7707_v43  ;;  %v8147_v14 = vmax.f32 %v8133_v34, %v8092_v22  ;;  %v8134_v15 = vmax.f32 %v8092_v22, %v8114_v23  ;;  %v18584_v34 = vld [vmem:[#allocation71_spill] sm:$0xff] }
 0x327   : > { %v13421_v49 = vpop.f32.mrf.mxu0  ;;  %v17347_v20 = vadd.f32 %v18584_v34, %v6789_v54 }
 0x328   : > { %8074 = vst.msk [vmem:[#allocation2 + $0x48] sm:$0xff] %vm8064_vm4, %v8049_v62  ;;  %v8048_v30 = vadd.f32 %v17236_v26, %v8017_v42  ;;  %v8020_v60 = vadd.f32 %v13421_v49, %v7710_v56  ;;  %v8161_v12 = vmax.f32 %v8147_v14, %v8114_v23  ;;  %v18587_v23 = vld [vmem:[#allocation87_spill] sm:$0xff]  ;;  %v18588_v62 = vld [vmem:[#allocation89_spill] sm:$0xff]  ;;  %v7408_v42 = vadd.f32 %v17155_v45, %v7098_v9  ;;  %v8184_v9 = vld [vmem:[%s18143_s3 + $0x8] sm:$0x3] }
 0x329   : > { %v7940_v31 = vpop.f32.mrf.mxu0  ;;  %v8094_v16 = vld [vmem:[#allocation2 + $0x20] ss:$2 sm:$0xff]  ;;  %v8116_v2 = vld [vmem:[#allocation2 + $0x21] ss:$2 sm:$0xff]  ;;  %v7406_v56 = vadd.f32 %v18587_v23, %v7096_v25  ;;  %v7405_v54 = vadd.f32 %v18588_v62, %v7095_v58  ;;  %v7713_v25 = vadd.f32 %v17283_v47, %v7403_v37  ;;  %v17375_v47 = vpop.f32.mrf.mxu1 }
 0x32a   : > { %8073 = vst.msk [vmem:[#allocation2 + $0x40] sm:$0xff] %vm8064_vm4, %v8048_v30  ;;  %v8051_v48 = vadd.f32 %v17236_v26, %v8020_v60  ;;  %v8019_v43 = vadd.f32 %v7940_v31, %v7709_v4  ;;  %v8148_v44 = vmax.f32 %v8134_v15, %v8094_v16  ;;  %v17351_v7 = vmax.f32 %v8161_v12, 0.0 }
 0x32b   : > { %v13424_v32 = vpop.f32.mrf.mxu0  ;;  %v8135_v14 = vmax.f32 %v8094_v16, %v8116_v2  ;;  %v7407_v12 = vadd.f32 %v17175_v8, %v7097_v46  ;;  %v7716_v40 = vadd.f32 %v17302_v55, %v7406_v56  ;;  %v7410_v46 = vadd.f32 %v17188_v0, %v7100_v17  ;;  %v7680_v18 = vpop.f32.mrf.mxu1 }
 0x32c   : > { %8076 = vst.msk [vmem:[#allocation2 + $0x58] sm:$0xff] %vm8064_vm4, %v8051_v48  ;;  %v8050_v28 = vadd.f32 %v17236_v26, %v8019_v43  ;;  %v8022_v29 = vadd.f32 %v13424_v32, %v7712_v21  ;;  %v8162_v22 = vmax.f32 %v8148_v44, %v8116_v2  ;;  %v8192_v45 = vrot.slane %v17351_v7, 1  ;;  %v8183_v43 = vld [vmem:[%s18143_s3] sm:$0xff]  ;;  %v11605_v2 = vld [vmem:[%s18143_s3 + $0x68] sm:$0x3] }
 0x32d   : > { %v7950_v11 = vpop.f32.mrf.mxu0  ;;  %v8096_v52 = vld [vmem:[#allocation2 + $0x30] ss:$2 sm:$0xff]  ;;  %v8118_v53 = vld [vmem:[#allocation2 + $0x31] ss:$2 sm:$0xff]  ;;  %v8582_v4 = vrot.slane %v17351_v7, 4  ;;  %v7715_v16 = vadd.f32 %v17323_v61, %v7405_v54  ;;  %v18589_v17 = vmov 0.0   ;;  %v7718_v24 = vadd.f32 %v17341_v35, %v7408_v42 }
 0x32e   : > { %8075 = vst.msk [vmem:[#allocation2 + $0x50] sm:$0xff] %vm8064_vm4, %v8050_v28  ;;  %v8053_v36 = vadd.f32 %v17236_v26, %v8022_v29  ;;  %v8021_v59 = vadd.f32 %v7950_v11, %v7711_v19  ;;  %v17364_v50 = vmax.f32 %v8162_v22, 0.0  ;;  %v8149_v49 = vmax.f32 %v8135_v14, %v8096_v52  ;;  %v11604_v42 = vld [vmem:[%s18143_s3 + $0x60] sm:$0xff] }
 0x32f   : > { %v13427_v58 = vpop.f32.mrf.mxu0  ;;  %v8136_v57 = vmax.f32 %v8096_v52, %v8118_v53  ;;  %v7717_v23 = vadd.f32 %v17359_v5, %v7407_v12 }
 0x330   : > { %8078 = vst.msk [vmem:[#allocation2 + $0x68] sm:$0xff] %vm8064_vm4, %v8053_v36  ;;  %v8052_v10 = vadd.f32 %v17236_v26, %v8021_v59  ;;  %v8024_v30 = vadd.f32 %v13427_v58, %v7714_v38  ;;  %v8193_v60 = vrot.slane %v17364_v50, 1  ;;  %v8583_v15 = vrot.slane %v17364_v50, 4  ;;  %v18590_v36 = vld [vmem:[#allocation62_spill] sm:$0xff]  ;;  %v18591_v59 = vld [vmem:[#allocation73_spill] sm:$0xff] }
 0x331   : > { %v7960_v13 = vpop.f32.mrf.mxu0  ;;  %v8163_v1 = vmax.f32 %v8149_v49, %v8118_v53  ;;  %v8098_v33 = vld [vmem:[#allocation2 + $0x40] ss:$2 sm:$0xff]  ;;  %v8120_v51 = vld [vmem:[#allocation2 + $0x41] ss:$2 sm:$0xff]  ;;  %v7102_v53 = vadd.f32 %v18591_v59, %v18590_v36  ;;  %v7409_v49 = vadd.f32 %v17200_v27, %v17347_v20  ;;  %v8381_v36 = vrot.slane %v17364_v50, 2 }
 0x332   : > { %8077 = vst.msk [vmem:[#allocation2 + $0x60] sm:$0xff] %vm8064_vm4, %v8052_v10  ;;  %v8055_v41 = vadd.f32 %v17236_v26, %v8024_v30  ;;  %v8023_v31 = vadd.f32 %v7960_v13, %v7713_v25  ;;  %v8194_v8 = vsel %vm8191_vm5, %v8192_v45, %v8193_v60  ;;  %v8584_v55 = vsel %vm8581_vm6, %v8582_v4, %v8583_v15  ;;  %v18592_v25 = vld [vmem:[#allocation75_spill] sm:$0xff]  ;;  %v13401_v45 = vpop.f32.mrf.mxu1 }
 0x333   : > { %v13430_v21 = vpop.f32.mrf.mxu0  ;;  %13445 = vmatmul.mubr.msk.f32.vlgmr.msra.gmra.mxu1 %vm8064_vm4, %v8194_v8  ;;  %13497 = vmatmul.mubr.msk.f32.vlgmr.msra.gmra.mxu0 %vm8064_vm4, %v8584_v55  ;;  %v17388_v48 = vmax.f32 %v8163_v1, 0.0  ;;  %v8150_v44 = vmax.f32 %v8136_v57, %v8098_v33  ;;  %v8137_v34 = vmax.f32 %v8098_v33, %v8120_v51  ;;  %v7101_v58 = vadd.f32 %v18592_v25, %v17319_v63 }
 0x334   : > { %8080 = vst.msk [vmem:[#allocation2 + $0x78] sm:$0xff] %vm8064_vm4, %v8055_v41  ;;  %v8054_v0 = vadd.f32 %v17236_v26, %v8023_v31  ;;  %v8026_v61 = vadd.f32 %v13430_v21, %v7716_v40  ;;  %13454 = vmatpush3.msk.msra.mxu1 %vm8203_vm2, %v8184_v9  ;;  %13447 = vmatprep.mubr.msk.f32.mxu1 %vm13903_vm3, %v18589_v17 }
 0x335   : > { %v7970_v3 = vpop.f32.mrf.mxu0  ;;  %13499 = vmatprep.mubr.msk.f32.mxu0 %vm13903_vm3, %v18589_v17  ;;  %v17405_v37 = vrot.slane %v17388_v48, 1  ;;  %v17408_v32 = vrot.slane %v17388_v48, 4  ;;  %13455 = vmatprep.subr.mxu1 %v18589_v17  ;;  %v8164_v19 = vmax.f32 %v8150_v44, %v8120_v51  ;;  %v8100_v28 = vld [vmem:[#allocation2 + $0x50] ss:$2 sm:$0xff]  ;;  %v8122_v14 = vld [vmem:[#allocation2 + $0x51] ss:$2 sm:$0xff]  ;;  %v7720_v10 = vadd.f32 %v17375_v47, %v7410_v46 }
 0x336   : > { %8079 = vst.msk [vmem:[#allocation2 + $0x70] sm:$0xff] %vm8064_vm4, %v8054_v0  ;;  %v8057_v29 = vadd.f32 %v17236_v26, %v8026_v61  ;;  %v8025_v35 = vadd.f32 %v7970_v3, %v7715_v16  ;;  %13456 = vmatpush3.msra.mxu1 %v8183_v43  ;;  %13519 = vmatpush3.msk.msra.mxu0 %vm8203_vm2, %v11605_v2  ;;  %v11581_v16 = vld [vmem:[%s18143_s3 + $0x28] sm:$0x3] }
 0x337   : > { %v8151_v22 = vmax.f32 %v8137_v34, %v8100_v28  ;;  %v13433_v56 = vpop.f32.mrf.mxu0  ;;  %v8196_v62 = vsel %vm8191_vm5, %v8193_v60, %v17405_v37  ;;  %v8586_v54 = vsel %vm8581_vm6, %v8583_v15, %v17408_v32  ;;  %13520 = vmatprep.subr.mxu0 %v18589_v17  ;;  %13466 = vmatprep.subr.mxu1 %v18589_v17  ;;  %v17424_v11 = vmax.f32 %v8164_v19, 0.0  ;;  %v11617_v3 = vld [vmem:[%s18143_s3 + $0x88] sm:$0x3] }
 0x338   : > { %8082 = vst.msk [vmem:[#allocation2 + $0x88] sm:$0xff] %vm8064_vm4, %v8057_v29  ;;  %v8056_v5 = vadd.f32 %v17236_v26, %v8025_v35  ;;  %v8028_v52 = vadd.f32 %v13433_v56, %v7718_v24  ;;  %13448 = vmatmul.mubr.msk.f32.gmra.mxu1 %vm8064_vm4, %v8196_v62  ;;  %13500 = vmatmul.mubr.msk.f32.gmra.mxu0 %vm8064_vm4, %v8586_v54 }
 0x339   : > { %v8165_v38 = vmax.f32 %v8151_v22, %v8122_v14  ;;  %v7980_v4 = vpop.f32.mrf.mxu0  ;;  %13450 = vmatprep.mubr.msk.f32.mxu1 %vm13903_vm3, %v18589_v17  ;;  %13502 = vmatprep.mubr.msk.f32.mxu0 %vm13903_vm3, %v18589_v17  ;;  %v8102_v63 = vld [vmem:[#allocation2 + $0x60] ss:$2 sm:$0xff]  ;;  %v8124_v15 = vld [vmem:[#allocation2 + $0x61] ss:$2 sm:$0xff]  ;;  %v7412_v12 = vadd.f32 %v17211_v6, %v7102_v53  ;;  %v8777_v13 = vrot.slane %v17424_v11, 1  ;;  %v8138_v27 = vmax.f32 %v8100_v28, %v8122_v14  ;;  %v7690_v6 = vpop.f32.mrf.mxu1 }
 0x33a   : > { %8081 = vst.msk [vmem:[#allocation2 + $0x80] sm:$0xff] %vm8064_vm4, %v8056_v5  ;;  %v8059_v30 = vadd.f32 %v17236_v26, %v8028_v52  ;;  %v8027_v60 = vadd.f32 %v7980_v4, %v7717_v23  ;;  %13521 = vmatpush3.msra.mxu0 %v11604_v42  ;;  %v7719_v20 = vadd.f32 %v7680_v18, %v7409_v49  ;;  %v11580_v18 = vld [vmem:[%s18143_s3 + $0x20] sm:$0xff]  ;;  %v8975_v59 = vrot.slane %v17424_v11, 3 }
 0x33b   : > { %v13436_v40 = vpop.f32.mrf.mxu0  ;;  %v17445_v9 = vmax.f32 %v8165_v38, 0.0  ;;  %13544 = vmatprep.subr.mxu0 %v18589_v17  ;;  %v8139_v51 = vmax.f32 %v8102_v63, %v8124_v15  ;;  %v8152_v41 = vmax.f32 %v8138_v27, %v8102_v63  ;;  %v7411_v31 = vadd.f32 %v17222_v39, %v7101_v58  ;;  %v11616_v14 = vld [vmem:[%s18143_s3 + $0x80] sm:$0xff] }
 0x33c   : > { %8084 = vst.msk [vmem:[#allocation2 + $0x98] sm:$0xff] %vm8064_vm4, %v8059_v30  ;;  %v8058_v47 = vadd.f32 %v17236_v26, %v8027_v60  ;;  %v8030_v57 = vadd.f32 %v13436_v40, %v7720_v10  ;;  %13451 = vmatmul.mubr.msk.f32.gmra.mxu1 %vm8064_vm4, %v17405_v37  ;;  %13503 = vmatmul.mubr.msk.f32.gmra.mxu0 %vm8064_vm4, %v17408_v32  ;;  %v8380_v30 = vrot.slane %v17351_v7, 2  ;;  %v17528_v60 = vrot.slane %v17388_v48, 3 }
 0x33d   : > { %v7990_v1 = vpop.f32.mrf.mxu0  ;;  %13457 = vmatprep.mubr.msk.f32.mxu1 %vm13903_vm3, %v18589_v17  ;;  %13522 = vmatprep.mubr.msk.f32.mxu0 %vm13903_vm3, %v18589_v17  ;;  %v8104_v33 = vld [vmem:[#allocation2 + $0x70] ss:$2 sm:$0xff]  ;;  %v7722_v8 = vadd.f32 %v13401_v45, %v7412_v12  ;;  %v8126_v21 = vld [vmem:[#allocation2 + $0x71] ss:$2 sm:$0xff]  ;;  %v8778_v2 = vsel %vm8191_vm5, %v17405_v37, %v8777_v13  ;;  %v8779_v44 = vrot.slane %v17445_v9, 1  ;;  %v8166_v61 = vmax.f32 %v8152_v41, %v8124_v15 }
 0x33e   : > { %8083 = vst.msk [vmem:[#allocation2 + $0x90] sm:$0xff] %vm8064_vm4, %v8058_v47  ;;  %v8061_v55 = vadd.f32 %v17236_v26, %v8030_v57  ;;  %v8029_v46 = vadd.f32 %v7990_v1, %v7719_v20  ;;  %v8153_v0 = vmax.f32 %v8139_v51, %v8104_v33  ;;  %v7721_v39 = vadd.f32 %v7690_v6, %v7411_v31  ;;  %v11587_v12 = vld [vmem:[%s18143_s3 + $0x38] sm:$0x3]  ;;  %v11586_v1 = vld [vmem:[%s18143_s3 + $0x30] sm:$0xff] }
 0x33f   : > { %v13439_v43 = vpop.f32.mrf.mxu0  ;;  %v8140_v29 = vmax.f32 %v8104_v33, %v8126_v21  ;;  %v17481_v35 = vmax.f32 %v8166_v61, 0.0  ;;  %v8780_v56 = vsel %vm8191_vm5, %v8777_v13, %v8779_v44  ;;  %v8977_v58 = vrot.slane %v17445_v9, 3  ;;  %v11629_v33 = vld [vmem:[%s18143_s3 + $0xa8] sm:$0x3] }
 0x340   : > { %8086 = vst.msk [vmem:[#allocation2 + $0xa8] sm:$0xff] %vm8064_vm4, %v8061_v55  ;;  %v8060_v34 = vadd.f32 %v17236_v26, %v8029_v46  ;;  %v8032_v24 = vadd.f32 %v13439_v43, %v7722_v8  ;;  %13458 = vmatmul.mubr.msk.f32.vlgmr.msra.gmra.mxu1 %vm8064_vm4, %v17351_v7  ;;  %13523 = vmatmul.mubr.msk.f32.vlgmr.msra.gmra.mxu0 %vm8064_vm4, %v8778_v2  ;;  %v17544_v57 = vrot.slane %v17388_v48, 2 }
 0x341   : > { %13467 = vmatpush3.msk.msra.mxu1 %vm8203_vm2, %v11581_v16  ;;  %v8000_v37 = vpop.f32.mrf.mxu0  ;;  %13460 = vmatprep.mubr.msk.f32.mxu1 %vm13903_vm3, %v18589_v17  ;;  %v8106_v19 = vld [vmem:[#allocation2 + $0x80] ss:$2 sm:$0xff]  ;;  %v8128_v28 = vld [vmem:[#allocation2 + $0x81] ss:$2 sm:$0xff]  ;;  %v8167_v54 = vmax.f32 %v8153_v0, %v8126_v21  ;;  %v9268_v52 = vrot.slane %v17481_v35, 1  ;;  %v9466_v10 = vrot.slane %v17481_v35, 3  ;;  %v8382_v20 = vsel %vm8379_vm8, %v8380_v30, %v8381_v36 }
 0x342   : > { %8085 = vst.msk [vmem:[#allocation2 + $0xa0] sm:$0xff] %vm8064_vm4, %v8060_v34  ;;  %v8063_v22 = vadd.f32 %v17236_v26, %v8032_v24  ;;  %v8031_v23 = vadd.f32 %v8000_v37, %v7721_v39  ;;  %13525 = vmatprep.mubr.msk.f32.mxu0 %vm13903_vm3, %v18589_v17  ;;  %13468 = vmatprep.subr.mxu1 %v18589_v17  ;;  %v11628_v21 = vld [vmem:[%s18143_s3 + $0xa0] sm:$0xff]  ;;  %v8482_v0 = vrot.slane %v17364_v50, 3  ;;  %v8481_v39 = vrot.slane %v17351_v7, 3  ;;  %v11598_v24 = vld [vmem:[%s18143_s3 + $0x50] sm:$0xff] }
 0x343   : > { %13469 = vmatpush3.msra.mxu1 %v11580_v18  ;;  %13545 = vmatpush3.msk.msra.mxu0 %vm8203_vm2, %v11617_v3  ;;  %v8154_v62 = vmax.f32 %v8140_v29, %v8106_v19  ;;  %v8141_v5 = vmax.f32 %v8106_v19, %v8128_v28  ;;  %v17511_v25 = vsel %vm8191_vm5, %v8779_v44, %v9268_v52  ;;  %v17516_v49 = vmax.f32 %v8167_v54, 0.0  ;;  %v11641_v7 = vld [vmem:[%s18143_s3 + $0xc8] sm:$0x3]  ;;  %v11640_v3 = vld [vmem:[%s18143_s3 + $0xc0] sm:$0xff] }
 0x344   : > { %8089 = vst.msk [vmem:[#allocation2 + $0xb8] sm:$0xf] %vm8088_vm7, %v8063_v22  ;;  %v8062_v42 = vadd.f32 %v17236_v26, %v8031_v23  ;;  %13461 = vmatmul.mubr.msk.f32.gmra.mxu1 %vm8064_vm4, %v17364_v50  ;;  %13526 = vmatmul.mubr.msk.f32.gmra.mxu0 %vm8064_vm4, %v8780_v56  ;;  %v17533_v63 = vsel %vm8480_vm9, %v8977_v58, %v9466_v10  ;;  %v11599_v50 = vld [vmem:[%s18143_s3 + $0x58] sm:$0x3]  ;;  %v9367_v37 = vrot.slane %v17481_v35, 2  ;;  %v8878_v19 = vrot.slane %v17445_v9, 2 }
 0x345   : > { %13463 = vmatprep.mubr.msk.f32.mxu1 %vm13903_vm3, %v18589_v17  ;;  %13528 = vmatprep.mubr.msk.f32.mxu0 %vm13903_vm3, %v18589_v17  ;;  %v8108_v38 = vld [vmem:[#allocation2 + $0x90] ss:$2 sm:$0xff]  ;;  %v8168_v26 = vmax.f32 %v8154_v62, %v8128_v28  ;;  %v8130_v45 = vld [vmem:[#allocation2 + $0x91] ss:$2 sm:$0xff]  ;;  %v8976_v47 = vsel %vm8480_vm9, %v17528_v60, %v8975_v59  ;;  %v17547_v6 = vrot.slane %v17516_v49, 2  ;;  %v8384_v46 = vsel %vm8379_vm8, %v8381_v36, %v17544_v57  ;;  %v11652_v56 = vld [vmem:[%s18143_s3 + $0xe0] sm:$0xff] }
 0x346   : > { %8087 = vst.msk [vmem:[#allocation2 + $0xb0] sm:$0xff] %vm8064_vm4, %v8062_v42  ;;  %13546 = vmatprep.subr.mxu0 %v18589_v17  ;;  %13479 = vmatprep.subr.mxu1 %v18589_v17  ;;  %v8155_v53 = vmax.f32 %v8141_v5, %v8108_v38  ;;  %v8142_v13 = vmax.f32 %v8108_v38, %v8130_v45  ;;  %v11611_v28 = vld [vmem:[%s18143_s3 + $0x78] sm:$0x3]  ;;  %v11610_v22 = vld [vmem:[%s18143_s3 + $0x70] sm:$0xff]  ;;  %v11653_v23 = vld [vmem:[%s18143_s3 + $0xe8] sm:$0x3] }
 0x347   : > { %13547 = vmatpush3.msra.mxu0 %v11616_v14  ;;  %v17514_v4 = vmax.f32 %v8168_v26, 0.0  ;;  %v8978_v16 = vsel %vm8480_vm9, %v8975_v59, %v8977_v58  ;;  %v8483_v34 = vsel %vm8480_vm9, %v8481_v39, %v8482_v0  ;;  %v8485_v18 = vsel %vm8480_vm9, %v8482_v0, %v17528_v60  ;;  %v11623_v14 = vld [vmem:[%s18143_s3 + $0x98] sm:$0x3]  ;;  %v11665_v36 = vld [vmem:[%s18143_s3 + $0x108] sm:$0x3] }
 0x348   : > { %13464 = vmatmul.mubr.msk.f32.gmra.mxu1 %vm8064_vm4, %v17388_v48  ;;  %13529 = vmatmul.mubr.msk.f32.gmra.mxu0 %vm8064_vm4, %v8779_v44  ;;  %v8169_v40 = vmax.f32 %v8155_v53, %v8130_v45  ;;  %v9368_v29 = vsel %vm8379_vm8, %v8878_v19, %v9367_v37  ;;  %v8876_v62 = vrot.slane %v17424_v11, 2  ;;  %v9565_v54 = vrot.slane %v17481_v35, 4  ;;  %v11659_v39 = vld [vmem:[%s18143_s3 + $0xf8] sm:$0x3] }
 0x349   : > { %13470 = vmatprep.mubr.msk.f32.mxu1 %vm13903_vm3, %v18589_v17  ;;  %13548 = vmatprep.mubr.msk.f32.mxu0 %vm13903_vm3, %v18589_v17  ;;  %v8144_v15 = vld [vmem:[#allocation2 + $0xa0] ss:$2 sm:$0xff]  ;;  %v9858_v27 = vrot.slane %v17514_v4, 2  ;;  %v8158_v41 = vld [vmem:[#allocation2 + $0xa1] ss:$2 sm:$0xff]  ;;  %v9076_v42 = vrot.slane %v17445_v9, 4 }
 0x34a   : > { %13570 = vmatprep.subr.mxu0 %v18589_v17  ;;  %v8156_v51 = vmax.f32 %v8142_v13, %v8144_v15  ;;  %v17569_v8 = vmax.f32 %v8169_v40, 0.0  ;;  %v8877_v5 = vsel %vm8379_vm8, %v17544_v57, %v8876_v62  ;;  %v17706_v26 = vrot.slane %v17516_v49, 4  ;;  %v11635_v15 = vld [vmem:[%s18143_s3 + $0xb8] sm:$0x3]  ;;  %v11634_v40 = vld [vmem:[%s18143_s3 + $0xb0] sm:$0xff] }
 0x34b   : > { %v17564_v31 = vsel %vm8379_vm8, %v17547_v6, %v9858_v27  ;;  %v9566_v38 = vsel %vm8581_vm6, %v9076_v42, %v9565_v54  ;;  %v8879_v59 = vsel %vm8379_vm8, %v8876_v62, %v8878_v19  ;;  %v9074_v45 = vrot.slane %v17424_v11, 4  ;;  %v11677_v13 = vld [vmem:[%s18143_s3 + $0x128] sm:$0x3] }
 0x34c   : > { %13471 = vmatmul.mubr.msk.f32.vlgmr.msra.gmra.mxu1 %vm8064_vm4, %v8382_v20  ;;  %13549 = vmatmul.mubr.msk.f32.vlgmr.msra.gmra.mxu0 %vm8064_vm4, %v8976_v47  ;;  %v8170_v55 = vmax.f32 %v8156_v51, %v8158_v41  ;;  %v17589_v2 = vrot.slane %v17569_v8, 1  ;;  %v9568_v53 = vsel %vm8581_vm6, %v9565_v54, %v17706_v26  ;;  %v9759_v30 = vrot.slane %v17514_v4, 1  ;;  %v11676_v47 = vld [vmem:[%s18143_s3 + $0x120] sm:$0xff]  ;;  %v11646_v41 = vld [vmem:[%s18143_s3 + $0xd0] sm:$0xff]  ;;  %v11683_v54 = vld [vmem:[%s18143_s3 + $0x138] sm:$0x3] }
 0x34d   : > { %13480 = vmatpush3.msk.msra.mxu1 %vm8203_vm2, %v11587_v12  ;;  %13473 = vmatprep.mubr.msk.f32.mxu1 %vm13903_vm3, %v18589_v17  ;;  %v17798_v51 = vrot.slane %v17569_v8, 3  ;;  %v10058_v62 = vrot.slane %v17569_v8, 4 }
 0x34e   : > { %13551 = vmatprep.mubr.msk.f32.mxu0 %vm13903_vm3, %v18589_v17  ;;  %13481 = vmatprep.subr.mxu1 %v18589_v17  ;;  %v17580_v43 = vmax.f32 %v8170_v55, 0.0  ;;  %v9762_v20 = vsel %vm8191_vm5, %v9759_v30, %v17589_v2  ;;  %v11689_v55 = vld [vmem:[%s18143_s3 + $0x148] sm:$0x3] }
 0x34f   : > { %13482 = vmatpush3.msra.mxu1 %v11586_v1  ;;  %13571 = vmatpush3.msk.msra.mxu0 %vm8203_vm2, %v11629_v33  ;;  %v11647_v1 = vld [vmem:[%s18143_s3 + $0xd8] sm:$0x3] }
 0x350   : > { %13474 = vmatmul.mubr.msk.f32.gmra.mxu1 %vm8064_vm4, %v8384_v46  ;;  %13552 = vmatmul.mubr.msk.f32.gmra.mxu0 %vm8064_vm4, %v8978_v16  ;;  %v10250_v44 = vrot.slane %v17580_v43, 1  ;;  %v11688_v16 = vld [vmem:[%s18143_s3 + $0x140] sm:$0xff] }
 0x351   : > { %13476 = vmatprep.mubr.msk.f32.mxu1 %vm13903_vm3, %v18589_v17  ;;  %13554 = vmatprep.mubr.msk.f32.mxu0 %vm13903_vm3, %v18589_v17 }
 0x352   : > { %13572 = vmatprep.subr.mxu0 %v18589_v17  ;;  %13505 = vmatprep.subr.mxu1 %v18589_v17  ;;  %v17600_v61 = vsel %vm8191_vm5, %v17589_v2, %v10250_v44 }
 0x353   : > { %13573 = vmatpush3.msra.mxu0 %v11628_v21  ;;  %v8132_v21 = vld [vmem:[#allocation2 + $0xa1] ss:$2 sm:$0x3f] }
 0x354   : > { %13477 = vmatmul.mubr.msk.f32.gmra.mxu1 %vm8064_vm4, %v17544_v57  ;;  %13555 = vmatmul.mubr.msk.f32.gmra.mxu0 %vm8064_vm4, %v8977_v58  ;;  %v11664_v58 = vld [vmem:[%s18143_s3 + $0x100] sm:$0xff]  ;;  %v9957_v57 = vrot.slane %v17514_v4, 3 }
 0x355   : > { %13483 = vmatprep.mubr.msk.f32.mxu1 %vm13903_vm3, %v18589_v17  ;;  %13574 = vmatprep.mubr.msk.f32.mxu0 %vm13903_vm3, %v18589_v17 }
 0x356   : > { %13596 = vmatprep.subr.mxu0 %v18589_v17  ;;  %v9960_v46 = vsel %vm8480_vm9, %v9957_v57, %v17798_v51 }
 0x358   : > { %13484 = vmatmul.mubr.msk.f32.vlgmr.msra.gmra.mxu1 %vm8064_vm4, %v8483_v34  ;;  %13575 = vmatmul.mubr.msk.f32.vlgmr.msra.gmra.mxu0 %vm8064_vm4, %v17445_v9  ;;  %v11658_v34 = vld [vmem:[%s18143_s3 + $0xf0] sm:$0xff] }
 0x359   : > { %13506 = vmatpush3.msk.msra.mxu1 %vm8203_vm2, %v11599_v50  ;;  %13486 = vmatprep.mubr.msk.f32.mxu1 %vm13903_vm3, %v18589_v17 }
 0x35a   : > { %13577 = vmatprep.mubr.msk.f32.mxu0 %vm13903_vm3, %v18589_v17  ;;  %13507 = vmatprep.subr.mxu1 %v18589_v17 }
 0x35b   : > { %13508 = vmatpush3.msra.mxu1 %v11598_v24  ;;  %13597 = vmatpush3.msk.msra.mxu0 %vm8203_vm2, %v11641_v7  ;;  %v11701_v24 = vld [vmem:[%s18143_s3 + $0x168] sm:$0x3]  ;;  %v8160_v7 = vld [vmem:[#allocation2 + $0xb1] ss:$2 sm:$0x3f] }
 0x35c   : > { %13487 = vmatmul.mubr.msk.f32.gmra.mxu1 %vm8064_vm4, %v8485_v18  ;;  %13578 = vmatmul.mubr.msk.f32.gmra.mxu0 %vm8064_vm4, %v17481_v35 }
 0x35d   : > { %13489 = vmatprep.mubr.msk.f32.mxu1 %vm13903_vm3, %v18589_v17  ;;  %13580 = vmatprep.mubr.msk.f32.mxu0 %vm13903_vm3, %v18589_v17 }
 0x35e   : > { %13598 = vmatprep.subr.mxu0 %v18589_v17  ;;  %13531 = vmatprep.subr.mxu1 %v18589_v17 }
 0x35f   : > { %13599 = vmatpush3.msra.mxu0 %v11640_v3  ;;  %v11700_v3 = vld [vmem:[%s18143_s3 + $0x160] sm:$0xff] }
 0x360   : > { %13490 = vmatmul.mubr.msk.f32.gmra.mxu1 %vm8064_vm4, %v17528_v60  ;;  %13581 = vmatmul.mubr.msk.f32.gmra.mxu0 %vm8064_vm4, %v17516_v49  ;;  %v9270_v60 = vrot.slane %v17516_v49, 1 }
 0x361   : > { %13509 = vmatprep.mubr.msk.f32.mxu1 %vm13903_vm3, %v18589_v17  ;;  %13600 = vmatprep.mubr.msk.f32.mxu0 %vm13903_vm3, %v18589_v17 }
 0x362   : > { %13622 = vmatprep.subr.mxu0 %v18589_v17  ;;  %v9760_v12 = vsel %vm8191_vm5, %v9270_v60, %v9759_v30 }
 0x364   : > { %13510 = vmatmul.mubr.msk.f32.vlgmr.msra.gmra.mxu1 %vm8064_vm4, %v17388_v48  ;;  %13601 = vmatmul.mubr.msk.f32.vlgmr.msra.gmra.mxu0 %vm8064_vm4, %v9368_v29  ;;  %v9370_v48 = vsel %vm8379_vm8, %v9367_v37, %v17547_v6  ;;  %v9860_v37 = vrot.slane %v17569_v8, 2 }
 0x365   : > { %13532 = vmatpush3.msk.msra.mxu1 %vm8203_vm2, %v11611_v28  ;;  %13512 = vmatprep.mubr.msk.f32.mxu1 %vm13903_vm3, %v18589_v17 }
 0x366   : > { %13603 = vmatprep.mubr.msk.f32.mxu0 %vm13903_vm3, %v18589_v17  ;;  %13533 = vmatprep.subr.mxu1 %v18589_v17 }
 0x367   : > { %13534 = vmatpush3.msra.mxu1 %v11610_v22  ;;  %13623 = vmatpush3.msk.msra.mxu0 %vm8203_vm2, %v11653_v23  ;;  %v11670_v22 = vld [vmem:[%s18143_s3 + $0x110] sm:$0xff]  ;;  %v11713_v23 = vld [vmem:[%s18143_s3 + $0x188] sm:$0x3] }
 0x368   : > { %13513 = vmatmul.mubr.msk.f32.gmra.mxu1 %vm8064_vm4, %v17424_v11  ;;  %13604 = vmatmul.mubr.msk.f32.gmra.mxu0 %vm8064_vm4, %v9370_v48  ;;  %v9075_v11 = vsel %vm8581_vm6, %v17408_v32, %v9074_v45  ;;  %v9077_v32 = vsel %vm8581_vm6, %v9074_v45, %v9076_v42  ;;  %v11712_v48 = vld [vmem:[%s18143_s3 + $0x180] sm:$0xff] }
 0x369   : > { %13515 = vmatprep.mubr.msk.f32.mxu1 %vm13903_vm3, %v18589_v17  ;;  %13606 = vmatprep.mubr.msk.f32.mxu0 %vm13903_vm3, %v18589_v17 }
 0x36a   : > { %13624 = vmatprep.subr.mxu0 %v18589_v17  ;;  %13557 = vmatprep.subr.mxu1 %v18589_v17 }
 0x36b   : > { %13625 = vmatpush3.msra.mxu0 %v11652_v56  ;;  %v10547_v56 = vrot.slane %v17580_v43, 4 }
 0x36c   : > { %13516 = vmatmul.mubr.msk.f32.gmra.mxu1 %vm8064_vm4, %v17445_v9  ;;  %13607 = vmatmul.mubr.msk.f32.gmra.mxu0 %vm8064_vm4, %v17547_v6  ;;  %v11622_v9 = vld [vmem:[%s18143_s3 + $0x90] sm:$0xff]  ;;  %v9468_v6 = vrot.slane %v17516_v49, 3 }
 0x36d   : > { %13535 = vmatprep.mubr.msk.f32.mxu1 %vm13903_vm3, %v18589_v17  ;;  %13626 = vmatprep.mubr.msk.f32.mxu0 %vm13903_vm3, %v18589_v17 }
 0x36e   : > { %13648 = vmatprep.subr.mxu0 %v18589_v17  ;;  %v9958_v33 = vsel %vm8480_vm9, %v9468_v6, %v9957_v57  ;;  %v9469_v18 = vsel %vm8480_vm9, %v9466_v10, %v9468_v6  ;;  %v10349_v10 = vrot.slane %v17580_v43, 2 }
 0x370   : > { %13536 = vmatmul.mubr.msk.f32.vlgmr.msra.gmra.mxu1 %vm8064_vm4, %v8877_v5  ;;  %13627 = vmatmul.mubr.msk.f32.vlgmr.msra.gmra.mxu0 %vm8064_vm4, %v9566_v38  ;;  %v10350_v28 = vsel %vm8379_vm8, %v9860_v37, %v10349_v10  ;;  %v11682_v5 = vld [vmem:[%s18143_s3 + $0x130] sm:$0xff]  ;;  %v10056_v38 = vrot.slane %v17514_v4, 4 }
 0x371   : > { %13558 = vmatpush3.msk.msra.mxu1 %vm8203_vm2, %v11623_v14  ;;  %13538 = vmatprep.mubr.msk.f32.mxu1 %vm13903_vm3, %v18589_v17 }
 0x372   : > { %13629 = vmatprep.mubr.msk.f32.mxu0 %vm13903_vm3, %v18589_v17  ;;  %13559 = vmatprep.subr.mxu1 %v18589_v17 }
 0x373   : > { %13560 = vmatpush3.msra.mxu1 %v11622_v9  ;;  %13649 = vmatpush3.msk.msra.mxu0 %vm8203_vm2, %v11665_v36  ;;  %v10057_v9 = vsel %vm8581_vm6, %v17706_v26, %v10056_v38  ;;  %v10059_v36 = vsel %vm8581_vm6, %v10056_v38, %v10058_v62  ;;  %v10668_v38 = vld [vmem:[%s18145_s5 + $0x10] sm:$0xf] }
 0x374   : > { %13539 = vmatmul.mubr.msk.f32.gmra.mxu1 %vm8064_vm4, %v8879_v59  ;;  %13630 = vmatmul.mubr.msk.f32.gmra.mxu0 %vm8064_vm4, %v9568_v53  ;;  %v11706_v53 = vld [vmem:[%s18143_s3 + $0x170] sm:$0xff] }
 0x375   : > { %13541 = vmatprep.mubr.msk.f32.mxu1 %vm13903_vm3, %v18589_v17  ;;  %13632 = vmatprep.mubr.msk.f32.mxu0 %vm13903_vm3, %v18589_v17 }
 0x376   : > { %13650 = vmatprep.subr.mxu0 %v18589_v17  ;;  %13583 = vmatprep.subr.mxu1 %v18589_v17 }
 0x377   : > { %13651 = vmatpush3.msra.mxu0 %v11664_v58 }
 0x378   : > { %13542 = vmatmul.mubr.msk.f32.gmra.mxu1 %vm8064_vm4, %v8878_v19  ;;  %13633 = vmatmul.mubr.msk.f32.gmra.mxu0 %vm8064_vm4, %v17706_v26  ;;  %v11671_v19 = vld [vmem:[%s18143_s3 + $0x118] sm:$0x3] }
 0x379   : > { %13561 = vmatprep.mubr.msk.f32.mxu1 %vm13903_vm3, %v18589_v17  ;;  %13652 = vmatprep.mubr.msk.f32.mxu0 %vm13903_vm3, %v18589_v17  ;;  %v11707_v26 = vld [vmem:[%s18143_s3 + $0x178] sm:$0x3] }
 0x37a   : > { %13674 = vmatprep.subr.mxu0 %v18589_v17 }
 0x37c   : > { %13562 = vmatmul.mubr.msk.f32.vlgmr.msra.gmra.mxu1 %vm8064_vm4, %v9075_v11  ;;  %13653 = vmatmul.mubr.msk.f32.vlgmr.msra.gmra.mxu0 %vm8064_vm4, %v9760_v12 }
 0x37d   : > { %13584 = vmatpush3.msk.msra.mxu1 %vm8203_vm2, %v11635_v15  ;;  %13564 = vmatprep.mubr.msk.f32.mxu1 %vm13903_vm3, %v18589_v17 }
 0x37e   : > { %13655 = vmatprep.mubr.msk.f32.mxu0 %vm13903_vm3, %v18589_v17  ;;  %13585 = vmatprep.subr.mxu1 %v18589_v17 }
 0x37f   : > { %13586 = vmatpush3.msra.mxu1 %v11634_v40  ;;  %13675 = vmatpush3.msk.msra.mxu0 %vm8203_vm2, %v11677_v13 }
 0x380   : > { %13565 = vmatmul.mubr.msk.f32.gmra.mxu1 %vm8064_vm4, %v9077_v32  ;;  %13656 = vmatmul.mubr.msk.f32.gmra.mxu0 %vm8064_vm4, %v9762_v20 }
 0x381   : > { %13567 = vmatprep.mubr.msk.f32.mxu1 %vm13903_vm3, %v18589_v17  ;;  %13658 = vmatprep.mubr.msk.f32.mxu0 %vm13903_vm3, %v18589_v17 }
 0x382   : > { %13676 = vmatprep.subr.mxu0 %v18589_v17  ;;  %13609 = vmatprep.subr.mxu1 %v18589_v17 }
 0x383   : > { %13677 = vmatpush3.msra.mxu0 %v11676_v47 }
 0x384   : > { %13568 = vmatmul.mubr.msk.f32.gmra.mxu1 %vm8064_vm4, %v9076_v42  ;;  %13659 = vmatmul.mubr.msk.f32.gmra.mxu0 %vm8064_vm4, %v17589_v2  ;;  %v8146_v2 = vld [vmem:[#allocation2 + $0xb0] ss:$2 sm:$0x3f]  ;;  %v10548_v42 = vsel %vm8581_vm6, %v10058_v62, %v10547_v56 }
 0x385   : > { %13587 = vmatprep.mubr.msk.f32.mxu1 %vm13903_vm3, %v18589_v17  ;;  %13678 = vmatprep.mubr.msk.f32.mxu0 %vm13903_vm3, %v18589_v17 }
 0x386   : > { %13700 = vmatprep.subr.mxu0 %v18589_v17 }
 0x388   : > { %13588 = vmatmul.mubr.msk.f32.vlgmr.msra.gmra.mxu1 %vm8064_vm4, %v17511_v25  ;;  %13679 = vmatmul.mubr.msk.f32.vlgmr.msra.gmra.mxu0 %vm8064_vm4, %v9958_v33  ;;  %v9271_v25 = vsel %vm8191_vm5, %v9268_v52, %v9270_v60  ;;  %v8110_v52 = vld [vmem:[#allocation2 + $0xa0] ss:$2 sm:$0x3f] }
 0x389   : > { %13610 = vmatpush3.msk.msra.mxu1 %vm8203_vm2, %v11647_v1  ;;  %13590 = vmatprep.mubr.msk.f32.mxu1 %vm13903_vm3, %v18589_v17  ;;  %v8143_v0 = vmax.f32 %v8110_v52, %v8132_v21 }
 0x38a   : > { %13681 = vmatprep.mubr.msk.f32.mxu0 %vm13903_vm3, %v18589_v17  ;;  %13611 = vmatprep.subr.mxu1 %v18589_v17 }
 0x38b   : > { %13612 = vmatpush3.msra.mxu1 %v11646_v41  ;;  %13701 = vmatpush3.msk.msra.mxu0 %vm8203_vm2, %v11689_v55  ;;  %v8157_v50 = vmax.f32 %v8143_v0, %v8146_v2 }
 0x38c   : > { %13591 = vmatmul.mubr.msk.f32.gmra.mxu1 %vm8064_vm4, %v9271_v25  ;;  %13682 = vmatmul.mubr.msk.f32.gmra.mxu0 %vm8064_vm4, %v9960_v46 }
 0x38d   : > { %13593 = vmatprep.mubr.msk.f32.mxu1 %vm13903_vm3, %v18589_v17  ;;  %13684 = vmatprep.mubr.msk.f32.mxu0 %vm13903_vm3, %v18589_v17 }
 0x38e   : > { %13702 = vmatprep.subr.mxu0 %v18589_v17  ;;  %13635 = vmatprep.subr.mxu1 %v18589_v17 }
 0x38f   : > { %13703 = vmatpush3.msra.mxu0 %v11688_v16 }
 0x390   : > { %13594 = vmatmul.mubr.msk.f32.gmra.mxu1 %vm8064_vm4, %v9270_v60  ;;  %13685 = vmatmul.mubr.msk.f32.gmra.mxu0 %vm8064_vm4, %v17798_v51 }
 0x391   : > { %13613 = vmatprep.mubr.msk.f32.mxu1 %vm13903_vm3, %v18589_v17  ;;  %13704 = vmatprep.mubr.msk.f32.mxu0 %vm13903_vm3, %v18589_v17 }
 0x392   : > { %13726 = vmatprep.subr.mxu0 %v18589_v17 }
 0x394   : > { %13614 = vmatmul.mubr.msk.f32.vlgmr.msra.gmra.mxu1 %vm8064_vm4, %v17533_v63  ;;  %13705 = vmatmul.mubr.msk.f32.vlgmr.msra.gmra.mxu0 %vm8064_vm4, %v17569_v8  ;;  %v8171_v63 = vmax.f32 %v8157_v50, %v8160_v7 }
 0x395   : > { %13636 = vmatpush3.msk.msra.mxu1 %vm8203_vm2, %v11659_v39  ;;  %13616 = vmatprep.mubr.msk.f32.mxu1 %vm13903_vm3, %v18589_v17 }
 0x396   : > { %13707 = vmatprep.mubr.msk.f32.mxu0 %vm13903_vm3, %v18589_v17  ;;  %13637 = vmatprep.subr.mxu1 %v18589_v17  ;;  %v17873_v35 = vmax.f32 %v8171_v63, 0.0 }
 0x397   : > { %13638 = vmatpush3.msra.mxu1 %v11658_v34  ;;  %13727 = vmatpush3.msk.msra.mxu0 %vm8203_vm2, %v11701_v24 }
 0x398   : > { %13617 = vmatmul.mubr.msk.f32.gmra.mxu1 %vm8064_vm4, %v9469_v18  ;;  %13708 = vmatmul.mubr.msk.f32.gmra.mxu0 %vm8064_vm4, %v17580_v43  ;;  %v10351_v29 = vrot.slane %v17873_v35, 2  ;;  %v10549_v14 = vrot.slane %v17873_v35, 4  ;;  %v10252_v59 = vrot.slane %v17873_v35, 1 }
 0x399   : > { %13619 = vmatprep.mubr.msk.f32.mxu1 %vm13903_vm3, %v18589_v17  ;;  %13710 = vmatprep.mubr.msk.f32.mxu0 %vm13903_vm3, %v18589_v17 }
 0x39a   : > { %13728 = vmatprep.subr.mxu0 %v18589_v17  ;;  %13661 = vmatprep.subr.mxu1 %v18589_v17  ;;  %v10253_v58 = vsel %vm8191_vm5, %v10250_v44, %v10252_v59  ;;  %v10450_v44 = vrot.slane %v17873_v35, 3 }
 0x39b   : > { %13729 = vmatpush3.msra.mxu0 %v11700_v3 }
 0x39c   : > { %13620 = vmatmul.mubr.msk.f32.gmra.mxu1 %vm8064_vm4, %v9468_v6  ;;  %13711 = vmatmul.mubr.msk.f32.gmra.mxu0 %vm8064_vm4, %v17873_v35 }
 0x39d   : > { %13639 = vmatprep.mubr.msk.f32.mxu1 %vm13903_vm3, %v18589_v17  ;;  %13730 = vmatprep.mubr.msk.f32.mxu0 %vm13903_vm3, %v18589_v17 }
 0x39e   : > { %13752 = vmatprep.subr.mxu0 %v18589_v17 }
 0x3a0   : > { %13640 = vmatmul.mubr.msk.f32.vlgmr.msra.gmra.mxu1 %vm8064_vm4, %v17516_v49  ;;  %13731 = vmatmul.mubr.msk.f32.vlgmr.msra.gmra.mxu0 %vm8064_vm4, %v10350_v28  ;;  %v10352_v49 = vsel %vm8379_vm8, %v10349_v10, %v10351_v29 }
 0x3a1   : > { %13662 = vmatpush3.msk.msra.mxu1 %vm8203_vm2, %v11671_v19  ;;  %13642 = vmatprep.mubr.msk.f32.mxu1 %vm13903_vm3, %v18589_v17 }
 0x3a2   : > { %13733 = vmatprep.mubr.msk.f32.mxu0 %vm13903_vm3, %v18589_v17  ;;  %13663 = vmatprep.subr.mxu1 %v18589_v17 }
 0x3a3   : > { %13664 = vmatpush3.msra.mxu1 %v11670_v22  ;;  %13753 = vmatpush3.msk.msra.mxu0 %vm8203_vm2, %v11713_v23 }
 0x3a4   : > { %13643 = vmatmul.mubr.msk.f32.gmra.mxu1 %vm8064_vm4, %v17514_v4  ;;  %13734 = vmatmul.mubr.msk.f32.gmra.mxu0 %vm8064_vm4, %v10352_v49  ;;  %v11694_v4 = vld [vmem:[%s18143_s3 + $0x150] sm:$0xff] }
 0x3a5   : > { %13645 = vmatprep.mubr.msk.f32.mxu1 %vm13903_vm3, %v18589_v17  ;;  %13736 = vmatprep.mubr.msk.f32.mxu0 %vm13903_vm3, %v18589_v17 }
 0x3a6   : > { %13754 = vmatprep.subr.mxu0 %v18589_v17  ;;  %13687 = vmatprep.subr.mxu1 %v18589_v17 }
 0x3a7   : > { %13755 = vmatpush3.msra.mxu0 %v11712_v48 }
 0x3a8   : > { %13646 = vmatmul.mubr.msk.f32.gmra.mxu1 %vm8064_vm4, %v17569_v8  ;;  %13737 = vmatmul.mubr.msk.f32.gmra.mxu0 %vm8064_vm4, %v10351_v29  ;;  %v10550_v8 = vsel %vm8581_vm6, %v10547_v56, %v10549_v14 }
 0x3a9   : > { %13665 = vmatprep.mubr.msk.f32.mxu1 %vm13903_vm3, %v18589_v17  ;;  %13756 = vmatprep.mubr.msk.f32.mxu0 %vm13903_vm3, %v18589_v17 }
 0x3aa   : > { %13774 = vmatprep.subr.mxu0 %v18589_v17 }
 0x3ac   : > { %13666 = vmatmul.mubr.msk.f32.vlgmr.msra.gmra.mxu1 %vm8064_vm4, %v17564_v31  ;;  %13757 = vmatmul.mubr.msk.f32.vlgmr.msra.gmra.mxu0 %vm8064_vm4, %v10548_v42  ;;  %v9861_v31 = vsel %vm8379_vm8, %v9858_v27, %v9860_v37  ;;  %v11695_v27 = vld [vmem:[%s18143_s3 + $0x158] sm:$0x3] }
 0x3ad   : > { %13688 = vmatpush3.msk.msra.mxu1 %vm8203_vm2, %v11683_v54  ;;  %13668 = vmatprep.mubr.msk.f32.mxu1 %vm13903_vm3, %v18589_v17 }
 0x3ae   : > { %13759 = vmatprep.mubr.msk.f32.mxu0 %vm13903_vm3, %v18589_v17  ;;  %13689 = vmatprep.subr.mxu1 %v18589_v17 }
 0x3af   : > { %13690 = vmatpush3.msra.mxu1 %v11682_v5 }
 0x3b0   : > { %13669 = vmatmul.mubr.msk.f32.gmra.mxu1 %vm8064_vm4, %v9861_v31  ;;  %13760 = vmatmul.mubr.msk.f32.gmra.mxu0 %vm8064_vm4, %v10550_v8 }
 0x3b1   : > { %13671 = vmatprep.mubr.msk.f32.mxu1 %vm13903_vm3, %v18589_v17  ;;  %13762 = vmatprep.mubr.msk.f32.mxu0 %vm13903_vm3, %v18589_v17 }
 0x3b2   : > { %13713 = vmatprep.subr.mxu1 %v18589_v17 }
 0x3b4   : > { %13672 = vmatmul.mubr.msk.f32.gmra.mxu1 %vm8064_vm4, %v9860_v37  ;;  %13763 = vmatmul.mubr.msk.f32.gmra.mxu0 %vm8064_vm4, %v10549_v14 }
 0x3b5   : > { %13691 = vmatprep.mubr.msk.f32.mxu1 %vm13903_vm3, %v18589_v17  ;;  %13790 = vmatprep.mubr.msk.f32.mxu0 %vm13903_vm3, %v18589_v17 }
 0x3b8   : > { %13692 = vmatmul.mubr.msk.f32.vlgmr.msra.gmra.mxu1 %vm8064_vm4, %v10057_v9 }
 0x3b9   : > { %13714 = vmatpush3.msk.msra.mxu1 %vm8203_vm2, %v11695_v27  ;;  %13694 = vmatprep.mubr.msk.f32.mxu1 %vm13903_vm3, %v18589_v17  ;;  %v10667_v27 = vld [vmem:[%s18145_s5 + $0x8] sm:$0xff] }
 0x3ba   : > { %13715 = vmatprep.subr.mxu1 %v18589_v17 }
 0x3bb   : > { %13716 = vmatpush3.msra.mxu1 %v11694_v4 }
 0x3bc   : > { %13695 = vmatmul.mubr.msk.f32.gmra.mxu1 %vm8064_vm4, %v10059_v36  ;;  %13739 = vmatprep.subr.mxu1 %v18589_v17 }
 0x3bd   : > { %13697 = vmatprep.mubr.msk.f32.mxu1 %vm13903_vm3, %v18589_v17 }
 0x3c0   : > { %13698 = vmatmul.mubr.msk.f32.gmra.mxu1 %vm8064_vm4, %v10058_v62 }
 0x3c1   : > { %13717 = vmatprep.mubr.msk.f32.mxu1 %vm13903_vm3, %v18589_v17 }
 0x3c4   : > { %13718 = vmatmul.mubr.msk.f32.vlgmr.msra.gmra.mxu1 %vm8064_vm4, %v17600_v61  ;;  %v10448_v61 = vrot.slane %v17580_v43, 3 }
 0x3c5   : > { %13740 = vmatpush3.msk.msra.mxu1 %vm8203_vm2, %v11707_v26  ;;  %13720 = vmatprep.mubr.msk.f32.mxu1 %vm13903_vm3, %v18589_v17  ;;  %v10666_v26 = vld [vmem:[%s18145_s5] sm:$0xff] }
 0x3c6   : > { %13741 = vmatprep.subr.mxu1 %v18589_v17  ;;  %v10449_v45 = vsel %vm8480_vm9, %v17798_v51, %v10448_v61  ;;  %v10451_v30 = vsel %vm8480_vm9, %v10448_v61, %v10450_v44 }
 0x3c7   : > { %13742 = vmatpush3.msra.mxu1 %v11706_v53 }
 0x3c8   : > { %13721 = vmatmul.mubr.msk.f32.gmra.mxu1 %vm8064_vm4, %v10253_v58  ;;  %13765 = vmatprep.subr.mxu1 %v18589_v17 }
 0x3c9   : > { %13723 = vmatprep.mubr.msk.f32.mxu1 %vm13903_vm3, %v18589_v17 }
 0x3cc   : > { %13724 = vmatmul.mubr.msk.f32.gmra.mxu1 %vm8064_vm4, %v10252_v59 }
 0x3cd   : > { %13743 = vmatprep.mubr.msk.f32.mxu1 %vm13903_vm3, %v18589_v17 }
 0x3d0   : > { %13744 = vmatmul.mubr.msk.f32.vlgmr.msra.gmra.mxu1 %vm8064_vm4, %v10449_v45 }
 0x3d1   : > { %13746 = vmatprep.mubr.msk.f32.mxu1 %vm13903_vm3, %v18589_v17  ;;  %13766 = vmatpush3.msk.msra.mxu1 %vm8581_vm6, %v10668_v38 }
 0x3d2   : > { %13767 = vmatprep.subr.mxu1 %v18589_v17 }
 0x3d3   : > { %13768 = vmatpush3.msra.mxu1 %v10667_v27 }
 0x3d4   : > { %13747 = vmatmul.mubr.msk.f32.gmra.mxu1 %vm8064_vm4, %v10451_v30  ;;  %13769 = vmatprep.subr.mxu1 %v18589_v17 }
 0x3d5   : > { %13749 = vmatprep.mubr.msk.f32.mxu1 %vm13903_vm3, %v18589_v17  ;;  %13770 = vmatpush3.msra.mxu1 %v10666_v26 }
 0x3d8   : > { %13750 = vmatmul.mubr.msk.f32.gmra.mxu1 %vm8064_vm4, %v10450_v44 }
 0x3d9   : > { %13771 = vmatprep.mubr.msk.f32.mxu1 %vm13903_vm3, %v18589_v17 }
 0x3f3   : > { %v8273_v43 = vpop.f32.mrf.mxu1  ;;  %v8662_v60 = vpop.f32.mrf.mxu0 }
 0x3f5   : > { %v13446_v15 = vpop.f32.mrf.mxu1  ;;  %v13498_v11 = vpop.f32.mrf.mxu0 }
 0x3f8   : > { %v8278_v12 = vpop.f32.mrf.mxu1  ;;  %v8667_v40 = vpop.f32.mrf.mxu0 }
 0x3fa   : > { %v13449_v13 = vpop.f32.mrf.mxu1  ;;  %v13501_v32 = vpop.f32.mrf.mxu0 }
 0x3fc   : > { %v8283_v20 = vpop.f32.mrf.mxu1  ;;  %v8672_v47 = vpop.f32.mrf.mxu0 }
 0x3fe   : > { %v13452_v57 = vpop.f32.mrf.mxu1  ;;  %v13504_v6 = vpop.f32.mrf.mxu0 }
 0x3ff   : > { %v10753_v57 = vld [vmem:[%s18147_s7 + $0x30] sm:$0xff] }
 0x400   : > { %v8362_v1 = vpop.f32.mrf.mxu1  ;;  %v8856_v33 = vpop.f32.mrf.mxu0 }
 0x401   : > { %v8363_v51 = vadd.f32 %v8362_v1, %v8273_v43 }
 0x402   : > { %v13459_v41 = vpop.f32.mrf.mxu1  ;;  %v13524_v55 = vpop.f32.mrf.mxu0 }
 0x404   : > { %v8367_v25 = vpop.f32.mrf.mxu1  ;;  %v8861_v46 = vpop.f32.mrf.mxu0 }
 0x405   : > { %v10751_v46 = vld [vmem:[%s18147_s7 + $0x20] sm:$0xff] }
 0x406   : > { %v13462_v16 = vpop.f32.mrf.mxu1  ;;  %v13527_v52 = vpop.f32.mrf.mxu0 }
 0x408   : > { %v8372_v21 = vpop.f32.mrf.mxu1  ;;  %v8866_v2 = vpop.f32.mrf.mxu0 }
 0x409   : > { %v8373_v0 = vadd.f32 %v8372_v21, %v8283_v20 }
 0x40a   : > { %v13465_v39 = vpop.f32.mrf.mxu1  ;;  %v13530_v50 = vpop.f32.mrf.mxu0 }
 0x40c   : > { %v8460_v34 = vpop.f32.mrf.mxu1  ;;  %v18024_v24 = vpop.f32.mrf.mxu0 }
 0x40d   : > { %v8474_v7 = vadd.f32 %v8460_v34, %v8363_v51  ;;  %v10752_v51 = vld [vmem:[%s18147_s7 + $0x28] sm:$0xff] }
 0x40e   : > { %v13472_v63 = vpop.f32.mrf.mxu1  ;;  %v13550_v18 = vpop.f32.mrf.mxu0 }
 0x410   : > { %v8465_v3 = vpop.f32.mrf.mxu1  ;;  %v9059_v35 = vpop.f32.mrf.mxu0 }
 0x412   : > { %v13475_v10 = vpop.f32.mrf.mxu1  ;;  %v13553_v37 = vpop.f32.mrf.mxu0 }
 0x414   : > { %v8470_v19 = vpop.f32.mrf.mxu1  ;;  %v18026_v28 = vpop.f32.mrf.mxu0 }
 0x415   : > { %v8476_v29 = vadd.f32 %v8470_v19, %v8373_v0 }
 0x416   : > { %v13478_v22 = vpop.f32.mrf.mxu1  ;;  %v13556_v23 = vpop.f32.mrf.mxu0 }
 0x418   : > { %v8561_v49 = vpop.f32.mrf.mxu1  ;;  %v18028_v48 = vpop.f32.mrf.mxu0 }
 0x419   : > { %v8575_v56 = vadd.f32 %v8561_v49, %v8474_v7 }
 0x41a   : > { %v13485_v62 = vpop.f32.mrf.mxu1  ;;  %v13576_v54 = vpop.f32.mrf.mxu0 }
 0x41b   : > { %v8676_v42 = vadd.f32 %v8662_v60, %v8575_v56 }
 0x41c   : > { %v8566_v14 = vpop.f32.mrf.mxu1  ;;  %v9253_v5 = vpop.f32.mrf.mxu0 }
 0x41e   : > { %v13488_v31 = vpop.f32.mrf.mxu1  ;;  %v13579_v8 = vpop.f32.mrf.mxu0 }
 0x420   : > { %v8571_v9 = vpop.f32.mrf.mxu1  ;;  %v18036_v4 = vpop.f32.mrf.mxu0 }
 0x421   : > { %v8577_v36 = vadd.f32 %v8571_v9, %v8476_v29 }
 0x422   : > { %v13491_v59 = vpop.f32.mrf.mxu1  ;;  %v13582_v53 = vpop.f32.mrf.mxu0 }
 0x423   : > { %v8678_v58 = vadd.f32 %v8672_v47, %v8577_v36  ;;  %v10754_v47 = vld [vmem:[%s18147_s7 + $0x38] sm:$0xf] }
 0x424   : > { %v8757_v61 = vpop.f32.mrf.mxu1  ;;  %v18044_v45 = vpop.f32.mrf.mxu0  ;;  %13775 = vmatpush3.msk.msra.mxu0 %vm8581_vm6, %v10754_v47 }
 0x425   : > { %v8771_v44 = vadd.f32 %v8757_v61, %v8676_v42  ;;  %13776 = vmatprep.subr.mxu0 %v18589_v17 }
 0x426   : > { %v13511_v30 = vpop.f32.mrf.mxu1  ;;  %v13602_v43 = vpop.f32.mrf.mxu0  ;;  %13777 = vmatpush3.msra.mxu0 %v10753_v57 }
 0x427   : > { %v8870_v60 = vadd.f32 %v8856_v33, %v8771_v44  ;;  %13778 = vmatprep.subr.mxu0 %v18589_v17 }
 0x428   : > { %v8762_v15 = vpop.f32.mrf.mxu1  ;;  %v9451_v11 = vpop.f32.mrf.mxu0  ;;  %13779 = vmatpush3.msra.mxu0 %v10752_v51 }
 0x429   : > { %13780 = vmatprep.subr.mxu0 %v18589_v17 }
 0x42a   : > { %v13514_v12 = vpop.f32.mrf.mxu1  ;;  %v13605_v40 = vpop.f32.mrf.mxu0  ;;  %13781 = vmatpush3.msra.mxu0 %v10751_v46 }
 0x42b   : > { %13782 = vmatprep.subr.mxu0 %v18589_v17 }
 0x42c   : > { %v8767_v13 = vpop.f32.mrf.mxu1  ;;  %v18046_v32 = vpop.f32.mrf.mxu0 }
 0x42d   : > { %v8773_v20 = vadd.f32 %v8767_v13, %v8678_v58 }
 0x42e   : > { %v13517_v6 = vpop.f32.mrf.mxu1  ;;  %v13608_v1 = vpop.f32.mrf.mxu0 }
 0x42f   : > { %v8872_v33 = vadd.f32 %v8866_v2, %v8773_v20  ;;  %v10750_v2 = vld [vmem:[%s18147_s7 + $0x18] sm:$0xff] }
 0x430   : > { %v8955_v41 = vpop.f32.mrf.mxu1  ;;  %v9644_v55 = vpop.f32.mrf.mxu0  ;;  %13783 = vmatpush3.msra.mxu0 %v10750_v2 }
 0x431   : > { %v8969_v25 = vadd.f32 %v8955_v41, %v8870_v60  ;;  %13784 = vmatprep.subr.mxu0 %v18589_v17 }
 0x432   : > { %v13537_v16 = vpop.f32.mrf.mxu1  ;;  %v13628_v52 = vpop.f32.mrf.mxu0 }
 0x433   : > { %v9068_v21 = vadd.f32 %v18024_v24, %v8969_v25 }
 0x434   : > { %v8960_v0 = vpop.f32.mrf.mxu1  ;;  %v9649_v39 = vpop.f32.mrf.mxu0 }
 0x436   : > { %v13540_v50 = vpop.f32.mrf.mxu1  ;;  %v13631_v34 = vpop.f32.mrf.mxu0 }
 0x438   : > { %v8965_v7 = vpop.f32.mrf.mxu1  ;;  %v9654_v63 = vpop.f32.mrf.mxu0 }
 0x439   : > { %v8971_v18 = vadd.f32 %v8965_v7, %v8872_v33 }
 0x43a   : > { %v13543_v24 = vpop.f32.mrf.mxu1  ;;  %v13634_v3 = vpop.f32.mrf.mxu0 }
 0x43b   : > { %v9070_v35 = vadd.f32 %v18026_v28, %v8971_v18 }
 0x43c   : > { %v9153_v10 = vpop.f32.mrf.mxu1  ;;  %v9838_v37 = vpop.f32.mrf.mxu0 }
 0x43d   : > { %v9167_v19 = vadd.f32 %v9153_v10, %v9068_v21 }
 0x43e   : > { %v13563_v29 = vpop.f32.mrf.mxu1  ;;  %v13654_v22 = vpop.f32.mrf.mxu0 }
 0x43f   : > { %v9262_v23 = vadd.f32 %v18028_v48, %v9167_v19 }
 0x440   : > { %v9158_v49 = vpop.f32.mrf.mxu1  ;;  %v9843_v56 = vpop.f32.mrf.mxu0 }
 0x442   : > { %v13566_v62 = vpop.f32.mrf.mxu1  ;;  %v13657_v54 = vpop.f32.mrf.mxu0 }
 0x444   : > { %v9163_v42 = vpop.f32.mrf.mxu1  ;;  %v9848_v14 = vpop.f32.mrf.mxu0 }
 0x445   : > { %v9169_v5 = vadd.f32 %v9163_v42, %v9070_v35 }
 0x446   : > { %v13569_v31 = vpop.f32.mrf.mxu1  ;;  %v13660_v8 = vpop.f32.mrf.mxu0 }
 0x447   : > { %v9264_v38 = vadd.f32 %v18036_v4, %v9169_v5 }
 0x448   : > { %v9347_v27 = vpop.f32.mrf.mxu1  ;;  %v18073_v28 = vpop.f32.mrf.mxu0 }
 0x449   : > { %v9361_v9 = vadd.f32 %v9347_v27, %v9262_v23 }
 0x44a   : > { %v13589_v36 = vpop.f32.mrf.mxu1  ;;  %v13680_v26 = vpop.f32.mrf.mxu0 }
 0x44b   : > { %v9460_v59 = vadd.f32 %v18044_v45, %v9361_v9 }
 0x44c   : > { %v9352_v48 = vpop.f32.mrf.mxu1  ;;  %v10041_v53 = vpop.f32.mrf.mxu0 }
 0x44e   : > { %v13592_v58 = vpop.f32.mrf.mxu1  ;;  %v13683_v61 = vpop.f32.mrf.mxu0 }
 0x450   : > { %v9357_v44 = vpop.f32.mrf.mxu1  ;;  %v18076_v30 = vpop.f32.mrf.mxu0 }
 0x451   : > { %v9363_v43 = vadd.f32 %v9357_v44, %v9264_v38 }
 0x452   : > { %v13595_v60 = vpop.f32.mrf.mxu1  ;;  %v13686_v15 = vpop.f32.mrf.mxu0 }
 0x453   : > { %v9462_v4 = vadd.f32 %v18046_v32, %v9363_v43 }
 0x454   : > { %v9545_v11 = vpop.f32.mrf.mxu1  ;;  %v10230_v12 = vpop.f32.mrf.mxu0 }
 0x455   : > { %v9559_v40 = vadd.f32 %v9545_v11, %v9460_v59 }
 0x456   : > { %v13615_v13 = vpop.f32.mrf.mxu1  ;;  %v13706_v20 = vpop.f32.mrf.mxu0 }
 0x457   : > { %v9658_v47 = vadd.f32 %v9644_v55, %v9559_v40 }
 0x458   : > { %v9550_v57 = vpop.f32.mrf.mxu1  ;;  %v10235_v45 = vpop.f32.mrf.mxu0 }
 0x45a   : > { %v13618_v6 = vpop.f32.mrf.mxu1  ;;  %v13709_v1 = vpop.f32.mrf.mxu0 }
 0x45c   : > { %v9555_v33 = vpop.f32.mrf.mxu1  ;;  %v10240_v51 = vpop.f32.mrf.mxu0 }
 0x45d   : > { %v9561_v41 = vadd.f32 %v9555_v33, %v9462_v4 }
 0x45e   : > { %v13621_v25 = vpop.f32.mrf.mxu1  ;;  %v13712_v46 = vpop.f32.mrf.mxu0 }
 0x45f   : > { %v9660_v16 = vadd.f32 %v9654_v63, %v9561_v41 }
 0x460   : > { %v9739_v52 = vpop.f32.mrf.mxu1  ;;  %v10428_v21 = vpop.f32.mrf.mxu0 }
 0x461   : > { %v9753_v2 = vadd.f32 %v9739_v52, %v9658_v47 }
 0x462   : > { %v13641_v32 = vpop.f32.mrf.mxu1  ;;  %v13732_v0 = vpop.f32.mrf.mxu0 }
 0x463   : > { %v9852_v39 = vadd.f32 %v9838_v37, %v9753_v2 }
 0x464   : > { %v9744_v50 = vpop.f32.mrf.mxu1  ;;  %v10433_v34 = vpop.f32.mrf.mxu0 }
 0x466   : > { %v13644_v7 = vpop.f32.mrf.mxu1  ;;  %v13735_v55 = vpop.f32.mrf.mxu0 }
 0x468   : > { %v9749_v18 = vpop.f32.mrf.mxu1  ;;  %v10438_v24 = vpop.f32.mrf.mxu0 }
 0x469   : > { %v9755_v3 = vadd.f32 %v9749_v18, %v9660_v16  ;;  %v10749_v18 = vld [vmem:[%s18147_s7 + $0x10] sm:$0xff] }
 0x46a   : > { %v13647_v35 = vpop.f32.mrf.mxu1  ;;  %v13738_v10 = vpop.f32.mrf.mxu0  ;;  %13785 = vmatpush3.msra.mxu0 %v10749_v18 }
 0x46b   : > { %v9854_v19 = vadd.f32 %v9848_v14, %v9755_v3  ;;  %13786 = vmatprep.subr.mxu0 %v18589_v17  ;;  %v10747_v3 = vld [vmem:[%s18147_s7] sm:$0xff] }
 0x46c   : > { %v9937_v29 = vpop.f32.mrf.mxu1  ;;  %v10626_v22 = vpop.f32.mrf.mxu0  ;;  %v10669_v35 = vld [vmem:[%s18146_s6] sm:$0x1] }
 0x46d   : > { %v9951_v36 = vadd.f32 %v9937_v29, %v9852_v39 }
 0x46e   : > { %v13667_v23 = vpop.f32.mrf.mxu1  ;;  %v13758_v63 = vpop.f32.mrf.mxu0 }
 0x46f   : > { %v10050_v14 = vadd.f32 %v18073_v28, %v9951_v36  ;;  %v11718_v28 = vld [vmem:[%s18144_s4] ss:$0 sm:$0xff] }
 0x470   : > { %v9942_v49 = vpop.f32.mrf.mxu1  ;;  %v10631_v56 = vpop.f32.mrf.mxu0  ;;  %v10755_v23 = vld [vmem:[%s18148_s8] sm:$0x1] }
 0x472   : > { %v13670_v62 = vpop.f32.mrf.mxu1  ;;  %v13761_v54 = vpop.f32.mrf.mxu0 }
 0x474   : > { %v9947_v42 = vpop.f32.mrf.mxu1  ;;  %v10636_v37 = vpop.f32.mrf.mxu0 }
 0x475   : > { %v9953_v61 = vadd.f32 %v9947_v42, %v9854_v19 }
 0x476   : > { %v13673_v5 = vpop.f32.mrf.mxu1  ;;  %v13764_v31 = vpop.f32.mrf.mxu0 }
 0x477   : > { %v10052_v15 = vadd.f32 %v18076_v30, %v9953_v61 }
 0x478   : > { %v10135_v8 = vpop.f32.mrf.mxu1 }
 0x479   : > { %v10149_v53 = vadd.f32 %v10135_v8, %v10050_v14 }
 0x47a   : > { %v13693_v38 = vpop.f32.mrf.mxu1 }
 0x47b   : > { %v10244_v43 = vadd.f32 %v10230_v12, %v10149_v53 }
 0x47c   : > { %v10140_v27 = vpop.f32.mrf.mxu1 }
 0x47e   : > { %v13696_v9 = vpop.f32.mrf.mxu1 }
 0x480   : > { %v10145_v26 = vpop.f32.mrf.mxu1 }
 0x481   : > { %v10151_v40 = vadd.f32 %v10145_v26, %v10052_v15 }
 0x482   : > { %v13699_v59 = vpop.f32.mrf.mxu1 }
 0x483   : > { %v10246_v57 = vadd.f32 %v10240_v51, %v10151_v40 }
 0x484   : > { %v10329_v48 = vpop.f32.mrf.mxu1 }
 0x485   : > { %v10343_v4 = vadd.f32 %v10329_v48, %v10244_v43 }
 0x486   : > { %v13719_v58 = vpop.f32.mrf.mxu1 }
 0x487   : > { %v10442_v20 = vadd.f32 %v10428_v21, %v10343_v4 }
 0x488   : > { %v10334_v44 = vpop.f32.mrf.mxu1 }
 0x48a   : > { %v13722_v60 = vpop.f32.mrf.mxu1 }
 0x48c   : > { %v10339_v11 = vpop.f32.mrf.mxu1 }
 0x48d   : > { %v10345_v1 = vadd.f32 %v10339_v11, %v10246_v57 }
 0x48e   : > { %v13725_v13 = vpop.f32.mrf.mxu1 }
 0x48f   : > { %v10444_v30 = vadd.f32 %v10438_v24, %v10345_v1  ;;  %v10748_v24 = vld [vmem:[%s18147_s7 + $0x8] sm:$0xff] }
 0x490   : > { %v10527_v47 = vpop.f32.mrf.mxu1  ;;  %13787 = vmatpush3.msra.mxu0 %v10748_v24 }
 0x491   : > { %v10541_v45 = vadd.f32 %v10527_v47, %v10442_v20  ;;  %13788 = vmatprep.subr.mxu0 %v18589_v17 }
 0x492   : > { %v13745_v6 = vpop.f32.mrf.mxu1  ;;  %13789 = vmatpush3.msra.mxu0 %v10747_v3 }
 0x493   : > { %v10640_v33 = vadd.f32 %v10626_v22, %v10541_v45 }
 0x494   : > { %v10532_v12 = vpop.f32.mrf.mxu1 }
 0x495   : > { %v10650_v41 = vadd.f32 %v11718_v28, %v10640_v33 }
 0x496   : > { %v13748_v25 = vpop.f32.mrf.mxu1 }
 0x497   : > { %10654 = vst.msk [vmem:[#allocation3] sm:$0xff] %vm10653_vm10, %v10650_v41 }
 0x498   : > { %v10537_v46 = vpop.f32.mrf.mxu1 }
 0x499   : > { %v10543_v16 = vadd.f32 %v10537_v46, %v10444_v30 }
 0x49a   : > { %v13751_v52 = vpop.f32.mrf.mxu1 }
 0x49b   : > { %v10642_v21 = vadd.f32 %v10636_v37, %v10543_v16 }
 0x49d   : > { %v10652_v51 = vadd.f32 %v11718_v28, %v10642_v21 }
 0x49e   : > { %v10658_v2 = vld [vmem:[#allocation3] sm:$0x1]  ;;  %v10659_v32 = vld [vmem:[#allocation3 + $0x1] sm:$0x1] }
 0x49f   : > { %10657 = vst.msk [vmem:[#allocation3 + $0x10] sm:$0x3] %vm10656_vm11, %v10652_v51  ;;  %v10660_v0 = vmax.f32 %v10658_v2, %v10659_v32 }
 0x4a6   : > { %v10661_v39 = vld [vmem:[#allocation3 + $0x10] sm:$0x1]  ;;  %v10663_v34 = vld [vmem:[#allocation3 + $0x11] sm:$0x1] }
 0x4a7   : > { %v10662_v50 = vmax.f32 %v10660_v0, %v10661_v39 }
 0x4a9   : > { %v10664_v7 = vmax.f32 %v10662_v50, %v10663_v34 }
 0x4ab   : > { %v10665_v55 = vmax.f32 %v10664_v7, 0.0 }
 0x4ad   : > { %13772 = vmatmul.mubr.msk.f32.vlgmr.msra.gmra.mxu1 %vm10653_vm10, %v10665_v55 }
 0x56d   : > { %v10742_v10 = vpop.f32.mrf.mxu1 }
 0x56e   : > { %v10743_v19 = vadd.f32 %v10742_v10, %v10669_v35 }
 0x56f   : > { %v13773_v29 = vpop.f32.mrf.mxu1 }
 0x570   : > { %v10746_v22 = vmax.f32 %v10743_v19, 0.0 }
 0x572   : > { %13791 = vmatmul.mubr.msk.f32.vlgmr.msra.gmra.mxu0 %vm10756_vm12, %v10746_v22 }
 0x632   : > { %v10829_v63 = vpop.f32.mrf.mxu0 }
 0x633   : > { %v10830_v17 = vadd.f32 %v10829_v63, %v10755_v23 }
 0x634   : > { %v13792_v49 = vpop.f32.mrf.mxu0 }
 0x635   : > { %v10834_v56 = vsel %vm10833_vm13, %v10830_v17, -inf }
 0x636   : > { %10835 = vmax.xlane.f32.xlu0 %v10834_v56 }
 0x6bf   : > { %v10836_v62 = vpop.xlane.xlu0 %10835 }
 0x6c0   : > { %v10837_v54 = vsub.f32 %v10830_v17, %v10836_v62 }
 0x6c2   : > { %v10838_v42 = vmul.f32 1.442695, %v10837_v54 }
 0x6c4   : > { %13836 = vpow2.f32 %v10838_v42 }
 0x6d1   : > { %v13837_v37 = vpop.eup %13836 }
 0x6d2   : > { %v10840_v5 = vsel %vm10833_vm13, %v13837_v37, 0.0 }
 0x6d3   : > { %10841 = vadd.xlane.f32.xlu0 %v10840_v5 }
 0x75c   : > { %v10842_v31 = vpop.xlane.xlu0 %10841 }
 0x75d   : > { %13838 = vrcp.f32 %v10842_v31 }
 0x76a   : > { %v13839_v8 = vpop.eup %13838 }
 0x76b   : > { %v10844_v38 = vmul.f32 %v13839_v8, %v13837_v37 }
 0x76d   : > { %10845 = vst.msk [vmem:[%s324_s16] sm:$0x1] %vm10833_vm13, %v10844_v38 }
 0x76e   : > { %13853 = shalt.err (!%p13850_p3)
}
 0x76f   : > { %s13854_s28 = scalar_lea.hbm %s10857_s23, 16  ;;  %s13858_s16 = scalar_lea.hbm %s18149_s9, 32 }
 0x770   : > { %p13855_p4 = scmp.ne.s32.totalorder %s10857_s23, %s13854_s28  ;;  %p13859_p9 = scmp.lt.s32.totalorder %s10857_s23, %s18149_s9 }
 0x771   : > { %p13860_p10 = scmp.lt.s32.totalorder %s13858_s16, %s13854_s28 }
 0x772   : > { %p13856_p7 = pnand %p13855_p4, %p13993_p5 }
 0x773   : > { %p13861_p11 = por %p13860_p10, %p13859_p9 }
 0x774   : > { %p13857_p8 = pneg %p13856_p7 }
 0x776   : > { %p13862_p12 = pnand %p13861_p11, %p13857_p8 }
 0x778   : > { %13865 = shalt.err (!%p13862_p12)
}
 0x779   : > { %13795 = dma.vmem_to_hbm [thread:$0]  (%p13993_p5), %s10860_s17, 16, %s10857_s23, %s10847_s24  }
 0x77a PF: > { %p13801_p13 = scmp.ge.s32.totalorder %s13900_s12, 2  ;;  %s10871_s25 = sand.u32 1, %s13888_s30  }
 0x77b   : > { %s10872_s26 = scalar_lea.sflag [#allocation5], %s10871_s25 }
 0x77c   : > { %p13798_p0 = pnand %p13801_p13, %p13997_p6 }
 0x77e   : > { %p13799_p1 = pneg %p13798_p0 }
 0x780   : > { %13883 = dma.done.wait (%p13799_p1), %s10872_s26, 16  }
 0x781   : > { %13885 = vsyncadd (%p13799_p1), %s10872_s26, 4294967280  ;;  %p19_p2 = scmp.ge.s32.totalorder %s13980_s15, 4   ;;  %s18593_s30 = smov %s13892_s10 }
 0x782   : > { %s18594_s10 = smov %s13896_s11  ;;  %s18595_s11 = smov %s13991_s18 }
 0x783   : > { %s18596_s12 = smov %s13980_s15  ;;  %21 = sbr.rel (!%p19_p2) target bundleno = 3 (0x3), region = 162 }
 0x788   :  { %10876 = vsyncpa [#allocation5], 1 }
 0x789   :  { %10878 = vsyncpa [#allocation5 + $0x1], 1 }

</bundles_post_ra>
